<compile_context>
chip_gen: v7x
topology: tpu7x:2x2x1
jax: 0.10.0
libtpu: 0.0.40
codegen_flags: <defaults>
</compile_context>

<pallas_src>
import jax
import jax.numpy as jnp
from jax.experimental import pallas as pl
from jax.experimental.pallas import tpu as pltpu


def _rup(x, m):
    return (x + m - 1) // m * m


def _cdiv(a, b):
    return (a + b - 1) // b


# ---------------------------------------------------------------------------
# Row-tile selection with lane/sublane-padding-aware VMEM accounting.
# ---------------------------------------------------------------------------
def _pick_row_tile(ho, wo, cin, cout, stride, batch, budget_bytes=10 << 20):
    lane_in = _rup(max(cin, 1), 128)
    lane_out = _rup(max(cout, 1), 128)

    def est(tr):
        if stride == 1:
            in_rows, in_cols = tr + 2, wo + 2
        else:
            in_rows, in_cols = 2 * (tr + 1), 2 * (wo + 1)
        in_blk = in_rows * _rup(in_cols, 16) * lane_in * 2       # bf16 input block
        out_blk = tr * _rup(max(wo, 1), 16) * lane_out * 2       # bf16 output block
        acc_val = _rup(tr * wo, 8) * lane_out * 4                # f32 accumulator value
        lhs_val = _rup(tr * wo, 16) * lane_in * 2                # bf16 tap operand
        w_blk = 9 * _rup(cin, 16) * lane_out * 2
        # 2x on pipelined blocks (double buffering), 2x slack on tap operands.
        return 2 * in_blk + 2 * out_blk + acc_val + 2 * lhs_val + w_blk

    tr = _rup(ho, 8)
    # Target >= 4 grid steps (>= 2 blocks per v7x TensorCore) when rows allow it.
    min_tiles = max(1, _cdiv(4, max(batch, 1)))
    if min_tiles > 1 and ho >= 8 * min_tiles:
        tr = min(tr, _rup(_cdiv(ho, min_tiles), 8))
    while tr > 8 and est(tr) > budget_bytes:
        tr -= 8
    tr = max(tr, 8)
    n_t = _cdiv(ho, tr)
    tr = _rup(_cdiv(ho, n_t), 8)   # rebalance so the padded tail rows are minimal
    return tr, n_t


# ---------------------------------------------------------------------------
# Wrapper-side tile preparation (pure layout plumbing; fuses in XLA).
# ---------------------------------------------------------------------------
def _prepare_tiles_s1(xp, tr, n_t):
    """Stride-1: overlapping (tr+2)-row slabs of the padded NHWC input."""
    b, hp, wp, c = xp.shape
    need_rows = n_t * tr + 2
    if need_rows > hp:
        xp = jnp.pad(xp, ((0, 0), (0, need_rows - hp), (0, 0), (0, 0)))
    tiles = [xp[:, t * tr: t * tr + tr + 2] for t in range(n_t)]
    x_tiled = jnp.stack(tiles, axis=1)                   # (B, n_t, tr+2, wp, c)
    return x_tiled.reshape(b * n_t, tr + 2, wp, c)


def _prepare_tiles_s2(xp, tr, n_t, wo):
    """Stride-2: 2x2 phase split (space-to-depth) + overlapping (tr+1)-row phase slabs.

    Layout per tile: rows = [even-row phase ; odd-row phase], each tr+1 rows;
                     cols = [even-col phase ; odd-col phase], each wo+1 pixels.
    Every 3x3 tap then maps to a *contiguous* slice of the tile.
    """
    b, hp, wp, c = xp.shape
    need_r = 2 * (n_t * tr + 1)
    if need_r > hp:
        xp = jnp.pad(xp, ((0, 0), (0, need_r - hp), (0, 0), (0, 0)))
    need_c = 2 * (wo + 1)
    if need_c > wp:
        xp = jnp.pad(xp, ((0, 0), (0, 0), (0, need_c - wp), (0, 0)))
    xe, xo = xp[:, 0::2], xp[:, 1::2]                    # row phases

    def colsplit(a):
        return jnp.concatenate([a[:, :, 0::2, :], a[:, :, 1::2, :]], axis=2)

    xe, xo = colsplit(xe), colsplit(xo)                  # (..., 2*(wo+1), c)
    tiles = []
    for t in range(n_t):
        te = xe[:, t * tr: t * tr + tr + 1]
        to = xo[:, t * tr: t * tr + tr + 1]
        tiles.append(jnp.concatenate([te, to], axis=1))  # (B, 2*(tr+1), 2*(wo+1), c)
    x_tiled = jnp.stack(tiles, axis=1)
    return x_tiled.reshape(b * n_t, 2 * (tr + 1), 2 * (wo + 1), c)


# ---------------------------------------------------------------------------
# Fused 3x3 conv (pad=1) + folded eval-mode BatchNorm + ReLU.
# ---------------------------------------------------------------------------
def conv3x3_bn_relu(x, w_hwio, scale, bias, stride):
    """NHWC bf16 in / NHWC bf16 out.  Heavy compute runs in one Pallas kernel per conv."""
    b, h, w, cin = x.shape
    cout = w_hwio.shape[-1]
    ho = (h + 2 - 3) // stride + 1
    wo = (w + 2 - 3) // stride + 1

    x = x.astype(jnp.bfloat16)
    xp = jnp.pad(x, ((0, 0), (1, 1), (1, 1), (0, 0)))

    tr, n_t = _pick_row_tile(ho, wo, cin, cout, stride, b)

    if stride == 1:
        x_tiled = _prepare_tiles_s1(xp, tr, n_t)
        offsets = [(kh, kw) for kh in range(3) for kw in range(3)]
    else:
        x_tiled = _prepare_tiles_s2(xp, tr, n_t, wo)
        offsets = [((kh % 2) * (tr + 1) + kh // 2, (kw % 2) * (wo + 1) + kw // 2)
                   for kh in range(3) for kw in range(3)]

    in_rows, in_cols = int(x_tiled.shape[1]), int(x_tiled.shape[2])

    # Fold BN scale into the conv weights (f32), cast to bf16 for the MXU.
    wmat = (w_hwio.reshape(9, cin, cout).astype(jnp.float32)
            * scale.reshape(1, 1, cout).astype(jnp.float32)).astype(jnp.bfloat16)
    bias2 = bias.reshape(1, cout).astype(jnp.float32)

    def kernel(x_ref, w_ref, b_ref, o_ref):
        # x_ref: (1, in_rows, in_cols, cin) bf16 haloed (phase-split) input slab
        # w_ref: (9, cin, cout) bf16 BN-folded weights (resident across grid steps)
        # b_ref: (1, cout) f32 folded BN bias
        # o_ref: (1, tr, wo, cout) bf16 output tile
        acc = None
        for k, (r0, c0) in enumerate(offsets):            # static 9-tap loop
            slab = x_ref[0, r0:r0 + tr, c0:c0 + wo, :]     # (tr, wo, cin), contiguous
            lhs = slab.reshape(tr * wo, cin)
            part = jnp.dot(lhs, w_ref[k], preferred_element_type=jnp.float32)
            acc = part if acc is None else acc + part
        out = jnp.maximum(acc + b_ref[...], 0.0).astype(o_ref.dtype)
        o_ref[...] = out.reshape(1, tr, wo, cout)

    cost = pl.CostEstimate(
        flops=2 * b * ho * wo * 9 * cin * cout,
        transcendentals=0,
        bytes_accessed=(x_tiled.size * 2 + wmat.size * 2 + bias2.size * 4
                        + b * n_t * tr * wo * cout * 2),
    )

    out = pl.pallas_call(
        kernel,
        out_shape=jax.ShapeDtypeStruct((b * n_t, tr, wo, cout), jnp.bfloat16),
        grid=(b * n_t,),
        in_specs=[
            pl.BlockSpec((1, in_rows, in_cols, cin), lambda i: (i, 0, 0, 0)),
            pl.BlockSpec((9, cin, cout), lambda i: (0, 0, 0)),   # constant -> stays resident
            pl.BlockSpec((1, cout), lambda i: (0, 0)),
        ],
        out_specs=pl.BlockSpec((1, tr, wo, cout), lambda i: (i, 0, 0, 0)),
        compiler_params=pltpu.CompilerParams(
            dimension_semantics=("parallel",),
            vmem_limit_bytes=32 * 1024 * 1024,
        ),
        cost_estimate=cost,
    )(x_tiled, wmat, bias2)

    # Padded tail rows were computed from explicit zero padding; drop them here.
    out = out.reshape(b, n_t * tr, wo, cout)[:, :ho]
    return out


# ---------------------------------------------------------------------------
# Deterministic parameter construction (synthetic; no checkpoint loading).
# ---------------------------------------------------------------------------
def _make_conv_bn_params(key, cin, cout):
    w = jax.random.normal(key, (3, 3, cin, cout), dtype=jnp.float32) * 0.05
    gamma = 1.0 + 0.01 * jnp.arange(cout, dtype=jnp.float32)
    beta = 0.02 * jnp.arange(cout, dtype=jnp.float32)
    running_mean = jnp.zeros((cout,), jnp.float32)
    running_var = jnp.ones((cout,), jnp.float32)
    eps = 1e-5
    scale = gamma / jnp.sqrt(running_var + eps)
    bias = beta - running_mean * scale
    return w, scale, bias


def make_dgmn2_params(key, in_chans=3, embed_dims=(16, 32, 64, 128)):
    keys = jax.random.split(key, 6)
    mid = embed_dims[0] // 2
    params = {
        # PatchEmbed_stage1: conv(s2) -> conv(s1) -> conv(s2), each + BN + ReLU
        "pe1": [
            (*_make_conv_bn_params(keys[0], in_chans, mid), 2),
            (*_make_conv_bn_params(keys[1], mid, mid), 1),
            (*_make_conv_bn_params(keys[2], mid, embed_dims[0]), 2),
        ],
        # PatchEmbed stages 2..4: single conv(s2) + BN + ReLU
        "pe2": [(*_make_conv_bn_params(keys[3], embed_dims[0], embed_dims[1]), 2)],
        "pe3": [(*_make_conv_bn_params(keys[4], embed_dims[1], embed_dims[2]), 2)],
        "pe4": [(*_make_conv_bn_params(keys[5], embed_dims[2], embed_dims[3]), 2)],
    }
    return params


# ---------------------------------------------------------------------------
# DGMN2 forward_features: four feature maps (NCHW, strides 4/8/16/32).
# ---------------------------------------------------------------------------
def dgmn2_forward(x_nchw, params):
    # Internal chain stays NHWC bf16; NCHW f32 is only materialized for the outputs.
    x = jnp.transpose(x_nchw, (0, 2, 3, 1)).astype(jnp.bfloat16)
    outs = []
    for stage in ("pe1", "pe2", "pe3", "pe4"):
        for (w, scale, bias, stride) in params[stage]:
            x = conv3x3_bn_relu(x, w, scale, bias, stride)
        # Reference does (B,C,H,W)->(B,HW,C)->blocks->(B,C,H,W); with the blocks as
        # identity this round-trip is a no-op on the NHWC tensor.
        # TODO(synk): DGMN2Block definition not provided in the reference module.
        outs.append(jnp.transpose(x, (0, 3, 1, 2)).astype(jnp.float32))
    return outs


if __name__ == "__main__":
    key = jax.random.PRNGKey(0)
    pkey, xkey = jax.random.split(key)

    in_chans = 3
    embed_dims = (16, 32, 64, 128)
    params = make_dgmn2_params(pkey, in_chans=in_chans, embed_dims=embed_dims)

    # Small NCHW input consistent with the module.
    x = jax.random.normal(xkey, (2, in_chans, 32, 32), dtype=jnp.float32)

    fwd = jax.jit(lambda inp: dgmn2_forward(inp, params))
    outs = fwd(x)
    outs = [jax.block_until_ready(o) for o in outs]

    expected = [
        (2, embed_dims[0], 8, 8),
        (2, embed_dims[1], 4, 4),
        (2, embed_dims[2], 2, 2),
        (2, embed_dims[3], 1, 1),
    ]
    assert [tuple(o.shape) for o in outs] == expected, [tuple(o.shape) for o in outs]
    assert all(bool(jnp.all(o >= 0.0)) for o in outs)  # ReLU outputs
    assert all(bool(jnp.all(jnp.isfinite(o))) for o in outs)
    print("KERNEL_OK")
</pallas_src>

<mosaic_0001>
module attributes {stable_mosaic.version = 11 : i64} {
  func.func @kernel(%arg0: i32, %arg1: memref<1x18x34x3xbf16, #tpu.memory_space<vmem>>, %arg2: memref<9x3x8xbf16, #tpu.memory_space<vmem>>, %arg3: memref<1x8xf32, #tpu.memory_space<vmem>>, %arg4: memref<1x8x16x8xbf16, #tpu.memory_space<vmem>>) attributes {dimension_semantics = [#tpu.dimension_semantics<parallel>], iteration_bounds = array<i64: 4>, scalar_prefetch = 0 : i64, scratch_operands = 0 : i64, tpu.core_type = #tpu.core_type<tc>, window_params = [{transform_indices = @transform_0, window_bounds = array<i64: 1, 18, 34, 3>}, {pipeline_mode = #tpu.pipeline_mode<synchronous>, transform_indices = @transform_1, window_bounds = array<i64: 9, 3, 8>}, {pipeline_mode = #tpu.pipeline_mode<synchronous>, transform_indices = @transform_2, window_bounds = array<i64: 1, 8>}, {transform_indices = @transform_3, window_bounds = array<i64: 1, 8, 16, 8>}]} {
    %c0 = arith.constant 0 : index
    %c0_0 = arith.constant 0 : index
    %c0_1 = arith.constant 0 : index
    %c0_2 = arith.constant 0 : index
    %0 = vector.load %arg1[%c0, %c0_0, %c0_1, %c0_2] : memref<1x18x34x3xbf16, #tpu.memory_space<vmem>>, vector<1x8x16x3xbf16>
    %1 = vector.shape_cast %0 : vector<1x8x16x3xbf16> to vector<8x16x3xbf16>
    %2 = vector.shape_cast %1 : vector<8x16x3xbf16> to vector<128x3xbf16>
    %c0_3 = arith.constant 0 : index
    %c0_4 = arith.constant 0 : index
    %c0_5 = arith.constant 0 : index
    %3 = vector.load %arg2[%c0_3, %c0_4, %c0_5] : memref<9x3x8xbf16, #tpu.memory_space<vmem>>, vector<1x3x8xbf16>
    %4 = vector.shape_cast %3 : vector<1x3x8xbf16> to vector<3x8xbf16>
    %cst = arith.constant dense<0.000000e+00> : vector<128x8xf32>
    %5 = tpu.matmul %2, %4, %cst {dimension_numbers = #tpu.dot_dimension_numbers<[1], [0], [0], [1], [0, 0, 1, 1], [], []>} : vector<128x3xbf16>, vector<3x8xbf16>, vector<128x8xf32> -> vector<128x8xf32>
    %c0_6 = arith.constant 0 : index
    %c0_7 = arith.constant 0 : index
    %c17 = arith.constant 17 : index
    %c0_8 = arith.constant 0 : index
    %6 = vector.load %arg1[%c0_6, %c0_7, %c17, %c0_8] : memref<1x18x34x3xbf16, #tpu.memory_space<vmem>>, vector<1x8x16x3xbf16>
    %7 = vector.shape_cast %6 : vector<1x8x16x3xbf16> to vector<8x16x3xbf16>
    %8 = vector.shape_cast %7 : vector<8x16x3xbf16> to vector<128x3xbf16>
    %c1 = arith.constant 1 : index
    %c0_9 = arith.constant 0 : index
    %c0_10 = arith.constant 0 : index
    %9 = vector.load %arg2[%c1, %c0_9, %c0_10] : memref<9x3x8xbf16, #tpu.memory_space<vmem>>, vector<1x3x8xbf16>
    %10 = vector.shape_cast %9 : vector<1x3x8xbf16> to vector<3x8xbf16>
    %cst_11 = arith.constant dense<0.000000e+00> : vector<128x8xf32>
    %11 = tpu.matmul %8, %10, %cst_11 {dimension_numbers = #tpu.dot_dimension_numbers<[1], [0], [0], [1], [0, 0, 1, 1], [], []>} : vector<128x3xbf16>, vector<3x8xbf16>, vector<128x8xf32> -> vector<128x8xf32>
    %12 = arith.addf %5, %11 : vector<128x8xf32>
    %c0_12 = arith.constant 0 : index
    %c0_13 = arith.constant 0 : index
    %c1_14 = arith.constant 1 : index
    %c0_15 = arith.constant 0 : index
    %13 = vector.load %arg1[%c0_12, %c0_13, %c1_14, %c0_15] : memref<1x18x34x3xbf16, #tpu.memory_space<vmem>>, vector<1x8x16x3xbf16>
    %14 = vector.shape_cast %13 : vector<1x8x16x3xbf16> to vector<8x16x3xbf16>
    %15 = vector.shape_cast %14 : vector<8x16x3xbf16> to vector<128x3xbf16>
    %c2 = arith.constant 2 : index
    %c0_16 = arith.constant 0 : index
    %c0_17 = arith.constant 0 : index
    %16 = vector.load %arg2[%c2, %c0_16, %c0_17] : memref<9x3x8xbf16, #tpu.memory_space<vmem>>, vector<1x3x8xbf16>
    %17 = vector.shape_cast %16 : vector<1x3x8xbf16> to vector<3x8xbf16>
    %cst_18 = arith.constant dense<0.000000e+00> : vector<128x8xf32>
    %18 = tpu.matmul %15, %17, %cst_18 {dimension_numbers = #tpu.dot_dimension_numbers<[1], [0], [0], [1], [0, 0, 1, 1], [], []>} : vector<128x3xbf16>, vector<3x8xbf16>, vector<128x8xf32> -> vector<128x8xf32>
    %19 = arith.addf %12, %18 : vector<128x8xf32>
    %c0_19 = arith.constant 0 : index
    %c9 = arith.constant 9 : index
    %c0_20 = arith.constant 0 : index
    %c0_21 = arith.constant 0 : index
    %20 = vector.load %arg1[%c0_19, %c9, %c0_20, %c0_21] : memref<1x18x34x3xbf16, #tpu.memory_space<vmem>>, vector<1x8x16x3xbf16>
    %21 = vector.shape_cast %20 : vector<1x8x16x3xbf16> to vector<8x16x3xbf16>
    %22 = vector.shape_cast %21 : vector<8x16x3xbf16> to vector<128x3xbf16>
    %c3 = arith.constant 3 : index
    %c0_22 = arith.constant 0 : index
    %c0_23 = arith.constant 0 : index
    %23 = vector.load %arg2[%c3, %c0_22, %c0_23] : memref<9x3x8xbf16, #tpu.memory_space<vmem>>, vector<1x3x8xbf16>
    %24 = vector.shape_cast %23 : vector<1x3x8xbf16> to vector<3x8xbf16>
    %cst_24 = arith.constant dense<0.000000e+00> : vector<128x8xf32>
    %25 = tpu.matmul %22, %24, %cst_24 {dimension_numbers = #tpu.dot_dimension_numbers<[1], [0], [0], [1], [0, 0, 1, 1], [], []>} : vector<128x3xbf16>, vector<3x8xbf16>, vector<128x8xf32> -> vector<128x8xf32>
    %26 = arith.addf %19, %25 : vector<128x8xf32>
    %c0_25 = arith.constant 0 : index
    %c9_26 = arith.constant 9 : index
    %c17_27 = arith.constant 17 : index
    %c0_28 = arith.constant 0 : index
    %27 = vector.load %arg1[%c0_25, %c9_26, %c17_27, %c0_28] : memref<1x18x34x3xbf16, #tpu.memory_space<vmem>>, vector<1x8x16x3xbf16>
    %28 = vector.shape_cast %27 : vector<1x8x16x3xbf16> to vector<8x16x3xbf16>
    %29 = vector.shape_cast %28 : vector<8x16x3xbf16> to vector<128x3xbf16>
    %c4 = arith.constant 4 : index
    %c0_29 = arith.constant 0 : index
    %c0_30 = arith.constant 0 : index
    %30 = vector.load %arg2[%c4, %c0_29, %c0_30] : memref<9x3x8xbf16, #tpu.memory_space<vmem>>, vector<1x3x8xbf16>
    %31 = vector.shape_cast %30 : vector<1x3x8xbf16> to vector<3x8xbf16>
    %cst_31 = arith.constant dense<0.000000e+00> : vector<128x8xf32>
    %32 = tpu.matmul %29, %31, %cst_31 {dimension_numbers = #tpu.dot_dimension_numbers<[1], [0], [0], [1], [0, 0, 1, 1], [], []>} : vector<128x3xbf16>, vector<3x8xbf16>, vector<128x8xf32> -> vector<128x8xf32>
    %33 = arith.addf %26, %32 : vector<128x8xf32>
    %c0_32 = arith.constant 0 : index
    %c9_33 = arith.constant 9 : index
    %c1_34 = arith.constant 1 : index
    %c0_35 = arith.constant 0 : index
    %34 = vector.load %arg1[%c0_32, %c9_33, %c1_34, %c0_35] : memref<1x18x34x3xbf16, #tpu.memory_space<vmem>>, vector<1x8x16x3xbf16>
    %35 = vector.shape_cast %34 : vector<1x8x16x3xbf16> to vector<8x16x3xbf16>
    %36 = vector.shape_cast %35 : vector<8x16x3xbf16> to vector<128x3xbf16>
    %c5 = arith.constant 5 : index
    %c0_36 = arith.constant 0 : index
    %c0_37 = arith.constant 0 : index
    %37 = vector.load %arg2[%c5, %c0_36, %c0_37] : memref<9x3x8xbf16, #tpu.memory_space<vmem>>, vector<1x3x8xbf16>
    %38 = vector.shape_cast %37 : vector<1x3x8xbf16> to vector<3x8xbf16>
    %cst_38 = arith.constant dense<0.000000e+00> : vector<128x8xf32>
    %39 = tpu.matmul %36, %38, %cst_38 {dimension_numbers = #tpu.dot_dimension_numbers<[1], [0], [0], [1], [0, 0, 1, 1], [], []>} : vector<128x3xbf16>, vector<3x8xbf16>, vector<128x8xf32> -> vector<128x8xf32>
    %40 = arith.addf %33, %39 : vector<128x8xf32>
    %c0_39 = arith.constant 0 : index
    %c1_40 = arith.constant 1 : index
    %c0_41 = arith.constant 0 : index
    %c0_42 = arith.constant 0 : index
    %41 = vector.load %arg1[%c0_39, %c1_40, %c0_41, %c0_42] : memref<1x18x34x3xbf16, #tpu.memory_space<vmem>>, vector<1x8x16x3xbf16>
    %42 = vector.shape_cast %41 : vector<1x8x16x3xbf16> to vector<8x16x3xbf16>
    %43 = vector.shape_cast %42 : vector<8x16x3xbf16> to vector<128x3xbf16>
    %c6 = arith.constant 6 : index
    %c0_43 = arith.constant 0 : index
    %c0_44 = arith.constant 0 : index
    %44 = vector.load %arg2[%c6, %c0_43, %c0_44] : memref<9x3x8xbf16, #tpu.memory_space<vmem>>, vector<1x3x8xbf16>
    %45 = vector.shape_cast %44 : vector<1x3x8xbf16> to vector<3x8xbf16>
    %cst_45 = arith.constant dense<0.000000e+00> : vector<128x8xf32>
    %46 = tpu.matmul %43, %45, %cst_45 {dimension_numbers = #tpu.dot_dimension_numbers<[1], [0], [0], [1], [0, 0, 1, 1], [], []>} : vector<128x3xbf16>, vector<3x8xbf16>, vector<128x8xf32> -> vector<128x8xf32>
    %47 = arith.addf %40, %46 : vector<128x8xf32>
    %c0_46 = arith.constant 0 : index
    %c1_47 = arith.constant 1 : index
    %c17_48 = arith.constant 17 : index
    %c0_49 = arith.constant 0 : index
    %48 = vector.load %arg1[%c0_46, %c1_47, %c17_48, %c0_49] : memref<1x18x34x3xbf16, #tpu.memory_space<vmem>>, vector<1x8x16x3xbf16>
    %49 = vector.shape_cast %48 : vector<1x8x16x3xbf16> to vector<8x16x3xbf16>
    %50 = vector.shape_cast %49 : vector<8x16x3xbf16> to vector<128x3xbf16>
    %c7 = arith.constant 7 : index
    %c0_50 = arith.constant 0 : index
    %c0_51 = arith.constant 0 : index
    %51 = vector.load %arg2[%c7, %c0_50, %c0_51] : memref<9x3x8xbf16, #tpu.memory_space<vmem>>, vector<1x3x8xbf16>
    %52 = vector.shape_cast %51 : vector<1x3x8xbf16> to vector<3x8xbf16>
    %cst_52 = arith.constant dense<0.000000e+00> : vector<128x8xf32>
    %53 = tpu.matmul %50, %52, %cst_52 {dimension_numbers = #tpu.dot_dimension_numbers<[1], [0], [0], [1], [0, 0, 1, 1], [], []>} : vector<128x3xbf16>, vector<3x8xbf16>, vector<128x8xf32> -> vector<128x8xf32>
    %54 = arith.addf %47, %53 : vector<128x8xf32>
    %c0_53 = arith.constant 0 : index
    %c1_54 = arith.constant 1 : index
    %c1_55 = arith.constant 1 : index
    %c0_56 = arith.constant 0 : index
    %55 = vector.load %arg1[%c0_53, %c1_54, %c1_55, %c0_56] : memref<1x18x34x3xbf16, #tpu.memory_space<vmem>>, vector<1x8x16x3xbf16>
    %56 = vector.shape_cast %55 : vector<1x8x16x3xbf16> to vector<8x16x3xbf16>
    %57 = vector.shape_cast %56 : vector<8x16x3xbf16> to vector<128x3xbf16>
    %c8 = arith.constant 8 : index
    %c0_57 = arith.constant 0 : index
    %c0_58 = arith.constant 0 : index
    %58 = vector.load %arg2[%c8, %c0_57, %c0_58] : memref<9x3x8xbf16, #tpu.memory_space<vmem>>, vector<1x3x8xbf16>
    %59 = vector.shape_cast %58 : vector<1x3x8xbf16> to vector<3x8xbf16>
    %cst_59 = arith.constant dense<0.000000e+00> : vector<128x8xf32>
    %60 = tpu.matmul %57, %59, %cst_59 {dimension_numbers = #tpu.dot_dimension_numbers<[1], [0], [0], [1], [0, 0, 1, 1], [], []>} : vector<128x3xbf16>, vector<3x8xbf16>, vector<128x8xf32> -> vector<128x8xf32>
    %61 = arith.addf %54, %60 : vector<128x8xf32>
    %c0_60 = arith.constant 0 : index
    %c0_61 = arith.constant 0 : index
    %62 = vector.load %arg3[%c0_60, %c0_61] : memref<1x8xf32, #tpu.memory_space<vmem>>, vector<1x8xf32>
    %63 = vector.broadcast %62 : vector<1x8xf32> to vector<128x8xf32>
    %64 = arith.addf %61, %63 : vector<128x8xf32>
    %cst_62 = arith.constant 0.000000e+00 : f32
    %65 = vector.broadcast %cst_62 : f32 to vector<128x8xf32>
    %66 = arith.maximumf %64, %65 : vector<128x8xf32>
    %67 = arith.truncf %66 : vector<128x8xf32> to vector<128x8xbf16>
    %68 = vector.shape_cast %67 : vector<128x8xbf16> to vector<1x8x16x8xbf16>
    %c0_63 = arith.constant 0 : index
    %c0_64 = arith.constant 0 : index
    %c0_65 = arith.constant 0 : index
    %c0_66 = arith.constant 0 : index
    %69 = vector.load %arg4[%c0_63, %c0_64, %c0_65, %c0_66] : memref<1x8x16x8xbf16, #tpu.memory_space<vmem>>, vector<1x8x16x8xbf16>
    tpu.vector_store %arg4[%c0_63, %c0_64, %c0_65, %c0_66], %68 {strides = array<i32>} : memref<1x8x16x8xbf16, #tpu.memory_space<vmem>>, vector<1x8x16x8xbf16>,
    return
  }
  func.func @transform_0(%arg0: i32) -> (i32, i32, i32, i32) {
    %c0_i32 = arith.constant 0 : i32
    %c0_i32_0 = arith.constant 0 : i32
    %c0_i32_1 = arith.constant 0 : i32
    %c0_i32_2 = arith.constant 0 : i32
    return %arg0, %c0_i32, %c0_i32_0, %c0_i32_1 : i32, i32, i32, i32
  }
  func.func @transform_1(%arg0: i32) -> (i32, i32, i32) {
    %c0_i32 = arith.constant 0 : i32
    %c0_i32_0 = arith.constant 0 : i32
    %c0_i32_1 = arith.constant 0 : i32
    %c0_i32_2 = arith.constant 0 : i32
    return %c0_i32, %c0_i32_0, %c0_i32_1 : i32, i32, i32
  }
  func.func @transform_2(%arg0: i32) -> (i32, i32) {
    %c0_i32 = arith.constant 0 : i32
    %c0_i32_0 = arith.constant 0 : i32
    %c0_i32_1 = arith.constant 0 : i32
    return %c0_i32, %c0_i32_0 : i32, i32
  }
  func.func @transform_3(%arg0: i32) -> (i32, i32, i32, i32) {
    %c0_i32 = arith.constant 0 : i32
    %c0_i32_0 = arith.constant 0 : i32
    %c0_i32_1 = arith.constant 0 : i32
    %c0_i32_2 = arith.constant 0 : i32
    return %arg0, %c0_i32, %c0_i32_0, %c0_i32_1 : i32, i32, i32, i32
  }
}

module attributes {stable_mosaic.version = 11 : i64} {
  func.func @kernel(%arg0: i32, %arg1: memref<1x10x18x8xbf16, #tpu.memory_space<vmem>>, %arg2: memref<9x8x8xbf16, #tpu.memory_space<vmem>>, %arg3: memref<1x8xf32, #tpu.memory_space<vmem>>, %arg4: memref<1x8x16x8xbf16, #tpu.memory_space<vmem>>) attributes {dimension_semantics = [#tpu.dimension_semantics<parallel>], iteration_bounds = array<i64: 4>, scalar_prefetch = 0 : i64, scratch_operands = 0 : i64, tpu.core_type = #tpu.core_type<tc>, window_params = [{transform_indices = @transform_0, window_bounds = array<i64: 1, 10, 18, 8>}, {pipeline_mode = #tpu.pipeline_mode<synchronous>, transform_indices = @transform_1, window_bounds = array<i64: 9, 8, 8>}, {pipeline_mode = #tpu.pipeline_mode<synchronous>, transform_indices = @transform_2, window_bounds = array<i64: 1, 8>}, {transform_indices = @transform_3, window_bounds = array<i64: 1, 8, 16, 8>}]} {
    %c0 = arith.constant 0 : index
    %c0_0 = arith.constant 0 : index
    %c0_1 = arith.constant 0 : index
    %c0_2 = arith.constant 0 : index
    %0 = vector.load %arg1[%c0, %c0_0, %c0_1, %c0_2] : memref<1x10x18x8xbf16, #tpu.memory_space<vmem>>, vector<1x8x16x8xbf16>
    %1 = vector.shape_cast %0 : vector<1x8x16x8xbf16> to vector<8x16x8xbf16>
    %2 = vector.shape_cast %1 : vector<8x16x8xbf16> to vector<128x8xbf16>
    %c0_3 = arith.constant 0 : index
    %c0_4 = arith.constant 0 : index
    %c0_5 = arith.constant 0 : index
    %3 = vector.load %arg2[%c0_3, %c0_4, %c0_5] : memref<9x8x8xbf16, #tpu.memory_space<vmem>>, vector<1x8x8xbf16>
    %4 = vector.shape_cast %3 : vector<1x8x8xbf16> to vector<8x8xbf16>
    %cst = arith.constant dense<0.000000e+00> : vector<128x8xf32>
    %5 = tpu.matmul %2, %4, %cst {dimension_numbers = #tpu.dot_dimension_numbers<[1], [0], [0], [1], [0, 0, 1, 1], [], []>} : vector<128x8xbf16>, vector<8x8xbf16>, vector<128x8xf32> -> vector<128x8xf32>
    %c0_6 = arith.constant 0 : index
    %c0_7 = arith.constant 0 : index
    %c1 = arith.constant 1 : index
    %c0_8 = arith.constant 0 : index
    %6 = vector.load %arg1[%c0_6, %c0_7, %c1, %c0_8] : memref<1x10x18x8xbf16, #tpu.memory_space<vmem>>, vector<1x8x16x8xbf16>
    %7 = vector.shape_cast %6 : vector<1x8x16x8xbf16> to vector<8x16x8xbf16>
    %8 = vector.shape_cast %7 : vector<8x16x8xbf16> to vector<128x8xbf16>
    %c1_9 = arith.constant 1 : index
    %c0_10 = arith.constant 0 : index
    %c0_11 = arith.constant 0 : index
    %9 = vector.load %arg2[%c1_9, %c0_10, %c0_11] : memref<9x8x8xbf16, #tpu.memory_space<vmem>>, vector<1x8x8xbf16>
    %10 = vector.shape_cast %9 : vector<1x8x8xbf16> to vector<8x8xbf16>
    %cst_12 = arith.constant dense<0.000000e+00> : vector<128x8xf32>
    %11 = tpu.matmul %8, %10, %cst_12 {dimension_numbers = #tpu.dot_dimension_numbers<[1], [0], [0], [1], [0, 0, 1, 1], [], []>} : vector<128x8xbf16>, vector<8x8xbf16>, vector<128x8xf32> -> vector<128x8xf32>
    %12 = arith.addf %5, %11 : vector<128x8xf32>
    %c0_13 = arith.constant 0 : index
    %c0_14 = arith.constant 0 : index
    %c2 = arith.constant 2 : index
    %c0_15 = arith.constant 0 : index
    %13 = vector.load %arg1[%c0_13, %c0_14, %c2, %c0_15] : memref<1x10x18x8xbf16, #tpu.memory_space<vmem>>, vector<1x8x16x8xbf16>
    %14 = vector.shape_cast %13 : vector<1x8x16x8xbf16> to vector<8x16x8xbf16>
    %15 = vector.shape_cast %14 : vector<8x16x8xbf16> to vector<128x8xbf16>
    %c2_16 = arith.constant 2 : index
    %c0_17 = arith.constant 0 : index
    %c0_18 = arith.constant 0 : index
    %16 = vector.load %arg2[%c2_16, %c0_17, %c0_18] : memref<9x8x8xbf16, #tpu.memory_space<vmem>>, vector<1x8x8xbf16>
    %17 = vector.shape_cast %16 : vector<1x8x8xbf16> to vector<8x8xbf16>
    %cst_19 = arith.constant dense<0.000000e+00> : vector<128x8xf32>
    %18 = tpu.matmul %15, %17, %cst_19 {dimension_numbers = #tpu.dot_dimension_numbers<[1], [0], [0], [1], [0, 0, 1, 1], [], []>} : vector<128x8xbf16>, vector<8x8xbf16>, vector<128x8xf32> -> vector<128x8xf32>
    %19 = arith.addf %12, %18 : vector<128x8xf32>
    %c0_20 = arith.constant 0 : index
    %c1_21 = arith.constant 1 : index
    %c0_22 = arith.constant 0 : index
    %c0_23 = arith.constant 0 : index
    %20 = vector.load %arg1[%c0_20, %c1_21, %c0_22, %c0_23] : memref<1x10x18x8xbf16, #tpu.memory_space<vmem>>, vector<1x8x16x8xbf16>
    %21 = vector.shape_cast %20 : vector<1x8x16x8xbf16> to vector<8x16x8xbf16>
    %22 = vector.shape_cast %21 : vector<8x16x8xbf16> to vector<128x8xbf16>
    %c3 = arith.constant 3 : index
    %c0_24 = arith.constant 0 : index
    %c0_25 = arith.constant 0 : index
    %23 = vector.load %arg2[%c3, %c0_24, %c0_25] : memref<9x8x8xbf16, #tpu.memory_space<vmem>>, vector<1x8x8xbf16>
    %24 = vector.shape_cast %23 : vector<1x8x8xbf16> to vector<8x8xbf16>
    %cst_26 = arith.constant dense<0.000000e+00> : vector<128x8xf32>
    %25 = tpu.matmul %22, %24, %cst_26 {dimension_numbers = #tpu.dot_dimension_numbers<[1], [0], [0], [1], [0, 0, 1, 1], [], []>} : vector<128x8xbf16>, vector<8x8xbf16>, vector<128x8xf32> -> vector<128x8xf32>
    %26 = arith.addf %19, %25 : vector<128x8xf32>
    %c0_27 = arith.constant 0 : index
    %c1_28 = arith.constant 1 : index
    %c1_29 = arith.constant 1 : index
    %c0_30 = arith.constant 0 : index
    %27 = vector.load %arg1[%c0_27, %c1_28, %c1_29, %c0_30] : memref<1x10x18x8xbf16, #tpu.memory_space<vmem>>, vector<1x8x16x8xbf16>
    %28 = vector.shape_cast %27 : vector<1x8x16x8xbf16> to vector<8x16x8xbf16>
    %29 = vector.shape_cast %28 : vector<8x16x8xbf16> to vector<128x8xbf16>
    %c4 = arith.constant 4 : index
    %c0_31 = arith.constant 0 : index
    %c0_32 = arith.constant 0 : index
    %30 = vector.load %arg2[%c4, %c0_31, %c0_32] : memref<9x8x8xbf16, #tpu.memory_space<vmem>>, vector<1x8x8xbf16>
    %31 = vector.shape_cast %30 : vector<1x8x8xbf16> to vector<8x8xbf16>
    %cst_33 = arith.constant dense<0.000000e+00> : vector<128x8xf32>
    %32 = tpu.matmul %29, %31, %cst_33 {dimension_numbers = #tpu.dot_dimension_numbers<[1], [0], [0], [1], [0, 0, 1, 1], [], []>} : vector<128x8xbf16>, vector<8x8xbf16>, vector<128x8xf32> -> vector<128x8xf32>
    %33 = arith.addf %26, %32 : vector<128x8xf32>
    %c0_34 = arith.constant 0 : index
    %c1_35 = arith.constant 1 : index
    %c2_36 = arith.constant 2 : index
    %c0_37 = arith.constant 0 : index
    %34 = vector.load %arg1[%c0_34, %c1_35, %c2_36, %c0_37] : memref<1x10x18x8xbf16, #tpu.memory_space<vmem>>, vector<1x8x16x8xbf16>
    %35 = vector.shape_cast %34 : vector<1x8x16x8xbf16> to vector<8x16x8xbf16>
    %36 = vector.shape_cast %35 : vector<8x16x8xbf16> to vector<128x8xbf16>
    %c5 = arith.constant 5 : index
    %c0_38 = arith.constant 0 : index
    %c0_39 = arith.constant 0 : index
    %37 = vector.load %arg2[%c5, %c0_38, %c0_39] : memref<9x8x8xbf16, #tpu.memory_space<vmem>>, vector<1x8x8xbf16>
    %38 = vector.shape_cast %37 : vector<1x8x8xbf16> to vector<8x8xbf16>
    %cst_40 = arith.constant dense<0.000000e+00> : vector<128x8xf32>
    %39 = tpu.matmul %36, %38, %cst_40 {dimension_numbers = #tpu.dot_dimension_numbers<[1], [0], [0], [1], [0, 0, 1, 1], [], []>} : vector<128x8xbf16>, vector<8x8xbf16>, vector<128x8xf32> -> vector<128x8xf32>
    %40 = arith.addf %33, %39 : vector<128x8xf32>
    %c0_41 = arith.constant 0 : index
    %c2_42 = arith.constant 2 : index
    %c0_43 = arith.constant 0 : index
    %c0_44 = arith.constant 0 : index
    %41 = vector.load %arg1[%c0_41, %c2_42, %c0_43, %c0_44] : memref<1x10x18x8xbf16, #tpu.memory_space<vmem>>, vector<1x8x16x8xbf16>
    %42 = vector.shape_cast %41 : vector<1x8x16x8xbf16> to vector<8x16x8xbf16>
    %43 = vector.shape_cast %42 : vector<8x16x8xbf16> to vector<128x8xbf16>
    %c6 = arith.constant 6 : index
    %c0_45 = arith.constant 0 : index
    %c0_46 = arith.constant 0 : index
    %44 = vector.load %arg2[%c6, %c0_45, %c0_46] : memref<9x8x8xbf16, #tpu.memory_space<vmem>>, vector<1x8x8xbf16>
    %45 = vector.shape_cast %44 : vector<1x8x8xbf16> to vector<8x8xbf16>
    %cst_47 = arith.constant dense<0.000000e+00> : vector<128x8xf32>
    %46 = tpu.matmul %43, %45, %cst_47 {dimension_numbers = #tpu.dot_dimension_numbers<[1], [0], [0], [1], [0, 0, 1, 1], [], []>} : vector<128x8xbf16>, vector<8x8xbf16>, vector<128x8xf32> -> vector<128x8xf32>
    %47 = arith.addf %40, %46 : vector<128x8xf32>
    %c0_48 = arith.constant 0 : index
    %c2_49 = arith.constant 2 : index
    %c1_50 = arith.constant 1 : index
    %c0_51 = arith.constant 0 : index
    %48 = vector.load %arg1[%c0_48, %c2_49, %c1_50, %c0_51] : memref<1x10x18x8xbf16, #tpu.memory_space<vmem>>, vector<1x8x16x8xbf16>
    %49 = vector.shape_cast %48 : vector<1x8x16x8xbf16> to vector<8x16x8xbf16>
    %50 = vector.shape_cast %49 : vector<8x16x8xbf16> to vector<128x8xbf16>
    %c7 = arith.constant 7 : index
    %c0_52 = arith.constant 0 : index
    %c0_53 = arith.constant 0 : index
    %51 = vector.load %arg2[%c7, %c0_52, %c0_53] : memref<9x8x8xbf16, #tpu.memory_space<vmem>>, vector<1x8x8xbf16>
    %52 = vector.shape_cast %51 : vector<1x8x8xbf16> to vector<8x8xbf16>
    %cst_54 = arith.constant dense<0.000000e+00> : vector<128x8xf32>
    %53 = tpu.matmul %50, %52, %cst_54 {dimension_numbers = #tpu.dot_dimension_numbers<[1], [0], [0], [1], [0, 0, 1, 1], [], []>} : vector<128x8xbf16>, vector<8x8xbf16>, vector<128x8xf32> -> vector<128x8xf32>
    %54 = arith.addf %47, %53 : vector<128x8xf32>
    %c0_55 = arith.constant 0 : index
    %c2_56 = arith.constant 2 : index
    %c2_57 = arith.constant 2 : index
    %c0_58 = arith.constant 0 : index
    %55 = vector.load %arg1[%c0_55, %c2_56, %c2_57, %c0_58] : memref<1x10x18x8xbf16, #tpu.memory_space<vmem>>, vector<1x8x16x8xbf16>
    %56 = vector.shape_cast %55 : vector<1x8x16x8xbf16> to vector<8x16x8xbf16>
    %57 = vector.shape_cast %56 : vector<8x16x8xbf16> to vector<128x8xbf16>
    %c8 = arith.constant 8 : index
    %c0_59 = arith.constant 0 : index
    %c0_60 = arith.constant 0 : index
    %58 = vector.load %arg2[%c8, %c0_59, %c0_60] : memref<9x8x8xbf16, #tpu.memory_space<vmem>>, vector<1x8x8xbf16>
    %59 = vector.shape_cast %58 : vector<1x8x8xbf16> to vector<8x8xbf16>
    %cst_61 = arith.constant dense<0.000000e+00> : vector<128x8xf32>
    %60 = tpu.matmul %57, %59, %cst_61 {dimension_numbers = #tpu.dot_dimension_numbers<[1], [0], [0], [1], [0, 0, 1, 1], [], []>} : vector<128x8xbf16>, vector<8x8xbf16>, vector<128x8xf32> -> vector<128x8xf32>
    %61 = arith.addf %54, %60 : vector<128x8xf32>
    %c0_62 = arith.constant 0 : index
    %c0_63 = arith.constant 0 : index
    %62 = vector.load %arg3[%c0_62, %c0_63] : memref<1x8xf32, #tpu.memory_space<vmem>>, vector<1x8xf32>
    %63 = vector.broadcast %62 : vector<1x8xf32> to vector<128x8xf32>
    %64 = arith.addf %61, %63 : vector<128x8xf32>
    %cst_64 = arith.constant 0.000000e+00 : f32
    %65 = vector.broadcast %cst_64 : f32 to vector<128x8xf32>
    %66 = arith.maximumf %64, %65 : vector<128x8xf32>
    %67 = arith.truncf %66 : vector<128x8xf32> to vector<128x8xbf16>
    %68 = vector.shape_cast %67 : vector<128x8xbf16> to vector<1x8x16x8xbf16>
    %c0_65 = arith.constant 0 : index
    %c0_66 = arith.constant 0 : index
    %c0_67 = arith.constant 0 : index
    %c0_68 = arith.constant 0 : index
    %69 = vector.load %arg4[%c0_65, %c0_66, %c0_67, %c0_68] : memref<1x8x16x8xbf16, #tpu.memory_space<vmem>>, vector<1x8x16x8xbf16>
    tpu.vector_store %arg4[%c0_65, %c0_66, %c0_67, %c0_68], %68 {strides = array<i32>} : memref<1x8x16x8xbf16, #tpu.memory_space<vmem>>, vector<1x8x16x8xbf16>,
    return
  }
  func.func @transform_0(%arg0: i32) -> (i32, i32, i32, i32) {
    %c0_i32 = arith.constant 0 : i32
    %c0_i32_0 = arith.constant 0 : i32
    %c0_i32_1 = arith.constant 0 : i32
    %c0_i32_2 = arith.constant 0 : i32
    return %arg0, %c0_i32, %c0_i32_0, %c0_i32_1 : i32, i32, i32, i32
  }
  func.func @transform_1(%arg0: i32) -> (i32, i32, i32) {
    %c0_i32 = arith.constant 0 : i32
    %c0_i32_0 = arith.constant 0 : i32
    %c0_i32_1 = arith.constant 0 : i32
    %c0_i32_2 = arith.constant 0 : i32
    return %c0_i32, %c0_i32_0, %c0_i32_1 : i32, i32, i32
  }
  func.func @transform_2(%arg0: i32) -> (i32, i32) {
    %c0_i32 = arith.constant 0 : i32
    %c0_i32_0 = arith.constant 0 : i32
    %c0_i32_1 = arith.constant 0 : i32
    return %c0_i32, %c0_i32_0 : i32, i32
  }
  func.func @transform_3(%arg0: i32) -> (i32, i32, i32, i32) {
    %c0_i32 = arith.constant 0 : i32
    %c0_i32_0 = arith.constant 0 : i32
    %c0_i32_1 = arith.constant 0 : i32
    %c0_i32_2 = arith.constant 0 : i32
    return %arg0, %c0_i32, %c0_i32_0, %c0_i32_1 : i32, i32, i32, i32
  }
}

module attributes {stable_mosaic.version = 11 : i64} {
  func.func @kernel(%arg0: i32, %arg1: memref<1x18x10x16xbf16, #tpu.memory_space<vmem>>, %arg2: memref<9x16x32xbf16, #tpu.memory_space<vmem>>, %arg3: memref<1x32xf32, #tpu.memory_space<vmem>>, %arg4: memref<1x8x4x32xbf16, #tpu.memory_space<vmem>>) attributes {dimension_semantics = [#tpu.dimension_semantics<parallel>], iteration_bounds = array<i64: 2>, scalar_prefetch = 0 : i64, scratch_operands = 0 : i64, tpu.core_type = #tpu.core_type<tc>, window_params = [{transform_indices = @transform_0, window_bounds = array<i64: 1, 18, 10, 16>}, {pipeline_mode = #tpu.pipeline_mode<synchronous>, transform_indices = @transform_1, window_bounds = array<i64: 9, 16, 32>}, {pipeline_mode = #tpu.pipeline_mode<synchronous>, transform_indices = @transform_2, window_bounds = array<i64: 1, 32>}, {transform_indices = @transform_3, window_bounds = array<i64: 1, 8, 4, 32>}]} {
    %c0 = arith.constant 0 : index
    %c0_0 = arith.constant 0 : index
    %c0_1 = arith.constant 0 : index
    %c0_2 = arith.constant 0 : index
    %0 = vector.load %arg1[%c0, %c0_0, %c0_1, %c0_2] : memref<1x18x10x16xbf16, #tpu.memory_space<vmem>>, vector<1x8x4x16xbf16>
    %1 = vector.shape_cast %0 : vector<1x8x4x16xbf16> to vector<8x4x16xbf16>
    %2 = vector.shape_cast %1 : vector<8x4x16xbf16> to vector<32x16xbf16>
    %c0_3 = arith.constant 0 : index
    %c0_4 = arith.constant 0 : index
    %c0_5 = arith.constant 0 : index
    %3 = vector.load %arg2[%c0_3, %c0_4, %c0_5] : memref<9x16x32xbf16, #tpu.memory_space<vmem>>, vector<1x16x32xbf16>
    %4 = vector.shape_cast %3 : vector<1x16x32xbf16> to vector<16x32xbf16>
    %cst = arith.constant dense<0.000000e+00> : vector<32x32xf32>
    %5 = tpu.matmul %2, %4, %cst {dimension_numbers = #tpu.dot_dimension_numbers<[1], [0], [0], [1], [0, 0, 1, 1], [], []>} : vector<32x16xbf16>, vector<16x32xbf16>, vector<32x32xf32> -> vector<32x32xf32>
    %c0_6 = arith.constant 0 : index
    %c0_7 = arith.constant 0 : index
    %c5 = arith.constant 5 : index
    %c0_8 = arith.constant 0 : index
    %6 = vector.load %arg1[%c0_6, %c0_7, %c5, %c0_8] : memref<1x18x10x16xbf16, #tpu.memory_space<vmem>>, vector<1x8x4x16xbf16>
    %7 = vector.shape_cast %6 : vector<1x8x4x16xbf16> to vector<8x4x16xbf16>
    %8 = vector.shape_cast %7 : vector<8x4x16xbf16> to vector<32x16xbf16>
    %c1 = arith.constant 1 : index
    %c0_9 = arith.constant 0 : index
    %c0_10 = arith.constant 0 : index
    %9 = vector.load %arg2[%c1, %c0_9, %c0_10] : memref<9x16x32xbf16, #tpu.memory_space<vmem>>, vector<1x16x32xbf16>
    %10 = vector.shape_cast %9 : vector<1x16x32xbf16> to vector<16x32xbf16>
    %cst_11 = arith.constant dense<0.000000e+00> : vector<32x32xf32>
    %11 = tpu.matmul %8, %10, %cst_11 {dimension_numbers = #tpu.dot_dimension_numbers<[1], [0], [0], [1], [0, 0, 1, 1], [], []>} : vector<32x16xbf16>, vector<16x32xbf16>, vector<32x32xf32> -> vector<32x32xf32>
    %12 = arith.addf %5, %11 : vector<32x32xf32>
    %c0_12 = arith.constant 0 : index
    %c0_13 = arith.constant 0 : index
    %c1_14 = arith.constant 1 : index
    %c0_15 = arith.constant 0 : index
    %13 = vector.load %arg1[%c0_12, %c0_13, %c1_14, %c0_15] : memref<1x18x10x16xbf16, #tpu.memory_space<vmem>>, vector<1x8x4x16xbf16>
    %14 = vector.shape_cast %13 : vector<1x8x4x16xbf16> to vector<8x4x16xbf16>
    %15 = vector.shape_cast %14 : vector<8x4x16xbf16> to vector<32x16xbf16>
    %c2 = arith.constant 2 : index
    %c0_16 = arith.constant 0 : index
    %c0_17 = arith.constant 0 : index
    %16 = vector.load %arg2[%c2, %c0_16, %c0_17] : memref<9x16x32xbf16, #tpu.memory_space<vmem>>, vector<1x16x32xbf16>
    %17 = vector.shape_cast %16 : vector<1x16x32xbf16> to vector<16x32xbf16>
    %cst_18 = arith.constant dense<0.000000e+00> : vector<32x32xf32>
    %18 = tpu.matmul %15, %17, %cst_18 {dimension_numbers = #tpu.dot_dimension_numbers<[1], [0], [0], [1], [0, 0, 1, 1], [], []>} : vector<32x16xbf16>, vector<16x32xbf16>, vector<32x32xf32> -> vector<32x32xf32>
    %19 = arith.addf %12, %18 : vector<32x32xf32>
    %c0_19 = arith.constant 0 : index
    %c9 = arith.constant 9 : index
    %c0_20 = arith.constant 0 : index
    %c0_21 = arith.constant 0 : index
    %20 = vector.load %arg1[%c0_19, %c9, %c0_20, %c0_21] : memref<1x18x10x16xbf16, #tpu.memory_space<vmem>>, vector<1x8x4x16xbf16>
    %21 = vector.shape_cast %20 : vector<1x8x4x16xbf16> to vector<8x4x16xbf16>
    %22 = vector.shape_cast %21 : vector<8x4x16xbf16> to vector<32x16xbf16>
    %c3 = arith.constant 3 : index
    %c0_22 = arith.constant 0 : index
    %c0_23 = arith.constant 0 : index
    %23 = vector.load %arg2[%c3, %c0_22, %c0_23] : memref<9x16x32xbf16, #tpu.memory_space<vmem>>, vector<1x16x32xbf16>
    %24 = vector.shape_cast %23 : vector<1x16x32xbf16> to vector<16x32xbf16>
    %cst_24 = arith.constant dense<0.000000e+00> : vector<32x32xf32>
    %25 = tpu.matmul %22, %24, %cst_24 {dimension_numbers = #tpu.dot_dimension_numbers<[1], [0], [0], [1], [0, 0, 1, 1], [], []>} : vector<32x16xbf16>, vector<16x32xbf16>, vector<32x32xf32> -> vector<32x32xf32>
    %26 = arith.addf %19, %25 : vector<32x32xf32>
    %c0_25 = arith.constant 0 : index
    %c9_26 = arith.constant 9 : index
    %c5_27 = arith.constant 5 : index
    %c0_28 = arith.constant 0 : index
    %27 = vector.load %arg1[%c0_25, %c9_26, %c5_27, %c0_28] : memref<1x18x10x16xbf16, #tpu.memory_space<vmem>>, vector<1x8x4x16xbf16>
    %28 = vector.shape_cast %27 : vector<1x8x4x16xbf16> to vector<8x4x16xbf16>
    %29 = vector.shape_cast %28 : vector<8x4x16xbf16> to vector<32x16xbf16>
    %c4 = arith.constant 4 : index
    %c0_29 = arith.constant 0 : index
    %c0_30 = arith.constant 0 : index
    %30 = vector.load %arg2[%c4, %c0_29, %c0_30] : memref<9x16x32xbf16, #tpu.memory_space<vmem>>, vector<1x16x32xbf16>
    %31 = vector.shape_cast %30 : vector<1x16x32xbf16> to vector<16x32xbf16>
    %cst_31 = arith.constant dense<0.000000e+00> : vector<32x32xf32>
    %32 = tpu.matmul %29, %31, %cst_31 {dimension_numbers = #tpu.dot_dimension_numbers<[1], [0], [0], [1], [0, 0, 1, 1], [], []>} : vector<32x16xbf16>, vector<16x32xbf16>, vector<32x32xf32> -> vector<32x32xf32>
    %33 = arith.addf %26, %32 : vector<32x32xf32>
    %c0_32 = arith.constant 0 : index
    %c9_33 = arith.constant 9 : index
    %c1_34 = arith.constant 1 : index
    %c0_35 = arith.constant 0 : index
    %34 = vector.load %arg1[%c0_32, %c9_33, %c1_34, %c0_35] : memref<1x18x10x16xbf16, #tpu.memory_space<vmem>>, vector<1x8x4x16xbf16>
    %35 = vector.shape_cast %34 : vector<1x8x4x16xbf16> to vector<8x4x16xbf16>
    %36 = vector.shape_cast %35 : vector<8x4x16xbf16> to vector<32x16xbf16>
    %c5_36 = arith.constant 5 : index
    %c0_37 = arith.constant 0 : index
    %c0_38 = arith.constant 0 : index
    %37 = vector.load %arg2[%c5_36, %c0_37, %c0_38] : memref<9x16x32xbf16, #tpu.memory_space<vmem>>, vector<1x16x32xbf16>
    %38 = vector.shape_cast %37 : vector<1x16x32xbf16> to vector<16x32xbf16>
    %cst_39 = arith.constant dense<0.000000e+00> : vector<32x32xf32>
    %39 = tpu.matmul %36, %38, %cst_39 {dimension_numbers = #tpu.dot_dimension_numbers<[1], [0], [0], [1], [0, 0, 1, 1], [], []>} : vector<32x16xbf16>, vector<16x32xbf16>, vector<32x32xf32> -> vector<32x32xf32>
    %40 = arith.addf %33, %39 : vector<32x32xf32>
    %c0_40 = arith.constant 0 : index
    %c1_41 = arith.constant 1 : index
    %c0_42 = arith.constant 0 : index
    %c0_43 = arith.constant 0 : index
    %41 = vector.load %arg1[%c0_40, %c1_41, %c0_42, %c0_43] : memref<1x18x10x16xbf16, #tpu.memory_space<vmem>>, vector<1x8x4x16xbf16>
    %42 = vector.shape_cast %41 : vector<1x8x4x16xbf16> to vector<8x4x16xbf16>
    %43 = vector.shape_cast %42 : vector<8x4x16xbf16> to vector<32x16xbf16>
    %c6 = arith.constant 6 : index
    %c0_44 = arith.constant 0 : index
    %c0_45 = arith.constant 0 : index
    %44 = vector.load %arg2[%c6, %c0_44, %c0_45] : memref<9x16x32xbf16, #tpu.memory_space<vmem>>, vector<1x16x32xbf16>
    %45 = vector.shape_cast %44 : vector<1x16x32xbf16> to vector<16x32xbf16>
    %cst_46 = arith.constant dense<0.000000e+00> : vector<32x32xf32>
    %46 = tpu.matmul %43, %45, %cst_46 {dimension_numbers = #tpu.dot_dimension_numbers<[1], [0], [0], [1], [0, 0, 1, 1], [], []>} : vector<32x16xbf16>, vector<16x32xbf16>, vector<32x32xf32> -> vector<32x32xf32>
    %47 = arith.addf %40, %46 : vector<32x32xf32>
    %c0_47 = arith.constant 0 : index
    %c1_48 = arith.constant 1 : index
    %c5_49 = arith.constant 5 : index
    %c0_50 = arith.constant 0 : index
    %48 = vector.load %arg1[%c0_47, %c1_48, %c5_49, %c0_50] : memref<1x18x10x16xbf16, #tpu.memory_space<vmem>>, vector<1x8x4x16xbf16>
    %49 = vector.shape_cast %48 : vector<1x8x4x16xbf16> to vector<8x4x16xbf16>
    %50 = vector.shape_cast %49 : vector<8x4x16xbf16> to vector<32x16xbf16>
    %c7 = arith.constant 7 : index
    %c0_51 = arith.constant 0 : index
    %c0_52 = arith.constant 0 : index
    %51 = vector.load %arg2[%c7, %c0_51, %c0_52] : memref<9x16x32xbf16, #tpu.memory_space<vmem>>, vector<1x16x32xbf16>
    %52 = vector.shape_cast %51 : vector<1x16x32xbf16> to vector<16x32xbf16>
    %cst_53 = arith.constant dense<0.000000e+00> : vector<32x32xf32>
    %53 = tpu.matmul %50, %52, %cst_53 {dimension_numbers = #tpu.dot_dimension_numbers<[1], [0], [0], [1], [0, 0, 1, 1], [], []>} : vector<32x16xbf16>, vector<16x32xbf16>, vector<32x32xf32> -> vector<32x32xf32>
    %54 = arith.addf %47, %53 : vector<32x32xf32>
    %c0_54 = arith.constant 0 : index
    %c1_55 = arith.constant 1 : index
    %c1_56 = arith.constant 1 : index
    %c0_57 = arith.constant 0 : index
    %55 = vector.load %arg1[%c0_54, %c1_55, %c1_56, %c0_57] : memref<1x18x10x16xbf16, #tpu.memory_space<vmem>>, vector<1x8x4x16xbf16>
    %56 = vector.shape_cast %55 : vector<1x8x4x16xbf16> to vector<8x4x16xbf16>
    %57 = vector.shape_cast %56 : vector<8x4x16xbf16> to vector<32x16xbf16>
    %c8 = arith.constant 8 : index
    %c0_58 = arith.constant 0 : index
    %c0_59 = arith.constant 0 : index
    %58 = vector.load %arg2[%c8, %c0_58, %c0_59] : memref<9x16x32xbf16, #tpu.memory_space<vmem>>, vector<1x16x32xbf16>
    %59 = vector.shape_cast %58 : vector<1x16x32xbf16> to vector<16x32xbf16>
    %cst_60 = arith.constant dense<0.000000e+00> : vector<32x32xf32>
    %60 = tpu.matmul %57, %59, %cst_60 {dimension_numbers = #tpu.dot_dimension_numbers<[1], [0], [0], [1], [0, 0, 1, 1], [], []>} : vector<32x16xbf16>, vector<16x32xbf16>, vector<32x32xf32> -> vector<32x32xf32>
    %61 = arith.addf %54, %60 : vector<32x32xf32>
    %c0_61 = arith.constant 0 : index
    %c0_62 = arith.constant 0 : index
    %62 = vector.load %arg3[%c0_61, %c0_62] : memref<1x32xf32, #tpu.memory_space<vmem>>, vector<1x32xf32>
    %63 = vector.broadcast %62 : vector<1x32xf32> to vector<32x32xf32>
    %64 = arith.addf %61, %63 : vector<32x32xf32>
    %cst_63 = arith.constant 0.000000e+00 : f32
    %65 = vector.broadcast %cst_63 : f32 to vector<32x32xf32>
    %66 = arith.maximumf %64, %65 : vector<32x32xf32>
    %67 = arith.truncf %66 : vector<32x32xf32> to vector<32x32xbf16>
    %68 = vector.shape_cast %67 : vector<32x32xbf16> to vector<1x8x4x32xbf16>
    %c0_64 = arith.constant 0 : index
    %c0_65 = arith.constant 0 : index
    %c0_66 = arith.constant 0 : index
    %c0_67 = arith.constant 0 : index
    %69 = vector.load %arg4[%c0_64, %c0_65, %c0_66, %c0_67] : memref<1x8x4x32xbf16, #tpu.memory_space<vmem>>, vector<1x8x4x32xbf16>
    tpu.vector_store %arg4[%c0_64, %c0_65, %c0_66, %c0_67], %68 {strides = array<i32>} : memref<1x8x4x32xbf16, #tpu.memory_space<vmem>>, vector<1x8x4x32xbf16>,
    return
  }
  func.func @transform_0(%arg0: i32) -> (i32, i32, i32, i32) {
    %c0_i32 = arith.constant 0 : i32
    %c0_i32_0 = arith.constant 0 : i32
    %c0_i32_1 = arith.constant 0 : i32
    %c0_i32_2 = arith.constant 0 : i32
    return %arg0, %c0_i32, %c0_i32_0, %c0_i32_1 : i32, i32, i32, i32
  }
  func.func @transform_1(%arg0: i32) -> (i32, i32, i32) {
    %c0_i32 = arith.constant 0 : i32
    %c0_i32_0 = arith.constant 0 : i32
    %c0_i32_1 = arith.constant 0 : i32
    %c0_i32_2 = arith.constant 0 : i32
    return %c0_i32, %c0_i32_0, %c0_i32_1 : i32, i32, i32
  }
  func.func @transform_2(%arg0: i32) -> (i32, i32) {
    %c0_i32 = arith.constant 0 : i32
    %c0_i32_0 = arith.constant 0 : i32
    %c0_i32_1 = arith.constant 0 : i32
    return %c0_i32, %c0_i32_0 : i32, i32
  }
  func.func @transform_3(%arg0: i32) -> (i32, i32, i32, i32) {
    %c0_i32 = arith.constant 0 : i32
    %c0_i32_0 = arith.constant 0 : i32
    %c0_i32_1 = arith.constant 0 : i32
    %c0_i32_2 = arith.constant 0 : i32
    return %arg0, %c0_i32, %c0_i32_0, %c0_i32_1 : i32, i32, i32, i32
  }
}

module attributes {stable_mosaic.version = 11 : i64} {
  func.func @kernel(%arg0: i32, %arg1: memref<1x18x18x8xbf16, #tpu.memory_space<vmem>>, %arg2: memref<9x8x16xbf16, #tpu.memory_space<vmem>>, %arg3: memref<1x16xf32, #tpu.memory_space<vmem>>, %arg4: memref<1x8x8x16xbf16, #tpu.memory_space<vmem>>) attributes {dimension_semantics = [#tpu.dimension_semantics<parallel>], iteration_bounds = array<i64: 2>, scalar_prefetch = 0 : i64, scratch_operands = 0 : i64, tpu.core_type = #tpu.core_type<tc>, window_params = [{transform_indices = @transform_0, window_bounds = array<i64: 1, 18, 18, 8>}, {pipeline_mode = #tpu.pipeline_mode<synchronous>, transform_indices = @transform_1, window_bounds = array<i64: 9, 8, 16>}, {pipeline_mode = #tpu.pipeline_mode<synchronous>, transform_indices = @transform_2, window_bounds = array<i64: 1, 16>}, {transform_indices = @transform_3, window_bounds = array<i64: 1, 8, 8, 16>}]} {
    %c0 = arith.constant 0 : index
    %c0_0 = arith.constant 0 : index
    %c0_1 = arith.constant 0 : index
    %c0_2 = arith.constant 0 : index
    %0 = vector.load %arg1[%c0, %c0_0, %c0_1, %c0_2] : memref<1x18x18x8xbf16, #tpu.memory_space<vmem>>, vector<1x8x8x8xbf16>
    %1 = vector.shape_cast %0 : vector<1x8x8x8xbf16> to vector<8x8x8xbf16>
    %2 = vector.shape_cast %1 : vector<8x8x8xbf16> to vector<64x8xbf16>
    %c0_3 = arith.constant 0 : index
    %c0_4 = arith.constant 0 : index
    %c0_5 = arith.constant 0 : index
    %3 = vector.load %arg2[%c0_3, %c0_4, %c0_5] : memref<9x8x16xbf16, #tpu.memory_space<vmem>>, vector<1x8x16xbf16>
    %4 = vector.shape_cast %3 : vector<1x8x16xbf16> to vector<8x16xbf16>
    %cst = arith.constant dense<0.000000e+00> : vector<64x16xf32>
    %5 = tpu.matmul %2, %4, %cst {dimension_numbers = #tpu.dot_dimension_numbers<[1], [0], [0], [1], [0, 0, 1, 1], [], []>} : vector<64x8xbf16>, vector<8x16xbf16>, vector<64x16xf32> -> vector<64x16xf32>
    %c0_6 = arith.constant 0 : index
    %c0_7 = arith.constant 0 : index
    %c9 = arith.constant 9 : index
    %c0_8 = arith.constant 0 : index
    %6 = vector.load %arg1[%c0_6, %c0_7, %c9, %c0_8] : memref<1x18x18x8xbf16, #tpu.memory_space<vmem>>, vector<1x8x8x8xbf16>
    %7 = vector.shape_cast %6 : vector<1x8x8x8xbf16> to vector<8x8x8xbf16>
    %8 = vector.shape_cast %7 : vector<8x8x8xbf16> to vector<64x8xbf16>
    %c1 = arith.constant 1 : index
    %c0_9 = arith.constant 0 : index
    %c0_10 = arith.constant 0 : index
    %9 = vector.load %arg2[%c1, %c0_9, %c0_10] : memref<9x8x16xbf16, #tpu.memory_space<vmem>>, vector<1x8x16xbf16>
    %10 = vector.shape_cast %9 : vector<1x8x16xbf16> to vector<8x16xbf16>
    %cst_11 = arith.constant dense<0.000000e+00> : vector<64x16xf32>
    %11 = tpu.matmul %8, %10, %cst_11 {dimension_numbers = #tpu.dot_dimension_numbers<[1], [0], [0], [1], [0, 0, 1, 1], [], []>} : vector<64x8xbf16>, vector<8x16xbf16>, vector<64x16xf32> -> vector<64x16xf32>
    %12 = arith.addf %5, %11 : vector<64x16xf32>
    %c0_12 = arith.constant 0 : index
    %c0_13 = arith.constant 0 : index
    %c1_14 = arith.constant 1 : index
    %c0_15 = arith.constant 0 : index
    %13 = vector.load %arg1[%c0_12, %c0_13, %c1_14, %c0_15] : memref<1x18x18x8xbf16, #tpu.memory_space<vmem>>, vector<1x8x8x8xbf16>
    %14 = vector.shape_cast %13 : vector<1x8x8x8xbf16> to vector<8x8x8xbf16>
    %15 = vector.shape_cast %14 : vector<8x8x8xbf16> to vector<64x8xbf16>
    %c2 = arith.constant 2 : index
    %c0_16 = arith.constant 0 : index
    %c0_17 = arith.constant 0 : index
    %16 = vector.load %arg2[%c2, %c0_16, %c0_17] : memref<9x8x16xbf16, #tpu.memory_space<vmem>>, vector<1x8x16xbf16>
    %17 = vector.shape_cast %16 : vector<1x8x16xbf16> to vector<8x16xbf16>
    %cst_18 = arith.constant dense<0.000000e+00> : vector<64x16xf32>
    %18 = tpu.matmul %15, %17, %cst_18 {dimension_numbers = #tpu.dot_dimension_numbers<[1], [0], [0], [1], [0, 0, 1, 1], [], []>} : vector<64x8xbf16>, vector<8x16xbf16>, vector<64x16xf32> -> vector<64x16xf32>
    %19 = arith.addf %12, %18 : vector<64x16xf32>
    %c0_19 = arith.constant 0 : index
    %c9_20 = arith.constant 9 : index
    %c0_21 = arith.constant 0 : index
    %c0_22 = arith.constant 0 : index
    %20 = vector.load %arg1[%c0_19, %c9_20, %c0_21, %c0_22] : memref<1x18x18x8xbf16, #tpu.memory_space<vmem>>, vector<1x8x8x8xbf16>
    %21 = vector.shape_cast %20 : vector<1x8x8x8xbf16> to vector<8x8x8xbf16>
    %22 = vector.shape_cast %21 : vector<8x8x8xbf16> to vector<64x8xbf16>
    %c3 = arith.constant 3 : index
    %c0_23 = arith.constant 0 : index
    %c0_24 = arith.constant 0 : index
    %23 = vector.load %arg2[%c3, %c0_23, %c0_24] : memref<9x8x16xbf16, #tpu.memory_space<vmem>>, vector<1x8x16xbf16>
    %24 = vector.shape_cast %23 : vector<1x8x16xbf16> to vector<8x16xbf16>
    %cst_25 = arith.constant dense<0.000000e+00> : vector<64x16xf32>
    %25 = tpu.matmul %22, %24, %cst_25 {dimension_numbers = #tpu.dot_dimension_numbers<[1], [0], [0], [1], [0, 0, 1, 1], [], []>} : vector<64x8xbf16>, vector<8x16xbf16>, vector<64x16xf32> -> vector<64x16xf32>
    %26 = arith.addf %19, %25 : vector<64x16xf32>
    %c0_26 = arith.constant 0 : index
    %c9_27 = arith.constant 9 : index
    %c9_28 = arith.constant 9 : index
    %c0_29 = arith.constant 0 : index
    %27 = vector.load %arg1[%c0_26, %c9_27, %c9_28, %c0_29] : memref<1x18x18x8xbf16, #tpu.memory_space<vmem>>, vector<1x8x8x8xbf16>
    %28 = vector.shape_cast %27 : vector<1x8x8x8xbf16> to vector<8x8x8xbf16>
    %29 = vector.shape_cast %28 : vector<8x8x8xbf16> to vector<64x8xbf16>
    %c4 = arith.constant 4 : index
    %c0_30 = arith.constant 0 : index
    %c0_31 = arith.constant 0 : index
    %30 = vector.load %arg2[%c4, %c0_30, %c0_31] : memref<9x8x16xbf16, #tpu.memory_space<vmem>>, vector<1x8x16xbf16>
    %31 = vector.shape_cast %30 : vector<1x8x16xbf16> to vector<8x16xbf16>
    %cst_32 = arith.constant dense<0.000000e+00> : vector<64x16xf32>
    %32 = tpu.matmul %29, %31, %cst_32 {dimension_numbers = #tpu.dot_dimension_numbers<[1], [0], [0], [1], [0, 0, 1, 1], [], []>} : vector<64x8xbf16>, vector<8x16xbf16>, vector<64x16xf32> -> vector<64x16xf32>
    %33 = arith.addf %26, %32 : vector<64x16xf32>
    %c0_33 = arith.constant 0 : index
    %c9_34 = arith.constant 9 : index
    %c1_35 = arith.constant 1 : index
    %c0_36 = arith.constant 0 : index
    %34 = vector.load %arg1[%c0_33, %c9_34, %c1_35, %c0_36] : memref<1x18x18x8xbf16, #tpu.memory_space<vmem>>, vector<1x8x8x8xbf16>
    %35 = vector.shape_cast %34 : vector<1x8x8x8xbf16> to vector<8x8x8xbf16>
    %36 = vector.shape_cast %35 : vector<8x8x8xbf16> to vector<64x8xbf16>
    %c5 = arith.constant 5 : index
    %c0_37 = arith.constant 0 : index
    %c0_38 = arith.constant 0 : index
    %37 = vector.load %arg2[%c5, %c0_37, %c0_38] : memref<9x8x16xbf16, #tpu.memory_space<vmem>>, vector<1x8x16xbf16>
    %38 = vector.shape_cast %37 : vector<1x8x16xbf16> to vector<8x16xbf16>
    %cst_39 = arith.constant dense<0.000000e+00> : vector<64x16xf32>
    %39 = tpu.matmul %36, %38, %cst_39 {dimension_numbers = #tpu.dot_dimension_numbers<[1], [0], [0], [1], [0, 0, 1, 1], [], []>} : vector<64x8xbf16>, vector<8x16xbf16>, vector<64x16xf32> -> vector<64x16xf32>
    %40 = arith.addf %33, %39 : vector<64x16xf32>
    %c0_40 = arith.constant 0 : index
    %c1_41 = arith.constant 1 : index
    %c0_42 = arith.constant 0 : index
    %c0_43 = arith.constant 0 : index
    %41 = vector.load %arg1[%c0_40, %c1_41, %c0_42, %c0_43] : memref<1x18x18x8xbf16, #tpu.memory_space<vmem>>, vector<1x8x8x8xbf16>
    %42 = vector.shape_cast %41 : vector<1x8x8x8xbf16> to vector<8x8x8xbf16>
    %43 = vector.shape_cast %42 : vector<8x8x8xbf16> to vector<64x8xbf16>
    %c6 = arith.constant 6 : index
    %c0_44 = arith.constant 0 : index
    %c0_45 = arith.constant 0 : index
    %44 = vector.load %arg2[%c6, %c0_44, %c0_45] : memref<9x8x16xbf16, #tpu.memory_space<vmem>>, vector<1x8x16xbf16>
    %45 = vector.shape_cast %44 : vector<1x8x16xbf16> to vector<8x16xbf16>
    %cst_46 = arith.constant dense<0.000000e+00> : vector<64x16xf32>
    %46 = tpu.matmul %43, %45, %cst_46 {dimension_numbers = #tpu.dot_dimension_numbers<[1], [0], [0], [1], [0, 0, 1, 1], [], []>} : vector<64x8xbf16>, vector<8x16xbf16>, vector<64x16xf32> -> vector<64x16xf32>
    %47 = arith.addf %40, %46 : vector<64x16xf32>
    %c0_47 = arith.constant 0 : index
    %c1_48 = arith.constant 1 : index
    %c9_49 = arith.constant 9 : index
    %c0_50 = arith.constant 0 : index
    %48 = vector.load %arg1[%c0_47, %c1_48, %c9_49, %c0_50] : memref<1x18x18x8xbf16, #tpu.memory_space<vmem>>, vector<1x8x8x8xbf16>
    %49 = vector.shape_cast %48 : vector<1x8x8x8xbf16> to vector<8x8x8xbf16>
    %50 = vector.shape_cast %49 : vector<8x8x8xbf16> to vector<64x8xbf16>
    %c7 = arith.constant 7 : index
    %c0_51 = arith.constant 0 : index
    %c0_52 = arith.constant 0 : index
    %51 = vector.load %arg2[%c7, %c0_51, %c0_52] : memref<9x8x16xbf16, #tpu.memory_space<vmem>>, vector<1x8x16xbf16>
    %52 = vector.shape_cast %51 : vector<1x8x16xbf16> to vector<8x16xbf16>
    %cst_53 = arith.constant dense<0.000000e+00> : vector<64x16xf32>
    %53 = tpu.matmul %50, %52, %cst_53 {dimension_numbers = #tpu.dot_dimension_numbers<[1], [0], [0], [1], [0, 0, 1, 1], [], []>} : vector<64x8xbf16>, vector<8x16xbf16>, vector<64x16xf32> -> vector<64x16xf32>
    %54 = arith.addf %47, %53 : vector<64x16xf32>
    %c0_54 = arith.constant 0 : index
    %c1_55 = arith.constant 1 : index
    %c1_56 = arith.constant 1 : index
    %c0_57 = arith.constant 0 : index
    %55 = vector.load %arg1[%c0_54, %c1_55, %c1_56, %c0_57] : memref<1x18x18x8xbf16, #tpu.memory_space<vmem>>, vector<1x8x8x8xbf16>
    %56 = vector.shape_cast %55 : vector<1x8x8x8xbf16> to vector<8x8x8xbf16>
    %57 = vector.shape_cast %56 : vector<8x8x8xbf16> to vector<64x8xbf16>
    %c8 = arith.constant 8 : index
    %c0_58 = arith.constant 0 : index
    %c0_59 = arith.constant 0 : index
    %58 = vector.load %arg2[%c8, %c0_58, %c0_59] : memref<9x8x16xbf16, #tpu.memory_space<vmem>>, vector<1x8x16xbf16>
    %59 = vector.shape_cast %58 : vector<1x8x16xbf16> to vector<8x16xbf16>
    %cst_60 = arith.constant dense<0.000000e+00> : vector<64x16xf32>
    %60 = tpu.matmul %57, %59, %cst_60 {dimension_numbers = #tpu.dot_dimension_numbers<[1], [0], [0], [1], [0, 0, 1, 1], [], []>} : vector<64x8xbf16>, vector<8x16xbf16>, vector<64x16xf32> -> vector<64x16xf32>
    %61 = arith.addf %54, %60 : vector<64x16xf32>
    %c0_61 = arith.constant 0 : index
    %c0_62 = arith.constant 0 : index
    %62 = vector.load %arg3[%c0_61, %c0_62] : memref<1x16xf32, #tpu.memory_space<vmem>>, vector<1x16xf32>
    %63 = vector.broadcast %62 : vector<1x16xf32> to vector<64x16xf32>
    %64 = arith.addf %61, %63 : vector<64x16xf32>
    %cst_63 = arith.constant 0.000000e+00 : f32
    %65 = vector.broadcast %cst_63 : f32 to vector<64x16xf32>
    %66 = arith.maximumf %64, %65 : vector<64x16xf32>
    %67 = arith.truncf %66 : vector<64x16xf32> to vector<64x16xbf16>
    %68 = vector.shape_cast %67 : vector<64x16xbf16> to vector<1x8x8x16xbf16>
    %c0_64 = arith.constant 0 : index
    %c0_65 = arith.constant 0 : index
    %c0_66 = arith.constant 0 : index
    %c0_67 = arith.constant 0 : index
    %69 = vector.load %arg4[%c0_64, %c0_65, %c0_66, %c0_67] : memref<1x8x8x16xbf16, #tpu.memory_space<vmem>>, vector<1x8x8x16xbf16>
    tpu.vector_store %arg4[%c0_64, %c0_65, %c0_66, %c0_67], %68 {strides = array<i32>} : memref<1x8x8x16xbf16, #tpu.memory_space<vmem>>, vector<1x8x8x16xbf16>,
    return
  }
  func.func @transform_0(%arg0: i32) -> (i32, i32, i32, i32) {
    %c0_i32 = arith.constant 0 : i32
    %c0_i32_0 = arith.constant 0 : i32
    %c0_i32_1 = arith.constant 0 : i32
    %c0_i32_2 = arith.constant 0 : i32
    return %arg0, %c0_i32, %c0_i32_0, %c0_i32_1 : i32, i32, i32, i32
  }
  func.func @transform_1(%arg0: i32) -> (i32, i32, i32) {
    %c0_i32 = arith.constant 0 : i32
    %c0_i32_0 = arith.constant 0 : i32
    %c0_i32_1 = arith.constant 0 : i32
    %c0_i32_2 = arith.constant 0 : i32
    return %c0_i32, %c0_i32_0, %c0_i32_1 : i32, i32, i32
  }
  func.func @transform_2(%arg0: i32) -> (i32, i32) {
    %c0_i32 = arith.constant 0 : i32
    %c0_i32_0 = arith.constant 0 : i32
    %c0_i32_1 = arith.constant 0 : i32
    return %c0_i32, %c0_i32_0 : i32, i32
  }
  func.func @transform_3(%arg0: i32) -> (i32, i32, i32, i32) {
    %c0_i32 = arith.constant 0 : i32
    %c0_i32_0 = arith.constant 0 : i32
    %c0_i32_1 = arith.constant 0 : i32
    %c0_i32_2 = arith.constant 0 : i32
    return %arg0, %c0_i32, %c0_i32_0, %c0_i32_1 : i32, i32, i32, i32
  }
}

module attributes {stable_mosaic.version = 11 : i64} {
  func.func @kernel(%arg0: i32, %arg1: memref<1x18x6x32xbf16, #tpu.memory_space<vmem>>, %arg2: memref<9x32x64xbf16, #tpu.memory_space<vmem>>, %arg3: memref<1x64xf32, #tpu.memory_space<vmem>>, %arg4: memref<1x8x2x64xbf16, #tpu.memory_space<vmem>>) attributes {dimension_semantics = [#tpu.dimension_semantics<parallel>], iteration_bounds = array<i64: 2>, scalar_prefetch = 0 : i64, scratch_operands = 0 : i64, tpu.core_type = #tpu.core_type<tc>, window_params = [{transform_indices = @transform_0, window_bounds = array<i64: 1, 18, 6, 32>}, {pipeline_mode = #tpu.pipeline_mode<synchronous>, transform_indices = @transform_1, window_bounds = array<i64: 9, 32, 64>}, {pipeline_mode = #tpu.pipeline_mode<synchronous>, transform_indices = @transform_2, window_bounds = array<i64: 1, 64>}, {transform_indices = @transform_3, window_bounds = array<i64: 1, 8, 2, 64>}]} {
    %c0 = arith.constant 0 : index
    %c0_0 = arith.constant 0 : index
    %c0_1 = arith.constant 0 : index
    %c0_2 = arith.constant 0 : index
    %0 = vector.load %arg1[%c0, %c0_0, %c0_1, %c0_2] : memref<1x18x6x32xbf16, #tpu.memory_space<vmem>>, vector<1x8x2x32xbf16>
    %1 = vector.shape_cast %0 : vector<1x8x2x32xbf16> to vector<8x2x32xbf16>
    %2 = vector.shape_cast %1 : vector<8x2x32xbf16> to vector<16x32xbf16>
    %c0_3 = arith.constant 0 : index
    %c0_4 = arith.constant 0 : index
    %c0_5 = arith.constant 0 : index
    %3 = vector.load %arg2[%c0_3, %c0_4, %c0_5] : memref<9x32x64xbf16, #tpu.memory_space<vmem>>, vector<1x32x64xbf16>
    %4 = vector.shape_cast %3 : vector<1x32x64xbf16> to vector<32x64xbf16>
    %cst = arith.constant dense<0.000000e+00> : vector<16x64xf32>
    %5 = tpu.matmul %2, %4, %cst {dimension_numbers = #tpu.dot_dimension_numbers<[1], [0], [0], [1], [0, 0, 1, 1], [], []>} : vector<16x32xbf16>, vector<32x64xbf16>, vector<16x64xf32> -> vector<16x64xf32>
    %c0_6 = arith.constant 0 : index
    %c0_7 = arith.constant 0 : index
    %c3 = arith.constant 3 : index
    %c0_8 = arith.constant 0 : index
    %6 = vector.load %arg1[%c0_6, %c0_7, %c3, %c0_8] : memref<1x18x6x32xbf16, #tpu.memory_space<vmem>>, vector<1x8x2x32xbf16>
    %7 = vector.shape_cast %6 : vector<1x8x2x32xbf16> to vector<8x2x32xbf16>
    %8 = vector.shape_cast %7 : vector<8x2x32xbf16> to vector<16x32xbf16>
    %c1 = arith.constant 1 : index
    %c0_9 = arith.constant 0 : index
    %c0_10 = arith.constant 0 : index
    %9 = vector.load %arg2[%c1, %c0_9, %c0_10] : memref<9x32x64xbf16, #tpu.memory_space<vmem>>, vector<1x32x64xbf16>
    %10 = vector.shape_cast %9 : vector<1x32x64xbf16> to vector<32x64xbf16>
    %cst_11 = arith.constant dense<0.000000e+00> : vector<16x64xf32>
    %11 = tpu.matmul %8, %10, %cst_11 {dimension_numbers = #tpu.dot_dimension_numbers<[1], [0], [0], [1], [0, 0, 1, 1], [], []>} : vector<16x32xbf16>, vector<32x64xbf16>, vector<16x64xf32> -> vector<16x64xf32>
    %12 = arith.addf %5, %11 : vector<16x64xf32>
    %c0_12 = arith.constant 0 : index
    %c0_13 = arith.constant 0 : index
    %c1_14 = arith.constant 1 : index
    %c0_15 = arith.constant 0 : index
    %13 = vector.load %arg1[%c0_12, %c0_13, %c1_14, %c0_15] : memref<1x18x6x32xbf16, #tpu.memory_space<vmem>>, vector<1x8x2x32xbf16>
    %14 = vector.shape_cast %13 : vector<1x8x2x32xbf16> to vector<8x2x32xbf16>
    %15 = vector.shape_cast %14 : vector<8x2x32xbf16> to vector<16x32xbf16>
    %c2 = arith.constant 2 : index
    %c0_16 = arith.constant 0 : index
    %c0_17 = arith.constant 0 : index
    %16 = vector.load %arg2[%c2, %c0_16, %c0_17] : memref<9x32x64xbf16, #tpu.memory_space<vmem>>, vector<1x32x64xbf16>
    %17 = vector.shape_cast %16 : vector<1x32x64xbf16> to vector<32x64xbf16>
    %cst_18 = arith.constant dense<0.000000e+00> : vector<16x64xf32>
    %18 = tpu.matmul %15, %17, %cst_18 {dimension_numbers = #tpu.dot_dimension_numbers<[1], [0], [0], [1], [0, 0, 1, 1], [], []>} : vector<16x32xbf16>, vector<32x64xbf16>, vector<16x64xf32> -> vector<16x64xf32>
    %19 = arith.addf %12, %18 : vector<16x64xf32>
    %c0_19 = arith.constant 0 : index
    %c9 = arith.constant 9 : index
    %c0_20 = arith.constant 0 : index
    %c0_21 = arith.constant 0 : index
    %20 = vector.load %arg1[%c0_19, %c9, %c0_20, %c0_21] : memref<1x18x6x32xbf16, #tpu.memory_space<vmem>>, vector<1x8x2x32xbf16>
    %21 = vector.shape_cast %20 : vector<1x8x2x32xbf16> to vector<8x2x32xbf16>
    %22 = vector.shape_cast %21 : vector<8x2x32xbf16> to vector<16x32xbf16>
    %c3_22 = arith.constant 3 : index
    %c0_23 = arith.constant 0 : index
    %c0_24 = arith.constant 0 : index
    %23 = vector.load %arg2[%c3_22, %c0_23, %c0_24] : memref<9x32x64xbf16, #tpu.memory_space<vmem>>, vector<1x32x64xbf16>
    %24 = vector.shape_cast %23 : vector<1x32x64xbf16> to vector<32x64xbf16>
    %cst_25 = arith.constant dense<0.000000e+00> : vector<16x64xf32>
    %25 = tpu.matmul %22, %24, %cst_25 {dimension_numbers = #tpu.dot_dimension_numbers<[1], [0], [0], [1], [0, 0, 1, 1], [], []>} : vector<16x32xbf16>, vector<32x64xbf16>, vector<16x64xf32> -> vector<16x64xf32>
    %26 = arith.addf %19, %25 : vector<16x64xf32>
    %c0_26 = arith.constant 0 : index
    %c9_27 = arith.constant 9 : index
    %c3_28 = arith.constant 3 : index
    %c0_29 = arith.constant 0 : index
    %27 = vector.load %arg1[%c0_26, %c9_27, %c3_28, %c0_29] : memref<1x18x6x32xbf16, #tpu.memory_space<vmem>>, vector<1x8x2x32xbf16>
    %28 = vector.shape_cast %27 : vector<1x8x2x32xbf16> to vector<8x2x32xbf16>
    %29 = vector.shape_cast %28 : vector<8x2x32xbf16> to vector<16x32xbf16>
    %c4 = arith.constant 4 : index
    %c0_30 = arith.constant 0 : index
    %c0_31 = arith.constant 0 : index
    %30 = vector.load %arg2[%c4, %c0_30, %c0_31] : memref<9x32x64xbf16, #tpu.memory_space<vmem>>, vector<1x32x64xbf16>
    %31 = vector.shape_cast %30 : vector<1x32x64xbf16> to vector<32x64xbf16>
    %cst_32 = arith.constant dense<0.000000e+00> : vector<16x64xf32>
    %32 = tpu.matmul %29, %31, %cst_32 {dimension_numbers = #tpu.dot_dimension_numbers<[1], [0], [0], [1], [0, 0, 1, 1], [], []>} : vector<16x32xbf16>, vector<32x64xbf16>, vector<16x64xf32> -> vector<16x64xf32>
    %33 = arith.addf %26, %32 : vector<16x64xf32>
    %c0_33 = arith.constant 0 : index
    %c9_34 = arith.constant 9 : index
    %c1_35 = arith.constant 1 : index
    %c0_36 = arith.constant 0 : index
    %34 = vector.load %arg1[%c0_33, %c9_34, %c1_35, %c0_36] : memref<1x18x6x32xbf16, #tpu.memory_space<vmem>>, vector<1x8x2x32xbf16>
    %35 = vector.shape_cast %34 : vector<1x8x2x32xbf16> to vector<8x2x32xbf16>
    %36 = vector.shape_cast %35 : vector<8x2x32xbf16> to vector<16x32xbf16>
    %c5 = arith.constant 5 : index
    %c0_37 = arith.constant 0 : index
    %c0_38 = arith.constant 0 : index
    %37 = vector.load %arg2[%c5, %c0_37, %c0_38] : memref<9x32x64xbf16, #tpu.memory_space<vmem>>, vector<1x32x64xbf16>
    %38 = vector.shape_cast %37 : vector<1x32x64xbf16> to vector<32x64xbf16>
    %cst_39 = arith.constant dense<0.000000e+00> : vector<16x64xf32>
    %39 = tpu.matmul %36, %38, %cst_39 {dimension_numbers = #tpu.dot_dimension_numbers<[1], [0], [0], [1], [0, 0, 1, 1], [], []>} : vector<16x32xbf16>, vector<32x64xbf16>, vector<16x64xf32> -> vector<16x64xf32>
    %40 = arith.addf %33, %39 : vector<16x64xf32>
    %c0_40 = arith.constant 0 : index
    %c1_41 = arith.constant 1 : index
    %c0_42 = arith.constant 0 : index
    %c0_43 = arith.constant 0 : index
    %41 = vector.load %arg1[%c0_40, %c1_41, %c0_42, %c0_43] : memref<1x18x6x32xbf16, #tpu.memory_space<vmem>>, vector<1x8x2x32xbf16>
    %42 = vector.shape_cast %41 : vector<1x8x2x32xbf16> to vector<8x2x32xbf16>
    %43 = vector.shape_cast %42 : vector<8x2x32xbf16> to vector<16x32xbf16>
    %c6 = arith.constant 6 : index
    %c0_44 = arith.constant 0 : index
    %c0_45 = arith.constant 0 : index
    %44 = vector.load %arg2[%c6, %c0_44, %c0_45] : memref<9x32x64xbf16, #tpu.memory_space<vmem>>, vector<1x32x64xbf16>
    %45 = vector.shape_cast %44 : vector<1x32x64xbf16> to vector<32x64xbf16>
    %cst_46 = arith.constant dense<0.000000e+00> : vector<16x64xf32>
    %46 = tpu.matmul %43, %45, %cst_46 {dimension_numbers = #tpu.dot_dimension_numbers<[1], [0], [0], [1], [0, 0, 1, 1], [], []>} : vector<16x32xbf16>, vector<32x64xbf16>, vector<16x64xf32> -> vector<16x64xf32>
    %47 = arith.addf %40, %46 : vector<16x64xf32>
    %c0_47 = arith.constant 0 : index
    %c1_48 = arith.constant 1 : index
    %c3_49 = arith.constant 3 : index
    %c0_50 = arith.constant 0 : index
    %48 = vector.load %arg1[%c0_47, %c1_48, %c3_49, %c0_50] : memref<1x18x6x32xbf16, #tpu.memory_space<vmem>>, vector<1x8x2x32xbf16>
    %49 = vector.shape_cast %48 : vector<1x8x2x32xbf16> to vector<8x2x32xbf16>
    %50 = vector.shape_cast %49 : vector<8x2x32xbf16> to vector<16x32xbf16>
    %c7 = arith.constant 7 : index
    %c0_51 = arith.constant 0 : index
    %c0_52 = arith.constant 0 : index
    %51 = vector.load %arg2[%c7, %c0_51, %c0_52] : memref<9x32x64xbf16, #tpu.memory_space<vmem>>, vector<1x32x64xbf16>
    %52 = vector.shape_cast %51 : vector<1x32x64xbf16> to vector<32x64xbf16>
    %cst_53 = arith.constant dense<0.000000e+00> : vector<16x64xf32>
    %53 = tpu.matmul %50, %52, %cst_53 {dimension_numbers = #tpu.dot_dimension_numbers<[1], [0], [0], [1], [0, 0, 1, 1], [], []>} : vector<16x32xbf16>, vector<32x64xbf16>, vector<16x64xf32> -> vector<16x64xf32>
    %54 = arith.addf %47, %53 : vector<16x64xf32>
    %c0_54 = arith.constant 0 : index
    %c1_55 = arith.constant 1 : index
    %c1_56 = arith.constant 1 : index
    %c0_57 = arith.constant 0 : index
    %55 = vector.load %arg1[%c0_54, %c1_55, %c1_56, %c0_57] : memref<1x18x6x32xbf16, #tpu.memory_space<vmem>>, vector<1x8x2x32xbf16>
    %56 = vector.shape_cast %55 : vector<1x8x2x32xbf16> to vector<8x2x32xbf16>
    %57 = vector.shape_cast %56 : vector<8x2x32xbf16> to vector<16x32xbf16>
    %c8 = arith.constant 8 : index
    %c0_58 = arith.constant 0 : index
    %c0_59 = arith.constant 0 : index
    %58 = vector.load %arg2[%c8, %c0_58, %c0_59] : memref<9x32x64xbf16, #tpu.memory_space<vmem>>, vector<1x32x64xbf16>
    %59 = vector.shape_cast %58 : vector<1x32x64xbf16> to vector<32x64xbf16>
    %cst_60 = arith.constant dense<0.000000e+00> : vector<16x64xf32>
    %60 = tpu.matmul %57, %59, %cst_60 {dimension_numbers = #tpu.dot_dimension_numbers<[1], [0], [0], [1], [0, 0, 1, 1], [], []>} : vector<16x32xbf16>, vector<32x64xbf16>, vector<16x64xf32> -> vector<16x64xf32>
    %61 = arith.addf %54, %60 : vector<16x64xf32>
    %c0_61 = arith.constant 0 : index
    %c0_62 = arith.constant 0 : index
    %62 = vector.load %arg3[%c0_61, %c0_62] : memref<1x64xf32, #tpu.memory_space<vmem>>, vector<1x64xf32>
    %63 = vector.broadcast %62 : vector<1x64xf32> to vector<16x64xf32>
    %64 = arith.addf %61, %63 : vector<16x64xf32>
    %cst_63 = arith.constant 0.000000e+00 : f32
    %65 = vector.broadcast %cst_63 : f32 to vector<16x64xf32>
    %66 = arith.maximumf %64, %65 : vector<16x64xf32>
    %67 = arith.truncf %66 : vector<16x64xf32> to vector<16x64xbf16>
    %68 = vector.shape_cast %67 : vector<16x64xbf16> to vector<1x8x2x64xbf16>
    %c0_64 = arith.constant 0 : index
    %c0_65 = arith.constant 0 : index
    %c0_66 = arith.constant 0 : index
    %c0_67 = arith.constant 0 : index
    %69 = vector.load %arg4[%c0_64, %c0_65, %c0_66, %c0_67] : memref<1x8x2x64xbf16, #tpu.memory_space<vmem>>, vector<1x8x2x64xbf16>
    tpu.vector_store %arg4[%c0_64, %c0_65, %c0_66, %c0_67], %68 {strides = array<i32>} : memref<1x8x2x64xbf16, #tpu.memory_space<vmem>>, vector<1x8x2x64xbf16>,
    return
  }
  func.func @transform_0(%arg0: i32) -> (i32, i32, i32, i32) {
    %c0_i32 = arith.constant 0 : i32
    %c0_i32_0 = arith.constant 0 : i32
    %c0_i32_1 = arith.constant 0 : i32
    %c0_i32_2 = arith.constant 0 : i32
    return %arg0, %c0_i32, %c0_i32_0, %c0_i32_1 : i32, i32, i32, i32
  }
  func.func @transform_1(%arg0: i32) -> (i32, i32, i32) {
    %c0_i32 = arith.constant 0 : i32
    %c0_i32_0 = arith.constant 0 : i32
    %c0_i32_1 = arith.constant 0 : i32
    %c0_i32_2 = arith.constant 0 : i32
    return %c0_i32, %c0_i32_0, %c0_i32_1 : i32, i32, i32
  }
  func.func @transform_2(%arg0: i32) -> (i32, i32) {
    %c0_i32 = arith.constant 0 : i32
    %c0_i32_0 = arith.constant 0 : i32
    %c0_i32_1 = arith.constant 0 : i32
    return %c0_i32, %c0_i32_0 : i32, i32
  }
  func.func @transform_3(%arg0: i32) -> (i32, i32, i32, i32) {
    %c0_i32 = arith.constant 0 : i32
    %c0_i32_0 = arith.constant 0 : i32
    %c0_i32_1 = arith.constant 0 : i32
    %c0_i32_2 = arith.constant 0 : i32
    return %arg0, %c0_i32, %c0_i32_0, %c0_i32_1 : i32, i32, i32, i32
  }
}

module attributes {stable_mosaic.version = 11 : i64} {
  func.func @kernel(%arg0: i32, %arg1: memref<1x18x4x64xbf16, #tpu.memory_space<vmem>>, %arg2: memref<9x64x128xbf16, #tpu.memory_space<vmem>>, %arg3: memref<1x128xf32, #tpu.memory_space<vmem>>, %arg4: memref<1x8x1x128xbf16, #tpu.memory_space<vmem>>) attributes {dimension_semantics = [#tpu.dimension_semantics<parallel>], iteration_bounds = array<i64: 2>, scalar_prefetch = 0 : i64, scratch_operands = 0 : i64, tpu.core_type = #tpu.core_type<tc>, window_params = [{transform_indices = @transform_0, window_bounds = array<i64: 1, 18, 4, 64>}, {pipeline_mode = #tpu.pipeline_mode<synchronous>, transform_indices = @transform_1, window_bounds = array<i64: 9, 64, 128>}, {pipeline_mode = #tpu.pipeline_mode<synchronous>, transform_indices = @transform_2, window_bounds = array<i64: 1, 128>}, {transform_indices = @transform_3, window_bounds = array<i64: 1, 8, 1, 128>}]} {
    %c0 = arith.constant 0 : index
    %c0_0 = arith.constant 0 : index
    %c0_1 = arith.constant 0 : index
    %c0_2 = arith.constant 0 : index
    %0 = vector.load %arg1[%c0, %c0_0, %c0_1, %c0_2] : memref<1x18x4x64xbf16, #tpu.memory_space<vmem>>, vector<1x8x1x64xbf16>
    %1 = vector.shape_cast %0 : vector<1x8x1x64xbf16> to vector<8x1x64xbf16>
    %2 = vector.shape_cast %1 : vector<8x1x64xbf16> to vector<8x64xbf16>
    %c0_3 = arith.constant 0 : index
    %c0_4 = arith.constant 0 : index
    %c0_5 = arith.constant 0 : index
    %3 = vector.load %arg2[%c0_3, %c0_4, %c0_5] : memref<9x64x128xbf16, #tpu.memory_space<vmem>>, vector<1x64x128xbf16>
    %4 = vector.shape_cast %3 : vector<1x64x128xbf16> to vector<64x128xbf16>
    %cst = arith.constant dense<0.000000e+00> : vector<8x128xf32>
    %5 = tpu.matmul %2, %4, %cst {dimension_numbers = #tpu.dot_dimension_numbers<[1], [0], [0], [1], [0, 0, 1, 1], [], []>} : vector<8x64xbf16>, vector<64x128xbf16>, vector<8x128xf32> -> vector<8x128xf32>
    %c0_6 = arith.constant 0 : index
    %c0_7 = arith.constant 0 : index
    %c2 = arith.constant 2 : index
    %c0_8 = arith.constant 0 : index
    %6 = vector.load %arg1[%c0_6, %c0_7, %c2, %c0_8] : memref<1x18x4x64xbf16, #tpu.memory_space<vmem>>, vector<1x8x1x64xbf16>
    %7 = vector.shape_cast %6 : vector<1x8x1x64xbf16> to vector<8x1x64xbf16>
    %8 = vector.shape_cast %7 : vector<8x1x64xbf16> to vector<8x64xbf16>
    %c1 = arith.constant 1 : index
    %c0_9 = arith.constant 0 : index
    %c0_10 = arith.constant 0 : index
    %9 = vector.load %arg2[%c1, %c0_9, %c0_10] : memref<9x64x128xbf16, #tpu.memory_space<vmem>>, vector<1x64x128xbf16>
    %10 = vector.shape_cast %9 : vector<1x64x128xbf16> to vector<64x128xbf16>
    %cst_11 = arith.constant dense<0.000000e+00> : vector<8x128xf32>
    %11 = tpu.matmul %8, %10, %cst_11 {dimension_numbers = #tpu.dot_dimension_numbers<[1], [0], [0], [1], [0, 0, 1, 1], [], []>} : vector<8x64xbf16>, vector<64x128xbf16>, vector<8x128xf32> -> vector<8x128xf32>
    %12 = arith.addf %5, %11 : vector<8x128xf32>
    %c0_12 = arith.constant 0 : index
    %c0_13 = arith.constant 0 : index
    %c1_14 = arith.constant 1 : index
    %c0_15 = arith.constant 0 : index
    %13 = vector.load %arg1[%c0_12, %c0_13, %c1_14, %c0_15] : memref<1x18x4x64xbf16, #tpu.memory_space<vmem>>, vector<1x8x1x64xbf16>
    %14 = vector.shape_cast %13 : vector<1x8x1x64xbf16> to vector<8x1x64xbf16>
    %15 = vector.shape_cast %14 : vector<8x1x64xbf16> to vector<8x64xbf16>
    %c2_16 = arith.constant 2 : index
    %c0_17 = arith.constant 0 : index
    %c0_18 = arith.constant 0 : index
    %16 = vector.load %arg2[%c2_16, %c0_17, %c0_18] : memref<9x64x128xbf16, #tpu.memory_space<vmem>>, vector<1x64x128xbf16>
    %17 = vector.shape_cast %16 : vector<1x64x128xbf16> to vector<64x128xbf16>
    %cst_19 = arith.constant dense<0.000000e+00> : vector<8x128xf32>
    %18 = tpu.matmul %15, %17, %cst_19 {dimension_numbers = #tpu.dot_dimension_numbers<[1], [0], [0], [1], [0, 0, 1, 1], [], []>} : vector<8x64xbf16>, vector<64x128xbf16>, vector<8x128xf32> -> vector<8x128xf32>
    %19 = arith.addf %12, %18 : vector<8x128xf32>
    %c0_20 = arith.constant 0 : index
    %c9 = arith.constant 9 : index
    %c0_21 = arith.constant 0 : index
    %c0_22 = arith.constant 0 : index
    %20 = vector.load %arg1[%c0_20, %c9, %c0_21, %c0_22] : memref<1x18x4x64xbf16, #tpu.memory_space<vmem>>, vector<1x8x1x64xbf16>
    %21 = vector.shape_cast %20 : vector<1x8x1x64xbf16> to vector<8x1x64xbf16>
    %22 = vector.shape_cast %21 : vector<8x1x64xbf16> to vector<8x64xbf16>
    %c3 = arith.constant 3 : index
    %c0_23 = arith.constant 0 : index
    %c0_24 = arith.constant 0 : index
    %23 = vector.load %arg2[%c3, %c0_23, %c0_24] : memref<9x64x128xbf16, #tpu.memory_space<vmem>>, vector<1x64x128xbf16>
    %24 = vector.shape_cast %23 : vector<1x64x128xbf16> to vector<64x128xbf16>
    %cst_25 = arith.constant dense<0.000000e+00> : vector<8x128xf32>
    %25 = tpu.matmul %22, %24, %cst_25 {dimension_numbers = #tpu.dot_dimension_numbers<[1], [0], [0], [1], [0, 0, 1, 1], [], []>} : vector<8x64xbf16>, vector<64x128xbf16>, vector<8x128xf32> -> vector<8x128xf32>
    %26 = arith.addf %19, %25 : vector<8x128xf32>
    %c0_26 = arith.constant 0 : index
    %c9_27 = arith.constant 9 : index
    %c2_28 = arith.constant 2 : index
    %c0_29 = arith.constant 0 : index
    %27 = vector.load %arg1[%c0_26, %c9_27, %c2_28, %c0_29] : memref<1x18x4x64xbf16, #tpu.memory_space<vmem>>, vector<1x8x1x64xbf16>
    %28 = vector.shape_cast %27 : vector<1x8x1x64xbf16> to vector<8x1x64xbf16>
    %29 = vector.shape_cast %28 : vector<8x1x64xbf16> to vector<8x64xbf16>
    %c4 = arith.constant 4 : index
    %c0_30 = arith.constant 0 : index
    %c0_31 = arith.constant 0 : index
    %30 = vector.load %arg2[%c4, %c0_30, %c0_31] : memref<9x64x128xbf16, #tpu.memory_space<vmem>>, vector<1x64x128xbf16>
    %31 = vector.shape_cast %30 : vector<1x64x128xbf16> to vector<64x128xbf16>
    %cst_32 = arith.constant dense<0.000000e+00> : vector<8x128xf32>
    %32 = tpu.matmul %29, %31, %cst_32 {dimension_numbers = #tpu.dot_dimension_numbers<[1], [0], [0], [1], [0, 0, 1, 1], [], []>} : vector<8x64xbf16>, vector<64x128xbf16>, vector<8x128xf32> -> vector<8x128xf32>
    %33 = arith.addf %26, %32 : vector<8x128xf32>
    %c0_33 = arith.constant 0 : index
    %c9_34 = arith.constant 9 : index
    %c1_35 = arith.constant 1 : index
    %c0_36 = arith.constant 0 : index
    %34 = vector.load %arg1[%c0_33, %c9_34, %c1_35, %c0_36] : memref<1x18x4x64xbf16, #tpu.memory_space<vmem>>, vector<1x8x1x64xbf16>
    %35 = vector.shape_cast %34 : vector<1x8x1x64xbf16> to vector<8x1x64xbf16>
    %36 = vector.shape_cast %35 : vector<8x1x64xbf16> to vector<8x64xbf16>
    %c5 = arith.constant 5 : index
    %c0_37 = arith.constant 0 : index
    %c0_38 = arith.constant 0 : index
    %37 = vector.load %arg2[%c5, %c0_37, %c0_38] : memref<9x64x128xbf16, #tpu.memory_space<vmem>>, vector<1x64x128xbf16>
    %38 = vector.shape_cast %37 : vector<1x64x128xbf16> to vector<64x128xbf16>
    %cst_39 = arith.constant dense<0.000000e+00> : vector<8x128xf32>
    %39 = tpu.matmul %36, %38, %cst_39 {dimension_numbers = #tpu.dot_dimension_numbers<[1], [0], [0], [1], [0, 0, 1, 1], [], []>} : vector<8x64xbf16>, vector<64x128xbf16>, vector<8x128xf32> -> vector<8x128xf32>
    %40 = arith.addf %33, %39 : vector<8x128xf32>
    %c0_40 = arith.constant 0 : index
    %c1_41 = arith.constant 1 : index
    %c0_42 = arith.constant 0 : index
    %c0_43 = arith.constant 0 : index
    %41 = vector.load %arg1[%c0_40, %c1_41, %c0_42, %c0_43] : memref<1x18x4x64xbf16, #tpu.memory_space<vmem>>, vector<1x8x1x64xbf16>
    %42 = vector.shape_cast %41 : vector<1x8x1x64xbf16> to vector<8x1x64xbf16>
    %43 = vector.shape_cast %42 : vector<8x1x64xbf16> to vector<8x64xbf16>
    %c6 = arith.constant 6 : index
    %c0_44 = arith.constant 0 : index
    %c0_45 = arith.constant 0 : index
    %44 = vector.load %arg2[%c6, %c0_44, %c0_45] : memref<9x64x128xbf16, #tpu.memory_space<vmem>>, vector<1x64x128xbf16>
    %45 = vector.shape_cast %44 : vector<1x64x128xbf16> to vector<64x128xbf16>
    %cst_46 = arith.constant dense<0.000000e+00> : vector<8x128xf32>
    %46 = tpu.matmul %43, %45, %cst_46 {dimension_numbers = #tpu.dot_dimension_numbers<[1], [0], [0], [1], [0, 0, 1, 1], [], []>} : vector<8x64xbf16>, vector<64x128xbf16>, vector<8x128xf32> -> vector<8x128xf32>
    %47 = arith.addf %40, %46 : vector<8x128xf32>
    %c0_47 = arith.constant 0 : index
    %c1_48 = arith.constant 1 : index
    %c2_49 = arith.constant 2 : index
    %c0_50 = arith.constant 0 : index
    %48 = vector.load %arg1[%c0_47, %c1_48, %c2_49, %c0_50] : memref<1x18x4x64xbf16, #tpu.memory_space<vmem>>, vector<1x8x1x64xbf16>
    %49 = vector.shape_cast %48 : vector<1x8x1x64xbf16> to vector<8x1x64xbf16>
    %50 = vector.shape_cast %49 : vector<8x1x64xbf16> to vector<8x64xbf16>
    %c7 = arith.constant 7 : index
    %c0_51 = arith.constant 0 : index
    %c0_52 = arith.constant 0 : index
    %51 = vector.load %arg2[%c7, %c0_51, %c0_52] : memref<9x64x128xbf16, #tpu.memory_space<vmem>>, vector<1x64x128xbf16>
    %52 = vector.shape_cast %51 : vector<1x64x128xbf16> to vector<64x128xbf16>
    %cst_53 = arith.constant dense<0.000000e+00> : vector<8x128xf32>
    %53 = tpu.matmul %50, %52, %cst_53 {dimension_numbers = #tpu.dot_dimension_numbers<[1], [0], [0], [1], [0, 0, 1, 1], [], []>} : vector<8x64xbf16>, vector<64x128xbf16>, vector<8x128xf32> -> vector<8x128xf32>
    %54 = arith.addf %47, %53 : vector<8x128xf32>
    %c0_54 = arith.constant 0 : index
    %c1_55 = arith.constant 1 : index
    %c1_56 = arith.constant 1 : index
    %c0_57 = arith.constant 0 : index
    %55 = vector.load %arg1[%c0_54, %c1_55, %c1_56, %c0_57] : memref<1x18x4x64xbf16, #tpu.memory_space<vmem>>, vector<1x8x1x64xbf16>
    %56 = vector.shape_cast %55 : vector<1x8x1x64xbf16> to vector<8x1x64xbf16>
    %57 = vector.shape_cast %56 : vector<8x1x64xbf16> to vector<8x64xbf16>
    %c8 = arith.constant 8 : index
    %c0_58 = arith.constant 0 : index
    %c0_59 = arith.constant 0 : index
    %58 = vector.load %arg2[%c8, %c0_58, %c0_59] : memref<9x64x128xbf16, #tpu.memory_space<vmem>>, vector<1x64x128xbf16>
    %59 = vector.shape_cast %58 : vector<1x64x128xbf16> to vector<64x128xbf16>
    %cst_60 = arith.constant dense<0.000000e+00> : vector<8x128xf32>
    %60 = tpu.matmul %57, %59, %cst_60 {dimension_numbers = #tpu.dot_dimension_numbers<[1], [0], [0], [1], [0, 0, 1, 1], [], []>} : vector<8x64xbf16>, vector<64x128xbf16>, vector<8x128xf32> -> vector<8x128xf32>
    %61 = arith.addf %54, %60 : vector<8x128xf32>
    %c0_61 = arith.constant 0 : index
    %c0_62 = arith.constant 0 : index
    %62 = vector.load %arg3[%c0_61, %c0_62] : memref<1x128xf32, #tpu.memory_space<vmem>>, vector<1x128xf32>
    %63 = vector.broadcast %62 : vector<1x128xf32> to vector<8x128xf32>
    %64 = arith.addf %61, %63 : vector<8x128xf32>
    %cst_63 = arith.constant 0.000000e+00 : f32
    %65 = vector.broadcast %cst_63 : f32 to vector<8x128xf32>
    %66 = arith.maximumf %64, %65 : vector<8x128xf32>
    %67 = arith.truncf %66 : vector<8x128xf32> to vector<8x128xbf16>
    %68 = vector.shape_cast %67 : vector<8x128xbf16> to vector<1x8x1x128xbf16>
    %c0_64 = arith.constant 0 : index
    %c0_65 = arith.constant 0 : index
    %c0_66 = arith.constant 0 : index
    %c0_67 = arith.constant 0 : index
    %69 = vector.load %arg4[%c0_64, %c0_65, %c0_66, %c0_67] : memref<1x8x1x128xbf16, #tpu.memory_space<vmem>>, vector<1x8x1x128xbf16>
    tpu.vector_store %arg4[%c0_64, %c0_65, %c0_66, %c0_67], %68 {strides = array<i32>} : memref<1x8x1x128xbf16, #tpu.memory_space<vmem>>, vector<1x8x1x128xbf16>,
    return
  }
  func.func @transform_0(%arg0: i32) -> (i32, i32, i32, i32) {
    %c0_i32 = arith.constant 0 : i32
    %c0_i32_0 = arith.constant 0 : i32
    %c0_i32_1 = arith.constant 0 : i32
    %c0_i32_2 = arith.constant 0 : i32
    return %arg0, %c0_i32, %c0_i32_0, %c0_i32_1 : i32, i32, i32, i32
  }
  func.func @transform_1(%arg0: i32) -> (i32, i32, i32) {
    %c0_i32 = arith.constant 0 : i32
    %c0_i32_0 = arith.constant 0 : i32
    %c0_i32_1 = arith.constant 0 : i32
    %c0_i32_2 = arith.constant 0 : i32
    return %c0_i32, %c0_i32_0, %c0_i32_1 : i32, i32, i32
  }
  func.func @transform_2(%arg0: i32) -> (i32, i32) {
    %c0_i32 = arith.constant 0 : i32
    %c0_i32_0 = arith.constant 0 : i32
    %c0_i32_1 = arith.constant 0 : i32
    return %c0_i32, %c0_i32_0 : i32, i32
  }
  func.func @transform_3(%arg0: i32) -> (i32, i32, i32, i32) {
    %c0_i32 = arith.constant 0 : i32
    %c0_i32_0 = arith.constant 0 : i32
    %c0_i32_1 = arith.constant 0 : i32
    %c0_i32_2 = arith.constant 0 : i32
    return %arg0, %c0_i32, %c0_i32_0, %c0_i32_1 : i32, i32, i32, i32
  }
}

</mosaic_0001>

<bundles_post_ra>
// kernel: _lambda_.7
= control target key start
LH: loop header
LB: loop body
LE: loop exit
PB: predicated region body
PF: predicated region fallthrough
CT: control target
= control target key end

     0   :  { %s3563_s12 = smov 0   ;;  %s4496_s0 = inlined_call_operand.vmem [shape: bf16[4,10,18,8], index: 0, kind: input, shape index: {}]   ;;  %s4497_s1 = inlined_call_operand.vmem [shape: bf16[9,8,8], index: 1, kind: input, shape index: {}]   ;;  %s4498_s2 = inlined_call_operand.vmem [shape: f32[1,8], index: 2, kind: input, shape index: {}]   ;;  %s4499_s3 = inlined_call_operand.vmem [shape: bf16[4,8,16,8], index: 3, kind: output, shape index: {}]  }
   0x1 LB: > { %s2802_s13 = sadd.s32 4294967295, %s3541_s12   ;;  %p2806_p0 = scmp.ge.s32.totalorder %s3541_s12, 1  ;;  %s3541_s12 = sphi %s3563_s12, %s13_s12  }
   0x2   : > { %p137_p1 = scmp.lt.s32.totalorder %s3541_s12, 5 }
   0x4   : > { %p138_p2 = pnand %p2806_p0, %p137_p1 }
   0x6   : > { %141 = sbr.rel (%p138_p2) target bundleno = 419 (0x1a3), region = 32 }
   0xd   : > { %v2810_v0 = vld [vmem:[%s4497_s1 + $0x4] sm:$0xf]  ;;  %vm443_vm0 = vcmask 1043456   ;;  %v2925_v1 = vld [vmem:[%s4497_s1 + $0x10] sm:$0xf]  ;;  %p161_p3 = scmp.lt.s32.totalorder %s2802_s13, 3 }
   0xe   : > { %3491 = vmatprep.subr.msk.bf16.mxu1 %vm443_vm0, %v2810_v0  ;;  %3495 = vmatprep.subr.msk.bf16.mxu0 %vm443_vm0, %v2925_v1  ;;  %v445_v2 = vsel %vm443_vm0, %v2810_v0, 0  ;;  %v3581_v3 = vsel %vm443_vm0, %v2925_v1, 0  ;;  %v188_v4 = vld [vmem:[%s4497_s1] sm:$0xf]  ;;  %v2958_v5 = vld [vmem:[%s4497_s1 + $0x14] sm:$0xf] }
   0xf   : > { %3200 = vmatpush3.bf16.msra.mxu1 %v445_v2  ;;  %3272 = vmatpush3.bf16.msra.mxu0 %v3581_v3  ;;  %s4523_s13 = smov (!%p161_p3, %s2802_s13), 3  ;;  %vm197_vm1 = vsmask.f32 3328  ;;  %vm198_vm2 = vsmask.f32 7440  ;;  %vm418_vm3 = vcmask 64512  }
  0x10   : > { %3492 = vmatprep.subr.msk.bf16.mxu1 %vm443_vm0, %v188_v4  ;;  %3497 = vmatprep.subr.msk.bf16.mxu0 %vm443_vm0, %v2958_v5  ;;  %s3501_s22 = smul.u32 120, %s4523_s13  ;;  %v3622_v17 = vsel %vm443_vm0, %v188_v4, 0  ;;  %v3628_v26 = vld [vmem:[%s4497_s1 + $0x18] sm:$0xf]  ;;  %vm3637_vm4 = vmor %vm197_vm1, %vm198_vm2  ;;  %v3645_v37 = vsel %vm443_vm0, %v2958_v5, 0  ;;  %vm732_vm5 = vcmask 1042432  }
  0x11   : > { %v3649_v41 = vsel %vm443_vm0, %v3628_v26, 0  ;;  %vm733_vm6 = vcmask 1046532   ;;  %v4437_v32 = vld [vmem:[%s4498_s2] ss:$0 sm:$0xff]  ;;  %s3101_s15 = sshll.u32 %s4523_s13, 6  ;;  %vm2730_vm8 = vcmask 60416  }
  0x12   : > { %s3598_s25 = scalar_lea.vmem %s4496_s0, %s3501_s22  ;;  %vm3792_vm7 = vmor %vm732_vm5, %vm733_vm6  ;;  %s4446_s18 = scalar_lea.vmem %s4499_s3, %s3101_s15 }
  0x13   : > { %v3601_v6 = vld [vmem:[%s3598_s25] sm:$0xf]  ;;  %v3604_v7 = vld [vmem:[%s3598_s25 + $0x4] sm:$0xf]  ;;  %v3607_v8 = vld [vmem:[%s3598_s25 + $0x8] sm:$0x1] }
  0x14   : > { %v201_v9 = vshrl.u32 %v3601_v6, 16  ;;  %v204_v10 = vshll.u32 %v3601_v6, 16  ;;  %v210_v11 = vshll.u32 %v3604_v7, 16  ;;  %v214_v12 = vshrl.u32 %v3604_v7, 16  ;;  %v2901_v13 = vld [vmem:[%s3598_s25 + $0xc] sm:$0xf] }
  0x15   : > { %v220_v14 = vshll.u32 %v3607_v8, 16  ;;  %v3616_v15 = vld [vmem:[%s3598_s25 + $0x10] sm:$0xf]  ;;  %v3619_v16 = vld [vmem:[%s3598_s25 + $0x14] sm:$0x1]  ;;  %v1181_v23 = vshrl.u32 %v2901_v13, 16 }
  0x16   : > { %v203_v18 = vrot.slane %v201_v9, 4  ;;  %v206_v19 = vrot.slane %v204_v10, 5  ;;  %v212_v20 = vrot.slane %v210_v11, 5  ;;  %v216_v21 = vrot.slane %v214_v12, 4  ;;  %v3633_v31 = vld [vmem:[%s3598_s25 + $0xc] sm:$0xf] }
  0x17   : > { %v222_v22 = vrot.slane %v220_v14, 5  ;;  %v1184_v24 = vshll.u32 %v2901_v13, 16  ;;  %v1190_v25 = vshll.u32 %v3616_v15, 16  ;;  %v1194_v29 = vshrl.u32 %v3616_v15, 16  ;;  %v3642_v36 = vld [vmem:[%s3598_s25 + $0x10] sm:$0xf] }
  0x18   : > { %v207_v27 = vor.u32 %v206_v19, %v203_v18  ;;  %v217_v28 = vor.u32 %v216_v21, %v212_v20  ;;  %v1200_v30 = vshll.u32 %v3619_v16, 16  ;;  %v1183_v33 = vrot.slane %v1181_v23, 4  ;;  %v3652_v44 = vld [vmem:[%s3598_s25 + $0x14] sm:$0x1]  ;;  %v2904_v55 = vld [vmem:[%s3598_s25 + $0x18] sm:$0xf] }
  0x19   : > { %v1186_v34 = vrot.slane %v1184_v24, 5  ;;  %v1192_v35 = vrot.slane %v1190_v25, 5  ;;  %v1196_v40 = vrot.slane %v1194_v29, 4  ;;  %v225_v45 = vshrl.u32 %v3633_v31, 16  ;;  %v3665_v60 = vld [vmem:[%s3598_s25 + $0x1c] sm:$0xf] }
  0x1a   : > { %v208_v38 = vrot.slane %v207_v27, 4  ;;  %v218_v39 = vrot.slane %v217_v28, 4  ;;  %v1202_v43 = vrot.slane %v1200_v30, 5  ;;  %v228_v46 = vshll.u32 %v3633_v31, 16  ;;  %v3673_v1 = vld [vmem:[%s3598_s25 + $0x20] sm:$0x1] }
  0x1b   : > { %v1187_v42 = vor.u32 %v1186_v34, %v1183_v33  ;;  %v1197_v49 = vor.u32 %v1196_v40, %v1192_v35  ;;  %v234_v50 = vshll.u32 %v3642_v36, 16  ;;  %v227_v53 = vrot.slane %v225_v45, 4  ;;  %v3681_v21 = vld [vmem:[%s3598_s25 + $0x18] sm:$0xf]  ;;  %v3688_v27 = vld [vmem:[%s3598_s25 + $0x1c] sm:$0xf] }
  0x1c   : > { %v213_v47 = vsel %vm3637_vm4, %v208_v38, %v212_v20  ;;  %v223_v48 = vsel %vm3637_vm4, %v218_v39, %v222_v22  ;;  %v230_v54 = vrot.slane %v228_v46, 5  ;;  %v238_v58 = vshrl.u32 %v3642_v36, 16  ;;  %v3696_v38 = vld [vmem:[%s3598_s25 + $0x20] sm:$0x1] }
  0x1d   : > { %v2811_v51 = vcombine.low %v213_v47, %v223_v48  ;;  %v1188_v52 = vrot.slane %v1187_v42, 4  ;;  %v1198_v56 = vrot.slane %v1197_v49, 4  ;;  %v236_v57 = vrot.slane %v234_v50, 5  ;;  %v2907_v47 = vld [vmem:[%s3598_s25 + $0x24] sm:$0xf] }
  0x1e   : > { %v244_v59 = vshll.u32 %v3652_v44, 16  ;;  %v1572_v62 = vrot.slane %v3616_v15, 5  ;;  %v1575_v63 = vrot.slane %v3619_v16, 5  ;;  %v231_v0 = vor.u32 %v230_v54, %v227_v53 }
  0x1f   : > { %3201 = vmatprep.mubr.msk.bf16.mxu1 %vm418_vm3, %v2811_v51  ;;  %v1193_v61 = vsel %vm3637_vm4, %v1188_v52, %v1192_v35  ;;  %v1203_v2 = vsel %vm3637_vm4, %v1198_v56, %v1202_v43  ;;  %v240_v4 = vrot.slane %v238_v58, 4  ;;  %v1205_v9 = vshrl.u32 %v2904_v55, 16  ;;  %v3706_v52 = vld [vmem:[%s3598_s25 + $0x28] sm:$0xf] }
  0x20   : > { %v246_v5 = vrot.slane %v244_v59, 5  ;;  %v2926_v10 = vcombine.low %v1193_v61, %v1203_v2  ;;  %v232_v11 = vrot.slane %v231_v0, 4  ;;  %v1208_v12 = vshll.u32 %v2904_v55, 16  ;;  %v3718_v61 = vld [vmem:[%s3598_s25 + $0x2c] sm:$0x1] }
  0x21   : > { %v1214_v13 = vshll.u32 %v3665_v60, 16  ;;  %v241_v14 = vor.u32 %v240_v4, %v236_v57  ;;  %v1207_v18 = vrot.slane %v1205_v9, 4  ;;  %v1218_v19 = vshrl.u32 %v3665_v60, 16 }
  0x22   : > { %v1224_v20 = vshll.u32 %v3673_v1, 16  ;;  %3273 = vmatprep.mubr.msk.bf16.mxu0 %vm418_vm3, %v2926_v10  ;;  %v237_v22 = vsel %vm3637_vm4, %v232_v11, %v236_v57  ;;  %v1210_v23 = vrot.slane %v1208_v12, 5  ;;  %v1579_v25 = vrot.slane %v3665_v60, 5  ;;  %v3712_v57 = vld [vmem:[%s4497_s1 + $0x8] sm:$0xf] }
  0x23   : > { %v1216_v24 = vrot.slane %v1214_v13, 5  ;;  %v242_v28 = vrot.slane %v241_v14, 4  ;;  %v1220_v29 = vrot.slane %v1218_v19, 4  ;;  %v1582_v33 = vrot.slane %v3673_v1, 5  ;;  %v3725_v11 = vld [vmem:[%s3598_s25 + $0x24] sm:$0xf] }
  0x24   : > { %v1226_v30 = vrot.slane %v1224_v20, 5  ;;  %v1211_v34 = vor.u32 %v1210_v23, %v1207_v18  ;;  %v3693_v35 = vrot.slane %v1579_v25, 4  ;;  %v249_v39 = vshrl.u32 %v3681_v21, 16  ;;  %v3728_v19 = vld [vmem:[%s3598_s25 + $0x28] sm:$0xf] }
  0x25   : > { %v252_v40 = vshll.u32 %v3681_v21, 16  ;;  %v247_v42 = vsel %vm3637_vm4, %v242_v28, %v246_v5  ;;  %v1221_v43 = vor.u32 %v1220_v29, %v1216_v24  ;;  %v258_v45 = vshll.u32 %v3688_v27, 16  ;;  %v3738_v29 = vld [vmem:[%s3598_s25 + $0x2c] sm:$0x1] }
  0x26   : > { %v262_v46 = vshrl.u32 %v3688_v27, 16  ;;  %v2812_v48 = vcombine.low %v237_v22, %v247_v42  ;;  %v1212_v49 = vrot.slane %v1211_v34, 4  ;;  %v251_v50 = vrot.slane %v249_v39, 4 }
  0x27   : > { %v254_v51 = vrot.slane %v252_v40, 5  ;;  %v1222_v53 = vrot.slane %v1221_v43, 4  ;;  %v260_v54 = vrot.slane %v258_v45, 5  ;;  %v268_v56 = vshll.u32 %v3696_v38, 16  ;;  %v2910_v45 = vld [vmem:[%s3598_s25 + $0x30] sm:$0xf] }
  0x28   : > { %v264_v55 = vrot.slane %v262_v46, 4  ;;  %3202 = vmatmul.mubr.msk.bf16.vlgmr.msra.gmra.mrb[0].mxu1 %vm418_vm3, %v2812_v48  ;;  %v1217_v58 = vsel %vm3637_vm4, %v1212_v49, %v1216_v24  ;;  %v1229_v0 = vshrl.u32 %v2907_v47, 16  ;;  %v1232_v2 = vshll.u32 %v2907_v47, 16 }
  0x29   : > { %v255_v59 = vor.u32 %v254_v51, %v251_v50  ;;  %3218 = vmatpush3.bf16.msra.mxu1 %v3622_v17  ;;  %v1227_v4 = vsel %vm3637_vm4, %v1222_v53, %v1226_v30  ;;  %v270_v9 = vrot.slane %v268_v56, 5  ;;  %v1238_v10 = vshll.u32 %v3706_v52, 16  ;;  %v3748_v50 = vld [vmem:[%s3598_s25 + $0x34] sm:$0xf] }
  0x2a   : > { %v265_v5 = vor.u32 %v264_v55, %v260_v54  ;;  %v2927_v12 = vcombine.low %v1217_v58, %v1227_v4  ;;  %v1231_v14 = vrot.slane %v1229_v0, 4  ;;  %v1234_v18 = vrot.slane %v1232_v2, 5  ;;  %3493 = vmatprep.subr.msk.bf16.mxu1 %vm443_vm0, %v3712_v57  ;;  %v3758_v58 = vld [vmem:[%s3598_s25 + $0x38] sm:$0x1] }
  0x2b   : > { %v256_v13 = vrot.slane %v255_v59, 4  ;;  %v1240_v20 = vrot.slane %v1238_v10, 5  ;;  %v1242_v22 = vshrl.u32 %v3706_v52, 16  ;;  %v1248_v23 = vshll.u32 %v3718_v61, 16 }
  0x2c   : > { %v266_v17 = vrot.slane %v265_v5, 4  ;;  %3274 = vmatmul.mubr.msk.bf16.vlgmr.msra.gmra.mrb[0].mxu0 %vm418_vm3, %v2927_v12  ;;  %v1235_v28 = vor.u32 %v1234_v18, %v1231_v14  ;;  %v273_v30 = vshrl.u32 %v3725_v11, 16  ;;  %v276_v34 = vshll.u32 %v3725_v11, 16  ;;  %v3763_v14 = vld [vmem:[%s3598_s25 + $0x30] sm:$0xf] }
  0x2d   : > { %v261_v24 = vsel %vm3637_vm4, %v256_v13, %v260_v54  ;;  %3290 = vmatpush3.bf16.msra.mxu0 %v3645_v37  ;;  %v1244_v40 = vrot.slane %v1242_v22, 4  ;;  %v1250_v42 = vrot.slane %v1248_v23, 5  ;;  %v282_v43 = vshll.u32 %v3728_v19, 16  ;;  %v3769_v23 = vld [vmem:[%s3598_s25 + $0x34] sm:$0xf] }
  0x2e   : > { %v271_v39 = vsel %vm3637_vm4, %v266_v17, %v270_v9  ;;  %v1236_v47 = vrot.slane %v1235_v28, 4  ;;  %v275_v48 = vrot.slane %v273_v30, 4  ;;  %v278_v49 = vrot.slane %v276_v34, 5  ;;  %3498 = vmatprep.subr.msk.bf16.mxu0 %vm443_vm0, %v3628_v26 }
  0x2f   : > { %v2813_v46 = vcombine.low %v261_v24, %v271_v39  ;;  %v1245_v37 = vor.u32 %v1244_v40, %v1240_v20  ;;  %v284_v51 = vrot.slane %v282_v43, 5  ;;  %v286_v53 = vshrl.u32 %v3728_v19, 16  ;;  %v3774_v39 = vld [vmem:[%s3598_s25 + $0x38] sm:$0x1] }
  0x30   : > { %v292_v54 = vshll.u32 %v3738_v29, 16  ;;  %v1241_v55 = vsel %vm3637_vm4, %v1236_v47, %v1240_v20  ;;  %v279_v56 = vor.u32 %v278_v49, %v275_v48  ;;  %v1253_v59 = vshrl.u32 %v2910_v45, 16 }
  0x31   : > { %3205 = vmatprep.mubr.msk.bf16.mxu1 %vm418_vm3, %v2813_v46  ;;  %v1256_v0 = vshll.u32 %v2910_v45, 16  ;;  %v1246_v2 = vrot.slane %v1245_v37, 4  ;;  %v288_v26 = vrot.slane %v286_v53, 4  ;;  %v1262_v5 = vshll.u32 %v3748_v50, 16  ;;  %v2942_v37 = vld [vmem:[%s3598_s25 + $0xc] sm:$0xe] }
  0x32   : > { %v294_v4 = vrot.slane %v292_v54, 5  ;;  %v280_v9 = vrot.slane %v279_v56, 4  ;;  %v1255_v10 = vrot.slane %v1253_v59, 4  ;;  %v1266_v13 = vshrl.u32 %v3748_v50, 16  ;;  %v3786_v56 = vld [vmem:[%s3598_s25 + $0x3c] sm:$0xf] }
  0x33   : > { %v1258_v12 = vrot.slane %v1256_v0, 5  ;;  %v1251_v18 = vsel %vm3637_vm4, %v1246_v2, %v1250_v42  ;;  %v289_v17 = vor.u32 %v288_v26, %v284_v51  ;;  %v1264_v20 = vrot.slane %v1262_v5, 5 }
  0x34   : > { %v1272_v22 = vshll.u32 %v3758_v58, 16  ;;  %v2928_v24 = vcombine.low %v1241_v55, %v1251_v18  ;;  %v285_v28 = vsel %vm3637_vm4, %v280_v9, %v284_v51  ;;  %v1268_v34 = vrot.slane %v1266_v13, 4  ;;  %v3800_v18 = vld [vmem:[%s3598_s25 + $0x44] sm:$0x1] }
  0x35   : > { %v1259_v30 = vor.u32 %v1258_v12, %v1255_v10  ;;  %v290_v40 = vrot.slane %v289_v17, 4  ;;  %v297_v42 = vshrl.u32 %v3763_v14, 16  ;;  %v300_v45 = vshll.u32 %v3763_v14, 16  ;;  %v2943_v17 = vld [vmem:[%s3598_s25 + $0x18] sm:$0xe] }
  0x36   : > { %v1274_v43 = vrot.slane %v1272_v22, 5  ;;  %3277 = vmatprep.mubr.msk.bf16.mxu0 %vm418_vm3, %v2928_v24  ;;  %v1269_v47 = vor.u32 %v1268_v34, %v1264_v20  ;;  %v306_v48 = vshll.u32 %v3769_v23, 16  ;;  %v310_v49 = vshrl.u32 %v3769_v23, 16 }
  0x37   : > { %v1260_v46 = vrot.slane %v1259_v30, 4  ;;  %v295_v51 = vsel %vm3637_vm4, %v290_v40, %v294_v4  ;;  %v299_v53 = vrot.slane %v297_v42, 4  ;;  %v302_v54 = vrot.slane %v300_v45, 5  ;;  %v3797_v4 = vld [vmem:[%s3598_s25 + $0x40] sm:$0xf] }
  0x38   : > { %v316_v55 = vshll.u32 %v3774_v39, 16  ;;  %v2814_v59 = vcombine.low %v285_v28, %v295_v51  ;;  %v1270_v2 = vrot.slane %v1269_v47, 4  ;;  %v308_v26 = vrot.slane %v306_v48, 5  ;;  %v3811_v30 = vld [vmem:[%s3598_s25 + $0x48] sm:$0xf] }
  0x39   : > { %v1265_v0 = vsel %vm3637_vm4, %v1260_v46, %v1264_v20  ;;  %v303_v9 = vor.u32 %v302_v54, %v299_v53  ;;  %v312_v10 = vrot.slane %v310_v49, 4  ;;  %v2950_v13 = vrot.slane %v2942_v37, 9 }
  0x3a   : > { %v318_v12 = vrot.slane %v316_v55, 5  ;;  %3206 = vmatmul.mubr.msk.bf16.gmra.mrb[4].mxu1 %vm418_vm3, %v2814_v59  ;;  %v1275_v20 = vsel %vm3637_vm4, %v1270_v2, %v1274_v43  ;;  %v1574_v22 = vrot.slane %v1572_v62, 4  ;;  %v321_v24 = vshrl.u32 %v3786_v56, 16  ;;  %v3831_v55 = vld [vmem:[%s3598_s25 + $0x50] sm:$0x1] }
  0x3b   : > { %v324_v28 = vshll.u32 %v3786_v56, 16  ;;  %v2929_v34 = vcombine.low %v1265_v0, %v1275_v20  ;;  %v304_v40 = vrot.slane %v303_v9, 4  ;;  %v313_v42 = vor.u32 %v312_v10, %v308_v26 }
  0x3c   : > { %v1573_v45 = vsel %vm3792_vm7, %v2950_v13, %v1572_v62  ;;  %v1576_v43 = vsel %vm3792_vm7, %v1574_v22, %v1575_v63  ;;  %v323_v46 = vrot.slane %v321_v24, 4  ;;  %v330_v48 = vshll.u32 %v3797_v4, 16  ;;  %v3827_v62 = vld [vmem:[%s3598_s25 + $0x4c] sm:$0xf] }
  0x3d   : > { %v326_v47 = vrot.slane %v324_v28, 5  ;;  %3278 = vmatmul.mubr.msk.bf16.gmra.mrb[4].mxu0 %vm418_vm3, %v2929_v34  ;;  %v309_v49 = vsel %vm3637_vm4, %v304_v40, %v308_v26  ;;  %v314_v37 = vrot.slane %v313_v42, 4  ;;  %v2959_v15 = vcombine.low %v1573_v45, %v1576_v43  ;;  %v3849_v28 = vld [vmem:[%s3598_s25 + $0x54] sm:$0xf]  ;;  %v3860_v34 = vld [vmem:[%s4497_s1 + $0x1c] sm:$0xf] }
  0x3e   : > { %v334_v51 = vshrl.u32 %v3797_v4, 16  ;;  %v332_v53 = vrot.slane %v330_v48, 5  ;;  %v340_v63 = vshll.u32 %v3800_v18, 16  ;;  %v2951_v54 = vrot.slane %v2943_v17, 9 }
  0x3f   : > { %v327_v16 = vor.u32 %v326_v47, %v323_v46  ;;  %v319_v59 = vsel %vm3637_vm4, %v314_v37, %v318_v12  ;;  %3291 = vmatprep.mubr.msk.bf16.mxu0 %vm418_vm3, %v2959_v15  ;;  %v1583_v2 = vsel %vm3792_vm7, %v3693_v35, %v1582_v33  ;;  %v345_v26 = vshrl.u32 %v3811_v30, 16  ;;  %v2944_v12 = vld [vmem:[%s3598_s25 + $0x24] sm:$0xe]  ;;  %v3865_v37 = vld [vmem:[%s3598_s25 + $0x58] sm:$0xf] }
  0x40   : > { %v336_v0 = vrot.slane %v334_v51, 4  ;;  %v2815_v9 = vcombine.low %v309_v49, %v319_v59  ;;  %v342_v13 = vrot.slane %v340_v63, 5  ;;  %v1580_v17 = vsel %vm3792_vm7, %v2951_v54, %v1579_v25  ;;  %v3874_v54 = vld [vmem:[%s3598_s25 + $0x5c] sm:$0x1] }
  0x41   : > { %v328_v10 = vrot.slane %v327_v16, 4  ;;  %v2960_v22 = vcombine.low %v1580_v17, %v1583_v2  ;;  %v347_v24 = vrot.slane %v345_v26, 4  ;;  %v348_v1 = vshll.u32 %v3811_v30, 16 }
  0x42   : > { %v337_v20 = vor.u32 %v336_v0, %v332_v53  ;;  %3209 = vmatprep.mubr.msk.bf16.mxu1 %vm418_vm3, %v2815_v9  ;;  %v354_v35 = vshll.u32 %v3827_v62, 16  ;;  %v358_v60 = vshrl.u32 %v3827_v62, 16  ;;  %v364_v25 = vshll.u32 %v3831_v55, 16 }
  0x43   : > { %v333_v33 = vsel %vm3637_vm4, %v328_v10, %v332_v53  ;;  %v350_v42 = vrot.slane %v348_v1, 5  ;;  %v2952_v45 = vrot.slane %v2944_v12, 9  ;;  %v1586_v43 = vrot.slane %v3706_v52, 5  ;;  %v2945_v10 = vld [vmem:[%s3598_s25 + $0x30] sm:$0xe] }
  0x44   : > { %v338_v40 = vrot.slane %v337_v20, 4  ;;  %v356_v46 = vrot.slane %v354_v35, 5  ;;  %v360_v47 = vrot.slane %v358_v60, 4  ;;  %v366_v48 = vrot.slane %v364_v25, 5 }
  0x45   : > { %v1589_v49 = vrot.slane %v3718_v61, 5  ;;  %3292 = vmatmul.mubr.msk.bf16.vlgmr.msra.gmra.mrb[0].mxu0 %vm418_vm3, %v2960_v22  ;;  %v351_v51 = vor.u32 %v350_v42, %v347_v24  ;;  %v1587_v16 = vsel %vm3792_vm7, %v2952_v45, %v1586_v43  ;;  %v1588_v53 = vrot.slane %v1586_v43, 4  ;;  %v3895_v42 = vld [vmem:[%s3598_s25 + $0x40] sm:$0xf]  ;;  %v3898_v45 = vld [vmem:[%s3598_s25 + $0x44] sm:$0x1] }
  0x46   : > { %v343_v15 = vsel %vm3637_vm4, %v338_v40, %v342_v13  ;;  %3308 = vmatpush3.bf16.msra.mxu0 %v3649_v41  ;;  %v361_v52 = vor.u32 %v360_v47, %v356_v46  ;;  %v369_v61 = vshrl.u32 %v3849_v28, 16  ;;  %v372_v59 = vshll.u32 %v3849_v28, 16 }
  0x47   : > { %v2816_v63 = vcombine.low %v333_v33, %v343_v15  ;;  %v352_v0 = vrot.slane %v351_v51, 4  ;;  %v1590_v2 = vsel %vm3792_vm7, %v1588_v53, %v1589_v49  ;;  %v378_v26 = vshll.u32 %v3865_v37, 16  ;;  %3499 = vmatprep.subr.msk.bf16.mxu0 %vm443_vm0, %v3860_v34  ;;  %v2946_v33 = vld [vmem:[%s3598_s25 + $0x3c] sm:$0xe] }
  0x48   : > { %v382_v9 = vshrl.u32 %v3865_v37, 16  ;;  %v362_v41 = vrot.slane %v361_v52, 4  ;;  %v2961_v13 = vcombine.low %v1587_v16, %v1590_v2  ;;  %v371_v17 = vrot.slane %v369_v61, 4  ;;  %v2947_v2 = vld [vmem:[%s3598_s25 + $0x48] sm:$0xe] }
  0x49   : > { %3210 = vmatmul.mubr.msk.bf16.gmra.mrb[8].mxu1 %vm418_vm3, %v2816_v63  ;;  %v374_v12 = vrot.slane %v372_v59, 5  ;;  %v357_v20 = vsel %vm3637_vm4, %v352_v0, %v356_v46  ;;  %v380_v22 = vrot.slane %v378_v26, 5  ;;  %v388_v1 = vshll.u32 %v3874_v54, 16  ;;  %v3913_v59 = vld [vmem:[%s3598_s25 + $0x4c] sm:$0xf] }
  0x4a   : > { %v384_v24 = vrot.slane %v382_v9, 4  ;;  %v367_v35 = vsel %vm3637_vm4, %v362_v41, %v366_v48  ;;  %3295 = vmatprep.mubr.msk.bf16.mxu0 %vm418_vm3, %v2961_v13  ;;  %v2953_v25 = vrot.slane %v2945_v10, 9  ;;  %v1593_v40 = vrot.slane %v3748_v50, 5  ;;  %v3916_v0 = vld [vmem:[%s3598_s25 + $0x50] sm:$0x1] }
  0x4b   : > { %v375_v60 = vor.u32 %v374_v12, %v371_v17  ;;  %v2817_v43 = vcombine.low %v357_v20, %v367_v35  ;;  %v390_v47 = vrot.slane %v388_v1, 5  ;;  %v1596_v49 = vrot.slane %v3758_v58, 5  ;;  %v3924_v17 = vld [vmem:[%s3598_s25 + $0x58] sm:$0xf]  ;;  %v3927_v12 = vld [vmem:[%s3598_s25 + $0x5c] sm:$0x1] }
  0x4c   : > { %v385_v46 = vor.u32 %v384_v24, %v380_v22  ;;  %v1594_v48 = vsel %vm3792_vm7, %v2953_v25, %v1593_v40  ;;  %v1595_v51 = vrot.slane %v1593_v40, 4  ;;  %v2954_v16 = vrot.slane %v2946_v33, 9  ;;  %4509 = vst [vmem:[#allocation2_spill] sm:$0xff] %v3927_v12  ;;  %v3937_v35 = vld [vmem:[%s3598_s25 + $0x64] sm:$0xf] }
  0x4d   : > { %v376_v15 = vrot.slane %v375_v60, 4  ;;  %3213 = vmatprep.mubr.msk.bf16.mxu1 %vm418_vm3, %v2817_v43  ;;  %v1600_v53 = vrot.slane %v3895_v42, 5  ;;  %v1603_v63 = vrot.slane %v3898_v45, 5  ;;  %v2827_v61 = vcombine.low %v3601_v6, %v3604_v7  ;;  %v2948_v6 = vld [vmem:[%s3598_s25 + $0x54] sm:$0xe]  ;;  %4510 = vst [vmem:[#allocation3_spill] sm:$0xff] %v3937_v35 }
  0x4e   : > { %v386_v50 = vrot.slane %v385_v46, 4  ;;  %v1597_v58 = vsel %vm3792_vm7, %v1595_v51, %v1596_v49  ;;  %v1607_v24 = vrot.slane %v3913_v59, 5  ;;  %v1610_v1 = vrot.slane %v3916_v0, 5  ;;  %v3940_v60 = vld [vmem:[%s3598_s25 + $0x68] sm:$0x1] }
  0x4f   : > { %v381_v52 = vsel %vm3637_vm4, %v376_v15, %v380_v22  ;;  %v2962_v9 = vcombine.low %v1594_v48, %v1597_v58  ;;  %v1601_v10 = vsel %vm3792_vm7, %v2954_v16, %v1600_v53  ;;  %v1602_v41 = vrot.slane %v1600_v53, 4  ;;  %4511 = vst [vmem:[#allocation4_spill] sm:$0xff] %v3940_v60 }
  0x50   : > { %v391_v26 = vsel %vm3637_vm4, %v386_v50, %v390_v47  ;;  %v2955_v22 = vrot.slane %v2947_v2, 9  ;;  %v1609_v40 = vrot.slane %v1607_v24, 4  ;;  %v2956_v43 = vrot.slane %v2948_v6, 9  ;;  %v2949_v47 = vld [vmem:[%s3598_s25 + $0x60] sm:$0xe] }
  0x51   : > { %v2818_v13 = vcombine.low %v381_v52, %v391_v26  ;;  %3296 = vmatmul.mubr.msk.bf16.gmra.mrb[4].mxu0 %vm418_vm3, %v2962_v9  ;;  %v1604_v20 = vsel %vm3792_vm7, %v1602_v41, %v1603_v63  ;;  %v1614_v46 = vrot.slane %v3924_v17, 5  ;;  %v744_v49 = vrot.slane %v3642_v36, 5  ;;  %v710_v2 = vld [vmem:[%s3598_s25 + $0x18] sm:$0xe]  ;;  %v3972_v6 = vld [vmem:[%s4497_s1 + $0xc] sm:$0xf] }
  0x52   : > { %v2963_v33 = vcombine.low %v1601_v10, %v1604_v20  ;;  %v1608_v25 = vsel %vm3792_vm7, %v2955_v22, %v1607_v24  ;;  %v1617_v15 = vrot.slane %v3927_v12, 5  ;;  %v1611_v48 = vsel %vm3792_vm7, %v1609_v40, %v1610_v1  ;;  %v712_v1 = vld [vmem:[%s3598_s25 + $0x30] sm:$0xe] }
  0x53   : > { %3214 = vmatmul.mubr.msk.bf16.gmra.mrb[12].mxu1 %vm418_vm3, %v2818_v13  ;;  %v1615_v51 = vsel %vm3792_vm7, %v2956_v43, %v1614_v46  ;;  %v1616_v16 = vrot.slane %v1614_v46, 4  ;;  %v1621_v50 = vrot.slane %v3937_v35, 5  ;;  %v2828_v53 = vcombine.low %v3633_v31, %v3642_v36  ;;  %v711_v36 = vld [vmem:[%s3598_s25 + $0x24] sm:$0xe]  ;;  %v4246_v12 = vld [vmem:[%s3598_s25 + $0x70] sm:$0xf] }
  0x54   : > { %3219 = vmatprep.mubr.msk.bf16.mxu1 %vm418_vm3, %v2827_v61  ;;  %3299 = vmatprep.mubr.msk.bf16.mxu0 %vm418_vm3, %v2963_v33  ;;  %v2964_v63 = vcombine.low %v1608_v25, %v1611_v48  ;;  %v2957_v52 = vrot.slane %v2949_v47, 9  ;;  %v1624_v58 = vrot.slane %v3940_v60, 5  ;;  %v709_v61 = vld [vmem:[%s3598_s25 + $0xc] sm:$0xe]  ;;  %v747_v26 = vrot.slane %v3652_v44, 5 }
  0x55   : > { %v2829_v9 = vcombine.low %v3681_v21, %v3688_v27  ;;  %v1618_v10 = vsel %vm3792_vm7, %v1616_v16, %v1617_v15  ;;  %v1623_v41 = vrot.slane %v1621_v50, 4  ;;  %v842_v13 = vsel %vm443_vm0, %v3712_v57, 0  ;;  %v3515_v16 = vld [vmem:[%s3598_s25 + $0x18] sm:$0xff]   ;;  %v4218_v60 = vld [vmem:[%s3598_s25 + $0x64] sm:$0xf] }
  0x56   : > { %v2965_v31 = vcombine.low %v1615_v51, %v1618_v10  ;;  %v2844_v44 = vrot.slane %v709_v61, 9  ;;  %v746_v20 = vrot.slane %v744_v49, 4  ;;  %v2845_v21 = vrot.slane %v710_v2, 9  ;;  %4512 = vst [vmem:[#allocation5_spill] sm:$0xff] %v4218_v60 }
  0x57   : > { %v1622_v22 = vsel %vm3792_vm7, %v2957_v52, %v1621_v50  ;;  %v1625_v57 = vsel %vm3792_vm7, %v1623_v41, %v1624_v58  ;;  %v751_v24 = vrot.slane %v3688_v27, 5  ;;  %v754_v40 = vrot.slane %v3696_v38, 5 }
  0x58   : > { %v3985_v33 = vsel %vm3792_vm7, %v2844_v44, %v744_v49  ;;  %v3989_v25 = vsel %vm3792_vm7, %v746_v20, %v747_v26  ;;  %v2846_v43 = vrot.slane %v711_v36, 9  ;;  %v2966_v49 = vcombine.low %v1622_v22, %v1625_v57  ;;  %v3008_v26 = vld [vmem:[%s3598_s25 + $0x18] sm:$0xf]  ;;  %v3517_v57 = vld [vmem:[%s3598_s25 + $0x24] sm:$0xff]  }
  0x59   : > { %3300 = vmatmul.mubr.msk.bf16.gmra.mrb[8].mxu0 %vm418_vm3, %v2964_v63  ;;  %v2853_v27 = vcombine.low %v3985_v33, %v3989_v25  ;;  %v3998_v46 = vsel %vm3792_vm7, %v2845_v21, %v751_v24  ;;  %v753_v47 = vrot.slane %v751_v24, 4  ;;  %v758_v15 = vrot.slane %v3728_v19, 5 }
  0x5a   : > { %3303 = vmatprep.mubr.msk.bf16.mxu0 %vm418_vm3, %v2965_v31  ;;  %v761_v48 = vrot.slane %v3738_v29, 5  ;;  %v2847_v38 = vrot.slane %v712_v1, 9  ;;  %v2830_v51 = vcombine.low %v3725_v11, %v3728_v19  ;;  %v768_v63 = vrot.slane %v3774_v39, 5  ;;  %v713_v19 = vld [vmem:[%s3598_s25 + $0x3c] sm:$0xe] }
  0x5b   : > { %3220 = vmatmul.mubr.msk.bf16.vlgmr.msra.gmra.mrb[0].mxu1 %vm418_vm3, %v2828_v53  ;;  %v4007_v50 = vsel %vm3792_vm7, %v753_v47, %v754_v40  ;;  %v765_v53 = vrot.slane %v3769_v23, 5  ;;  %v2831_v52 = vcombine.low %v3763_v14, %v3769_v23  ;;  %v4017_v58 = vsel %vm3792_vm7, %v2846_v43, %v758_v15  ;;  %v708_v14 = vld [vmem:[%s3598_s25] sm:$0xe]  ;;  %v4045_v31 = vld [vmem:[%s3598_s25 + $0x1c] sm:$0xf] }
  0x5c   : > { %3236 = vmatpush3.bf16.msra.mxu1 %v842_v13  ;;  %3223 = vmatprep.mubr.msk.bf16.mxu1 %vm418_vm3, %v2829_v9  ;;  %v2854_v29 = vcombine.low %v3998_v46, %v4007_v50  ;;  %v760_v11 = vrot.slane %v758_v15, 4  ;;  %v737_v61 = vrot.slane %v3604_v7, 5  ;;  %v2848_v10 = vrot.slane %v713_v19, 9  ;;  %v714_v1 = vld [vmem:[%s3598_s25 + $0x48] sm:$0xe] }
  0x5d   : > { %3494 = vmatprep.subr.msk.bf16.mxu1 %vm443_vm0, %v3972_v6  ;;  %v4023_v2 = vsel %vm3792_vm7, %v2847_v38, %v765_v53  ;;  %v767_v39 = vrot.slane %v765_v53, 4  ;;  %v740_v41 = vrot.slane %v3607_v8, 5  ;;  %v2843_v36 = vrot.slane %v708_v14, 9  ;;  %v4071_v38 = vld [vmem:[%s4497_s1 + $0x20] sm:$0xf] }
  0x5e   : > { %v4029_v23 = vsel %vm3792_vm7, %v760_v11, %v761_v48  ;;  %v739_v44 = vrot.slane %v737_v61, 4  ;;  %v772_v20 = vrot.slane %v3797_v4, 5  ;;  %v775_v21 = vrot.slane %v3800_v18, 5  ;;  %v4092_v14 = vld [vmem:[%s3598_s25 + $0x28] sm:$0xf] }
  0x5f   : > { %v4038_v9 = vsel %vm3792_vm7, %v767_v39, %v768_v63  ;;  %v2832_v22 = vcombine.low %v3786_v56, %v3797_v4  ;;  %v2016_v24 = vshrl.u32 %v3008_v26, 16  ;;  %v2019_v8 = vshll.u32 %v3008_v26, 16  ;;  %v3519_v4 = vld [vmem:[%s3598_s25 + $0x30] sm:$0xff]   ;;  %v4194_v46 = vld [vmem:[%s3598_s25 + $0x44] sm:$0x1] }
  0x60   : > { %v2025_v40 = vshll.u32 %v4045_v31, 16  ;;  %v2029_v43 = vshrl.u32 %v4045_v31, 16  ;;  %v4057_v47 = vsel %vm3792_vm7, %v2848_v10, %v772_v20  ;;  %v2258_v18 = vsel %vm443_vm0, %v3860_v34, 0  ;;  %v3026_v7 = vld [vmem:[%s3598_s25 + $0x60] sm:$0xf] }
  0x61   : > { %3304 = vmatmul.mubr.msk.bf16.gmra.mrb[12].mxu0 %vm418_vm3, %v2966_v49  ;;  %v774_v49 = vrot.slane %v772_v20, 4  ;;  %v2833_v56 = vcombine.low %v3811_v30, %v3827_v62  ;;  %v738_v15 = vsel %vm3792_vm7, %v2843_v36, %v737_v61  ;;  %v741_v48 = vsel %vm3792_vm7, %v739_v44, %v740_v41  ;;  %v4079_v30 = vld [vmem:[%s3598_s25 + $0x20] sm:$0x1]  ;;  %v3011_v61 = vld [vmem:[%s3598_s25 + $0x24] sm:$0xf] }
  0x62   : > { %3309 = vmatprep.mubr.msk.bf16.mxu0 %vm418_vm3, %v3515_v16  ;;  %v2849_v34 = vrot.slane %v714_v1, 9  ;;  %v2018_v16 = vrot.slane %v2016_v24, 4  ;;  %v2021_v53 = vrot.slane %v2019_v8, 5  ;;  %v4085_v11 = vrot.slane %v2025_v40, 5  ;;  %v715_v44 = vld [vmem:[%s3598_s25 + $0x54] sm:$0xe] }
  0x63   : > { %3224 = vmatmul.mubr.msk.bf16.gmra.mrb[4].mxu1 %vm418_vm3, %v2830_v51  ;;  %v4075_v51 = vsel %vm3792_vm7, %v774_v49, %v775_v21  ;;  %v2031_v19 = vrot.slane %v2029_v43, 4  ;;  %v782_v39 = vrot.slane %v3831_v55, 5  ;;  %v2834_v10 = vcombine.low %v3849_v28, %v3865_v37  ;;  %v3014_v55 = vld [vmem:[%s3598_s25 + $0x30] sm:$0xf]  ;;  %v3521_v20 = vld [vmem:[%s3598_s25 + $0x3c] sm:$0xff]   ;;  %v3522_v1 = vld [vmem:[%s3598_s25 + $0x48] sm:$0xff]  }
  0x64   : > { %3227 = vmatprep.mubr.msk.bf16.mxu1 %vm418_vm3, %v2831_v52  ;;  %v779_v52 = vrot.slane %v3827_v62, 5  ;;  %v2852_v41 = vcombine.low %v738_v15, %v741_v48  ;;  %v2035_v36 = vshll.u32 %v4079_v30, 16  ;;  %v2022_v21 = vor.u32 %v2021_v53, %v2018_v16  ;;  %v4111_v8 = vld [vmem:[%s3598_s25 + $0x34] sm:$0xf] }
  0x65   : > { %v2032_v28 = vor.u32 %v2031_v19, %v4085_v11  ;;  %v2049_v40 = vshll.u32 %v4092_v14, 16  ;;  %v2053_v43 = vshrl.u32 %v4092_v14, 16  ;;  %v786_v15 = vrot.slane %v3865_v37, 5 }
  0x66   : > { %v4096_v62 = vsel %vm3792_vm7, %v2849_v34, %v779_v52  ;;  %v781_v26 = vrot.slane %v779_v52, 4  ;;  %v2073_v48 = vshll.u32 %v4111_v8, 16  ;;  %v2077_v34 = vshrl.u32 %v4111_v8, 16 }
  0x67   : > { %v789_v16 = vrot.slane %v3874_v54, 5  ;;  %v2023_v53 = vrot.slane %v2022_v21, 4  ;;  %v2037_v52 = vrot.slane %v2035_v36, 5  ;;  %v2033_v37 = vrot.slane %v2032_v28, 4  ;;  %v4134_v36 = vld [vmem:[%s3598_s25 + $0x2c] sm:$0x1] }
  0x68   : > { %v4108_v24 = vsel %vm3792_vm7, %v781_v26, %v782_v39  ;;  %v4130_v26 = vrot.slane %v2049_v40, 5  ;;  %v4141_v21 = vld [vmem:[%s3598_s25 + $0x38] sm:$0x1]  ;;  %v1041_v28 = vsel %vm443_vm0, %v3972_v6, 0 }
  0x69   : > { %3310 = vmatmul.mubr.msk.bf16.vlgmr.msra.gmra.mrb[0].mxu0 %vm418_vm3, %v3517_v57  ;;  %v2043_v57 = vshll.u32 %v3011_v61, 16  ;;  %v3523_v40 = vld [vmem:[%s3598_s25 + $0x54] sm:$0xff]  }
  0x6a   : > { %3326 = vmatpush3.bf16.msra.mxu0 %v2258_v18  ;;  %3313 = vmatprep.mubr.msk.bf16.mxu0 %vm418_vm3, %v3519_v4  ;;  %v2064_v18 = vshrl.u32 %v3014_v55, 16  ;;  %v2850_v4 = vrot.slane %v715_v44, 9 }
  0x6b   : > { %3228 = vmatmul.mubr.msk.bf16.gmra.mrb[8].mxu1 %vm418_vm3, %v2832_v22  ;;  %3500 = vmatprep.subr.msk.bf16.mxu0 %vm443_vm0, %v4071_v38  ;;  %v2040_v22 = vshrl.u32 %v3011_v61, 16  ;;  %v788_v61 = vrot.slane %v786_v15, 4  ;;  %v2045_v54 = vrot.slane %v2043_v57, 5  ;;  %v2079_v57 = vrot.slane %v2077_v34, 4  ;;  %v3020_v34 = vld [vmem:[%s3598_s25 + $0x48] sm:$0xf] }
  0x6c   : > { %3231 = vmatprep.mubr.msk.bf16.mxu1 %vm418_vm3, %v2833_v56  ;;  %v2067_v56 = vshll.u32 %v3014_v55, 16  ;;  %v4126_v19 = vsel %vm3792_vm7, %v2850_v4, %v786_v15  ;;  %v2055_v55 = vrot.slane %v2053_v43, 4  ;;  %v2066_v44 = vrot.slane %v2064_v18, 4  ;;  %v4152_v43 = vld [vmem:[%s3598_s25 + $0x40] sm:$0xf] }
  0x6d   : > { %v2042_v39 = vrot.slane %v2040_v22, 4  ;;  %v4143_v22 = vrot.slane %v2073_v48, 5  ;;  %v3524_v18 = vld [vmem:[%s3598_s25 + $0x60] sm:$0xff]   ;;  %v2038_v4 = vsel %vm3637_vm4, %v2033_v37, %v2037_v52  ;;  %v2059_v48 = vshll.u32 %v4134_v36, 16 }
  0x6e   : > { %v2112_v52 = vshrl.u32 %v3020_v34, 16  ;;  %v2115_v37 = vshll.u32 %v3020_v34, 16 }
  0x6f   : > { %v2046_v15 = vor.u32 %v2045_v54, %v2042_v39  ;;  %v2080_v63 = vor.u32 %v2079_v57, %v4143_v22  ;;  %v3023_v57 = vld [vmem:[%s3598_s25 + $0x54] sm:$0xf] }
  0x70   : > { %v2114_v50 = vrot.slane %v2112_v52, 4  ;;  %v2139_v34 = vshll.u32 %v3023_v57, 16 }
  0x71   : > { %3314 = vmatmul.mubr.msk.bf16.gmra.mrb[4].mxu0 %vm418_vm3, %v3521_v20  ;;  %v2069_v20 = vrot.slane %v2067_v56, 5  ;;  %v2028_v56 = vsel %vm3637_vm4, %v2023_v53, %v4085_v11  ;;  %v2097_v11 = vshll.u32 %v4152_v43, 16  ;;  %v2101_v53 = vshrl.u32 %v4152_v43, 16 }
  0x72   : > { %3317 = vmatprep.mubr.msk.bf16.mxu0 %vm418_vm3, %v3522_v1  ;;  %v2083_v1 = vshll.u32 %v4141_v21, 16  ;;  %v3033_v54 = vcombine.low %v2028_v56, %v2038_v4  ;;  %v2081_v56 = vrot.slane %v2080_v63, 4  ;;  %v4199_v63 = vld [vmem:[%s3598_s25 + $0x50] sm:$0x1] }
  0x73   : > { %3232 = vmatmul.mubr.msk.bf16.gmra.mrb[12].mxu1 %vm418_vm3, %v2834_v10  ;;  %v4138_v10 = vsel %vm3792_vm7, %v788_v61, %v789_v16  ;;  %v4163_v16 = vld [vmem:[%s3598_s25 + $0x4c] sm:$0xf]  ;;  %v2056_v61 = vor.u32 %v2055_v55, %v4130_v26  ;;  %v2070_v6 = vor.u32 %v2069_v20, %v2066_v44  ;;  %v2047_v55 = vrot.slane %v2046_v15, 4 }
  0x74   : > { %3237 = vmatprep.mubr.msk.bf16.mxu1 %vm418_vm3, %v2852_v41  ;;  %v3017_v41 = vld [vmem:[%s3598_s25 + $0x3c] sm:$0xf]  ;;  %v2121_v39 = vshll.u32 %v4163_v16, 16  ;;  %v2061_v44 = vrot.slane %v2059_v48, 5  ;;  %v2125_v20 = vshrl.u32 %v4163_v16, 16  ;;  %v2085_v33 = vrot.slane %v2083_v1, 5 }
  0x75   : > { %v2088_v49 = vshrl.u32 %v3017_v41, 16  ;;  %v2091_v13 = vshll.u32 %v3017_v41, 16  ;;  %v2057_v41 = vrot.slane %v2056_v61, 4  ;;  %v4187_v15 = vrot.slane %v2097_v11, 5 }
  0x76   : > { %v2103_v48 = vrot.slane %v2101_v53, 4  ;;  %v2136_v1 = vshrl.u32 %v3023_v57, 16  ;;  %v1310_v11 = vshll.u32 %v3913_v59, 16  ;;  %v2052_v53 = vsel %vm3637_vm4, %v2047_v55, %v4130_v26 }
  0x77   : > { %v2090_v25 = vrot.slane %v2088_v49, 4  ;;  %v2093_v4 = vrot.slane %v2091_v13, 5  ;;  %v4196_v49 = vrot.slane %v2121_v39, 5  ;;  %v2127_v13 = vrot.slane %v2125_v20, 4 }
  0x78   : > { %v2062_v52 = vsel %vm3637_vm4, %v2057_v41, %v2061_v44  ;;  %v2104_v57 = vor.u32 %v2103_v48, %v4187_v15  ;;  %v2086_v26 = vsel %vm3637_vm4, %v2081_v56, %v2085_v33  ;;  %v2138_v44 = vrot.slane %v2136_v1, 4  ;;  %v4237_v56 = vld [vmem:[%s3598_s25 + $0x5c] sm:$0x1] }
  0x79   : > { %3318 = vmatmul.mubr.msk.bf16.gmra.mrb[8].mxu0 %vm418_vm3, %v3523_v40  ;;  %v2071_v40 = vrot.slane %v2070_v6, 4  ;;  %v2094_v20 = vor.u32 %v2093_v4, %v2090_v25  ;;  %v2128_v41 = vor.u32 %v2127_v13, %v4196_v49  ;;  %v4514_v33 = vcombine.low %v4023_v2, %v4038_v9 }
  0x7a   : > { %3321 = vmatprep.mubr.msk.bf16.mxu0 %vm418_vm3, %v3524_v18  ;;  %v3525_v18 = vld [vmem:[%s3598_s25 + $0x6c] sm:$0xff]   ;;  %v2160_v4 = vshrl.u32 %v3026_v7, 16  ;;  %v1314_v48 = vshrl.u32 %v3913_v59, 16  ;;  %v3034_v13 = vcombine.low %v2052_v53, %v2062_v52 }
  0x7b   : > { %3238 = vmatmul.mubr.msk.bf16.vlgmr.msra.gmra.mrb[0].mxu1 %vm418_vm3, %v2853_v27  ;;  %v4184_v27 = vld [vmem:[%s3598_s25 + $0x58] sm:$0xf]  ;;  %v2076_v39 = vsel %vm3637_vm4, %v2071_v40, %v4143_v22  ;;  %v4513_v22 = vcombine.low %v4017_v58, %v4029_v23  ;;  %v2141_v40 = vrot.slane %v2139_v34, 5  ;;  %v2163_v58 = vshll.u32 %v3026_v7, 16 }
  0x7c   : > { %3254 = vmatpush3.bf16.msra.mxu1 %v1041_v28  ;;  %3241 = vmatprep.mubr.msk.bf16.mxu1 %vm418_vm3, %v2854_v29  ;;  %v3534_v28 = vld [vmem:[%s4497_s1 + $0x10] sm:$0xf]  ;;  %v2117_v29 = vrot.slane %v2115_v37, 5  ;;  %v2145_v61 = vshll.u32 %v4184_v27, 16  ;;  %v2149_v6 = vshrl.u32 %v4184_v27, 16  ;;  %v2512_v37 = vsel %vm443_vm0, %v4071_v38, 0 }
  0x7d   : > { %3496 = vmatprep.subr.msk.bf16.mxu1 %vm443_vm0, %v3534_v28  ;;  %v2107_v28 = vshll.u32 %v4194_v46, 16  ;;  %v2131_v38 = vshll.u32 %v4199_v63, 16  ;;  %v2169_v23 = vshll.u32 %v4218_v60, 16  ;;  %v3035_v34 = vcombine.low %v2076_v39, %v2086_v26 }
  0x7e   : > { %v2118_v55 = vor.u32 %v2117_v29, %v2114_v50  ;;  %v4230_v25 = vrot.slane %v2145_v61, 5  ;;  %v2095_v50 = vrot.slane %v2094_v20, 4  ;;  %v2105_v29 = vrot.slane %v2104_v57, 4 }
  0x7f   : > { %v2109_v1 = vrot.slane %v2107_v28, 5  ;;  %v2133_v9 = vrot.slane %v2131_v38, 5  ;;  %v2129_v61 = vrot.slane %v2128_v41, 4  ;;  %v2155_v7 = vshll.u32 %v4237_v56, 16  ;;  %v4258_v28 = vld [vmem:[%s3598_s25 + $0x68] sm:$0x1] }
  0x80   : > { %v2119_v2 = vrot.slane %v2118_v55, 4  ;;  %v2162_v35 = vrot.slane %v2160_v4, 4  ;;  %v4248_v59 = vrot.slane %v2169_v23, 5  ;;  %v4250_v57 = vrot.slane %v1310_v11, 5 }
  0x81   : > { %3322 = vmatmul.mubr.msk.bf16.gmra.mrb[12].mxu0 %vm418_vm3, %v3525_v18  ;;  %v2151_v18 = vrot.slane %v2149_v6, 4  ;;  %v2142_v6 = vor.u32 %v2141_v40, %v2138_v44  ;;  %v1316_v53 = vrot.slane %v1314_v48, 4  ;;  %v2100_v52 = vsel %vm3637_vm4, %v2095_v50, %v4187_v15 }
  0x82   : > { %3327 = vmatprep.mubr.msk.bf16.mxu0 %vm418_vm3, %v3033_v54  ;;  %v2173_v54 = vshrl.u32 %v4218_v60, 16  ;;  %v2165_v60 = vrot.slane %v2163_v58, 5  ;;  %v2110_v39 = vsel %vm3637_vm4, %v2105_v29, %v2109_v1  ;;  %v2193_v38 = vshll.u32 %v4246_v12, 16  ;;  %v3526_v1 = vld [vmem:[%s3598_s25 + $0xc] sm:$0xff]  }
  0x83   : > { %3242 = vmatmul.mubr.msk.bf16.gmra.mrb[4].mxu1 %vm418_vm3, %v4513_v22  ;;  %v2152_v22 = vor.u32 %v2151_v18, %v4230_v25  ;;  %v2197_v44 = vshrl.u32 %v4246_v12, 16  ;;  %v4515_v11 = vcombine.low %v4057_v47, %v4075_v51  ;;  %v2124_v15 = vsel %vm3637_vm4, %v2119_v2, %v4196_v49 }
  0x84   : > { %3245 = vmatprep.mubr.msk.bf16.mxu1 %vm418_vm3, %v4514_v33  ;;  %v3029_v33 = vld [vmem:[%s3598_s25 + $0x6c] sm:$0xf]  ;;  %v2175_v20 = vrot.slane %v2173_v54, 4  ;;  %v2134_v41 = vsel %vm3637_vm4, %v2129_v61, %v2133_v9  ;;  %v2143_v40 = vrot.slane %v2142_v6, 4  ;;  %v2157_v18 = vrot.slane %v2155_v7, 5 }
  0x85   : > { %v2184_v26 = vshrl.u32 %v3029_v33, 16  ;;  %v2187_v55 = vshll.u32 %v3029_v33, 16  ;;  %v4516_v4 = vcombine.low %v4096_v62, %v4108_v24  ;;  %v2153_v47 = vrot.slane %v2152_v22, 4  ;;  %v2916_v22 = vld [vmem:[%s3598_s25 + $0x48] sm:$0xf] }
  0x86   : > { %v2166_v51 = vor.u32 %v2165_v60, %v2162_v35  ;;  %v2179_v49 = vshll.u32 %v4258_v28, 16  ;;  %v1317_v58 = vor.u32 %v1316_v53, %v4250_v57  ;;  %v1320_v23 = vshll.u32 %v3916_v0, 16  ;;  %v4287_v60 = vld [vmem:[%s3598_s25 + $0x74] sm:$0x1] }
  0x87   : > { %v3036_v54 = vcombine.low %v2100_v52, %v2110_v39  ;;  %v2186_v48 = vrot.slane %v2184_v26, 4  ;;  %v2189_v62 = vrot.slane %v2187_v55, 5  ;;  %v4281_v24 = vrot.slane %v2193_v38, 5 }
  0x88   : > { %v2199_v50 = vrot.slane %v2197_v44, 4  ;;  %v3037_v29 = vcombine.low %v2124_v15, %v2134_v41  ;;  %v2148_v35 = vsel %vm3637_vm4, %v2143_v40, %v4230_v25  ;;  %v2167_v0 = vrot.slane %v2166_v51, 4  ;;  %v3528_v51 = vld [vmem:[%s3598_s25 + $0x24] sm:$0xff]  }
  0x89   : > { %3328 = vmatmul.mubr.msk.bf16.vlgmr.msra.gmra.mrb[0].mxu0 %vm418_vm3, %v3034_v13  ;;  %v2158_v13 = vsel %vm3637_vm4, %v2153_v47, %v2157_v18  ;;  %v2181_v2 = vrot.slane %v2179_v49, 5  ;;  %v1318_v9 = vrot.slane %v1317_v58, 4  ;;  %v1322_v61 = vrot.slane %v1320_v23, 5 }
  0x8a   : > { %3344 = vmatpush3.bf16.msra.mxu0 %v2512_v37  ;;  %3331 = vmatprep.mubr.msk.bf16.mxu0 %vm418_vm3, %v3035_v34  ;;  %v2176_v37 = vor.u32 %v2175_v20, %v4248_v59  ;;  %v2407_v6 = vrot.slane %v4045_v31, 5  ;;  %v2190_v7 = vor.u32 %v2189_v62, %v2186_v48  ;;  %v2200_v33 = vor.u32 %v2199_v50, %v4281_v24  ;;  %v3049_v20 = vld [vmem:[%s3598_s25 + $0x18] sm:$0xe]  ;;  %v3051_v62 = vld [vmem:[%s3598_s25 + $0x30] sm:$0xe] }
  0x8b   : > { %3246 = vmatmul.mubr.msk.bf16.gmra.mrb[8].mxu1 %vm418_vm3, %v4515_v11  ;;  %v2203_v25 = vshll.u32 %v4287_v60, 16  ;;  %v4517_v53 = vcombine.low %v4126_v19, %v4138_v10  ;;  %v3038_v52 = vcombine.low %v2148_v35, %v2158_v13  ;;  %v2172_v31 = vsel %vm3637_vm4, %v2167_v0, %v4248_v59  ;;  %v3527_v59 = vld [vmem:[%s3598_s25 + $0x18] sm:$0xff]  }
  0x8c   : > { %3249 = vmatprep.mubr.msk.bf16.mxu1 %vm418_vm3, %v4516_v4  ;;  %v2177_v34 = vrot.slane %v2176_v37, 4  ;;  %v1301_v26 = vshrl.u32 %v2916_v22, 16  ;;  %v1304_v55 = vshll.u32 %v2916_v22, 16  ;;  %v3057_v19 = vrot.slane %v3049_v20, 9  ;;  %v2913_v4 = vld [vmem:[%s3598_s25 + $0x3c] sm:$0xf] }
  0x8d   : > { %v2409_v10 = vrot.slane %v2407_v6, 4  ;;  %v2410_v38 = vrot.slane %v4079_v30, 5  ;;  %v1323_v44 = vsel %vm3637_vm4, %v1318_v9, %v1322_v61  ;;  %v2191_v11 = vrot.slane %v2190_v7, 4  ;;  %v3050_v30 = vld [vmem:[%s3598_s25 + $0x24] sm:$0xe]  ;;  %v3529_v22 = vld [vmem:[%s3598_s25 + $0x30] sm:$0xff]  }
  0x8e   : > { %v2182_v39 = vsel %vm3637_vm4, %v2177_v34, %v2181_v2  ;;  %v2201_v15 = vrot.slane %v2200_v33, 4  ;;  %v2205_v41 = vrot.slane %v2203_v25, 5  ;;  %v1303_v40 = vrot.slane %v1301_v26, 4  ;;  %v3530_v20 = vld [vmem:[%s3598_s25 + $0x3c] sm:$0xff]   ;;  %v2919_v26 = vld [vmem:[%s3598_s25 + $0x54] sm:$0xf] }
  0x8f   : > { %v3039_v18 = vcombine.low %v2172_v31, %v2182_v39  ;;  %v1306_v47 = vrot.slane %v1304_v55, 5  ;;  %v2408_v37 = vsel %vm3792_vm7, %v3057_v19, %v2407_v6  ;;  %v2411_v49 = vsel %vm3792_vm7, %v2409_v10, %v2410_v38  ;;  %v3053_v38 = vld [vmem:[%s3598_s25 + $0x48] sm:$0xe] }
  0x90   : > { %v2414_v58 = vrot.slane %v4092_v14, 5  ;;  %v2206_v48 = vsel %vm3637_vm4, %v2201_v15, %v2205_v41  ;;  %v2421_v50 = vrot.slane %v4111_v8, 5  ;;  %v1280_v35 = vshll.u32 %v2913_v4, 16 }
  0x91   : > { %3332 = vmatmul.mubr.msk.bf16.gmra.mrb[4].mxu0 %vm418_vm3, %v3036_v54  ;;  %v1307_v23 = vor.u32 %v1306_v47, %v1303_v40  ;;  %v2196_v54 = vsel %vm3637_vm4, %v2191_v11, %v4281_v24  ;;  %v1286_v14 = vshll.u32 %v3895_v42, 16  ;;  %v3058_v24 = vrot.slane %v3050_v30, 9 }
  0x92   : > { %3335 = vmatprep.mubr.msk.bf16.mxu0 %vm418_vm3, %v3037_v29  ;;  %v1277_v29 = vshrl.u32 %v2913_v4, 16  ;;  %v2417_v8 = vrot.slane %v4134_v36, 5  ;;  %v3066_v0 = vcombine.low %v2408_v37, %v2411_v49  ;;  %v2416_v34 = vrot.slane %v2414_v58, 4  ;;  %v3531_v37 = vld [vmem:[%s3598_s25 + $0x48] sm:$0xff]  }
  0x93   : > { %3250 = vmatmul.mubr.msk.bf16.gmra.mrb[12].mxu1 %vm418_vm3, %v4517_v53  ;;  %v1308_v13 = vrot.slane %v1307_v23, 4  ;;  %v3059_v2 = vrot.slane %v3051_v62, 9  ;;  %v3040_v61 = vcombine.low %v2196_v54, %v2206_v48  ;;  %v2423_v6 = vrot.slane %v2421_v50, 4  ;;  %v3532_v23 = vld [vmem:[%s3598_s25 + $0x54] sm:$0xff]  }
  0x94   : > { %3255 = vmatprep.mubr.msk.bf16.mxu1 %vm418_vm3, %v3526_v1  ;;  %v1290_v1 = vshrl.u32 %v3895_v42, 16  ;;  %v2424_v42 = vrot.slane %v4141_v21, 5  ;;  %v1279_v7 = vrot.slane %v1277_v29, 4  ;;  %v1282_v33 = vrot.slane %v1280_v35, 5 }
  0x95   : > { %v1313_v9 = vsel %vm3637_vm4, %v1308_v13, %v4250_v57  ;;  %v4343_v25 = vrot.slane %v1286_v14, 5  ;;  %v2415_v53 = vsel %vm3792_vm7, %v3058_v24, %v2414_v58  ;;  %v2418_v57 = vsel %vm3792_vm7, %v2416_v34, %v2417_v8  ;;  %v3054_v24 = vld [vmem:[%s3598_s25 + $0x54] sm:$0xe]  ;;  %v4518_v8 = vld [vmem:[#allocation5_spill] sm:$0xff] }
  0x96   : > { %v1292_v36 = vrot.slane %v1290_v1, 4  ;;  %v2422_v21 = vsel %vm3792_vm7, %v3059_v2, %v2421_v50  ;;  %v2428_v31 = vrot.slane %v4152_v43, 5  ;;  %v1296_v39 = vshll.u32 %v3898_v45, 16  ;;  %v2922_v50 = vld [vmem:[%s3598_s25 + $0x60] sm:$0xf] }
  0x97   : > { %v2425_v55 = vsel %vm3792_vm7, %v2423_v6, %v2424_v42  ;;  %v1283_v19 = vor.u32 %v1282_v33, %v1279_v7  ;;  %v3067_v43 = vcombine.low %v2415_v53, %v2418_v57  ;;  %v2431_v11 = vrot.slane %v4194_v46, 5  ;;  %v4520_v33 = vld [vmem:[#allocation2_spill] sm:$0xff] }
  0x98   : > { %v1293_v10 = vor.u32 %v1292_v36, %v4343_v25  ;;  %v1325_v15 = vshrl.u32 %v2919_v26, 16  ;;  %v1328_v41 = vshll.u32 %v2919_v26, 16  ;;  %v1334_v40 = vshll.u32 %v3924_v17, 16 }
  0x99   : > { %3336 = vmatmul.mubr.msk.bf16.gmra.mrb[8].mxu0 %vm418_vm3, %v3038_v52  ;;  %v3052_v52 = vld [vmem:[%s3598_s25 + $0x3c] sm:$0xe]  ;;  %v2430_v4 = vrot.slane %v2428_v31, 4  ;;  %v1298_v47 = vrot.slane %v1296_v39, 5  ;;  %v2438_v58 = vrot.slane %v4199_v63, 5  ;;  %v2442_v63 = vrot.slane %v4184_v27, 5 }
  0x9a   : > { %3339 = vmatprep.mubr.msk.bf16.mxu0 %vm418_vm3, %v3039_v18  ;;  %v3060_v45 = vrot.slane %v3052_v52, 9  ;;  %v3068_v18 = vcombine.low %v2422_v21, %v2425_v55  ;;  %v1294_v49 = vrot.slane %v1293_v10, 4  ;;  %v1327_v46 = vrot.slane %v1325_v15, 4  ;;  %v3055_v27 = vld [vmem:[%s3598_s25 + $0x60] sm:$0xe] }
  0x9b   : > { %3256 = vmatmul.mubr.msk.bf16.vlgmr.msra.gmra.mrb[0].mxu1 %vm418_vm3, %v3527_v59  ;;  %v1338_v59 = vshrl.u32 %v3924_v17, 16  ;;  %v1330_v54 = vrot.slane %v1328_v41, 5  ;;  %v1336_v48 = vrot.slane %v1334_v40, 5  ;;  %v2432_v29 = vsel %vm3792_vm7, %v2430_v4, %v2431_v11  ;;  %v3533_v52 = vld [vmem:[%s3598_s25 + $0x60] sm:$0xff]  }
  0x9c   : > { %3362 = vmatpush3.bf16.msra.mxu1 %v3581_v3  ;;  %3259 = vmatprep.mubr.msk.bf16.mxu1 %vm418_vm3, %v3528_v51  ;;  %v4340_v3 = vcombine.low %v1313_v9, %v1323_v44  ;;  %v2435_v44 = vrot.slane %v4163_v16, 5  ;;  %v3061_v51 = vrot.slane %v3053_v38, 9  ;;  %v1284_v16 = vrot.slane %v1283_v19, 4  ;;  %v4519_v9 = vld [vmem:[#allocation3_spill] sm:$0xff] }
  0x9d   : > { %v1340_v62 = vrot.slane %v1338_v59, 4  ;;  %v2429_v17 = vsel %vm3792_vm7, %v3060_v45, %v2428_v31  ;;  %v1299_v1 = vsel %vm3637_vm4, %v1294_v49, %v1298_v47  ;;  %v1349_v34 = vshrl.u32 %v2922_v50, 16  ;;  %v3056_v47 = vld [vmem:[%s3598_s25 + $0x6c] sm:$0xe] }
  0x9e   : > { %v2437_v30 = vrot.slane %v2435_v44, 4  ;;  %v2436_v35 = vsel %vm3792_vm7, %v3061_v51, %v2435_v44  ;;  %v1289_v14 = vsel %vm3637_vm4, %v1284_v16, %v4343_v25  ;;  %v1352_v2 = vshll.u32 %v2922_v50, 16 }
  0x9f   : > { %v1362_v6 = vshrl.u32 %v4519_v9, 16  ;;  %v3069_v42 = vcombine.low %v2429_v17, %v2432_v29  ;;  %v1341_v7 = vor.u32 %v1340_v62, %v1336_v48  ;;  %v1344_v25 = vshll.u32 %v4520_v33, 16 }
  0xa0   : > { %v2439_v13 = vsel %vm3792_vm7, %v2437_v30, %v2438_v58  ;;  %v2444_v53 = vrot.slane %v2442_v63, 4  ;;  %v2445_v57 = vrot.slane %v4237_v56, 5  ;;  %v2930_v21 = vcombine.low %v1289_v14, %v1299_v1 }
  0xa1   : > { %3340 = vmatmul.mubr.msk.bf16.gmra.mrb[12].mxu0 %vm418_vm3, %v3040_v61  ;;  %v1358_v61 = vshll.u32 %v4519_v9, 16  ;;  %v3070_v36 = vcombine.low %v2436_v35, %v2439_v13  ;;  %v3063_v31 = vrot.slane %v3055_v27, 9  ;;  %v2452_v26 = vrot.slane %v4258_v28, 5 }
  0xa2   : > { %3345 = vmatprep.mubr.msk.bf16.mxu0 %vm418_vm3, %v3066_v0  ;;  %v2449_v0 = vrot.slane %v4518_v8, 5  ;;  %v1351_v55 = vrot.slane %v1349_v34, 4  ;;  %v1354_v19 = vrot.slane %v1352_v2, 5  ;;  %v1364_v38 = vrot.slane %v1362_v6, 4 }
  0xa3   : > { %3260 = vmatmul.mubr.msk.bf16.gmra.mrb[4].mxu1 %vm418_vm3, %v3529_v22  ;;  %v1331_v22 = vor.u32 %v1330_v54, %v1327_v46  ;;  %v1360_v10 = vrot.slane %v1358_v61, 5  ;;  %v1346_v45 = vrot.slane %v1344_v25, 5  ;;  %v2446_v28 = vsel %vm3792_vm7, %v2444_v53, %v2445_v57 }
  0xa4   : > { %3263 = vmatprep.mubr.msk.bf16.mxu1 %vm418_vm3, %v3530_v20  ;;  %v3062_v20 = vrot.slane %v3054_v24, 9  ;;  %v2451_v39 = vrot.slane %v2449_v0, 4  ;;  %v2450_v11 = vsel %vm3792_vm7, %v3063_v31, %v2449_v0  ;;  %v2456_v15 = vrot.slane %v4246_v12, 5 }
  0xa5   : > { %v1332_v44 = vrot.slane %v1331_v22, 4  ;;  %v1355_v40 = vor.u32 %v1354_v19, %v1351_v55  ;;  %v1365_v59 = vor.u32 %v1364_v38, %v1360_v10  ;;  %v3064_v30 = vrot.slane %v3056_v47, 9 }
  0xa6   : > { %v2443_v56 = vsel %vm3792_vm7, %v3062_v20, %v2442_v63  ;;  %v2453_v41 = vsel %vm3792_vm7, %v2451_v39, %v2452_v26  ;;  %v2458_v12 = vrot.slane %v2456_v15, 4  ;;  %v2459_v58 = vrot.slane %v4287_v60, 5 }
  0xa7   : > { %v1337_v51 = vsel %vm3637_vm4, %v1332_v44, %v1336_v48  ;;  %v3071_v16 = vcombine.low %v2443_v56, %v2446_v28  ;;  %v3072_v49 = vcombine.low %v2450_v11, %v2453_v41  ;;  %v1356_v46 = vrot.slane %v1355_v40, 4 }
  0xa8   : > { %v1366_v54 = vrot.slane %v1365_v59, 4  ;;  %v2457_v48 = vsel %vm3792_vm7, %v3064_v30, %v2456_v15  ;;  %v2460_v50 = vsel %vm3792_vm7, %v2458_v12, %v2459_v58 }
  0xa9   : > { %3346 = vmatmul.mubr.msk.bf16.vlgmr.msra.gmra.mrb[0].mxu0 %vm418_vm3, %v3067_v43  ;;  %v1342_v43 = vrot.slane %v1341_v7, 4  ;;  %v1361_v60 = vsel %vm3637_vm4, %v1356_v46, %v1360_v10  ;;  %v3073_v29 = vcombine.low %v2457_v48, %v2460_v50 }
  0xaa   : > { %3349 = vmatprep.mubr.msk.bf16.mxu0 %vm418_vm3, %v3068_v18  ;;  %v4521_v18 = vld [vmem:[#allocation4_spill] sm:$0xff] }
  0xab   : > { %3264 = vmatmul.mubr.msk.bf16.gmra.mrb[8].mxu1 %vm418_vm3, %v3531_v37  ;;  %v1368_v4 = vshll.u32 %v4521_v18, 16  ;;  %v1347_v37 = vsel %vm3637_vm4, %v1342_v43, %v1346_v45 }
  0xac   : > { %3267 = vmatprep.mubr.msk.bf16.mxu1 %vm418_vm3, %v3532_v23  ;;  %v2932_v23 = vcombine.low %v1337_v51, %v1347_v37 }
  0xad   : > { %v1370_v62 = vrot.slane %v1368_v4, 5 }
  0xaf   : > { %v1371_v17 = vsel %vm3637_vm4, %v1366_v54, %v1370_v62 }
  0xb0   : > { %v2933_v35 = vcombine.low %v1361_v60, %v1371_v17 }
  0xb1   : > { %3350 = vmatmul.mubr.msk.bf16.gmra.mrb[4].mxu0 %vm418_vm3, %v3069_v42 }
  0xb2   : > { %3353 = vmatprep.mubr.msk.bf16.mxu0 %vm418_vm3, %v3070_v36 }
  0xb3   : > { %3268 = vmatmul.mubr.msk.bf16.gmra.mrb[12].mxu1 %vm418_vm3, %v3533_v52 }
  0xb4   : > { %3281 = vmatprep.mubr.msk.bf16.mxu1 %vm418_vm3, %v2930_v21 }
  0xb9   : > { %3354 = vmatmul.mubr.msk.bf16.gmra.mrb[8].mxu0 %vm418_vm3, %v3071_v16 }
  0xba   : > { %3357 = vmatprep.mubr.msk.bf16.mxu0 %vm418_vm3, %v3072_v49 }
  0xbb   : > { %3282 = vmatmul.mubr.msk.bf16.vlgmr.msra.gmra.mrb[8].mxu1 %vm418_vm3, %v4340_v3 }
  0xbc   : > { %3285 = vmatprep.mubr.msk.bf16.mxu1 %vm418_vm3, %v2932_v23 }
  0xc1   : > { %3358 = vmatmul.mubr.msk.bf16.gmra.mrb[12].mxu0 %vm418_vm3, %v3073_v29 }
  0xc3   : > { %3286 = vmatmul.mubr.msk.bf16.gmra.mrb[12].mxu1 %vm418_vm3, %v2933_v35 }
 0x16e   : > { %v3257_v3 = vpop.f32.mrb[0].mxu1 }
 0x16f   : > { %v1077_v63 = vpop.f32.mrb[1].mxu1 }
 0x170   : > { %v3258_v14 = vpop.f32.mrb[2].mxu1 }
 0x171   : > { %v1080_v5 = vpop.f32.mrb[3].mxu1 }
 0x176   : > { %v3261_v1 = vpop.f32.mrb[4].mxu1 }
 0x177   : > { %v1093_v13 = vpop.f32.mrb[5].mxu1 }
 0x178   : > { %v3262_v24 = vpop.f32.mrb[6].mxu1 }
 0x179   : > { %v1096_v8 = vpop.f32.mrb[7].mxu1 }
 0x17c   : > { %v3347_v0 = vpop.f32.mrb[0].mxu0 }
 0x17d   : > { %v3363_v27 = vadd.f32 %v3347_v0, %v3257_v3  ;;  %v2548_v34 = vpop.f32.mrb[1].mxu0 }
 0x17e   : > { %v3364_v2 = vadd.f32 %v2548_v34, %v1077_v63  ;;  %v3348_v9 = vpop.f32.mrb[2].mxu0 }
 0x17f   : > { %v2636_v61 = vadd.f32 %v3363_v27, %v4437_v32  ;;  %v3365_v6 = vadd.f32 %v3348_v9, %v3258_v14  ;;  %v2551_v42 = vpop.f32.mrb[3].mxu0 }
 0x180   : > { %v2634_v22 = vadd.f32 %v3364_v2, %v4437_v32  ;;  %v3366_v7 = vadd.f32 %v2551_v42, %v1080_v5 }
 0x181   : > { %v2652_v33 = vmax.f32 %v2636_v61, 0.0  ;;  %v2637_v25 = vadd.f32 %v3365_v6, %v4437_v32 }
 0x182   : > { %v2650_v36 = vmax.f32 %v2634_v22, 0.0  ;;  %v2635_v20 = vadd.f32 %v3366_v7, %v4437_v32 }
 0x183   : > { %v3104_v53 = vpack.c.bf16 %v2652_v33, %v2652_v33  ;;  %v2653_v57 = vmax.f32 %v2637_v25, 0.0 }
 0x184   : > { %v3102_v52 = vpack.c.bf16 %v2650_v36, %v2650_v36  ;;  %v2651_v21 = vmax.f32 %v2635_v20, 0.0  ;;  %v3351_v31 = vpop.f32.mrb[4].mxu0 }
 0x185   : > { %2733 = vst.msk [vmem:[%s4446_s18 + $0x8] sm:$0xf] %vm2730_vm8, %v3104_v53  ;;  %v3105_v39 = vpack.c.bf16 %v2653_v57, %v2653_v57  ;;  %v3367_v26 = vadd.f32 %v3351_v31, %v3261_v1  ;;  %v2564_v55 = vpop.f32.mrb[5].mxu0 }
 0x186   : > { %2731 = vst.msk [vmem:[%s4446_s18] sm:$0xf] %vm2730_vm8, %v3102_v52  ;;  %v3103_v19 = vpack.c.bf16 %v2651_v21, %v2651_v21  ;;  %v3368_v10 = vadd.f32 %v2564_v55, %v1093_v13  ;;  %v3352_v38 = vpop.f32.mrb[6].mxu0 }
 0x187   : > { %2734 = vst.msk [vmem:[%s4446_s18 + $0xc] sm:$0xf] %vm2730_vm8, %v3105_v39  ;;  %v2640_v44 = vadd.f32 %v3367_v26, %v4437_v32  ;;  %v3369_v43 = vadd.f32 %v3352_v38, %v3262_v24  ;;  %v2567_v45 = vpop.f32.mrb[7].mxu0 }
 0x188   : > { %2732 = vst.msk [vmem:[%s4446_s18 + $0x4] sm:$0xf] %vm2730_vm8, %v3103_v19  ;;  %v2638_v56 = vadd.f32 %v3368_v10, %v4437_v32  ;;  %v3370_v28 = vadd.f32 %v2567_v45, %v1096_v8 }
 0x189   : > { %v2656_v11 = vmax.f32 %v2640_v44, 0.0  ;;  %v2641_v15 = vadd.f32 %v3369_v43, %v4437_v32 }
 0x18a   : > { %v2654_v41 = vmax.f32 %v2638_v56, 0.0  ;;  %v2639_v40 = vadd.f32 %v3370_v28, %v4437_v32 }
 0x18b   : > { %v3108_v59 = vpack.c.bf16 %v2656_v11, %v2656_v11  ;;  %v2657_v18 = vmax.f32 %v2641_v15, 0.0 }
 0x18c   : > { %v3106_v4 = vpack.c.bf16 %v2654_v41, %v2654_v41  ;;  %v2655_v47 = vmax.f32 %v2639_v40, 0.0  ;;  %v3355_v51 = vpop.f32.mrb[8].mxu0 }
 0x18d   : > { %2737 = vst.msk [vmem:[%s4446_s18 + $0x18] sm:$0xf] %vm2730_vm8, %v3108_v59  ;;  %v3109_v37 = vpack.c.bf16 %v2657_v18, %v2657_v18  ;;  %v2580_v49 = vpop.f32.mrb[9].mxu0 }
 0x18e   : > { %v3283_v16 = vpop.f32.mrb[8].mxu1  ;;  %2735 = vst.msk [vmem:[%s4446_s18 + $0x10] sm:$0xf] %vm2730_vm8, %v3106_v4  ;;  %v3107_v30 = vpack.c.bf16 %v2655_v47, %v2655_v47  ;;  %v3356_v23 = vpop.f32.mrb[10].mxu0 }
 0x18f   : > { %v3371_v12 = vadd.f32 %v3355_v51, %v3283_v16  ;;  %v1491_v58 = vpop.f32.mrb[9].mxu1  ;;  %2738 = vst.msk [vmem:[%s4446_s18 + $0x1c] sm:$0xf] %vm2730_vm8, %v3109_v37  ;;  %v2583_v62 = vpop.f32.mrb[11].mxu0 }
 0x190   : > { %v3372_v46 = vadd.f32 %v2580_v49, %v1491_v58  ;;  %v3284_v54 = vpop.f32.mrb[10].mxu1  ;;  %2736 = vst.msk [vmem:[%s4446_s18 + $0x14] sm:$0xf] %vm2730_vm8, %v3107_v30 }
 0x191   : > { %v2644_v48 = vadd.f32 %v3371_v12, %v4437_v32  ;;  %v3373_v50 = vadd.f32 %v3356_v23, %v3284_v54  ;;  %v1494_v60 = vpop.f32.mrb[11].mxu1 }
 0x192   : > { %v2642_v17 = vadd.f32 %v3372_v46, %v4437_v32  ;;  %v3374_v29 = vadd.f32 %v2583_v62, %v1494_v60 }
 0x193   : > { %v2660_v35 = vmax.f32 %v2644_v48, 0.0  ;;  %v2645_v3 = vadd.f32 %v3373_v50, %v4437_v32 }
 0x194   : > { %v2658_v63 = vmax.f32 %v2642_v17, 0.0  ;;  %v2643_v14 = vadd.f32 %v3374_v29, %v4437_v32  ;;  %v3359_v13 = vpop.f32.mrb[12].mxu0 }
 0x195   : > { %v3112_v5 = vpack.c.bf16 %v2660_v35, %v2660_v35  ;;  %v2661_v1 = vmax.f32 %v2645_v3, 0.0  ;;  %v2596_v27 = vpop.f32.mrb[13].mxu0 }
 0x196   : > { %v3110_v24 = vpack.c.bf16 %v2658_v63, %v2658_v63  ;;  %v2659_v8 = vmax.f32 %v2643_v14, 0.0  ;;  %v3287_v0 = vpop.f32.mrb[12].mxu1  ;;  %v3360_v61 = vpop.f32.mrb[14].mxu0 }
 0x197   : > { %2741 = vst.msk [vmem:[%s4446_s18 + $0x28] sm:$0xf] %vm2730_vm8, %v3112_v5  ;;  %v3113_v34 = vpack.c.bf16 %v2661_v1, %v2661_v1  ;;  %v3375_v2 = vadd.f32 %v3359_v13, %v3287_v0  ;;  %v1507_v9 = vpop.f32.mrb[13].mxu1  ;;  %v2599_v7 = vpop.f32.mrb[15].mxu0 }
 0x198   : > { %2739 = vst.msk [vmem:[%s4446_s18 + $0x20] sm:$0xf] %vm2730_vm8, %v3110_v24  ;;  %v3111_v6 = vpack.c.bf16 %v2659_v8, %v2659_v8  ;;  %v3376_v42 = vadd.f32 %v2596_v27, %v1507_v9  ;;  %v3288_v22 = vpop.f32.mrb[14].mxu1 }
 0x199   : > { %2742 = vst.msk [vmem:[%s4446_s18 + $0x2c] sm:$0xf] %vm2730_vm8, %v3113_v34  ;;  %v2648_v33 = vadd.f32 %v3375_v2, %v4437_v32  ;;  %v3377_v25 = vadd.f32 %v3360_v61, %v3288_v22  ;;  %v1510_v36 = vpop.f32.mrb[15].mxu1 }
 0x19a   : > { %2740 = vst.msk [vmem:[%s4446_s18 + $0x24] sm:$0xf] %vm2730_vm8, %v3111_v6  ;;  %v2646_v20 = vadd.f32 %v3376_v42, %v4437_v32  ;;  %v3378_v53 = vadd.f32 %v2599_v7, %v1510_v36 }
 0x19b   : > { %v2664_v57 = vmax.f32 %v2648_v33, 0.0  ;;  %v2649_v52 = vadd.f32 %v3377_v25, %v4437_v32 }
 0x19c   : > { %v2662_v21 = vmax.f32 %v2646_v20, 0.0  ;;  %v2647_v31 = vadd.f32 %v3378_v53, %v4437_v32 }
 0x19d   : > { %v3116_v39 = vpack.c.bf16 %v2664_v57, %v2664_v57  ;;  %v2665_v26 = vmax.f32 %v2649_v52, 0.0 }
 0x19e   : > { %v3114_v55 = vpack.c.bf16 %v2662_v21, %v2662_v21  ;;  %v2663_v19 = vmax.f32 %v2647_v31, 0.0 }
 0x19f   : > { %2745 = vst.msk [vmem:[%s4446_s18 + $0x38] sm:$0xf] %vm2730_vm8, %v3116_v39  ;;  %v3117_v10 = vpack.c.bf16 %v2665_v26, %v2665_v26 }
 0x1a0   : > { %2743 = vst.msk [vmem:[%s4446_s18 + $0x30] sm:$0xf] %vm2730_vm8, %v3114_v55  ;;  %v3115_v38 = vpack.c.bf16 %v2663_v19, %v2663_v19 }
 0x1a1   : > { %2746 = vst.msk [vmem:[%s4446_s18 + $0x3c] sm:$0xf] %vm2730_vm8, %v3117_v10 }
 0x1a2   : > { %2744 = vst.msk [vmem:[%s4446_s18 + $0x34] sm:$0xf] %vm2730_vm8, %v3115_v38 }
 0x1a3 PF: > { %s13_s12 = sadd.s32 1, %s3541_s12  }
 0x1a4   : > { %p10_p4 = scmp.ge.s32.totalorder %s13_s12, 6  }
 0x1a6   :  { %12 = sbr.rel (!%p10_p4) target bundleno = 1 (0x1), region = 72 }

// kernel: _lambda_.6
= control target key start
LH: loop header
LB: loop body
LE: loop exit
PB: predicated region body
PF: predicated region fallthrough
CT: control target
= control target key end

     0   :  { %s3970_s12 = smov 0   ;;  %s4556_s0 = inlined_call_operand.vmem [shape: bf16[4,18,34,3], index: 0, kind: input, shape index: {}]   ;;  %s4557_s1 = inlined_call_operand.vmem [shape: bf16[9,3,8], index: 1, kind: input, shape index: {}]   ;;  %s4558_s2 = inlined_call_operand.vmem [shape: f32[1,8], index: 2, kind: input, shape index: {}]   ;;  %s4559_s3 = inlined_call_operand.vmem [shape: bf16[4,8,16,8], index: 3, kind: output, shape index: {}]  }
   0x1 LB: > { %s3210_s13 = sadd.s32 4294967295, %s3947_s12   ;;  %p3214_p0 = scmp.ge.s32.totalorder %s3947_s12, 1  ;;  %s3947_s12 = sphi %s3970_s12, %s13_s12  }
   0x2   : > { %p137_p1 = scmp.lt.s32.totalorder %s3947_s12, 5 }
   0x4   : > { %p138_p2 = pnand %p3214_p0, %p137_p1 }
   0x5   : > { %v3218_v0 = vld [vmem:[%s4557_s1 + $0x2] sm:$0x3] (!%p138_p2)  ;;  %vm459_vm0 = vcmask (!%p138_p2), 1040384   ;;  %vm460_vm1 = vcmask (!%p138_p2), 1041408   ;;  %p161_p3 = scmp.lt.s32.totalorder (!%p138_p2), %s3210_s13, 3  ;;  %v3949_v1 = vmov (!%p138_p2), 65535  }
   0x6   : > { %141 = sbr.rel (%p138_p2) target bundleno = 452 (0x1c4), region = 32  ;;  %v461_v2 = vsel (!%p138_p2), %vm459_vm0, 4294967295, %v3949_v1  ;;  %v3325_v3 = vld [vmem:[%s4557_s1 + $0x8] sm:$0x3] (!%p138_p2)  ;;  %v188_v5 = vld [vmem:[%s4557_s1] sm:$0x3] (!%p138_p2) }
   0x7   : > { %v462_v4 = vsel (!%p138_p2), %vm460_vm1, %v461_v2, 0  ;;  %v3366_v9 = vld [vmem:[%s4557_s1 + $0xa] sm:$0x3] (!%p138_p2)  ;;  %v3399_v10 = vld [vmem:[%s4557_s1 + $0xc] sm:$0x3] (!%p138_p2)  ;;  %vm434_vm4 = vcmask (!%p138_p2), 23552  }
   0x8   : > { %v464_v6 = vand.u32 (!%p138_p2), %v3218_v0, %v462_v4  ;;  %v3989_v7 = vand.u32 (!%p138_p2), %v3325_v3, %v462_v4  ;;  %v3991_v8 = vand.u32 (!%p138_p2), %v462_v4, %v188_v5  ;;  %v4000_v11 = vand.u32 (!%p138_p2), %v3366_v9, %v462_v4  ;;  %v3251_v12 = vld [vmem:[%s4557_s1 + $0x4] sm:$0x3] (!%p138_p2)  ;;  %v3440_v13 = vld [vmem:[%s4557_s1 + $0xe] sm:$0x3] (!%p138_p2)  ;;  %v3284_v14 = vld [vmem:[%s4557_s1 + $0x6] sm:$0x3] (!%p138_p2) }
   0x9   : > { %vm213_vm2 = vsmask.f32 (!%p138_p2), 3328  ;;  %vm214_vm3 = vsmask.f32 (!%p138_p2), 7440  ;;  %v3481_v15 = vld [vmem:[%s4557_s1 + $0x10] sm:$0x3] (!%p138_p2)  ;;  %v4026_v19 = vand.u32 (!%p138_p2), %v3399_v10, %v462_v4  ;;  %v4028_v20 = vand.u32 (!%p138_p2), %v3251_v12, %v462_v4 }
   0xa   : > { %3615 = vmatprep.subr.bf16.mxu1 (!%p138_p2), %v464_v6  ;;  %3687 = vmatprep.subr.bf16.mxu0 (!%p138_p2), %v3989_v7  ;;  %v4030_v21 = vand.u32 (!%p138_p2), %v3440_v13, %v462_v4  ;;  %v4035_v31 = vand.u32 (!%p138_p2), %v3284_v14, %v462_v4  ;;  %v4037_v32 = vand.u32 (!%p138_p2), %v3481_v15, %v462_v4  ;;  %vm4043_vm5 = vmor (!%p138_p2), %vm213_vm2, %vm214_vm3  ;;  %vm3138_vm6 = vcmask (!%p138_p2), 60416  }
   0xb   : > { %3616 = vmatpush3.bf16.msra.mxu1 (!%p138_p2), %v464_v6  ;;  %3688 = vmatpush3.bf16.msra.mxu0 (!%p138_p2), %v3989_v7 }
   0xc   : > { %3633 = vmatprep.subr.bf16.mxu1 (!%p138_p2), %v3991_v8  ;;  %3705 = vmatprep.subr.bf16.mxu0 (!%p138_p2), %v4000_v11 }
   0xd   : > { %s4563_s13 = smov (!%p161_p3, %s3210_s13), 3 }
   0xe   : > { %s3907_s24 = smul.u32 360, %s4563_s13  ;;  %s3517_s11 = sshll.u32 %s4563_s13, 6 }
   0xf   : > { %s4506_s16 = scalar_lea.vmem %s4559_s3, %s3517_s11 }
  0x10   : > { %s4013_s4 = scalar_lea.vmem %s4556_s0, %s3907_s24 }
  0x11   : > { %v189_v16 = vld [vmem:[%s4013_s4 + $0x8] sm:$0xf]  ;;  %v190_v17 = vld [vmem:[%s4013_s4 + $0xc] sm:$0xf]  ;;  %v191_v18 = vld [vmem:[%s4013_s4 + $0x10] sm:$0x1] }
  0x12   : > { %v217_v22 = vshrl.u32 %v189_v16, 16  ;;  %v220_v23 = vshll.u32 %v189_v16, 16  ;;  %v226_v24 = vshll.u32 %v190_v17, 16  ;;  %v230_v25 = vshrl.u32 %v190_v17, 16  ;;  %v3301_v26 = vld [vmem:[%s4013_s4 + $0xbc] sm:$0xf] }
  0x13   : > { %v236_v27 = vshll.u32 %v191_v18, 16  ;;  %v3302_v28 = vld [vmem:[%s4013_s4 + $0xc0] sm:$0xf]  ;;  %v3303_v29 = vld [vmem:[%s4013_s4 + $0xc4] sm:$0x1]  ;;  %v1333_v30 = vshrl.u32 %v3301_v26, 16 }
  0x14   : > { %v219_v33 = vrot.slane %v217_v22, 4  ;;  %v222_v34 = vrot.slane %v220_v23, 5  ;;  %v228_v35 = vrot.slane %v226_v24, 5  ;;  %v232_v36 = vrot.slane %v230_v25, 4  ;;  %v192_v37 = vld [vmem:[%s4013_s4 + $0x1c] sm:$0xf] }
  0x15   : > { %v238_v38 = vrot.slane %v236_v27, 5  ;;  %v1335_v39 = vrot.slane %v1333_v30, 4  ;;  %v1336_v40 = vshll.u32 %v3301_v26, 16  ;;  %v1342_v41 = vshll.u32 %v3302_v28, 16  ;;  %v193_v46 = vld [vmem:[%s4013_s4 + $0x20] sm:$0xf] }
  0x16   : > { %v223_v42 = vor.u32 %v222_v34, %v219_v33  ;;  %v233_v43 = vor.u32 %v232_v36, %v228_v35  ;;  %v1346_v44 = vshrl.u32 %v3302_v28, 16  ;;  %v1352_v45 = vshll.u32 %v3303_v29, 16  ;;  %v194_v56 = vld [vmem:[%s4013_s4 + $0x24] sm:$0x1]  ;;  %v3304_v61 = vld [vmem:[%s4013_s4 + $0xd0] sm:$0xf] }
  0x17   : > { %v1338_v48 = vrot.slane %v1336_v40, 5  ;;  %v1344_v49 = vrot.slane %v1342_v41, 5  ;;  %v241_v50 = vshrl.u32 %v192_v37, 16  ;;  %v244_v51 = vshll.u32 %v192_v37, 16  ;;  %v3305_v2 = vld [vmem:[%s4013_s4 + $0xd4] sm:$0xf] }
  0x18   : > { %v224_v52 = vrot.slane %v223_v42, 4  ;;  %v234_v53 = vrot.slane %v233_v43, 4  ;;  %v1348_v54 = vrot.slane %v1346_v44, 4  ;;  %v1354_v55 = vrot.slane %v1352_v45, 5  ;;  %v3306_v13 = vld [vmem:[%s4013_s4 + $0xd8] sm:$0x1] }
  0x19   : > { %v1339_v57 = vor.u32 %v1338_v48, %v1335_v39  ;;  %v243_v58 = vrot.slane %v241_v50, 4  ;;  %v246_v59 = vrot.slane %v244_v51, 5  ;;  %v250_v60 = vshll.u32 %v193_v46, 16  ;;  %v195_v22 = vld [vmem:[%s4013_s4 + $0x30] sm:$0xf] }
  0x1a   : > { %v229_v62 = vsel %vm4043_vm5, %v224_v52, %v228_v35  ;;  %v239_v63 = vsel %vm4043_vm5, %v234_v53, %v238_v38  ;;  %v1349_v0 = vor.u32 %v1348_v54, %v1344_v49  ;;  %v254_v1 = vshrl.u32 %v193_v46, 16  ;;  %v196_v27 = vld [vmem:[%s4013_s4 + $0x34] sm:$0xf]  ;;  %v197_v37 = vld [vmem:[%s4013_s4 + $0x38] sm:$0x1] }
  0x1b   : > { %v3219_v3 = vcombine.low %v229_v62, %v239_v63  ;;  %v1340_v4 = vrot.slane %v1339_v57, 4  ;;  %v247_v5 = vor.u32 %v246_v59, %v243_v58  ;;  %v252_v6 = vrot.slane %v250_v60, 5  ;;  %v3307_v43 = vld [vmem:[%s4013_s4 + $0xe4] sm:$0xf]  ;;  %v3309_v60 = vld [vmem:[%s4013_s4 + $0xec] sm:$0x1] }
  0x1c   : > { %v1350_v9 = vrot.slane %v1349_v0, 4  ;;  %v256_v10 = vrot.slane %v254_v1, 4  ;;  %v260_v12 = vshll.u32 %v194_v56, 16  ;;  %v1357_v14 = vshrl.u32 %v3304_v61, 16  ;;  %v198_v63 = vld [vmem:[%s4013_s4 + $0x44] sm:$0xf] }
  0x1d   : > { %3617 = vmatprep.mubr.msk.bf16.mxu1 %vm434_vm4, %v3219_v3  ;;  %v1345_v15 = vsel %vm4043_vm5, %v1340_v4, %v1344_v49  ;;  %v248_v16 = vrot.slane %v247_v5, 4  ;;  %v1360_v17 = vshll.u32 %v3304_v61, 16  ;;  %v1366_v18 = vshll.u32 %v3305_v2, 16  ;;  %v3308_v49 = vld [vmem:[%s4013_s4 + $0xe8] sm:$0xf] }
  0x1e   : > { %v1355_v23 = vsel %vm4043_vm5, %v1350_v9, %v1354_v55  ;;  %v257_v24 = vor.u32 %v256_v10, %v252_v6  ;;  %v262_v25 = vrot.slane %v260_v12, 5  ;;  %v1359_v26 = vrot.slane %v1357_v14, 4  ;;  %v199_v14 = vld [vmem:[%s4013_s4 + $0x48] sm:$0xf] }
  0x1f   : > { %v3326_v28 = vcombine.low %v1345_v15, %v1355_v23  ;;  %v253_v29 = vsel %vm4043_vm5, %v248_v16, %v252_v6  ;;  %v1362_v30 = vrot.slane %v1360_v17, 5  ;;  %v1368_v33 = vrot.slane %v1366_v18, 5  ;;  %v3310_v23 = vld [vmem:[%s4013_s4 + $0xf8] sm:$0xf] }
  0x20   : > { %v258_v34 = vrot.slane %v257_v24, 4  ;;  %v1370_v35 = vshrl.u32 %v3305_v2, 16  ;;  %v1376_v36 = vshll.u32 %v3306_v13, 16  ;;  %v265_v38 = vshrl.u32 %v195_v22, 16 }
  0x21   : > { %3689 = vmatprep.mubr.msk.bf16.mxu0 %vm434_vm4, %v3326_v28  ;;  %v1363_v39 = vor.u32 %v1362_v30, %v1359_v26  ;;  %v268_v40 = vshll.u32 %v195_v22, 16  ;;  %v274_v41 = vshll.u32 %v196_v27, 16  ;;  %v278_v42 = vshrl.u32 %v196_v27, 16  ;;  %v200_v22 = vld [vmem:[%s4013_s4 + $0x4c] sm:$0x1] }
  0x22   : > { %v263_v44 = vsel %vm4043_vm5, %v258_v34, %v262_v25  ;;  %v1372_v45 = vrot.slane %v1370_v35, 4  ;;  %v1378_v46 = vrot.slane %v1376_v36, 5  ;;  %v267_v48 = vrot.slane %v265_v38, 4 }
  0x23   : > { %v3220_v50 = vcombine.low %v253_v29, %v263_v44  ;;  %v1364_v51 = vrot.slane %v1363_v39, 4  ;;  %v270_v52 = vrot.slane %v268_v40, 5  ;;  %v276_v53 = vrot.slane %v274_v41, 5 }
  0x24   : > { %v1373_v54 = vor.u32 %v1372_v45, %v1368_v33  ;;  %v280_v55 = vrot.slane %v278_v42, 4  ;;  %v284_v56 = vshll.u32 %v197_v37, 16  ;;  %v1381_v57 = vshrl.u32 %v3307_v43, 16  ;;  %v3311_v37 = vld [vmem:[%s4013_s4 + $0xfc] sm:$0xf] }
  0x25   : > { %3618 = vmatmul.mubr.msk.bf16.vlgmr.msra.gmra.mrb[0].mxu1 %vm434_vm4, %v3220_v50  ;;  %v1369_v58 = vsel %vm4043_vm5, %v1364_v51, %v1368_v33  ;;  %v271_v59 = vor.u32 %v270_v52, %v267_v48  ;;  %v1384_v61 = vshll.u32 %v3307_v43, 16  ;;  %v1390_v62 = vshll.u32 %v3308_v49, 16  ;;  %v3312_v42 = vld [vmem:[%s4013_s4 + $0x100] sm:$0x1]  ;;  %v201_v48 = vld [vmem:[%s4013_s4 + $0x58] sm:$0xf] }
  0x26   : > { %3634 = vmatpush3.bf16.msra.mxu1 %v3991_v8  ;;  %v1374_v0 = vrot.slane %v1373_v54, 4  ;;  %v281_v1 = vor.u32 %v280_v55, %v276_v53  ;;  %v286_v2 = vrot.slane %v284_v56, 5  ;;  %v1383_v3 = vrot.slane %v1381_v57, 4  ;;  %v202_v57 = vld [vmem:[%s4013_s4 + $0x5c] sm:$0xf] }
  0x27   : > { %v272_v4 = vrot.slane %v271_v59, 4  ;;  %v1386_v5 = vrot.slane %v1384_v61, 5  ;;  %v1392_v6 = vrot.slane %v1390_v62, 5  ;;  %v1394_v9 = vshrl.u32 %v3308_v49, 16  ;;  %3651 = vmatprep.subr.bf16.mxu1 %v4028_v20  ;;  %v203_v61 = vld [vmem:[%s4013_s4 + $0x60] sm:$0x1] }
  0x28   : > { %v1379_v10 = vsel %vm4043_vm5, %v1374_v0, %v1378_v46  ;;  %v282_v12 = vrot.slane %v281_v1, 4  ;;  %v1400_v13 = vshll.u32 %v3309_v60, 16  ;;  %v289_v15 = vshrl.u32 %v198_v63, 16 }
  0x29   : > { %v3327_v8 = vcombine.low %v1369_v58, %v1379_v10  ;;  %v277_v16 = vsel %vm4043_vm5, %v272_v4, %v276_v53  ;;  %v1387_v17 = vor.u32 %v1386_v5, %v1383_v3  ;;  %v1396_v18 = vrot.slane %v1394_v9, 4  ;;  %v3342_v9 = vld [vmem:[%s4013_s4 + $0xb4] sm:$0xf] }
  0x2a   : > { %v287_v24 = vsel %vm4043_vm5, %v282_v12, %v286_v2  ;;  %v1402_v25 = vrot.slane %v1400_v13, 5  ;;  %v291_v26 = vrot.slane %v289_v15, 4  ;;  %v292_v27 = vshll.u32 %v198_v63, 16  ;;  %v3343_v15 = vld [vmem:[%s4013_s4 + $0xb8] sm:$0xf] }
  0x2b   : > { %3690 = vmatmul.mubr.msk.bf16.vlgmr.msra.gmra.mrb[0].mxu0 %vm434_vm4, %v3327_v8  ;;  %v3221_v28 = vcombine.low %v277_v16, %v287_v24  ;;  %v1388_v29 = vrot.slane %v1387_v17, 4  ;;  %v1397_v30 = vor.u32 %v1396_v18, %v1392_v6  ;;  %v298_v33 = vshll.u32 %v199_v14, 16 }
  0x2c   : > { %3706 = vmatpush3.bf16.msra.mxu0 %v4000_v11  ;;  %v294_v34 = vrot.slane %v292_v27, 5  ;;  %v302_v35 = vshrl.u32 %v199_v14, 16  ;;  %v308_v36 = vshll.u32 %v200_v22, 16  ;;  %v1405_v38 = vshrl.u32 %v3310_v23, 16 }
  0x2d   : > { %3621 = vmatprep.mubr.msk.bf16.mxu1 %vm434_vm4, %v3221_v28  ;;  %v1393_v39 = vsel %vm4043_vm5, %v1388_v29, %v1392_v6  ;;  %v1398_v40 = vrot.slane %v1397_v30, 4  ;;  %v300_v41 = vrot.slane %v298_v33, 5  ;;  %v1408_v43 = vshll.u32 %v3310_v23, 16  ;;  %3723 = vmatprep.subr.bf16.mxu0 %v4026_v19  ;;  %v204_v33 = vld [vmem:[%s4013_s4 + $0x6c] sm:$0xf] }
  0x2e   : > { %v295_v44 = vor.u32 %v294_v34, %v291_v26  ;;  %v304_v11 = vrot.slane %v302_v35, 4  ;;  %v310_v45 = vrot.slane %v308_v36, 5  ;;  %v1407_v46 = vrot.slane %v1405_v38, 4  ;;  %v205_v38 = vld [vmem:[%s4013_s4 + $0x70] sm:$0xf] }
  0x2f   : > { %v1403_v49 = vsel %vm4043_vm5, %v1398_v40, %v1402_v25  ;;  %v1410_v50 = vrot.slane %v1408_v43, 5  ;;  %v1414_v51 = vshll.u32 %v3311_v37, 16  ;;  %v1418_v52 = vshrl.u32 %v3311_v37, 16  ;;  %v3344_v25 = vld [vmem:[%s4013_s4 + $0xbc] sm:$0x1] }
  0x30   : > { %v3328_v53 = vcombine.low %v1393_v39, %v1403_v49  ;;  %v296_v54 = vrot.slane %v295_v44, 4  ;;  %v305_v55 = vor.u32 %v304_v11, %v300_v41  ;;  %v1424_v56 = vshll.u32 %v3312_v42, 16  ;;  %v206_v11 = vld [vmem:[%s4013_s4 + $0x74] sm:$0x1] }
  0x31   : > { %v1411_v58 = vor.u32 %v1410_v50, %v1407_v46  ;;  %v1416_v59 = vrot.slane %v1414_v51, 5  ;;  %v1420_v60 = vrot.slane %v1418_v52, 4  ;;  %v313_v62 = vshrl.u32 %v201_v48, 16  ;;  %v3345_v52 = vld [vmem:[%s4013_s4 + $0xc8] sm:$0xf] }
  0x32   : > { %3693 = vmatprep.mubr.msk.bf16.mxu0 %vm434_vm4, %v3328_v53  ;;  %v301_v63 = vsel %vm4043_vm5, %v296_v54, %v300_v41  ;;  %v306_v0 = vrot.slane %v305_v55, 4  ;;  %v1426_v1 = vrot.slane %v1424_v56, 5  ;;  %v316_v2 = vshll.u32 %v201_v48, 16  ;;  %v3346_v53 = vld [vmem:[%s4013_s4 + $0xcc] sm:$0xf] }
  0x33   : > { %v1412_v3 = vrot.slane %v1411_v58, 4  ;;  %v1421_v4 = vor.u32 %v1420_v60, %v1416_v59  ;;  %v315_v5 = vrot.slane %v313_v62, 4  ;;  %v322_v6 = vshll.u32 %v202_v57, 16 }
  0x34   : > { %v311_v10 = vsel %vm4043_vm5, %v306_v0, %v310_v45  ;;  %v318_v12 = vrot.slane %v316_v2, 5  ;;  %v326_v13 = vshrl.u32 %v202_v57, 16  ;;  %v332_v14 = vshll.u32 %v203_v61, 16 }
  0x35   : > { %v3222_v8 = vcombine.low %v301_v63, %v311_v10  ;;  %v1417_v16 = vsel %vm4043_vm5, %v1412_v3, %v1416_v59  ;;  %v1422_v17 = vrot.slane %v1421_v4, 4  ;;  %v324_v18 = vrot.slane %v322_v6, 5  ;;  %v208_v10 = vld [vmem:[%s4013_s4 + $0x84] sm:$0xf] }
  0x36   : > { %v319_v22 = vor.u32 %v318_v12, %v315_v5  ;;  %v328_v23 = vrot.slane %v326_v13, 4  ;;  %v334_v24 = vrot.slane %v332_v14, 5  ;;  %v1715_v26 = vshrl.u32 %v3342_v9, 16 }
  0x37   : > { %3622 = vmatmul.mubr.msk.bf16.gmra.mrb[4].mxu1 %vm434_vm4, %v3222_v8  ;;  %v1427_v27 = vsel %vm4043_vm5, %v1422_v17, %v1426_v1  ;;  %v1718_v28 = vshll.u32 %v3342_v9, 16  ;;  %v1724_v29 = vshll.u32 %v3343_v15, 16  ;;  %v1728_v30 = vshrl.u32 %v3343_v15, 16  ;;  %v3347_v1 = vld [vmem:[%s4013_s4 + $0xd0] sm:$0x1] }
  0x38   : > { %v3329_v34 = vcombine.low %v1417_v16, %v1427_v27  ;;  %v320_v35 = vrot.slane %v319_v22, 4  ;;  %v329_v36 = vor.u32 %v328_v23, %v324_v18  ;;  %v1717_v37 = vrot.slane %v1715_v26, 4  ;;  %v207_v9 = vld [vmem:[%s4013_s4 + $0x80] sm:$0xf]  ;;  %v209_v22 = vld [vmem:[%s4013_s4 + $0x88] sm:$0x1] }
  0x39   : > { %v1720_v39 = vrot.slane %v1718_v28, 5  ;;  %v1726_v40 = vrot.slane %v1724_v29, 5  ;;  %v1730_v41 = vrot.slane %v1728_v30, 4  ;;  %v1734_v42 = vshll.u32 %v3344_v25, 16  ;;  %v3348_v27 = vld [vmem:[%s4013_s4 + $0xdc] sm:$0xf] }
  0x3a   : > { %3694 = vmatmul.mubr.msk.bf16.gmra.mrb[4].mxu0 %vm434_vm4, %v3329_v34  ;;  %v325_v43 = vsel %vm4043_vm5, %v320_v35, %v324_v18  ;;  %v330_v44 = vrot.slane %v329_v36, 4  ;;  %v337_v45 = vshrl.u32 %v204_v33, 16  ;;  %v340_v46 = vshll.u32 %v204_v33, 16  ;;  %v3349_v34 = vld [vmem:[%s4013_s4 + $0xe0] sm:$0xf] }
  0x3b   : > { %v1721_v48 = vor.u32 %v1720_v39, %v1717_v37  ;;  %v1731_v49 = vor.u32 %v1730_v41, %v1726_v40  ;;  %v1736_v50 = vrot.slane %v1734_v42, 5  ;;  %v346_v51 = vshll.u32 %v205_v38, 16 }
  0x3c   : > { %v335_v54 = vsel %vm4043_vm5, %v330_v44, %v334_v24  ;;  %v339_v55 = vrot.slane %v337_v45, 4  ;;  %v342_v56 = vrot.slane %v340_v46, 5  ;;  %v350_v57 = vshrl.u32 %v205_v38, 16 }
  0x3d   : > { %v3223_v58 = vcombine.low %v325_v43, %v335_v54  ;;  %v1722_v59 = vrot.slane %v1721_v48, 4  ;;  %v1732_v60 = vrot.slane %v1731_v49, 4  ;;  %v348_v61 = vrot.slane %v346_v51, 5  ;;  %v3350_v43 = vld [vmem:[%s4013_s4 + $0xe4] sm:$0x1] }
  0x3e   : > { %v343_v62 = vor.u32 %v342_v56, %v339_v55  ;;  %v352_v63 = vrot.slane %v350_v57, 4  ;;  %v356_v0 = vshll.u32 %v206_v11, 16  ;;  %v1739_v2 = vshrl.u32 %v3345_v52, 16  ;;  %v210_v48 = vld [vmem:[%s4013_s4 + $0x94] sm:$0xf] }
  0x3f   : > { %3625 = vmatprep.mubr.msk.bf16.mxu1 %vm434_vm4, %v3223_v58  ;;  %v1727_v3 = vsel %vm4043_vm5, %v1722_v59, %v1726_v40  ;;  %v1737_v4 = vsel %vm4043_vm5, %v1732_v60, %v1736_v50  ;;  %v1742_v5 = vshll.u32 %v3345_v52, 16  ;;  %v1748_v6 = vshll.u32 %v3346_v53, 16 }
  0x40   : > { %v3367_v12 = vcombine.low %v1727_v3, %v1737_v4  ;;  %v344_v13 = vrot.slane %v343_v62, 4  ;;  %v353_v14 = vor.u32 %v352_v63, %v348_v61  ;;  %v358_v15 = vrot.slane %v356_v0, 5  ;;  %v212_v62 = vld [vmem:[%s4013_s4 + $0x9c] sm:$0x1]  ;;  %v3351_v3 = vld [vmem:[%s4013_s4 + $0xf0] sm:$0xf] }
  0x41   : > { %v1741_v8 = vrot.slane %v1739_v2, 4  ;;  %v1744_v16 = vrot.slane %v1742_v5, 5  ;;  %v1750_v17 = vrot.slane %v1748_v6, 5  ;;  %v1752_v18 = vshrl.u32 %v3346_v53, 16  ;;  %v211_v53 = vld [vmem:[%s4013_s4 + $0x98] sm:$0xf] }
  0x42   : > { %3707 = vmatprep.mubr.msk.bf16.mxu0 %vm434_vm4, %v3367_v12  ;;  %v349_v23 = vsel %vm4043_vm5, %v344_v13, %v348_v61  ;;  %v354_v24 = vrot.slane %v353_v14, 4  ;;  %v1758_v25 = vshll.u32 %v3347_v1, 16  ;;  %v361_v26 = vshrl.u32 %v207_v9, 16 }
  0x43   : > { %v1745_v28 = vor.u32 %v1744_v16, %v1741_v8  ;;  %v1754_v29 = vrot.slane %v1752_v18, 4  ;;  %v364_v30 = vshll.u32 %v207_v9, 16  ;;  %v370_v33 = vshll.u32 %v208_v10, 16 }
  0x44   : > { %v359_v35 = vsel %vm4043_vm5, %v354_v24, %v358_v15  ;;  %v1760_v36 = vrot.slane %v1758_v25, 5  ;;  %v363_v37 = vrot.slane %v361_v26, 4  ;;  %v374_v38 = vshrl.u32 %v208_v10, 16  ;;  %v3352_v10 = vld [vmem:[%s4013_s4 + $0xf4] sm:$0xf] }
  0x45   : > { %v3224_v39 = vcombine.low %v349_v23, %v359_v35  ;;  %v1746_v40 = vrot.slane %v1745_v28, 4  ;;  %v1755_v41 = vor.u32 %v1754_v29, %v1750_v17  ;;  %v366_v42 = vrot.slane %v364_v30, 5  ;;  %v3353_v26 = vld [vmem:[%s4013_s4 + $0xf8] sm:$0x1] }
  0x46   : > { %v372_v44 = vrot.slane %v370_v33, 5  ;;  %v376_v11 = vrot.slane %v374_v38, 4  ;;  %v380_v45 = vshll.u32 %v209_v22, 16  ;;  %v1763_v46 = vshrl.u32 %v3348_v27, 16 }
  0x47   : > { %3626 = vmatmul.mubr.msk.bf16.gmra.mrb[8].mxu1 %vm434_vm4, %v3224_v39  ;;  %v1751_v49 = vsel %vm4043_vm5, %v1746_v40, %v1750_v17  ;;  %v1756_v50 = vrot.slane %v1755_v41, 4  ;;  %v367_v51 = vor.u32 %v366_v42, %v363_v37  ;;  %v1766_v52 = vshll.u32 %v3348_v27, 16  ;;  %v3355_v41 = vld [vmem:[%s4013_s4 + $0x108] sm:$0xf] }
  0x48   : > { %v377_v54 = vor.u32 %v376_v11, %v372_v44  ;;  %v382_v55 = vrot.slane %v380_v45, 5  ;;  %v1765_v56 = vrot.slane %v1763_v46, 4  ;;  %v1772_v57 = vshll.u32 %v3349_v34, 16 }
  0x49   : > { %v1761_v58 = vsel %vm4043_vm5, %v1756_v50, %v1760_v36  ;;  %v368_v59 = vrot.slane %v367_v51, 4  ;;  %v1768_v60 = vrot.slane %v1766_v52, 5  ;;  %v1776_v61 = vshrl.u32 %v3349_v34, 16  ;;  %v3354_v36 = vld [vmem:[%s4013_s4 + $0x104] sm:$0xf] }
  0x4a   : > { %v3368_v63 = vcombine.low %v1751_v49, %v1761_v58  ;;  %v378_v0 = vrot.slane %v377_v54, 4  ;;  %v1774_v1 = vrot.slane %v1772_v57, 5  ;;  %v1782_v2 = vshll.u32 %v3350_v43, 16  ;;  %v3356_v52 = vld [vmem:[%s4013_s4 + $0x10c] sm:$0x1] }
  0x4b   : > { %v373_v4 = vsel %vm4043_vm5, %v368_v59, %v372_v44  ;;  %v1769_v5 = vor.u32 %v1768_v60, %v1765_v56  ;;  %v1778_v6 = vrot.slane %v1776_v61, 4  ;;  %v385_v9 = vshrl.u32 %v210_v48, 16  ;;  %v3357_v59 = vld [vmem:[%s4013_s4 + $0x118] sm:$0xf]  ;;  %v3917_v61 = vld [vmem:[%s4013_s4] sm:$0xff]  }
  0x4c   : > { %3708 = vmatmul.mubr.msk.bf16.vlgmr.msra.gmra.mrb[0].mxu0 %vm434_vm4, %v3368_v63  ;;  %v383_v12 = vsel %vm4043_vm5, %v378_v0, %v382_v55  ;;  %v1784_v13 = vrot.slane %v1782_v2, 5  ;;  %v388_v14 = vshll.u32 %v210_v48, 16  ;;  %v394_v15 = vshll.u32 %v211_v53, 16 }
  0x4d   : > { %3724 = vmatpush3.bf16.msra.mxu0 %v4026_v19  ;;  %v3225_v8 = vcombine.low %v373_v4, %v383_v12  ;;  %v1770_v16 = vrot.slane %v1769_v5, 4  ;;  %v1779_v17 = vor.u32 %v1778_v6, %v1774_v1  ;;  %v387_v18 = vrot.slane %v385_v9, 4 }
  0x4e   : > { %v390_v22 = vrot.slane %v388_v14, 5  ;;  %v396_v23 = vrot.slane %v394_v15, 5  ;;  %v398_v24 = vshrl.u32 %v211_v53, 16  ;;  %v404_v25 = vshll.u32 %v212_v62, 16  ;;  %3741 = vmatprep.subr.bf16.mxu0 %v4030_v21 }
  0x4f   : > { %3629 = vmatprep.mubr.msk.bf16.mxu1 %vm434_vm4, %v3225_v8  ;;  %v1775_v27 = vsel %vm4043_vm5, %v1770_v16, %v1774_v1  ;;  %v1780_v28 = vrot.slane %v1779_v17, 4  ;;  %v1787_v19 = vshrl.u32 %v3351_v3, 16  ;;  %v1790_v29 = vshll.u32 %v3351_v3, 16  ;;  %v3358_v1 = vld [vmem:[%s4013_s4 + $0x11c] sm:$0xf] }
  0x50   : > { %v391_v30 = vor.u32 %v390_v22, %v387_v18  ;;  %v400_v33 = vrot.slane %v398_v24, 4  ;;  %v406_v34 = vrot.slane %v404_v25, 5  ;;  %v1796_v35 = vshll.u32 %v3352_v10, 16  ;;  %v3360_v17 = vld [vmem:[%s4013_s4 + $0x12c] sm:$0xf] }
  0x51   : > { %v1785_v37 = vsel %vm4043_vm5, %v1780_v28, %v1784_v13  ;;  %v1789_v38 = vrot.slane %v1787_v19, 4  ;;  %v1792_v39 = vrot.slane %v1790_v29, 5  ;;  %v1800_v40 = vshrl.u32 %v3352_v10, 16  ;;  %v3359_v10 = vld [vmem:[%s4013_s4 + $0x120] sm:$0x1] }
  0x52   : > { %v3369_v42 = vcombine.low %v1775_v27, %v1785_v37  ;;  %v392_v43 = vrot.slane %v391_v30, 4  ;;  %v401_v44 = vor.u32 %v400_v33, %v396_v23  ;;  %v1798_v11 = vrot.slane %v1796_v35, 5  ;;  %v3361_v25 = vld [vmem:[%s4013_s4 + $0x130] sm:$0xf]  ;;  %v3918_v33 = vld [vmem:[%s4013_s4 + $0x14] sm:$0xff]  }
  0x53   : > { %v1793_v45 = vor.u32 %v1792_v39, %v1789_v38  ;;  %v1802_v46 = vrot.slane %v1800_v40, 4  ;;  %v1806_v48 = vshll.u32 %v3353_v26, 16  ;;  %v1811_v49 = vshrl.u32 %v3354_v36, 16 }
  0x54   : > { %3711 = vmatprep.mubr.msk.bf16.mxu0 %vm434_vm4, %v3369_v42  ;;  %v397_v50 = vsel %vm4043_vm5, %v392_v43, %v396_v23  ;;  %v402_v51 = vrot.slane %v401_v44, 4  ;;  %v1814_v53 = vshll.u32 %v3354_v36, 16  ;;  %v1820_v54 = vshll.u32 %v3355_v41, 16  ;;  %v3364_v42 = vld [vmem:[%s4013_s4 + $0x144] sm:$0xf]  ;;  %v3919_v44 = vld [vmem:[%s4013_s4 + $0x28] sm:$0xff]  }
  0x55   : > { %v1794_v55 = vrot.slane %v1793_v45, 4  ;;  %v1803_v56 = vor.u32 %v1802_v46, %v1798_v11  ;;  %v1808_v57 = vrot.slane %v1806_v48, 5  ;;  %v1813_v58 = vrot.slane %v1811_v49, 4 }
  0x56   : > { %v407_v60 = vsel %vm4043_vm5, %v402_v51, %v406_v34  ;;  %v1816_v62 = vrot.slane %v1814_v53, 5  ;;  %v1822_v63 = vrot.slane %v1820_v54, 5  ;;  %v1824_v0 = vshrl.u32 %v3355_v41, 16  ;;  %v3362_v34 = vld [vmem:[%s4013_s4 + $0x134] sm:$0x1] }
  0x57   : > { %v3226_v2 = vcombine.low %v397_v50, %v407_v60  ;;  %v1799_v3 = vsel %vm4043_vm5, %v1794_v55, %v1798_v11  ;;  %v1804_v4 = vrot.slane %v1803_v56, 4  ;;  %v1830_v5 = vshll.u32 %v3356_v52, 16  ;;  %v3363_v41 = vld [vmem:[%s4013_s4 + $0x140] sm:$0xf] }
  0x58   : > { %v1817_v6 = vor.u32 %v1816_v62, %v1813_v58  ;;  %v1826_v9 = vrot.slane %v1824_v0, 4  ;;  %v1835_v12 = vshrl.u32 %v3357_v59, 16  ;;  %v1838_v13 = vshll.u32 %v3357_v59, 16  ;;  %v3365_v58 = vld [vmem:[%s4013_s4 + $0x148] sm:$0x1] }
  0x59   : > { %3630 = vmatmul.mubr.msk.bf16.gmra.mrb[12].mxu1 %vm434_vm4, %v3226_v2  ;;  %v1809_v14 = vsel %vm4043_vm5, %v1804_v4, %v1808_v57  ;;  %v1832_v15 = vrot.slane %v1830_v5, 5  ;;  %v1844_v8 = vshll.u32 %v3358_v1, 16  ;;  %v1848_v16 = vshrl.u32 %v3358_v1, 16  ;;  %v728_v2 = vld [vmem:[%s4013_s4 + $0x4] sm:$0xf] }
  0x5a   : > { %v3370_v18 = vcombine.low %v1799_v3, %v1809_v14  ;;  %3635 = vmatprep.mubr.msk.bf16.mxu1 %vm434_vm4, %v3917_v61  ;;  %v1818_v22 = vrot.slane %v1817_v6, 4  ;;  %v1827_v23 = vor.u32 %v1826_v9, %v1822_v63  ;;  %v1837_v24 = vrot.slane %v1835_v12, 4  ;;  %v727_v61 = vld [vmem:[%s4013_s4] sm:$0xf]  ;;  %v729_v12 = vld [vmem:[%s4013_s4 + $0x8] sm:$0x1] }
  0x5b   : > { %v1840_v26 = vrot.slane %v1838_v13, 5  ;;  %v1846_v27 = vrot.slane %v1844_v8, 5  ;;  %v1850_v28 = vrot.slane %v1848_v16, 4  ;;  %v1854_v19 = vshll.u32 %v3359_v10, 16  ;;  %v3920_v14 = vld [vmem:[%s4013_s4 + $0x3c] sm:$0xff]  }
  0x5c   : > { %3712 = vmatmul.mubr.msk.bf16.gmra.mrb[4].mxu0 %vm434_vm4, %v3370_v18  ;;  %v1823_v29 = vsel %vm4043_vm5, %v1818_v22, %v1822_v63  ;;  %v1828_v30 = vrot.slane %v1827_v23, 4  ;;  %v1859_v35 = vshrl.u32 %v3360_v17, 16  ;;  %v1862_v36 = vshll.u32 %v3360_v17, 16  ;;  %v730_v18 = vld [vmem:[%s4013_s4 + $0x14] sm:$0xf] }
  0x5d   : > { %v1841_v37 = vor.u32 %v1840_v26, %v1837_v24  ;;  %v1851_v38 = vor.u32 %v1850_v28, %v1846_v27  ;;  %v1856_v39 = vrot.slane %v1854_v19, 5  ;;  %v1868_v40 = vshll.u32 %v3361_v25, 16  ;;  %v3921_v24 = vld [vmem:[%s4013_s4 + $0x50] sm:$0xff]  }
  0x5e   : > { %v1833_v43 = vsel %vm4043_vm5, %v1828_v30, %v1832_v15  ;;  %v1861_v11 = vrot.slane %v1859_v35, 4  ;;  %v1864_v45 = vrot.slane %v1862_v36, 5  ;;  %v1872_v46 = vshrl.u32 %v3361_v25, 16  ;;  %v731_v30 = vld [vmem:[%s4013_s4 + $0x18] sm:$0xf] }
  0x5f   : > { %v3371_v48 = vcombine.low %v1823_v29, %v1833_v43  ;;  %v1842_v49 = vrot.slane %v1841_v37, 4  ;;  %v1852_v50 = vrot.slane %v1851_v38, 4  ;;  %v1870_v51 = vrot.slane %v1868_v40, 5  ;;  %v732_v40 = vld [vmem:[%s4013_s4 + $0x1c] sm:$0x1] }
  0x60   : > { %v1865_v52 = vor.u32 %v1864_v45, %v1861_v11  ;;  %v1874_v53 = vrot.slane %v1872_v46, 4  ;;  %v1878_v54 = vshll.u32 %v3362_v34, 16  ;;  %v1883_v55 = vshrl.u32 %v3363_v41, 16  ;;  %v733_v45 = vld [vmem:[%s4013_s4 + $0x28] sm:$0xf] }
  0x61   : > { %3715 = vmatprep.mubr.msk.bf16.mxu0 %vm434_vm4, %v3371_v48  ;;  %3636 = vmatmul.mubr.msk.bf16.vlgmr.msra.gmra.mrb[0].mxu1 %vm434_vm4, %v3918_v33  ;;  %v1847_v56 = vsel %vm4043_vm5, %v1842_v49, %v1846_v27  ;;  %v1857_v57 = vsel %vm4043_vm5, %v1852_v50, %v1856_v39  ;;  %v1886_v59 = vshll.u32 %v3363_v41, 16  ;;  %v1892_v60 = vshll.u32 %v3364_v42, 16  ;;  %v3922_v48 = vld [vmem:[%s4013_s4 + $0x14] sm:$0xff]  }
  0x62   : > { %3652 = vmatpush3.bf16.msra.mxu1 %v4028_v20  ;;  %v3372_v62 = vcombine.low %v1847_v56, %v1857_v57  ;;  %3639 = vmatprep.mubr.msk.bf16.mxu1 %vm434_vm4, %v3919_v44  ;;  %v1866_v63 = vrot.slane %v1865_v52, 4  ;;  %v1875_v0 = vor.u32 %v1874_v53, %v1870_v51  ;;  %v1880_v1 = vrot.slane %v1878_v54, 5  ;;  %v734_v52 = vld [vmem:[%s4013_s4 + $0x2c] sm:$0xf]  ;;  %v3923_v57 = vld [vmem:[%s4013_s4 + $0x64] sm:$0xff]  }
  0x63   : > { %v1885_v3 = vrot.slane %v1883_v55, 4  ;;  %v1888_v4 = vrot.slane %v1886_v59, 5  ;;  %v1894_v5 = vrot.slane %v1892_v60, 5  ;;  %v1896_v6 = vshrl.u32 %v3364_v42, 16  ;;  %3669 = vmatprep.subr.bf16.mxu1 %v4035_v31 }
  0x64   : > { %3716 = vmatmul.mubr.msk.bf16.gmra.mrb[8].mxu0 %vm434_vm4, %v3372_v62  ;;  %v1871_v20 = vsel %vm4043_vm5, %v1866_v63, %v1870_v51  ;;  %v1876_v9 = vrot.slane %v1875_v0, 4  ;;  %v1902_v10 = vshll.u32 %v3365_v58, 16  ;;  %v752_v13 = vshrl.u32 %v727_v61, 16  ;;  %v3925_v63 = vld [vmem:[%s4013_s4 + $0x78] sm:$0xff]  }
  0x65   : > { %v1889_v15 = vor.u32 %v1888_v4, %v1885_v3  ;;  %v1898_v8 = vrot.slane %v1896_v6, 4  ;;  %v755_v16 = vshll.u32 %v727_v61, 16  ;;  %v761_v17 = vshll.u32 %v728_v2, 16  ;;  %v735_v61 = vld [vmem:[%s4013_s4 + $0x30] sm:$0x1] }
  0x66   : > { %v1881_v22 = vsel %vm4043_vm5, %v1876_v9, %v1880_v1  ;;  %v1904_v23 = vrot.slane %v1902_v10, 5  ;;  %v754_v25 = vrot.slane %v752_v13, 4  ;;  %v765_v26 = vshrl.u32 %v728_v2, 16  ;;  %v736_v4 = vld [vmem:[%s4013_s4 + $0x3c] sm:$0xf] }
  0x67   : > { %v3373_v27 = vcombine.low %v1871_v20, %v1881_v22  ;;  %v1890_v28 = vrot.slane %v1889_v15, 4  ;;  %v1899_v19 = vor.u32 %v1898_v8, %v1894_v5  ;;  %v757_v29 = vrot.slane %v755_v16, 5  ;;  %v737_v10 = vld [vmem:[%s4013_s4 + $0x40] sm:$0xf]  ;;  %v738_v8 = vld [vmem:[%s4013_s4 + $0x44] sm:$0x1] }
  0x68   : > { %v763_v33 = vrot.slane %v761_v17, 5  ;;  %v767_v34 = vrot.slane %v765_v26, 4  ;;  %v771_v35 = vshll.u32 %v729_v12, 16  ;;  %v776_v36 = vshrl.u32 %v730_v18, 16  ;;  %v739_v16 = vld [vmem:[%s4013_s4 + $0x50] sm:$0xf] }
  0x69   : > { %3719 = vmatprep.mubr.msk.bf16.mxu0 %vm434_vm4, %v3373_v27  ;;  %3640 = vmatmul.mubr.msk.bf16.gmra.mrb[4].mxu1 %vm434_vm4, %v3920_v14  ;;  %v1895_v37 = vsel %vm4043_vm5, %v1890_v28, %v1894_v5  ;;  %v1900_v38 = vrot.slane %v1899_v19, 4  ;;  %v758_v39 = vor.u32 %v757_v29, %v754_v25  ;;  %v779_v41 = vshll.u32 %v730_v18, 16  ;;  %v3924_v25 = vld [vmem:[%s4013_s4 + $0x28] sm:$0xff]   ;;  %v3926_v29 = vld [vmem:[%s4013_s4 + $0x3c] sm:$0xff]  }
  0x6a   : > { %3643 = vmatprep.mubr.msk.bf16.mxu1 %vm434_vm4, %v3921_v24  ;;  %v768_v42 = vor.u32 %v767_v34, %v763_v33  ;;  %v773_v43 = vrot.slane %v771_v35, 5  ;;  %v778_v44 = vrot.slane %v776_v36, 4  ;;  %v785_v11 = vshll.u32 %v731_v30, 16  ;;  %v740_v24 = vld [vmem:[%s4013_s4 + $0x54] sm:$0xf] }
  0x6b   : > { %v1905_v46 = vsel %vm4043_vm5, %v1900_v38, %v1904_v23  ;;  %v759_v49 = vrot.slane %v758_v39, 4  ;;  %v781_v50 = vrot.slane %v779_v41, 5  ;;  %v789_v51 = vshrl.u32 %v731_v30, 16  ;;  %v3927_v41 = vld [vmem:[%s4013_s4 + $0x8c] sm:$0xff]  }
  0x6c   : > { %v3374_v53 = vcombine.low %v1895_v37, %v1905_v46  ;;  %v769_v54 = vrot.slane %v768_v42, 4  ;;  %v787_v55 = vrot.slane %v785_v11, 5  ;;  %v795_v56 = vshll.u32 %v732_v40, 16  ;;  %v741_v40 = vld [vmem:[%s4013_s4 + $0x58] sm:$0x1] }
  0x6d   : > { %v764_v58 = vsel %vm4043_vm5, %v759_v49, %v763_v33  ;;  %v782_v59 = vor.u32 %v781_v50, %v778_v44  ;;  %v791_v60 = vrot.slane %v789_v51, 4  ;;  %v800_v62 = vshrl.u32 %v733_v45, 16 }
  0x6e   : > { %3720 = vmatmul.mubr.msk.bf16.gmra.mrb[12].mxu0 %vm434_vm4, %v3374_v53  ;;  %v774_v0 = vsel %vm4043_vm5, %v769_v54, %v773_v43  ;;  %v797_v1 = vrot.slane %v795_v56, 5  ;;  %v803_v2 = vshll.u32 %v733_v45, 16  ;;  %v809_v3 = vshll.u32 %v734_v52, 16  ;;  %v3416_v45 = vld [vmem:[%s4013_s4 + $0x1c] sm:$0xf] }
  0x6f   : > { %3725 = vmatprep.mubr.msk.bf16.mxu0 %vm434_vm4, %v3922_v48  ;;  %v4235_v5 = vcombine.low %v764_v58, %v774_v0  ;;  %v783_v6 = vrot.slane %v782_v59, 4  ;;  %v792_v20 = vor.u32 %v791_v60, %v787_v55  ;;  %v802_v9 = vrot.slane %v800_v62, 4  ;;  %v3417_v59 = vld [vmem:[%s4013_s4 + $0x20] sm:$0xf]  ;;  %v742_v0 = vld [vmem:[%s4013_s4 + $0x64] sm:$0xf] }
  0x70   : > { %v805_v12 = vrot.slane %v803_v2, 5  ;;  %v811_v13 = vrot.slane %v809_v3, 5  ;;  %v813_v14 = vshrl.u32 %v734_v52, 16  ;;  %v819_v15 = vshll.u32 %v735_v61, 16 }
  0x71   : > { %3644 = vmatmul.mubr.msk.bf16.gmra.mrb[8].mxu1 %vm434_vm4, %v3923_v57  ;;  %v788_v17 = vsel %vm4043_vm5, %v783_v6, %v787_v55  ;;  %v793_v18 = vrot.slane %v792_v20, 4  ;;  %v824_v22 = vshrl.u32 %v736_v4, 16  ;;  %v827_v23 = vshll.u32 %v736_v4, 16  ;;  %v3929_v20 = vld [vmem:[%s4013_s4 + $0x64] sm:$0xff]  }
  0x72   : > { %3647 = vmatprep.mubr.msk.bf16.mxu1 %vm434_vm4, %v3925_v63  ;;  %v806_v26 = vor.u32 %v805_v12, %v802_v9  ;;  %v815_v27 = vrot.slane %v813_v14, 4  ;;  %v821_v28 = vrot.slane %v819_v15, 5  ;;  %v833_v19 = vshll.u32 %v737_v10, 16  ;;  %v3418_v63 = vld [vmem:[%s4013_s4 + $0x24] sm:$0x1] }
  0x73   : > { %v798_v30 = vsel %vm4043_vm5, %v793_v18, %v797_v1  ;;  %v826_v33 = vrot.slane %v824_v22, 4  ;;  %v829_v34 = vrot.slane %v827_v23, 5  ;;  %v837_v35 = vshrl.u32 %v737_v10, 16  ;;  %v3928_v1 = vld [vmem:[%s4013_s4 + $0x50] sm:$0xff]  }
  0x74   : > { %v4249_v36 = vcombine.low %v788_v17, %v798_v30  ;;  %v807_v37 = vrot.slane %v806_v26, 4  ;;  %v816_v38 = vor.u32 %v815_v27, %v811_v13  ;;  %v835_v39 = vrot.slane %v833_v19, 5  ;;  %v743_v17 = vld [vmem:[%s4013_s4 + $0x68] sm:$0xf] }
  0x75   : > { %v830_v42 = vor.u32 %v829_v34, %v826_v33  ;;  %v839_v43 = vrot.slane %v837_v35, 4  ;;  %v843_v44 = vshll.u32 %v738_v8, 16  ;;  %v848_v11 = vshrl.u32 %v739_v16, 16  ;;  %v3419_v34 = vld [vmem:[%s4013_s4 + $0x30] sm:$0xf] }
  0x76   : > { %3726 = vmatmul.mubr.msk.bf16.vlgmr.msra.gmra.mrb[0].mxu0 %vm434_vm4, %v3924_v25  ;;  %v812_v46 = vsel %vm4043_vm5, %v807_v37, %v811_v13  ;;  %v817_v48 = vrot.slane %v816_v38, 4  ;;  %v851_v49 = vshll.u32 %v739_v16, 16  ;;  %v857_v50 = vshll.u32 %v740_v24, 16 }
  0x77   : > { %3742 = vmatpush3.bf16.msra.mxu0 %v4030_v21  ;;  %3729 = vmatprep.mubr.msk.bf16.mxu0 %vm434_vm4, %v3926_v29  ;;  %v831_v51 = vrot.slane %v830_v42, 4  ;;  %v840_v52 = vor.u32 %v839_v43, %v835_v39  ;;  %v845_v53 = vrot.slane %v843_v44, 5  ;;  %v850_v54 = vrot.slane %v848_v11, 4 }
  0x78   : > { %v822_v55 = vsel %vm4043_vm5, %v817_v48, %v821_v28  ;;  %v853_v56 = vrot.slane %v851_v49, 5  ;;  %v859_v57 = vrot.slane %v857_v50, 5  ;;  %v861_v58 = vshrl.u32 %v740_v24, 16  ;;  %3759 = vmatprep.subr.bf16.mxu0 %v4037_v32  ;;  %v744_v24 = vld [vmem:[%s4013_s4 + $0x6c] sm:$0x1] }
  0x79   : > { %3648 = vmatmul.mubr.msk.bf16.gmra.mrb[12].mxu1 %vm434_vm4, %v3927_v41  ;;  %v3254_v21 = vcombine.low %v812_v46, %v822_v55  ;;  %v836_v60 = vsel %vm4043_vm5, %v831_v51, %v835_v39  ;;  %v841_v61 = vrot.slane %v840_v52, 4  ;;  %v867_v62 = vshll.u32 %v741_v40, 16  ;;  %v3420_v40 = vld [vmem:[%s4013_s4 + $0x34] sm:$0xf]  ;;  %v3930_v41 = vld [vmem:[%s4013_s4 + $0x78] sm:$0xff]   ;;  %v3931_v46 = vld [vmem:[%s4013_s4 + $0x8c] sm:$0xff]  }
  0x7a   : > { %3653 = vmatprep.mubr.msk.bf16.mxu1 %vm434_vm4, %v4235_v5  ;;  %v854_v2 = vor.u32 %v853_v56, %v850_v54  ;;  %v863_v3 = vrot.slane %v861_v58, 4  ;;  %v2296_v4 = vshrl.u32 %v3416_v45, 16  ;;  %v2299_v6 = vshll.u32 %v3416_v45, 16  ;;  %v3421_v45 = vld [vmem:[%s4013_s4 + $0x38] sm:$0x1] }
  0x7b   : > { %v846_v9 = vsel %vm4043_vm5, %v841_v61, %v845_v53  ;;  %v869_v10 = vrot.slane %v867_v62, 5  ;;  %v2305_v12 = vshll.u32 %v3417_v59, 16  ;;  %v2309_v13 = vshrl.u32 %v3417_v59, 16  ;;  %v745_v55 = vld [vmem:[%s4013_s4 + $0x78] sm:$0xf] }
  0x7c   : > { %v4274_v14 = vcombine.low %v836_v60, %v846_v9  ;;  %v855_v15 = vrot.slane %v854_v2, 4  ;;  %v864_v8 = vor.u32 %v863_v3, %v859_v57  ;;  %v2298_v16 = vrot.slane %v2296_v4, 4  ;;  %v746_v59 = vld [vmem:[%s4013_s4 + $0x7c] sm:$0xf] }
  0x7d   : > { %v2301_v5 = vrot.slane %v2299_v6, 5  ;;  %v2307_v18 = vrot.slane %v2305_v12, 5  ;;  %v2311_v22 = vrot.slane %v2309_v13, 4  ;;  %v2315_v23 = vshll.u32 %v3418_v63, 16  ;;  %v747_v63 = vld [vmem:[%s4013_s4 + $0x80] sm:$0x1] }
  0x7e   : > { %3730 = vmatmul.mubr.msk.bf16.gmra.mrb[4].mxu0 %vm434_vm4, %v3928_v1  ;;  %v860_v25 = vsel %vm4043_vm5, %v855_v15, %v859_v57  ;;  %v865_v26 = vrot.slane %v864_v8, 4  ;;  %v872_v27 = vshrl.u32 %v742_v0, 16  ;;  %v875_v28 = vshll.u32 %v742_v0, 16  ;;  %v3932_v12 = vld [vmem:[%s4013_s4 + $0xa0] sm:$0xff]  }
  0x7f   : > { %3733 = vmatprep.mubr.msk.bf16.mxu0 %vm434_vm4, %v3929_v20  ;;  %v2302_v19 = vor.u32 %v2301_v5, %v2298_v16  ;;  %v2312_v29 = vor.u32 %v2311_v22, %v2307_v18  ;;  %v2317_v30 = vrot.slane %v2315_v23, 5  ;;  %v881_v33 = vshll.u32 %v743_v17, 16  ;;  %v3423_v23 = vld [vmem:[%s4013_s4 + $0x48] sm:$0xf] }
  0x80   : > { %v870_v35 = vsel %vm4043_vm5, %v865_v26, %v869_v10  ;;  %v874_v37 = vrot.slane %v872_v27, 4  ;;  %v877_v38 = vrot.slane %v875_v28, 5  ;;  %v885_v39 = vshrl.u32 %v743_v17, 16  ;;  %v3422_v10 = vld [vmem:[%s4013_s4 + $0x44] sm:$0xf] }
  0x81   : > { %3654 = vmatmul.mubr.msk.bf16.vlgmr.msra.gmra.mrb[0].mxu1 %vm434_vm4, %v4249_v36  ;;  %v3256_v42 = vcombine.low %v860_v25, %v870_v35  ;;  %v2303_v43 = vrot.slane %v2302_v19, 4  ;;  %v2313_v44 = vrot.slane %v2312_v29, 4  ;;  %v883_v11 = vrot.slane %v881_v33, 5  ;;  %v748_v33 = vld [vmem:[%s4013_s4 + $0x8c] sm:$0xf] }
  0x82   : > { %3670 = vmatpush3.bf16.msra.mxu1 %v4035_v31  ;;  %3657 = vmatprep.mubr.msk.bf16.mxu1 %vm434_vm4, %v3254_v21  ;;  %v878_v48 = vor.u32 %v877_v38, %v874_v37  ;;  %v887_v49 = vrot.slane %v885_v39, 4  ;;  %v891_v50 = vshll.u32 %v744_v24, 16  ;;  %v2320_v51 = vshrl.u32 %v3419_v34, 16  ;;  %v749_v39 = vld [vmem:[%s4013_s4 + $0x90] sm:$0xf] }
  0x83   : > { %v2308_v36 = vsel %vm4043_vm5, %v2303_v43, %v2307_v18  ;;  %v2318_v52 = vsel %vm4043_vm5, %v2313_v44, %v2317_v30  ;;  %v2323_v53 = vshll.u32 %v3419_v34, 16  ;;  %v2329_v54 = vshll.u32 %v3420_v40, 16  ;;  %3777 = vmatprep.subr.bf16.mxu1 %v3989_v7  ;;  %v3424_v30 = vld [vmem:[%s4013_s4 + $0x4c] sm:$0x1] }
  0x84   : > { %v3441_v31 = vcombine.low %v2308_v36, %v2318_v52  ;;  %v879_v56 = vrot.slane %v878_v48, 4  ;;  %v888_v57 = vor.u32 %v887_v49, %v883_v11  ;;  %v893_v58 = vrot.slane %v891_v50, 5 }
  0x85   : > { %v2322_v21 = vrot.slane %v2320_v51, 4  ;;  %v2325_v60 = vrot.slane %v2323_v53, 5  ;;  %v2331_v61 = vrot.slane %v2329_v54, 5  ;;  %v2333_v62 = vshrl.u32 %v3420_v40, 16  ;;  %v750_v51 = vld [vmem:[%s4013_s4 + $0x94] sm:$0x1] }
  0x86   : > { %3734 = vmatmul.mubr.msk.bf16.gmra.mrb[8].mxu0 %vm434_vm4, %v3930_v41  ;;  %v884_v0 = vsel %vm4043_vm5, %v879_v56, %v883_v11  ;;  %v889_v1 = vrot.slane %v888_v57, 4  ;;  %v2339_v2 = vshll.u32 %v3421_v45, 16  ;;  %v896_v3 = vshrl.u32 %v745_v55, 16  ;;  %v3425_v56 = vld [vmem:[%s4013_s4 + $0x58] sm:$0xf] }
  0x87   : > { %3737 = vmatprep.mubr.msk.bf16.mxu0 %vm434_vm4, %v3931_v46  ;;  %v2326_v4 = vor.u32 %v2325_v60, %v2322_v21  ;;  %v2335_v6 = vrot.slane %v2333_v62, 4  ;;  %v899_v20 = vshll.u32 %v745_v55, 16  ;;  %v905_v9 = vshll.u32 %v746_v59, 16  ;;  %v3426_v21 = vld [vmem:[%s4013_s4 + $0x5c] sm:$0xf] }
  0x88   : > { %v894_v13 = vsel %vm4043_vm5, %v889_v1, %v893_v58  ;;  %v2341_v15 = vrot.slane %v2339_v2, 5  ;;  %v898_v8 = vrot.slane %v896_v3, 4  ;;  %v909_v16 = vshrl.u32 %v746_v59, 16  ;;  %v3427_v2 = vld [vmem:[%s4013_s4 + $0x60] sm:$0x1] }
  0x89   : > { %3658 = vmatmul.mubr.msk.bf16.gmra.mrb[4].mxu1 %vm434_vm4, %v4274_v14  ;;  %v3257_v17 = vcombine.low %v884_v0, %v894_v13  ;;  %v2327_v5 = vrot.slane %v2326_v4, 4  ;;  %v2336_v18 = vor.u32 %v2335_v6, %v2331_v61  ;;  %v901_v22 = vrot.slane %v899_v20, 5 }
  0x8a   : > { %3661 = vmatprep.mubr.msk.bf16.mxu1 %vm434_vm4, %v3256_v42  ;;  %v907_v24 = vrot.slane %v905_v9, 5  ;;  %v911_v25 = vrot.slane %v909_v16, 4  ;;  %v915_v26 = vshll.u32 %v747_v63, 16  ;;  %v2344_v27 = vshrl.u32 %v3422_v10, 16 }
  0x8b   : > { %v2332_v28 = vsel %vm4043_vm5, %v2327_v5, %v2331_v61  ;;  %v2337_v19 = vrot.slane %v2336_v18, 4  ;;  %v902_v29 = vor.u32 %v901_v22, %v898_v8  ;;  %v2347_v14 = vshll.u32 %v3422_v10, 16 }
  0x8c   : > { %v912_v34 = vor.u32 %v911_v25, %v907_v24  ;;  %v917_v35 = vrot.slane %v915_v26, 5  ;;  %v2346_v37 = vrot.slane %v2344_v27, 4  ;;  %v2353_v38 = vshll.u32 %v3423_v23, 16 }
  0x8d   : > { %v2342_v40 = vsel %vm4043_vm5, %v2337_v19, %v2341_v15  ;;  %v903_v41 = vrot.slane %v902_v29, 4  ;;  %v2349_v42 = vrot.slane %v2347_v14, 5  ;;  %v2357_v43 = vshrl.u32 %v3423_v23, 16  ;;  %v3430_v29 = vld [vmem:[%s4013_s4 + $0x74] sm:$0x1] }
  0x8e   : > { %3738 = vmatmul.mubr.msk.bf16.gmra.mrb[12].mxu0 %vm434_vm4, %v3932_v12  ;;  %v3442_v44 = vcombine.low %v2332_v28, %v2342_v40  ;;  %v913_v11 = vrot.slane %v912_v34, 4  ;;  %v2355_v45 = vrot.slane %v2353_v38, 5  ;;  %v2363_v46 = vshll.u32 %v3424_v30, 16  ;;  %v3428_v12 = vld [vmem:[%s4013_s4 + $0x6c] sm:$0xf] }
  0x8f   : > { %3743 = vmatprep.mubr.msk.bf16.mxu0 %vm434_vm4, %v3441_v31  ;;  %v908_v48 = vsel %vm4043_vm5, %v903_v41, %v907_v24  ;;  %v2350_v49 = vor.u32 %v2349_v42, %v2346_v37  ;;  %v2359_v50 = vrot.slane %v2357_v43, 4  ;;  %v920_v36 = vshrl.u32 %v748_v33, 16  ;;  %v3431_v37 = vld [vmem:[%s4013_s4 + $0x80] sm:$0xf]  ;;  %v3432_v43 = vld [vmem:[%s4013_s4 + $0x84] sm:$0xf] }
  0x90   : > { %v918_v52 = vsel %vm4043_vm5, %v913_v11, %v917_v35  ;;  %v2365_v53 = vrot.slane %v2363_v46, 5  ;;  %v923_v54 = vshll.u32 %v748_v33, 16  ;;  %v929_v55 = vshll.u32 %v749_v39, 16 }
  0x91   : > { %3662 = vmatmul.mubr.msk.bf16.gmra.mrb[8].mxu1 %vm434_vm4, %v3257_v17  ;;  %v3258_v57 = vcombine.low %v908_v48, %v918_v52  ;;  %v2351_v31 = vrot.slane %v2350_v49, 4  ;;  %v2360_v58 = vor.u32 %v2359_v50, %v2355_v45  ;;  %v922_v59 = vrot.slane %v920_v36, 4  ;;  %v3429_v17 = vld [vmem:[%s4013_s4 + $0x70] sm:$0xf]  ;;  %v3433_v50 = vld [vmem:[%s4013_s4 + $0x88] sm:$0x1] }
  0x92   : > { %v925_v60 = vrot.slane %v923_v54, 5  ;;  %v931_v61 = vrot.slane %v929_v55, 5  ;;  %v933_v62 = vshrl.u32 %v749_v39, 16  ;;  %v939_v63 = vshll.u32 %v750_v51, 16  ;;  %v3933_v39 = vld [vmem:[%s4013_s4 + $0xb4] sm:$0xff]  }
  0x93   : > { %3665 = vmatprep.mubr.msk.bf16.mxu1 %vm434_vm4, %v3258_v57  ;;  %v2356_v0 = vsel %vm4043_vm5, %v2351_v31, %v2355_v45  ;;  %v2361_v1 = vrot.slane %v2360_v58, 4  ;;  %v2368_v3 = vshrl.u32 %v3425_v56, 16  ;;  %v2371_v4 = vshll.u32 %v3425_v56, 16  ;;  %v3434_v56 = vld [vmem:[%s4013_s4 + $0x94] sm:$0xf] }
  0x94   : > { %v926_v6 = vor.u32 %v925_v60, %v922_v59  ;;  %v935_v20 = vrot.slane %v933_v62, 4  ;;  %v941_v9 = vrot.slane %v939_v63, 5  ;;  %v2377_v10 = vshll.u32 %v3426_v21, 16 }
  0x95   : > { %v2366_v13 = vsel %vm4043_vm5, %v2361_v1, %v2365_v53  ;;  %v2370_v15 = vrot.slane %v2368_v3, 4  ;;  %v2373_v8 = vrot.slane %v2371_v4, 5  ;;  %v2381_v16 = vshrl.u32 %v3426_v21, 16  ;;  %v3435_v21 = vld [vmem:[%s4013_s4 + $0x98] sm:$0xf] }
  0x96   : > { %3744 = vmatmul.mubr.msk.bf16.vlgmr.msra.gmra.mrb[0].mxu0 %vm434_vm4, %v3442_v44  ;;  %v3443_v5 = vcombine.low %v2356_v0, %v2366_v13  ;;  %v927_v18 = vrot.slane %v926_v6, 4  ;;  %v936_v22 = vor.u32 %v935_v20, %v931_v61  ;;  %v2379_v23 = vrot.slane %v2377_v10, 5  ;;  %v3436_v10 = vld [vmem:[%s4013_s4 + $0x9c] sm:$0x1]  ;;  %v3437_v13 = vld [vmem:[%s4013_s4 + $0xa8] sm:$0xf] }
  0x97   : > { %3760 = vmatpush3.bf16.msra.mxu0 %v4037_v32  ;;  %v2374_v24 = vor.u32 %v2373_v8, %v2370_v15  ;;  %v2383_v25 = vrot.slane %v2381_v16, 4  ;;  %v2387_v26 = vshll.u32 %v3427_v2, 16  ;;  %v2392_v27 = vshrl.u32 %v3428_v12, 16  ;;  %v3934_v2 = vld [vmem:[%s4013_s4 + $0xc8] sm:$0xff]   ;;  %v3935_v8 = vld [vmem:[%s4013_s4 + $0xdc] sm:$0xff]  }
  0x98   : > { %3747 = vmatprep.mubr.msk.bf16.mxu0 %vm434_vm4, %v3443_v5  ;;  %v932_v28 = vsel %vm4043_vm5, %v927_v18, %v931_v61  ;;  %v937_v19 = vrot.slane %v936_v22, 4  ;;  %v2395_v30 = vshll.u32 %v3428_v12, 16  ;;  %v2401_v14 = vshll.u32 %v3429_v17, 16  ;;  %v3438_v18 = vld [vmem:[%s4013_s4 + $0xac] sm:$0xf] }
  0x99   : > { %v2375_v33 = vrot.slane %v2374_v24, 4  ;;  %v2384_v34 = vor.u32 %v2383_v25, %v2379_v23  ;;  %v2389_v35 = vrot.slane %v2387_v26, 5  ;;  %v2394_v32 = vrot.slane %v2392_v27, 4 }
  0x9a   : > { %v942_v38 = vsel %vm4043_vm5, %v937_v19, %v941_v9  ;;  %v2397_v40 = vrot.slane %v2395_v30, 5  ;;  %v2403_v41 = vrot.slane %v2401_v14, 5  ;;  %v2405_v42 = vshrl.u32 %v3429_v17, 16  ;;  %v3439_v14 = vld [vmem:[%s4013_s4 + $0xb0] sm:$0x1] }
  0x9b   : > { %v3259_v44 = vcombine.low %v932_v28, %v942_v38  ;;  %v2380_v11 = vsel %vm4043_vm5, %v2375_v33, %v2379_v23  ;;  %v2385_v45 = vrot.slane %v2384_v34, 4  ;;  %v2411_v46 = vshll.u32 %v3430_v29, 16 }
  0x9c   : > { %v2398_v48 = vor.u32 %v2397_v40, %v2394_v32  ;;  %v2407_v49 = vrot.slane %v2405_v42, 4  ;;  %v2416_v51 = vshrl.u32 %v3431_v37, 16  ;;  %v2419_v36 = vshll.u32 %v3431_v37, 16  ;;  %v3458_v40 = vld [vmem:[%s4013_s4 + $0x18] sm:$0xf] }
  0x9d   : > { %3666 = vmatmul.mubr.msk.bf16.gmra.mrb[12].mxu1 %vm434_vm4, %v3259_v44  ;;  %v2390_v52 = vsel %vm4043_vm5, %v2385_v45, %v2389_v35  ;;  %v2413_v53 = vrot.slane %v2411_v46, 5  ;;  %v2425_v54 = vshll.u32 %v3432_v43, 16  ;;  %v2429_v55 = vshrl.u32 %v3432_v43, 16  ;;  %v3457_v35 = vld [vmem:[%s4013_s4 + $0x14] sm:$0xf] }
  0x9e   : > { %v3444_v57 = vcombine.low %v2380_v11, %v2390_v52  ;;  %3671 = vmatprep.mubr.msk.bf16.mxu1 %vm434_vm4, %v3933_v39  ;;  %v2399_v31 = vrot.slane %v2398_v48, 4  ;;  %v2408_v58 = vor.u32 %v2407_v49, %v2403_v41  ;;  %v2418_v59 = vrot.slane %v2416_v51, 4  ;;  %v3459_v46 = vld [vmem:[%s4013_s4 + $0x1c] sm:$0x1]  ;;  %v3936_v49 = vld [vmem:[%s4013_s4 + $0xf0] sm:$0xff]  }
  0x9f   : > { %v2421_v60 = vrot.slane %v2419_v36, 5  ;;  %v2427_v61 = vrot.slane %v2425_v54, 5  ;;  %v2431_v62 = vrot.slane %v2429_v55, 4  ;;  %v2435_v63 = vshll.u32 %v3433_v50, 16 }
  0xa0   : > { %3748 = vmatmul.mubr.msk.bf16.gmra.mrb[4].mxu0 %vm434_vm4, %v3444_v57  ;;  %v2404_v0 = vsel %vm4043_vm5, %v2399_v31, %v2403_v41  ;;  %v2409_v1 = vrot.slane %v2408_v58, 4  ;;  %v2440_v3 = vshrl.u32 %v3434_v56, 16  ;;  %v2443_v4 = vshll.u32 %v3434_v56, 16  ;;  %v3937_v56 = vld [vmem:[%s4013_s4 + $0x104] sm:$0xff]  }
  0xa1   : > { %v2422_v6 = vor.u32 %v2421_v60, %v2418_v59  ;;  %v2432_v20 = vor.u32 %v2431_v62, %v2427_v61  ;;  %v2437_v9 = vrot.slane %v2435_v63, 5  ;;  %v2449_v12 = vshll.u32 %v3435_v21, 16 }
  0xa2   : > { %v2414_v15 = vsel %vm4043_vm5, %v2409_v1, %v2413_v53  ;;  %v2442_v16 = vrot.slane %v2440_v3, 4  ;;  %v2445_v17 = vrot.slane %v2443_v4, 5  ;;  %v2453_v5 = vshrl.u32 %v3435_v21, 16  ;;  %v3460_v53 = vld [vmem:[%s4013_s4 + $0x28] sm:$0xf] }
  0xa3   : > { %v3445_v22 = vcombine.low %v2404_v0, %v2414_v15  ;;  %v2423_v23 = vrot.slane %v2422_v6, 4  ;;  %v2433_v24 = vrot.slane %v2432_v20, 4  ;;  %v2451_v25 = vrot.slane %v2449_v12, 5  ;;  %v3462_v6 = vld [vmem:[%s4013_s4 + $0x30] sm:$0x1] }
  0xa4   : > { %v2446_v26 = vor.u32 %v2445_v17, %v2442_v16  ;;  %v2455_v27 = vrot.slane %v2453_v5, 4  ;;  %v2459_v28 = vshll.u32 %v3436_v10, 16  ;;  %v2464_v19 = vshrl.u32 %v3437_v13, 16  ;;  %v3463_v15 = vld [vmem:[%s4013_s4 + $0x3c] sm:$0xf] }
  0xa5   : > { %3751 = vmatprep.mubr.msk.bf16.mxu0 %vm434_vm4, %v3445_v22  ;;  %3672 = vmatmul.mubr.msk.bf16.vlgmr.msra.gmra.mrb[0].mxu1 %vm434_vm4, %v3934_v2  ;;  %v2428_v29 = vsel %vm4043_vm5, %v2423_v23, %v2427_v61  ;;  %v2438_v30 = vsel %vm4043_vm5, %v2433_v24, %v2437_v9  ;;  %v2467_v33 = vshll.u32 %v3437_v13, 16  ;;  %v2473_v34 = vshll.u32 %v3438_v18, 16  ;;  %v3461_v61 = vld [vmem:[%s4013_s4 + $0x2c] sm:$0xf] }
  0xa6   : > { %3778 = vmatpush3.bf16.msra.mxu1 %v3989_v7  ;;  %v3446_v32 = vcombine.low %v2428_v29, %v2438_v30  ;;  %3675 = vmatprep.mubr.msk.bf16.mxu1 %vm434_vm4, %v3935_v8  ;;  %v2447_v37 = vrot.slane %v2446_v26, 4  ;;  %v2456_v38 = vor.u32 %v2455_v27, %v2451_v25  ;;  %v2461_v39 = vrot.slane %v2459_v28, 5  ;;  %v3938_v27 = vld [vmem:[%s4013_s4 + $0x118] sm:$0xff]   ;;  %v3465_v29 = vld [vmem:[%s4013_s4 + $0x44] sm:$0x1] }
  0xa7   : > { %v2466_v41 = vrot.slane %v2464_v19, 4  ;;  %v2469_v42 = vrot.slane %v2467_v33, 5  ;;  %v2475_v43 = vrot.slane %v2473_v34, 5  ;;  %v2477_v44 = vshrl.u32 %v3438_v18, 16  ;;  %v3464_v18 = vld [vmem:[%s4013_s4 + $0x40] sm:$0xf] }
  0xa8   : > { %3752 = vmatmul.mubr.msk.bf16.gmra.mrb[8].mxu0 %vm434_vm4, %v3446_v32  ;;  %v2452_v11 = vsel %vm4043_vm5, %v2447_v37, %v2451_v25  ;;  %v2457_v7 = vrot.slane %v2456_v38, 4  ;;  %v2483_v45 = vshll.u32 %v3439_v14, 16  ;;  %v2678_v48 = vshrl.u32 %v3457_v35, 16  ;;  %v3939_v34 = vld [vmem:[%s4013_s4 + $0x12c] sm:$0xff]  }
  0xa9   : > { %v2470_v50 = vor.u32 %v2469_v42, %v2466_v41  ;;  %v2479_v51 = vrot.slane %v2477_v44, 4  ;;  %v2681_v36 = vshll.u32 %v3457_v35, 16  ;;  %v2687_v52 = vshll.u32 %v3458_v40, 16  ;;  %v3466_v37 = vld [vmem:[%s4013_s4 + $0x50] sm:$0xf] }
  0xaa   : > { %v2462_v54 = vsel %vm4043_vm5, %v2457_v7, %v2461_v39  ;;  %v2485_v55 = vrot.slane %v2483_v45, 5  ;;  %v2680_v57 = vrot.slane %v2678_v48, 4  ;;  %v2691_v31 = vshrl.u32 %v3458_v40, 16  ;;  %v3467_v42 = vld [vmem:[%s4013_s4 + $0x54] sm:$0xf] }
  0xab   : > { %v3447_v58 = vcombine.low %v2452_v11, %v2462_v54  ;;  %v2471_v59 = vrot.slane %v2470_v50, 4  ;;  %v2480_v21 = vor.u32 %v2479_v51, %v2475_v43  ;;  %v2683_v60 = vrot.slane %v2681_v36, 5  ;;  %v3468_v48 = vld [vmem:[%s4013_s4 + $0x58] sm:$0x1]  ;;  %v3313_v54 = vld [vmem:[%s4013_s4 + $0x10c] sm:$0xf] }
  0xac   : > { %v2689_v62 = vrot.slane %v2687_v52, 5  ;;  %v2693_v63 = vrot.slane %v2691_v31, 4  ;;  %v2697_v0 = vshll.u32 %v3459_v46, 16  ;;  %v2702_v1 = vshrl.u32 %v3460_v53, 16 }
  0xad   : > { %3755 = vmatprep.mubr.msk.bf16.mxu0 %vm434_vm4, %v3447_v58  ;;  %3676 = vmatmul.mubr.msk.bf16.gmra.mrb[4].mxu1 %vm434_vm4, %v3936_v49  ;;  %v2476_v2 = vsel %vm4043_vm5, %v2471_v59, %v2475_v43  ;;  %v2481_v3 = vrot.slane %v2480_v21, 4  ;;  %v2684_v4 = vor.u32 %v2683_v60, %v2680_v57  ;;  %v2705_v20 = vshll.u32 %v3460_v53, 16  ;;  %v3314_v58 = vld [vmem:[%s4013_s4 + $0x110] sm:$0xf] }
  0xae   : > { %3679 = vmatprep.mubr.msk.bf16.mxu1 %vm434_vm4, %v3937_v56  ;;  %v2694_v9 = vor.u32 %v2693_v63, %v2689_v62  ;;  %v2699_v10 = vrot.slane %v2697_v0, 5  ;;  %v2704_v12 = vrot.slane %v2702_v1, 4  ;;  %v2711_v13 = vshll.u32 %v3461_v61, 16 }
  0xaf   : > { %v2486_v8 = vsel %vm4043_vm5, %v2481_v3, %v2485_v55  ;;  %v2685_v16 = vrot.slane %v2684_v4, 4  ;;  %v2707_v17 = vrot.slane %v2705_v20, 5  ;;  %v2715_v5 = vshrl.u32 %v3461_v61, 16 }
  0xb0   : > { %v3448_v22 = vcombine.low %v2476_v2, %v2486_v8  ;;  %v2695_v23 = vrot.slane %v2694_v9, 4  ;;  %v2713_v24 = vrot.slane %v2711_v13, 5  ;;  %v2721_v25 = vshll.u32 %v3462_v6, 16  ;;  %v3315_v6 = vld [vmem:[%s4013_s4 + $0x114] sm:$0x1] }
  0xb1   : > { %v2690_v26 = vsel %vm4043_vm5, %v2685_v16, %v2689_v62  ;;  %v2708_v28 = vor.u32 %v2707_v17, %v2704_v12  ;;  %v2717_v19 = vrot.slane %v2715_v5, 4  ;;  %v2726_v30 = vshrl.u32 %v3463_v15, 16  ;;  %v3940_v62 = vld [vmem:[%s4013_s4 + $0x140] sm:$0xff]  }
  0xb2   : > { %3756 = vmatmul.mubr.msk.bf16.gmra.mrb[12].mxu0 %vm434_vm4, %v3448_v22  ;;  %v2700_v14 = vsel %vm4043_vm5, %v2695_v23, %v2699_v10  ;;  %v2723_v33 = vrot.slane %v2721_v25, 5  ;;  %v2729_v35 = vshll.u32 %v3463_v15, 16  ;;  %v2735_v32 = vshll.u32 %v3464_v18, 16  ;;  %v3469_v8 = vld [vmem:[%s4013_s4 + $0x64] sm:$0xf] }
  0xb3   : > { %v3482_v38 = vcombine.low %v2690_v26, %v2700_v14  ;;  %v2709_v39 = vrot.slane %v2708_v28, 4  ;;  %v2718_v40 = vor.u32 %v2717_v19, %v2713_v24  ;;  %v2728_v41 = vrot.slane %v2726_v30, 4  ;;  %v3470_v22 = vld [vmem:[%s4013_s4 + $0x68] sm:$0xf]  ;;  %v3471_v19 = vld [vmem:[%s4013_s4 + $0x6c] sm:$0x1] }
  0xb4   : > { %v2731_v43 = vrot.slane %v2729_v35, 5  ;;  %v2737_v44 = vrot.slane %v2735_v32, 5  ;;  %v2739_v11 = vshrl.u32 %v3464_v18, 16  ;;  %v2745_v7 = vshll.u32 %v3465_v29, 16  ;;  %v3316_v32 = vld [vmem:[%s4013_s4 + $0x120] sm:$0xf] }
  0xb5   : > { %3761 = vmatprep.mubr.msk.bf16.mxu0 %vm434_vm4, %v3482_v38  ;;  %3680 = vmatmul.mubr.msk.bf16.gmra.mrb[8].mxu1 %vm434_vm4, %v3938_v27  ;;  %v2714_v45 = vsel %vm4043_vm5, %v2709_v39, %v2713_v24  ;;  %v2719_v46 = vrot.slane %v2718_v40, 4  ;;  %v2750_v49 = vshrl.u32 %v3466_v37, 16  ;;  %v2753_v50 = vshll.u32 %v3466_v37, 16 }
  0xb6   : > { %3683 = vmatprep.mubr.msk.bf16.mxu1 %vm434_vm4, %v3939_v34  ;;  %v2732_v51 = vor.u32 %v2731_v43, %v2728_v41  ;;  %v2741_v36 = vrot.slane %v2739_v11, 4  ;;  %v2747_v52 = vrot.slane %v2745_v7, 5  ;;  %v2759_v53 = vshll.u32 %v3467_v42, 16  ;;  %v3317_v41 = vld [vmem:[%s4013_s4 + $0x124] sm:$0xf] }
  0xb7   : > { %v2724_v55 = vsel %vm4043_vm5, %v2719_v46, %v2723_v33  ;;  %v2752_v56 = vrot.slane %v2750_v49, 4  ;;  %v2755_v57 = vrot.slane %v2753_v50, 5  ;;  %v2763_v31 = vshrl.u32 %v3467_v42, 16 }
  0xb8   : > { %v3483_v59 = vcombine.low %v2714_v45, %v2724_v55  ;;  %v2733_v21 = vrot.slane %v2732_v51, 4  ;;  %v2742_v60 = vor.u32 %v2741_v36, %v2737_v44  ;;  %v2761_v61 = vrot.slane %v2759_v53, 5  ;;  %v3318_v36 = vld [vmem:[%s4013_s4 + $0x128] sm:$0x1]  ;;  %v3472_v53 = vld [vmem:[%s4013_s4 + $0x78] sm:$0xf] }
  0xb9   : > { %v2756_v63 = vor.u32 %v2755_v57, %v2752_v56  ;;  %v2765_v0 = vrot.slane %v2763_v31, 4  ;;  %v2769_v1 = vshll.u32 %v3468_v48, 16  ;;  %v1429_v2 = vshrl.u32 %v3313_v54, 16  ;;  %v3473_v31 = vld [vmem:[%s4013_s4 + $0x7c] sm:$0xf] }
  0xba   : > { %3762 = vmatmul.mubr.msk.bf16.vlgmr.msra.gmra.mrb[0].mxu0 %vm434_vm4, %v3483_v59  ;;  %v2738_v3 = vsel %vm4043_vm5, %v2733_v21, %v2737_v44  ;;  %v2743_v4 = vrot.slane %v2742_v60, 4  ;;  %v1432_v20 = vshll.u32 %v3313_v54, 16  ;;  %v1438_v9 = vshll.u32 %v3314_v58, 16 }
  0xbb   : > { %v2757_v10 = vrot.slane %v2756_v63, 4  ;;  %v2766_v12 = vor.u32 %v2765_v0, %v2761_v61  ;;  %v2771_v13 = vrot.slane %v2769_v1, 5  ;;  %v1431_v15 = vrot.slane %v1429_v2, 4 }
  0xbc   : > { %v2748_v16 = vsel %vm4043_vm5, %v2743_v4, %v2747_v52  ;;  %v1434_v17 = vrot.slane %v1432_v20, 5  ;;  %v1440_v5 = vrot.slane %v1438_v9, 5  ;;  %v1442_v18 = vshrl.u32 %v3314_v58, 16  ;;  %v3319_v20 = vld [vmem:[%s4013_s4 + $0x134] sm:$0xf] }
  0xbd   : > { %v3484_v23 = vcombine.low %v2738_v3, %v2748_v16  ;;  %3684 = vmatmul.mubr.msk.bf16.gmra.mrb[12].mxu1 %vm434_vm4, %v3940_v62  ;;  %v2762_v24 = vsel %vm4043_vm5, %v2757_v10, %v2761_v61  ;;  %v2767_v25 = vrot.slane %v2766_v12, 4  ;;  %v1448_v26 = vshll.u32 %v3315_v6, 16  ;;  %v3474_v3 = vld [vmem:[%s4013_s4 + $0x80] sm:$0x1] }
  0xbe   : > { %v1435_v27 = vor.u32 %v1434_v17, %v1431_v15  ;;  %v1444_v28 = vrot.slane %v1442_v18, 4  ;;  %v2774_v29 = vshrl.u32 %v3469_v8, 16  ;;  %v2777_v30 = vshll.u32 %v3469_v8, 16  ;;  %v3320_v15 = vld [vmem:[%s4013_s4 + $0x138] sm:$0xf] }
  0xbf   : > { %3765 = vmatprep.mubr.msk.bf16.mxu0 %vm434_vm4, %v3484_v23  ;;  %v2772_v14 = vsel %vm4043_vm5, %v2767_v25, %v2771_v13  ;;  %v1450_v33 = vrot.slane %v1448_v26, 5  ;;  %v2783_v34 = vshll.u32 %v3470_v22, 16  ;;  %v2787_v35 = vshrl.u32 %v3470_v22, 16 }
  0xc0   : > { %v3485_v37 = vcombine.low %v2762_v24, %v2772_v14  ;;  %v1436_v38 = vrot.slane %v1435_v27, 4  ;;  %v1445_v39 = vor.u32 %v1444_v28, %v1440_v5  ;;  %v2776_v40 = vrot.slane %v2774_v29, 4  ;;  %v3321_v24 = vld [vmem:[%s4013_s4 + $0x13c] sm:$0x1]  ;;  %v3475_v29 = vld [vmem:[%s4013_s4 + $0x8c] sm:$0xf] }
  0xc1   : > { %v2779_v42 = vrot.slane %v2777_v30, 5  ;;  %v2785_v43 = vrot.slane %v2783_v34, 5  ;;  %v2789_v44 = vrot.slane %v2787_v35, 4  ;;  %v2793_v11 = vshll.u32 %v3471_v19, 16 }
  0xc2   : > { %3766 = vmatmul.mubr.msk.bf16.gmra.mrb[4].mxu0 %vm434_vm4, %v3485_v37  ;;  %v1441_v7 = vsel %vm4043_vm5, %v1436_v38, %v1440_v5  ;;  %v1446_v45 = vrot.slane %v1445_v39, 4  ;;  %v1453_v46 = vshrl.u32 %v3316_v32, 16  ;;  %v1456_v48 = vshll.u32 %v3316_v32, 16  ;;  %v3476_v39 = vld [vmem:[%s4013_s4 + $0x90] sm:$0xf] }
  0xc3   : > { %v2780_v49 = vor.u32 %v2779_v42, %v2776_v40  ;;  %v2790_v50 = vor.u32 %v2789_v44, %v2785_v43  ;;  %v2795_v51 = vrot.slane %v2793_v11, 5  ;;  %v1462_v52 = vshll.u32 %v3317_v41, 16 }
  0xc4   : > { %v1451_v54 = vsel %vm4043_vm5, %v1446_v45, %v1450_v33  ;;  %v1455_v55 = vrot.slane %v1453_v46, 4  ;;  %v1458_v56 = vrot.slane %v1456_v48, 5  ;;  %v1466_v57 = vshrl.u32 %v3317_v41, 16  ;;  %v3477_v45 = vld [vmem:[%s4013_s4 + $0x94] sm:$0x1] }
  0xc5   : > { %v3330_v58 = vcombine.low %v1441_v7, %v1451_v54  ;;  %v2781_v59 = vrot.slane %v2780_v49, 4  ;;  %v2791_v21 = vrot.slane %v2790_v50, 4  ;;  %v1464_v60 = vrot.slane %v1462_v52, 5 }
  0xc6   : > { %v1459_v61 = vor.u32 %v1458_v56, %v1455_v55  ;;  %v1468_v62 = vrot.slane %v1466_v57, 4  ;;  %v1472_v63 = vshll.u32 %v3318_v36, 16  ;;  %v2798_v0 = vshrl.u32 %v3472_v53, 16  ;;  %v3322_v36 = vld [vmem:[%s4013_s4 + $0x148] sm:$0xf] }
  0xc7   : > { %3697 = vmatprep.mubr.msk.bf16.mxu1 %vm434_vm4, %v3330_v58  ;;  %v2786_v1 = vsel %vm4043_vm5, %v2781_v59, %v2785_v43  ;;  %v2796_v2 = vsel %vm4043_vm5, %v2791_v21, %v2795_v51  ;;  %v2801_v4 = vshll.u32 %v3472_v53, 16  ;;  %v2807_v6 = vshll.u32 %v3473_v31, 16  ;;  %v3323_v56 = vld [vmem:[%s4013_s4 + $0x14c] sm:$0xf] }
  0xc8   : > { %v3486_v9 = vcombine.low %v2786_v1, %v2796_v2  ;;  %v1460_v10 = vrot.slane %v1459_v61, 4  ;;  %v1469_v12 = vor.u32 %v1468_v62, %v1464_v60  ;;  %v1474_v13 = vrot.slane %v1472_v63, 5  ;;  %v3324_v62 = vld [vmem:[%s4013_s4 + $0x150] sm:$0x1] }
  0xc9   : > { %v2800_v8 = vrot.slane %v2798_v0, 4  ;;  %v2803_v16 = vrot.slane %v2801_v4, 5  ;;  %v2809_v17 = vrot.slane %v2807_v6, 5  ;;  %v2811_v5 = vshrl.u32 %v3473_v31, 16  ;;  %v3478_v4 = vld [vmem:[%s4013_s4 + $0xa0] sm:$0xf] }
  0xca   : > { %3769 = vmatprep.mubr.msk.bf16.mxu0 %vm434_vm4, %v3486_v9  ;;  %v1465_v18 = vsel %vm4043_vm5, %v1460_v10, %v1464_v60  ;;  %v1470_v22 = vrot.slane %v1469_v12, 4  ;;  %v2817_v23 = vshll.u32 %v3474_v3, 16  ;;  %v1477_v25 = vshrl.u32 %v3319_v20, 16  ;;  %v3479_v12 = vld [vmem:[%s4013_s4 + $0xa4] sm:$0xf] }
  0xcb   : > { %v2804_v26 = vor.u32 %v2803_v16, %v2800_v8  ;;  %v2813_v27 = vrot.slane %v2811_v5, 4  ;;  %v1480_v28 = vshll.u32 %v3319_v20, 16  ;;  %v1486_v19 = vshll.u32 %v3320_v15, 16 }
  0xcc   : > { %v1475_v30 = vsel %vm4043_vm5, %v1470_v22, %v1474_v13  ;;  %v2819_v14 = vrot.slane %v2817_v23, 5  ;;  %v1479_v33 = vrot.slane %v1477_v25, 4  ;;  %v1490_v34 = vshrl.u32 %v3320_v15, 16 }
  0xcd   : > { %v3331_v35 = vcombine.low %v1465_v18, %v1475_v30  ;;  %v2805_v32 = vrot.slane %v2804_v26, 4  ;;  %v2814_v37 = vor.u32 %v2813_v27, %v2809_v17  ;;  %v1482_v38 = vrot.slane %v1480_v28, 5  ;;  %v3480_v26 = vld [vmem:[%s4013_s4 + $0xa8] sm:$0x1] }
  0xce   : > { %v1488_v40 = vrot.slane %v1486_v19, 5  ;;  %v1492_v41 = vrot.slane %v1490_v34, 4  ;;  %v1496_v42 = vshll.u32 %v3321_v24, 16  ;;  %v2822_v43 = vshrl.u32 %v3475_v29, 16 }
  0xcf   : > { %3698 = vmatmul.mubr.msk.bf16.vlgmr.msra.gmra.mrb[8].mxu1 %vm434_vm4, %v3331_v35  ;;  %v2810_v44 = vsel %vm4043_vm5, %v2805_v32, %v2809_v17  ;;  %v2815_v11 = vrot.slane %v2814_v37, 4  ;;  %v1483_v7 = vor.u32 %v1482_v38, %v1479_v33  ;;  %v2825_v46 = vshll.u32 %v3475_v29, 16 }
  0xd0   : > { %v1493_v48 = vor.u32 %v1492_v41, %v1488_v40  ;;  %v1498_v49 = vrot.slane %v1496_v42, 5  ;;  %v2824_v50 = vrot.slane %v2822_v43, 4  ;;  %v2831_v51 = vshll.u32 %v3476_v39, 16 }
  0xd1   : > { %v2820_v52 = vsel %vm4043_vm5, %v2815_v11, %v2819_v14  ;;  %v1484_v53 = vrot.slane %v1483_v7, 4  ;;  %v2827_v54 = vrot.slane %v2825_v46, 5  ;;  %v2835_v55 = vshrl.u32 %v3476_v39, 16 }
  0xd2   : > { %v3487_v57 = vcombine.low %v2810_v44, %v2820_v52  ;;  %v1494_v31 = vrot.slane %v1493_v48, 4  ;;  %v2833_v58 = vrot.slane %v2831_v51, 5  ;;  %v2841_v59 = vshll.u32 %v3477_v45, 16 }
  0xd3   : > { %v1489_v21 = vsel %vm4043_vm5, %v1484_v53, %v1488_v40  ;;  %v2828_v60 = vor.u32 %v2827_v54, %v2824_v50  ;;  %v2837_v61 = vrot.slane %v2835_v55, 4  ;;  %v1501_v63 = vshrl.u32 %v3322_v36, 16 }
  0xd4   : > { %3770 = vmatmul.mubr.msk.bf16.gmra.mrb[8].mxu0 %vm434_vm4, %v3487_v57  ;;  %v1499_v0 = vsel %vm4043_vm5, %v1494_v31, %v1498_v49  ;;  %v2843_v1 = vrot.slane %v2841_v59, 5  ;;  %v1504_v2 = vshll.u32 %v3322_v36, 16  ;;  %v1510_v3 = vshll.u32 %v3323_v56, 16  ;;  %v4497_v57 = vld [vmem:[%s4558_s2] ss:$0 sm:$0xff] }
  0xd5   : > { %v3332_v6 = vcombine.low %v1489_v21, %v1499_v0  ;;  %v2829_v20 = vrot.slane %v2828_v60, 4  ;;  %v2838_v9 = vor.u32 %v2837_v61, %v2833_v58  ;;  %v1503_v10 = vrot.slane %v1501_v63, 4 }
  0xd6   : > { %v1506_v13 = vrot.slane %v1504_v2, 5  ;;  %v1512_v15 = vrot.slane %v1510_v3, 5  ;;  %v1514_v8 = vshrl.u32 %v3323_v56, 16  ;;  %v1520_v16 = vshll.u32 %v3324_v62, 16 }
  0xd7   : > { %3701 = vmatprep.mubr.msk.bf16.mxu1 %vm434_vm4, %v3332_v6  ;;  %v2834_v17 = vsel %vm4043_vm5, %v2829_v20, %v2833_v58  ;;  %v2839_v5 = vrot.slane %v2838_v9, 4  ;;  %v2846_v18 = vshrl.u32 %v3478_v4, 16  ;;  %v2849_v22 = vshll.u32 %v3478_v4, 16 }
  0xd8   : > { %v1507_v23 = vor.u32 %v1506_v13, %v1503_v10  ;;  %v1516_v24 = vrot.slane %v1514_v8, 4  ;;  %v1522_v25 = vrot.slane %v1520_v16, 5  ;;  %v2855_v27 = vshll.u32 %v3479_v12, 16 }
  0xd9   : > { %v2844_v28 = vsel %vm4043_vm5, %v2839_v5, %v2843_v1  ;;  %v2848_v19 = vrot.slane %v2846_v18, 4  ;;  %v2851_v29 = vrot.slane %v2849_v22, 5  ;;  %v2859_v30 = vshrl.u32 %v3479_v12, 16 }
  0xda   : > { %v3488_v14 = vcombine.low %v2834_v17, %v2844_v28  ;;  %v1508_v33 = vrot.slane %v1507_v23, 4  ;;  %v1517_v34 = vor.u32 %v1516_v24, %v1512_v15  ;;  %v2857_v35 = vrot.slane %v2855_v27, 5 }
  0xdb   : > { %v2852_v32 = vor.u32 %v2851_v29, %v2848_v19  ;;  %v2861_v37 = vrot.slane %v2859_v30, 4  ;;  %v2865_v38 = vshll.u32 %v3480_v26, 16 }
  0xdc   : > { %3773 = vmatprep.mubr.msk.bf16.mxu0 %vm434_vm4, %v3488_v14  ;;  %v1513_v39 = vsel %vm4043_vm5, %v1508_v33, %v1512_v15  ;;  %v1518_v40 = vrot.slane %v1517_v34, 4 }
  0xdd   : > { %v2853_v41 = vrot.slane %v2852_v32, 4  ;;  %v2862_v42 = vor.u32 %v2861_v37, %v2857_v35  ;;  %v2867_v43 = vrot.slane %v2865_v38, 5 }
  0xde   : > { %v1523_v44 = vsel %vm4043_vm5, %v1518_v40, %v1522_v25 }
  0xdf   : > { %v3333_v11 = vcombine.low %v1513_v39, %v1523_v44  ;;  %v2858_v7 = vsel %vm4043_vm5, %v2853_v41, %v2857_v35  ;;  %v2863_v45 = vrot.slane %v2862_v42, 4 }
  0xe1   : > { %3702 = vmatmul.mubr.msk.bf16.gmra.mrb[12].mxu1 %vm434_vm4, %v3333_v11  ;;  %v2868_v46 = vsel %vm4043_vm5, %v2863_v45, %v2867_v43 }
  0xe2   : > { %v3489_v48 = vcombine.low %v2858_v7, %v2868_v46 }
  0xe4   : > { %3774 = vmatmul.mubr.msk.bf16.gmra.mrb[12].mxu0 %vm434_vm4, %v3489_v48 }
 0x178   : > { %v3673_v49 = vpop.f32.mrb[0].mxu1 }
 0x179   : > { %v1229_v50 = vpop.f32.mrb[1].mxu1 }
 0x17a   : > { %v3674_v51 = vpop.f32.mrb[2].mxu1 }
 0x17b   : > { %v1232_v36 = vpop.f32.mrb[3].mxu1 }
 0x180   : > { %v3677_v52 = vpop.f32.mrb[4].mxu1 }
 0x181   : > { %v1245_v53 = vpop.f32.mrb[5].mxu1 }
 0x182   : > { %v3678_v54 = vpop.f32.mrb[6].mxu1 }
 0x183   : > { %v1248_v55 = vpop.f32.mrb[7].mxu1 }
 0x18d   : > { %v3763_v56 = vpop.f32.mrb[0].mxu0 }
 0x18e   : > { %v3779_v47 = vadd.f32 %v3763_v56, %v3673_v49  ;;  %v2956_v31 = vpop.f32.mrb[1].mxu0 }
 0x18f   : > { %v3780_v58 = vadd.f32 %v2956_v31, %v1229_v50  ;;  %v3764_v59 = vpop.f32.mrb[2].mxu0 }
 0x190   : > { %v3044_v21 = vadd.f32 %v3779_v47, %v4497_v57  ;;  %v3781_v60 = vadd.f32 %v3764_v59, %v3674_v51  ;;  %v2959_v61 = vpop.f32.mrb[3].mxu0 }
 0x191   : > { %v3042_v62 = vadd.f32 %v3780_v58, %v4497_v57  ;;  %v3782_v63 = vadd.f32 %v2959_v61, %v1232_v36 }
 0x192   : > { %v3060_v0 = vmax.f32 %v3044_v21, 0.0  ;;  %v3045_v1 = vadd.f32 %v3781_v60, %v4497_v57 }
 0x193   : > { %v3058_v2 = vmax.f32 %v3042_v62, 0.0  ;;  %v3043_v3 = vadd.f32 %v3782_v63, %v4497_v57 }
 0x194   : > { %v3520_v4 = vpack.c.bf16 %v3060_v0, %v3060_v0  ;;  %v3061_v6 = vmax.f32 %v3045_v1, 0.0 }
 0x195   : > { %v3518_v20 = vpack.c.bf16 %v3058_v2, %v3058_v2  ;;  %v3059_v9 = vmax.f32 %v3043_v3, 0.0  ;;  %v3767_v10 = vpop.f32.mrb[4].mxu0 }
 0x196   : > { %3141 = vst.msk [vmem:[%s4506_s16 + $0x8] sm:$0xf] %vm3138_vm6, %v3520_v4  ;;  %v3521_v12 = vpack.c.bf16 %v3061_v6, %v3061_v6  ;;  %v3783_v13 = vadd.f32 %v3767_v10, %v3677_v52  ;;  %v2972_v15 = vpop.f32.mrb[5].mxu0 }
 0x197   : > { %3139 = vst.msk [vmem:[%s4506_s16] sm:$0xf] %vm3138_vm6, %v3518_v20  ;;  %v3519_v8 = vpack.c.bf16 %v3059_v9, %v3059_v9  ;;  %v3784_v16 = vadd.f32 %v2972_v15, %v1245_v53  ;;  %v3768_v17 = vpop.f32.mrb[6].mxu0 }
 0x198   : > { %3142 = vst.msk [vmem:[%s4506_s16 + $0xc] sm:$0xf] %vm3138_vm6, %v3521_v12  ;;  %v3048_v5 = vadd.f32 %v3783_v13, %v4497_v57  ;;  %v3785_v18 = vadd.f32 %v3768_v17, %v3678_v54  ;;  %v2975_v22 = vpop.f32.mrb[7].mxu0 }
 0x199   : > { %3140 = vst.msk [vmem:[%s4506_s16 + $0x4] sm:$0xf] %vm3138_vm6, %v3519_v8  ;;  %v3046_v23 = vadd.f32 %v3784_v16, %v4497_v57  ;;  %v3786_v24 = vadd.f32 %v2975_v22, %v1248_v55 }
 0x19a   : > { %v3064_v25 = vmax.f32 %v3048_v5, 0.0  ;;  %v3049_v26 = vadd.f32 %v3785_v18, %v4497_v57 }
 0x19b   : > { %v3062_v27 = vmax.f32 %v3046_v23, 0.0  ;;  %v3047_v28 = vadd.f32 %v3786_v24, %v4497_v57 }
 0x19c   : > { %v3524_v19 = vpack.c.bf16 %v3064_v25, %v3064_v25  ;;  %v3065_v29 = vmax.f32 %v3049_v26, 0.0 }
 0x19d   : > { %v3522_v30 = vpack.c.bf16 %v3062_v27, %v3062_v27  ;;  %v3063_v14 = vmax.f32 %v3047_v28, 0.0 }
 0x19e   : > { %3145 = vst.msk [vmem:[%s4506_s16 + $0x18] sm:$0xf] %vm3138_vm6, %v3524_v19  ;;  %v3525_v33 = vpack.c.bf16 %v3065_v29, %v3065_v29 }
 0x19f   : > { %3143 = vst.msk [vmem:[%s4506_s16 + $0x10] sm:$0xf] %vm3138_vm6, %v3522_v30  ;;  %v3523_v34 = vpack.c.bf16 %v3063_v14, %v3063_v14 }
 0x1a0   : > { %3146 = vst.msk [vmem:[%s4506_s16 + $0x1c] sm:$0xf] %vm3138_vm6, %v3525_v33 }
 0x1a1   : > { %3144 = vst.msk [vmem:[%s4506_s16 + $0x14] sm:$0xf] %vm3138_vm6, %v3523_v34 }
 0x1a2   : > { %v3699_v35 = vpop.f32.mrb[8].mxu1 }
 0x1a3   : > { %v1643_v32 = vpop.f32.mrb[9].mxu1 }
 0x1a4   : > { %v3700_v37 = vpop.f32.mrb[10].mxu1 }
 0x1a5   : > { %v1646_v38 = vpop.f32.mrb[11].mxu1 }
 0x1a7   : > { %v3771_v39 = vpop.f32.mrb[8].mxu0 }
 0x1a8   : > { %v3787_v40 = vadd.f32 %v3771_v39, %v3699_v35  ;;  %v2988_v41 = vpop.f32.mrb[9].mxu0 }
 0x1a9   : > { %v3788_v42 = vadd.f32 %v2988_v41, %v1643_v32  ;;  %v3772_v43 = vpop.f32.mrb[10].mxu0 }
 0x1aa   : > { %v3052_v44 = vadd.f32 %v3787_v40, %v4497_v57  ;;  %v3789_v11 = vadd.f32 %v3772_v43, %v3700_v37  ;;  %v2991_v7 = vpop.f32.mrb[11].mxu0 }
 0x1ab   : > { %v3050_v45 = vadd.f32 %v3788_v42, %v4497_v57  ;;  %v3790_v46 = vadd.f32 %v2991_v7, %v1646_v38 }
 0x1ac   : > { %v3068_v48 = vmax.f32 %v3052_v44, 0.0  ;;  %v3053_v49 = vadd.f32 %v3789_v11, %v4497_v57 }
 0x1ad   : > { %v3066_v50 = vmax.f32 %v3050_v45, 0.0  ;;  %v3051_v51 = vadd.f32 %v3790_v46, %v4497_v57 }
 0x1ae   : > { %v3528_v36 = vpack.c.bf16 %v3068_v48, %v3068_v48  ;;  %v3069_v52 = vmax.f32 %v3053_v49, 0.0 }
 0x1af   : > { %v3526_v53 = vpack.c.bf16 %v3066_v50, %v3066_v50  ;;  %v3067_v54 = vmax.f32 %v3051_v51, 0.0 }
 0x1b0   : > { %3149 = vst.msk [vmem:[%s4506_s16 + $0x28] sm:$0xf] %vm3138_vm6, %v3528_v36  ;;  %v3529_v55 = vpack.c.bf16 %v3069_v52, %v3069_v52 }
 0x1b1   : > { %3147 = vst.msk [vmem:[%s4506_s16 + $0x20] sm:$0xf] %vm3138_vm6, %v3526_v53  ;;  %v3527_v56 = vpack.c.bf16 %v3067_v54, %v3067_v54 }
 0x1b2   : > { %3150 = vst.msk [vmem:[%s4506_s16 + $0x2c] sm:$0xf] %vm3138_vm6, %v3529_v55 }
 0x1b3   : > { %3148 = vst.msk [vmem:[%s4506_s16 + $0x24] sm:$0xf] %vm3138_vm6, %v3527_v56 }
 0x1b4   : > { %v3703_v47 = vpop.f32.mrb[12].mxu1 }
 0x1b5   : > { %v1659_v31 = vpop.f32.mrb[13].mxu1 }
 0x1b6   : > { %v3704_v58 = vpop.f32.mrb[14].mxu1 }
 0x1b7   : > { %v3775_v59 = vpop.f32.mrb[12].mxu0  ;;  %v1662_v21 = vpop.f32.mrb[15].mxu1 }
 0x1b8   : > { %v3791_v60 = vadd.f32 %v3775_v59, %v3703_v47  ;;  %v3004_v61 = vpop.f32.mrb[13].mxu0 }
 0x1b9   : > { %v3792_v62 = vadd.f32 %v3004_v61, %v1659_v31  ;;  %v3776_v63 = vpop.f32.mrb[14].mxu0 }
 0x1ba   : > { %v3056_v0 = vadd.f32 %v3791_v60, %v4497_v57  ;;  %v3793_v1 = vadd.f32 %v3776_v63, %v3704_v58  ;;  %v3007_v2 = vpop.f32.mrb[15].mxu0 }
 0x1bb   : > { %v3054_v3 = vadd.f32 %v3792_v62, %v4497_v57  ;;  %v3794_v4 = vadd.f32 %v3007_v2, %v1662_v21 }
 0x1bc   : > { %v3072_v6 = vmax.f32 %v3056_v0, 0.0  ;;  %v3057_v20 = vadd.f32 %v3793_v1, %v4497_v57 }
 0x1bd   : > { %v3070_v9 = vmax.f32 %v3054_v3, 0.0  ;;  %v3055_v10 = vadd.f32 %v3794_v4, %v4497_v57 }
 0x1be   : > { %v3532_v12 = vpack.c.bf16 %v3072_v6, %v3072_v6  ;;  %v3073_v13 = vmax.f32 %v3057_v20, 0.0 }
 0x1bf   : > { %v3530_v15 = vpack.c.bf16 %v3070_v9, %v3070_v9  ;;  %v3071_v8 = vmax.f32 %v3055_v10, 0.0 }
 0x1c0   : > { %3153 = vst.msk [vmem:[%s4506_s16 + $0x38] sm:$0xf] %vm3138_vm6, %v3532_v12  ;;  %v3533_v16 = vpack.c.bf16 %v3073_v13, %v3073_v13 }
 0x1c1   : > { %3151 = vst.msk [vmem:[%s4506_s16 + $0x30] sm:$0xf] %vm3138_vm6, %v3530_v15  ;;  %v3531_v17 = vpack.c.bf16 %v3071_v8, %v3071_v8 }
 0x1c2   : > { %3154 = vst.msk [vmem:[%s4506_s16 + $0x3c] sm:$0xf] %vm3138_vm6, %v3533_v16 }
 0x1c3   : > { %3152 = vst.msk [vmem:[%s4506_s16 + $0x34] sm:$0xf] %vm3138_vm6, %v3531_v17 }
 0x1c4 PF: > { %s13_s12 = sadd.s32 1, %s3947_s12  }
 0x1c5   : > { %p10_p4 = scmp.ge.s32.totalorder %s13_s12, 6  }
 0x1c7   :  { %12 = sbr.rel (!%p10_p4) target bundleno = 1 (0x1), region = 72 }

// kernel: _lambda_.8
= control target key start
LH: loop header
LB: loop body
LE: loop exit
PB: predicated region body
PF: predicated region fallthrough
CT: control target
= control target key end

     0   :  { %s2463_s12 = smov 0   ;;  %s2849_s0 = inlined_call_operand.vmem [shape: bf16[2,18,18,8], index: 0, kind: input, shape index: {}]   ;;  %s2850_s1 = inlined_call_operand.vmem [shape: bf16[9,8,16], index: 1, kind: input, shape index: {}]   ;;  %s2851_s2 = inlined_call_operand.vmem [shape: f32[1,16], index: 2, kind: input, shape index: {}]   ;;  %s2852_s3 = inlined_call_operand.vmem [shape: bf16[2,8,8,16], index: 3, kind: output, shape index: {}]  }
   0x1 LB: > { %s2015_s13 = sadd.s32 4294967295, %s2441_s12   ;;  %p2019_p0 = scmp.ge.s32.totalorder %s2441_s12, 1  ;;  %s2441_s12 = sphi %s2463_s12, %s13_s12  }
   0x2   : > { %p137_p1 = scmp.lt.s32.totalorder %s2441_s12, 3 }
   0x4   : > { %p138_p2 = pnand %p2019_p0, %p137_p1 }
   0x5   : > { %v2023_v0 = vld [vmem:[%s2850_s1 + $0x4] sm:$0xf] (!%p138_p2)  ;;  %vm339_vm0 = vcmask (!%p138_p2), 1043456   ;;  %v2477_v1 = vld [vmem:[%s2850_s1 + $0x10] sm:$0xf] (!%p138_p2)  ;;  %p161_p3 = scmp.lt.s32.totalorder (!%p138_p2), %s2015_s13, 1 }
   0x6   : > { %141 = sbr.rel (%p138_p2) target bundleno = 363 (0x16b), region = 32  ;;  %2404 = vmatprep.subr.msk.bf16.mxu1 (!%p138_p2), %vm339_vm0, %v2023_v0  ;;  %2408 = vmatprep.subr.msk.bf16.mxu0 (!%p138_p2), %vm339_vm0, %v2477_v1  ;;  %v341_v2 = vsel (!%p138_p2), %vm339_vm0, %v2023_v0, 0  ;;  %v2485_v3 = vsel (!%p138_p2), %vm339_vm0, %v2477_v1, 0  ;;  %v180_v4 = vld [vmem:[%s2850_s1] sm:$0xf] (!%p138_p2)  ;;  %vm326_vm3 = vcmask (!%p138_p2), 64512  }
   0x7   : > { %2249 = vmatpush3.bf16.msra.mxu1 (!%p138_p2), %v341_v2  ;;  %2289 = vmatpush3.bf16.msra.mxu0 (!%p138_p2), %v2485_v3  ;;  %v2107_v5 = vld [vmem:[%s2850_s1 + $0x14] sm:$0xf] (!%p138_p2)  ;;  %v2501_v6 = vld [vmem:[%s2850_s1 + $0x18] sm:$0xf] (!%p138_p2)  ;;  %v2506_v7 = vld [vmem:[%s2850_s1 + $0x8] sm:$0xf] (!%p138_p2) }
   0x8   : > { %2405 = vmatprep.subr.msk.bf16.mxu1 (!%p138_p2), %vm339_vm0, %v180_v4  ;;  %2410 = vmatprep.subr.msk.bf16.mxu0 (!%p138_p2), %vm339_vm0, %v2107_v5  ;;  %vm197_vm1 = vsmask.f32 (!%p138_p2), 3328  ;;  %v2512_v8 = vld [vmem:[%s2850_s1 + $0x1c] sm:$0xf] (!%p138_p2)  ;;  %vm198_vm2 = vsmask.f32 (!%p138_p2), 7440 }
   0x9   : > { %v2515_v9 = vsel (!%p138_p2), %vm339_vm0, %v180_v4, 0  ;;  %v2518_v10 = vsel (!%p138_p2), %vm339_vm0, %v2107_v5, 0  ;;  %v2523_v11 = vld [vmem:[%s2850_s1 + $0xc] sm:$0xf] (!%p138_p2)  ;;  %v2532_v12 = vsel (!%p138_p2), %vm339_vm0, %v2501_v6, 0  ;;  %v2536_v13 = vsel (!%p138_p2), %vm339_vm0, %v2506_v7, 0  ;;  %vm2557_vm4 = vmor (!%p138_p2), %vm197_vm1, %vm198_vm2 }
   0xa   : > { %v2540_v14 = vsel (!%p138_p2), %vm339_vm0, %v2512_v8, 0  ;;  %v2544_v15 = vsel (!%p138_p2), %vm339_vm0, %v2523_v11, 0  ;;  %vm1951_vm5 = vcmask (!%p138_p2), 125952  }
   0xd   : > { %s2856_s13 = smov (!%p161_p3, %s2015_s13), 1 }
   0xe   : > { %s2414_s26 = smul.u32 216, %s2856_s13  ;;  %s2194_s11 = sshll.u32 %s2856_s13, 5 }
   0xf   : > { %s2828_s16 = scalar_lea.vmem %s2852_s3, %s2194_s11 }
  0x10   : > { %s2528_s6 = scalar_lea.vmem %s2849_s0, %s2414_s26 }
  0x11   : > { %v181_v16 = vld [vmem:[%s2528_s6 + $0x4] sm:$0xf]  ;;  %v182_v17 = vld [vmem:[%s2528_s6 + $0x8] sm:$0x1]  ;;  %v183_v18 = vld [vmem:[%s2528_s6 + $0x10] sm:$0xf] }
  0x12   : > { %v184_v19 = vld [vmem:[%s2528_s6 + $0x14] sm:$0x1]  ;;  %v201_v20 = vshrl.u32 %v181_v16, 16  ;;  %v204_v21 = vshll.u32 %v181_v16, 16  ;;  %v210_v22 = vshll.u32 %v182_v17, 16  ;;  %v215_v23 = vshrl.u32 %v183_v18, 16 }
  0x13   : > { %v218_v24 = vshll.u32 %v183_v18, 16  ;;  %v224_v25 = vshll.u32 %v184_v19, 16  ;;  %v2066_v26 = vld [vmem:[%s2528_s6 + $0x70] sm:$0xf]  ;;  %v2067_v27 = vld [vmem:[%s2528_s6 + $0x74] sm:$0x1] }
  0x14   : > { %v203_v28 = vrot.slane %v201_v20, 4  ;;  %v206_v29 = vrot.slane %v204_v21, 5  ;;  %v212_v30 = vrot.slane %v210_v22, 5  ;;  %v217_v31 = vrot.slane %v215_v23, 4  ;;  %v2068_v32 = vld [vmem:[%s2528_s6 + $0x7c] sm:$0xf] }
  0x15   : > { %v220_v33 = vrot.slane %v218_v24, 5  ;;  %v226_v34 = vrot.slane %v224_v25, 5  ;;  %v2069_v35 = vld [vmem:[%s2528_s6 + $0x80] sm:$0x1]  ;;  %v874_v36 = vshrl.u32 %v2066_v26, 16  ;;  %v877_v37 = vshll.u32 %v2066_v26, 16 }
  0x16   : > { %v207_v38 = vor.u32 %v206_v29, %v203_v28  ;;  %v883_v39 = vshll.u32 %v2067_v27, 16  ;;  %v888_v40 = vshrl.u32 %v2068_v32, 16  ;;  %v891_v41 = vshll.u32 %v2068_v32, 16  ;;  %v185_v42 = vld [vmem:[%s2528_s6 + $0x1c] sm:$0xf] }
  0x17   : > { %v221_v44 = vor.u32 %v220_v33, %v217_v31  ;;  %v876_v45 = vrot.slane %v874_v36, 4  ;;  %v879_v46 = vrot.slane %v877_v37, 5  ;;  %v897_v47 = vshll.u32 %v2069_v35, 16  ;;  %v186_v48 = vld [vmem:[%s2528_s6 + $0x20] sm:$0x1] }
  0x18   : > { %v208_v49 = vrot.slane %v207_v38, 4  ;;  %v885_v50 = vrot.slane %v883_v39, 5  ;;  %v890_v51 = vrot.slane %v888_v40, 4  ;;  %v893_v52 = vrot.slane %v891_v41, 5  ;;  %v187_v53 = vld [vmem:[%s2528_s6 + $0x28] sm:$0xf] }
  0x19   : > { %v222_v54 = vrot.slane %v221_v44, 4  ;;  %v880_v55 = vor.u32 %v879_v46, %v876_v45  ;;  %v899_v56 = vrot.slane %v897_v47, 5  ;;  %v229_v57 = vshrl.u32 %v185_v42, 16  ;;  %v188_v60 = vld [vmem:[%s2528_s6 + $0x2c] sm:$0x1] }
  0x1a   : > { %v213_v58 = vsel %vm2557_vm4, %v208_v49, %v212_v30  ;;  %v894_v59 = vor.u32 %v893_v52, %v890_v51  ;;  %v232_v61 = vshll.u32 %v185_v42, 16  ;;  %v238_v62 = vshll.u32 %v186_v48, 16  ;;  %v2070_v5 = vld [vmem:[%s2528_s6 + $0x88] sm:$0xf]  ;;  %v2071_v20 = vld [vmem:[%s2528_s6 + $0x8c] sm:$0x1] }
  0x1b   : > { %v227_v63 = vsel %vm2557_vm4, %v222_v54, %v226_v34  ;;  %v881_v0 = vrot.slane %v880_v55, 4  ;;  %v231_v2 = vrot.slane %v229_v57, 4  ;;  %v243_v4 = vshrl.u32 %v187_v53, 16  ;;  %v2072_v25 = vld [vmem:[%s2528_s6 + $0x94] sm:$0xf] }
  0x1c   : > { %v2024_v16 = vcombine.low %v213_v58, %v227_v63  ;;  %v895_v17 = vrot.slane %v894_v59, 4  ;;  %v234_v18 = vrot.slane %v232_v61, 5  ;;  %v240_v19 = vrot.slane %v238_v62, 5  ;;  %v2073_v28 = vld [vmem:[%s2528_s6 + $0x98] sm:$0x1] }
  0x1d   : > { %v886_v21 = vsel %vm2557_vm4, %v881_v0, %v885_v50  ;;  %v245_v22 = vrot.slane %v243_v4, 4  ;;  %v246_v23 = vshll.u32 %v187_v53, 16  ;;  %v252_v24 = vshll.u32 %v188_v60, 16  ;;  %v189_v35 = vld [vmem:[%s2528_s6 + $0x34] sm:$0xf] }
  0x1e   : > { %2250 = vmatprep.mubr.msk.bf16.mxu1 %vm326_vm3, %v2024_v16  ;;  %v900_v26 = vsel %vm2557_vm4, %v895_v17, %v899_v56  ;;  %v235_v27 = vor.u32 %v234_v18, %v231_v2  ;;  %v902_v29 = vshrl.u32 %v2070_v5, 16  ;;  %v905_v30 = vshll.u32 %v2070_v5, 16  ;;  %v190_v40 = vld [vmem:[%s2528_s6 + $0x38] sm:$0x1]  ;;  %v191_v46 = vld [vmem:[%s2528_s6 + $0x40] sm:$0xf] }
  0x1f   : > { %v2083_v31 = vcombine.low %v886_v21, %v900_v26  ;;  %v248_v32 = vrot.slane %v246_v23, 5  ;;  %v254_v33 = vrot.slane %v252_v24, 5  ;;  %v911_v34 = vshll.u32 %v2071_v20, 16  ;;  %v192_v54 = vld [vmem:[%s2528_s6 + $0x44] sm:$0x1] }
  0x20   : > { %v236_v36 = vrot.slane %v235_v27, 4  ;;  %v904_v37 = vrot.slane %v902_v29, 4  ;;  %v907_v38 = vrot.slane %v905_v30, 5  ;;  %v916_v39 = vshrl.u32 %v2072_v25, 16  ;;  %v193_v60 = vld [vmem:[%s2528_s6 + $0x4c] sm:$0xf] }
  0x21   : > { %2290 = vmatprep.mubr.msk.bf16.mxu0 %vm326_vm3, %v2083_v31  ;;  %v249_v41 = vor.u32 %v248_v32, %v245_v22  ;;  %v913_v42 = vrot.slane %v911_v34, 5  ;;  %v919_v44 = vshll.u32 %v2072_v25, 16  ;;  %v925_v45 = vshll.u32 %v2073_v28, 16  ;;  %v194_v2 = vld [vmem:[%s2528_s6 + $0x50] sm:$0x1] }
  0x22   : > { %v241_v47 = vsel %vm2557_vm4, %v236_v36, %v240_v19  ;;  %v908_v48 = vor.u32 %v907_v38, %v904_v37  ;;  %v918_v49 = vrot.slane %v916_v39, 4  ;;  %v257_v50 = vshrl.u32 %v189_v35, 16  ;;  %v195_v4 = vld [vmem:[%s2528_s6 + $0x58] sm:$0xf]  ;;  %v196_v23 = vld [vmem:[%s2528_s6 + $0x5c] sm:$0x1] }
  0x23   : > { %v250_v51 = vrot.slane %v249_v41, 4  ;;  %v921_v52 = vrot.slane %v919_v44, 5  ;;  %v927_v53 = vrot.slane %v925_v45, 5  ;;  %v260_v55 = vshll.u32 %v189_v35, 16  ;;  %v2091_v24 = vld [vmem:[%s2528_s6 + $0x6c] sm:$0xf] }
  0x24   : > { %v909_v56 = vrot.slane %v908_v48, 4  ;;  %v259_v57 = vrot.slane %v257_v50, 4  ;;  %v266_v58 = vshll.u32 %v190_v40, 16  ;;  %v271_v59 = vshrl.u32 %v191_v46, 16  ;;  %v2092_v29 = vld [vmem:[%s2528_s6 + $0x70] sm:$0x1] }
  0x25   : > { %v255_v61 = vsel %vm2557_vm4, %v250_v51, %v254_v33  ;;  %v922_v62 = vor.u32 %v921_v52, %v918_v49  ;;  %v262_v63 = vrot.slane %v260_v55, 5  ;;  %v274_v0 = vshll.u32 %v191_v46, 16  ;;  %v2093_v38 = vld [vmem:[%s2528_s6 + $0x78] sm:$0xf]  ;;  %v2095_v51 = vld [vmem:[%s2528_s6 + $0x84] sm:$0xf] }
  0x26   : > { %v2025_v5 = vcombine.low %v241_v47, %v255_v61  ;;  %v914_v16 = vsel %vm2557_vm4, %v909_v56, %v913_v42  ;;  %v268_v17 = vrot.slane %v266_v58, 5  ;;  %v273_v18 = vrot.slane %v271_v59, 4  ;;  %v2094_v42 = vld [vmem:[%s2528_s6 + $0x7c] sm:$0x1]  ;;  %v2096_v56 = vld [vmem:[%s2528_s6 + $0x88] sm:$0x1] }
  0x27   : > { %v923_v19 = vrot.slane %v922_v62, 4  ;;  %v263_v20 = vor.u32 %v262_v63, %v259_v57  ;;  %v276_v21 = vrot.slane %v274_v0, 5  ;;  %v280_v22 = vshll.u32 %v192_v54, 16  ;;  %v2098_v0 = vld [vmem:[%s2528_s6 + $0x94] sm:$0x1] }
  0x28   : > { %2251 = vmatmul.mubr.msk.bf16.vlgmr.msra.gmra.mrb[0].mxu1 %vm326_vm3, %v2025_v5  ;;  %v285_v25 = vshrl.u32 %v193_v60, 16  ;;  %v288_v26 = vshll.u32 %v193_v60, 16  ;;  %v294_v27 = vshll.u32 %v194_v2, 16  ;;  %v299_v28 = vshrl.u32 %v195_v4, 16  ;;  %v2097_v60 = vld [vmem:[%s2528_s6 + $0x90] sm:$0xf] }
  0x29   : > { %2259 = vmatpush3.bf16.msra.mxu1 %v2515_v9  ;;  %v928_v30 = vsel %vm2557_vm4, %v923_v19, %v927_v53  ;;  %v264_v31 = vrot.slane %v263_v20, 4  ;;  %v277_v32 = vor.u32 %v276_v21, %v273_v18  ;;  %v282_v33 = vrot.slane %v280_v22, 5  ;;  %v2099_v22 = vld [vmem:[%s2528_s6 + $0x9c] sm:$0xf] }
  0x2a   : > { %v2084_v34 = vcombine.low %v914_v16, %v928_v30  ;;  %v287_v35 = vrot.slane %v285_v25, 4  ;;  %v290_v36 = vrot.slane %v288_v26, 5  ;;  %v296_v37 = vrot.slane %v294_v27, 5  ;;  %2406 = vmatprep.subr.msk.bf16.mxu1 %vm339_vm0, %v2506_v7  ;;  %v2100_v27 = vld [vmem:[%s2528_s6 + $0xa0] sm:$0x1] }
  0x2b   : > { %v269_v39 = vsel %vm2557_vm4, %v264_v31, %v268_v17  ;;  %v278_v40 = vrot.slane %v277_v32, 4  ;;  %v301_v9 = vrot.slane %v299_v28, 4  ;;  %v302_v41 = vshll.u32 %v195_v4, 16  ;;  %v2423_v17 = vld [vmem:[%s2528_s6] ss:$12 sps:$4 sm:$0xff]  }
  0x2c   : > { %2291 = vmatmul.mubr.msk.bf16.vlgmr.msra.gmra.mrb[0].mxu0 %vm326_vm3, %v2084_v34  ;;  %v291_v44 = vor.u32 %v290_v36, %v287_v35  ;;  %v308_v45 = vshll.u32 %v196_v23, 16  ;;  %v1104_v46 = vshrl.u32 %v2091_v24, 16  ;;  %v1107_v47 = vshll.u32 %v2091_v24, 16  ;;  %v2101_v32 = vld [vmem:[%s2528_s6 + $0xa8] sm:$0xf] }
  0x2d   : > { %2299 = vmatpush3.bf16.msra.mxu0 %v2518_v10  ;;  %v283_v7 = vsel %vm2557_vm4, %v278_v40, %v282_v33  ;;  %v304_v48 = vrot.slane %v302_v41, 5  ;;  %v1113_v49 = vshll.u32 %v2092_v29, 16  ;;  %v1118_v50 = vshrl.u32 %v2093_v38, 16  ;;  %v2102_v36 = vld [vmem:[%s2528_s6 + $0xac] sm:$0x1] }
  0x2e   : > { %v2026_v52 = vcombine.low %v269_v39, %v283_v7  ;;  %v292_v53 = vrot.slane %v291_v44, 4  ;;  %v310_v54 = vrot.slane %v308_v45, 5  ;;  %v1106_v55 = vrot.slane %v1104_v46, 4  ;;  %2411 = vmatprep.subr.msk.bf16.mxu0 %vm339_vm0, %v2501_v6 }
  0x2f   : > { %v305_v57 = vor.u32 %v304_v48, %v301_v9  ;;  %v1109_v10 = vrot.slane %v1107_v47, 5  ;;  %v1115_v58 = vrot.slane %v1113_v49, 5  ;;  %v1120_v59 = vrot.slane %v1118_v50, 4  ;;  %v2424_v49 = vld [vmem:[%s2528_s6 + $0x18] ss:$12 sps:$4 sm:$0xff]  }
  0x30   : > { %2254 = vmatprep.mubr.msk.bf16.mxu1 %vm326_vm3, %v2026_v52  ;;  %v297_v61 = vsel %vm2557_vm4, %v292_v53, %v296_v37  ;;  %v1121_v62 = vshll.u32 %v2093_v38, 16  ;;  %v1127_v63 = vshll.u32 %v2094_v42, 16  ;;  %v1132_v2 = vshrl.u32 %v2095_v51, 16  ;;  %v2103_v38 = vld [vmem:[%s2528_s6 + $0xb4] sm:$0xf] }
  0x31   : > { %v306_v4 = vrot.slane %v305_v57, 4  ;;  %v1110_v6 = vor.u32 %v1109_v10, %v1106_v55  ;;  %v1135_v5 = vshll.u32 %v2095_v51, 16  ;;  %v1141_v16 = vshll.u32 %v2096_v56, 16  ;;  %v2104_v42 = vld [vmem:[%s2528_s6 + $0xb8] sm:$0x1] }
  0x32   : > { %v1123_v18 = vrot.slane %v1121_v62, 5  ;;  %v1129_v19 = vrot.slane %v1127_v63, 5  ;;  %v1134_v20 = vrot.slane %v1132_v2, 4  ;;  %v1146_v21 = vshrl.u32 %v2097_v60, 16  ;;  %v2105_v52 = vld [vmem:[%s2528_s6 + $0xc0] sm:$0xf] }
  0x33   : > { %v311_v23 = vsel %vm2557_vm4, %v306_v4, %v310_v54  ;;  %v1111_v24 = vrot.slane %v1110_v6, 4  ;;  %v1137_v25 = vrot.slane %v1135_v5, 5  ;;  %v1143_v26 = vrot.slane %v1141_v16, 5  ;;  %v2425_v5 = vld [vmem:[%s2528_s6 + $0x30] ss:$12 sps:$4 sm:$0xff]  }
  0x34   : > { %v2027_v28 = vcombine.low %v297_v61, %v311_v23  ;;  %v1124_v29 = vor.u32 %v1123_v18, %v1120_v59  ;;  %v1148_v30 = vrot.slane %v1146_v21, 4  ;;  %v1149_v31 = vshll.u32 %v2097_v60, 16  ;;  %v2106_v59 = vld [vmem:[%s2528_s6 + $0xc4] sm:$0x1] }
  0x35   : > { %v1116_v33 = vsel %vm2557_vm4, %v1111_v24, %v1115_v58  ;;  %v1138_v34 = vor.u32 %v1137_v25, %v1134_v20  ;;  %v1155_v35 = vshll.u32 %v2098_v0, 16  ;;  %v1160_v37 = vshrl.u32 %v2099_v22, 16  ;;  %v508_v20 = vld [vmem:[%s2528_s6] sm:$0xf]  ;;  %v509_v25 = vld [vmem:[%s2528_s6 + $0x4] sm:$0x1] }
  0x36   : > { %2255 = vmatmul.mubr.msk.bf16.gmra.mrb[4].mxu1 %vm326_vm3, %v2027_v28  ;;  %v1125_v39 = vrot.slane %v1124_v29, 4  ;;  %v1151_v40 = vrot.slane %v1149_v31, 5  ;;  %v1163_v9 = vshll.u32 %v2099_v22, 16  ;;  %v1169_v41 = vshll.u32 %v2100_v27, 16  ;;  %v510_v29 = vld [vmem:[%s2528_s6 + $0xc] sm:$0xf] }
  0x37   : > { %v1139_v44 = vrot.slane %v1138_v34, 4  ;;  %v1157_v45 = vrot.slane %v1155_v35, 5  ;;  %2260 = vmatprep.mubr.msk.bf16.mxu1 %vm326_vm3, %v2423_v17  ;;  %v1162_v46 = vrot.slane %v1160_v37, 4  ;;  %v1174_v47 = vshrl.u32 %v2101_v32, 16  ;;  %v511_v34 = vld [vmem:[%s2528_s6 + $0x10] sm:$0x1] }
  0x38   : > { %v1130_v7 = vsel %vm2557_vm4, %v1125_v39, %v1129_v19  ;;  %v1152_v48 = vor.u32 %v1151_v40, %v1148_v30  ;;  %v1165_v50 = vrot.slane %v1163_v9, 5  ;;  %v1171_v51 = vrot.slane %v1169_v41, 5  ;;  %v512_v39 = vld [vmem:[%s2528_s6 + $0x18] sm:$0xf] }
  0x39   : > { %v2108_v53 = vcombine.low %v1116_v33, %v1130_v7  ;;  %v1144_v54 = vsel %vm2557_vm4, %v1139_v44, %v1143_v26  ;;  %v1176_v55 = vrot.slane %v1174_v47, 4  ;;  %v1177_v56 = vshll.u32 %v2101_v32, 16  ;;  %v2426_v33 = vld [vmem:[%s2528_s6 + $0x48] ss:$12 sps:$4 sm:$0xff]   ;;  %v513_v44 = vld [vmem:[%s2528_s6 + $0x1c] sm:$0x1] }
  0x3a   : > { %v1153_v57 = vrot.slane %v1152_v48, 4  ;;  %v1166_v10 = vor.u32 %v1165_v50, %v1162_v46  ;;  %v1183_v58 = vshll.u32 %v2102_v36, 16  ;;  %v1188_v60 = vshrl.u32 %v2103_v38, 16 }
  0x3b   : > { %2300 = vmatprep.mubr.msk.bf16.mxu0 %vm326_vm3, %v2108_v53  ;;  %v1179_v61 = vrot.slane %v1177_v56, 5  ;;  %v1191_v62 = vshll.u32 %v2103_v38, 16  ;;  %v1197_v63 = vshll.u32 %v2104_v42, 16  ;;  %v1202_v0 = vshrl.u32 %v2105_v52, 16 }
  0x3c   : > { %v1158_v2 = vsel %vm2557_vm4, %v1153_v57, %v1157_v45  ;;  %v1167_v4 = vrot.slane %v1166_v10, 4  ;;  %v1190_v6 = vrot.slane %v1188_v60, 4  ;;  %v1185_v18 = vrot.slane %v1183_v58, 5  ;;  %v514_v45 = vld [vmem:[%s2528_s6 + $0x24] sm:$0xf] }
  0x3d   : > { %v2109_v16 = vcombine.low %v1144_v54, %v1158_v2  ;;  %v1180_v17 = vor.u32 %v1179_v61, %v1176_v55  ;;  %v1193_v19 = vrot.slane %v1191_v62, 5  ;;  %v1199_v21 = vrot.slane %v1197_v63, 5  ;;  %v515_v55 = vld [vmem:[%s2528_s6 + $0x28] sm:$0x1] }
  0x3e   : > { %2261 = vmatmul.mubr.msk.bf16.vlgmr.msra.gmra.mrb[0].mxu1 %vm326_vm3, %v2424_v49  ;;  %v1204_v22 = vrot.slane %v1202_v0, 4  ;;  %v1205_v23 = vshll.u32 %v2105_v52, 16  ;;  %v1211_v24 = vshll.u32 %v2106_v59, 16  ;;  %v1172_v26 = vsel %vm2557_vm4, %v1167_v4, %v1171_v51  ;;  %v2427_v49 = vld [vmem:[%s2528_s6 + $0xc] ss:$12 sps:$4 sm:$0xff]  }
  0x3f   : > { %2301 = vmatmul.mubr.msk.bf16.vlgmr.msra.gmra.mrb[0].mxu0 %vm326_vm3, %v2109_v16  ;;  %2269 = vmatpush3.bf16.msra.mxu1 %v2536_v13  ;;  %v1181_v27 = vrot.slane %v1180_v17, 4  ;;  %v1194_v28 = vor.u32 %v1193_v19, %v1190_v6  ;;  %v525_v30 = vshrl.u32 %v508_v20, 16  ;;  %v528_v35 = vshll.u32 %v508_v20, 16  ;;  %v2669_v52 = vld [vmem:[%s2850_s1 + $0x20] sm:$0xf] }
  0x40   : > { %2309 = vmatpush3.bf16.msra.mxu0 %v2532_v12  ;;  %v1207_v31 = vrot.slane %v1205_v23, 5  ;;  %v1213_v32 = vrot.slane %v1211_v24, 5  ;;  %2264 = vmatprep.mubr.msk.bf16.mxu1 %vm326_vm3, %v2425_v5  ;;  %v534_v13 = vshll.u32 %v509_v25, 16  ;;  %v539_v12 = vshrl.u32 %v510_v29, 16  ;;  %v516_v5 = vld [vmem:[%s2528_s6 + $0x30] sm:$0xf] }
  0x41   : > { %v1186_v36 = vsel %vm2557_vm4, %v1181_v27, %v1185_v18  ;;  %v1195_v37 = vrot.slane %v1194_v28, 4  ;;  %2412 = vmatprep.subr.msk.bf16.mxu0 %vm339_vm0, %v2512_v8  ;;  %v527_v38 = vrot.slane %v525_v30, 4  ;;  %2407 = vmatprep.subr.msk.bf16.mxu1 %vm339_vm0, %v2523_v11  ;;  %v530_v41 = vrot.slane %v528_v35, 5  ;;  %v517_v16 = vld [vmem:[%s2528_s6 + $0x34] sm:$0x1] }
  0x42   : > { %v2110_v40 = vcombine.low %v1172_v26, %v1186_v36  ;;  %v1208_v9 = vor.u32 %v1207_v31, %v1204_v22  ;;  %v536_v42 = vrot.slane %v534_v13, 5  ;;  %v541_v47 = vrot.slane %v539_v12, 4  ;;  %v518_v19 = vld [vmem:[%s2528_s6 + $0x3c] sm:$0xf]  ;;  %v519_v25 = vld [vmem:[%s2528_s6 + $0x40] sm:$0x1] }
  0x43   : > { %v1200_v46 = vsel %vm2557_vm4, %v1195_v37, %v1199_v21  ;;  %v542_v7 = vshll.u32 %v510_v29, 16  ;;  %v548_v8 = vshll.u32 %v511_v34, 16  ;;  %v531_v50 = vor.u32 %v530_v41, %v527_v38  ;;  %v2428_v27 = vld [vmem:[%s2528_s6 + $0x24] ss:$12 sps:$4 sm:$0xff]   ;;  %v521_v36 = vld [vmem:[%s2528_s6 + $0x4c] sm:$0x1] }
  0x44   : > { %2304 = vmatprep.mubr.msk.bf16.mxu0 %vm326_vm3, %v2110_v40  ;;  %v1209_v48 = vrot.slane %v1208_v9, 4  ;;  %v553_v11 = vshrl.u32 %v512_v39, 16  ;;  %v556_v51 = vshll.u32 %v512_v39, 16  ;;  %v562_v56 = vshll.u32 %v513_v44, 16  ;;  %v522_v37 = vld [vmem:[%s2528_s6 + $0x54] sm:$0xf] }
  0x45   : > { %v544_v53 = vrot.slane %v542_v7, 5  ;;  %v550_v54 = vrot.slane %v548_v8, 5  ;;  %v567_v57 = vshrl.u32 %v514_v45, 16  ;;  %v532_v58 = vrot.slane %v531_v50, 4  ;;  %v2429_v38 = vld [vmem:[%s2528_s6 + $0x3c] ss:$12 sps:$4 sm:$0xff]  }
  0x46   : > { %v1214_v10 = vsel %vm2557_vm4, %v1209_v48, %v1213_v32  ;;  %2265 = vmatmul.mubr.msk.bf16.gmra.mrb[4].mxu1 %vm326_vm3, %v2426_v33  ;;  %v555_v59 = vrot.slane %v553_v11, 4  ;;  %v558_v60 = vrot.slane %v556_v51, 5  ;;  %v564_v63 = vrot.slane %v562_v56, 5  ;;  %v520_v32 = vld [vmem:[%s2528_s6 + $0x48] sm:$0xf] }
  0x47   : > { %v2111_v61 = vcombine.low %v1200_v46, %v1214_v10  ;;  %v545_v62 = vor.u32 %v544_v53, %v541_v47  ;;  %v569_v0 = vrot.slane %v567_v57, 4  ;;  %v570_v4 = vshll.u32 %v514_v45, 16  ;;  %v523_v44 = vld [vmem:[%s2528_s6 + $0x58] sm:$0x1] }
  0x48   : > { %v559_v2 = vor.u32 %v558_v60, %v555_v59  ;;  %v576_v6 = vshll.u32 %v515_v55, 16  ;;  %v537_v17 = vsel %vm2557_vm4, %v532_v58, %v536_v42  ;;  %v581_v20 = vshrl.u32 %v516_v5, 16  ;;  %v2135_v58 = vld [vmem:[%s2528_s6 + $0x1c] sm:$0xf] }
  0x49   : > { %2305 = vmatmul.mubr.msk.bf16.gmra.mrb[4].mxu0 %vm326_vm3, %v2111_v61  ;;  %v546_v18 = vrot.slane %v545_v62, 4  ;;  %v2683_v21 = vsel %vm339_vm0, %v2669_v52, 0  ;;  %v572_v23 = vrot.slane %v570_v4, 5  ;;  %v584_v26 = vshll.u32 %v516_v5, 16 }
  0x4a   : > { %2310 = vmatprep.mubr.msk.bf16.mxu0 %vm326_vm3, %v2427_v49  ;;  %v560_v22 = vrot.slane %v559_v2, 4  ;;  %v578_v24 = vrot.slane %v576_v6, 5  ;;  %v583_v29 = vrot.slane %v581_v20, 4  ;;  %v590_v30 = vshll.u32 %v517_v16, 16  ;;  %v2133_v49 = vld [vmem:[%s2528_s6 + $0x10] sm:$0xf] }
  0x4b   : > { %v551_v28 = vsel %vm2557_vm4, %v546_v18, %v550_v54  ;;  %v595_v31 = vshrl.u32 %v518_v19, 16  ;;  %v573_v35 = vor.u32 %v572_v23, %v569_v0  ;;  %v586_v13 = vrot.slane %v584_v26, 5  ;;  %v2134_v54 = vld [vmem:[%s2528_s6 + $0x14] sm:$0x1]  ;;  %v2137_v0 = vld [vmem:[%s2528_s6 + $0x28] sm:$0xf] }
  0x4c   : > { %v2041_v33 = vcombine.low %v537_v17, %v551_v28  ;;  %v565_v34 = vsel %vm2557_vm4, %v560_v22, %v564_v63  ;;  %v592_v12 = vrot.slane %v590_v30, 5  ;;  %v598_v40 = vshll.u32 %v518_v19, 16  ;;  %v2136_v63 = vld [vmem:[%s2528_s6 + $0x20] sm:$0x1]  ;;  %v2139_v26 = vld [vmem:[%s2528_s6 + $0x34] sm:$0xf] }
  0x4d   : > { %v597_v39 = vrot.slane %v595_v31, 4  ;;  %v604_v9 = vshll.u32 %v519_v25, 16  ;;  %v574_v41 = vrot.slane %v573_v35, 4  ;;  %v587_v42 = vor.u32 %v586_v13, %v583_v29  ;;  %v2430_v2 = vld [vmem:[%s2528_s6 + $0x54] ss:$12 sps:$4 sm:$0xff]  }
  0x4e   : > { %2270 = vmatprep.mubr.msk.bf16.mxu1 %vm326_vm3, %v2041_v33  ;;  %v609_v45 = vshrl.u32 %v520_v32, 16  ;;  %v612_v46 = vshll.u32 %v520_v32, 16  ;;  %v600_v47 = vrot.slane %v598_v40, 5  ;;  %v618_v8 = vshll.u32 %v521_v36, 16  ;;  %v2140_v32 = vld [vmem:[%s2528_s6 + $0x38] sm:$0x1] }
  0x4f   : > { %v606_v7 = vrot.slane %v604_v9, 5  ;;  %v623_v48 = vshrl.u32 %v522_v37, 16  ;;  %v579_v50 = vsel %vm2557_vm4, %v574_v41, %v578_v24  ;;  %v588_v11 = vrot.slane %v587_v42, 4  ;;  %v2431_v36 = vld [vmem:[%s2528_s6 + $0x6c] ss:$12 sps:$4 sm:$0xff]  }
  0x50   : > { %v611_v51 = vrot.slane %v609_v45, 4  ;;  %v614_v53 = vrot.slane %v612_v46, 5  ;;  %v2042_v55 = vcombine.low %v565_v34, %v579_v50  ;;  %v601_v56 = vor.u32 %v600_v47, %v597_v39  ;;  %v2142_v9 = vld [vmem:[%s2528_s6 + $0x44] sm:$0x1]  ;;  %v2143_v46 = vld [vmem:[%s2528_s6 + $0x4c] sm:$0xf] }
  0x51   : > { %2311 = vmatmul.mubr.msk.bf16.vlgmr.msra.gmra.mrb[0].mxu0 %vm326_vm3, %v2428_v27  ;;  %v620_v57 = vrot.slane %v618_v8, 5  ;;  %v625_v10 = vrot.slane %v623_v48, 4  ;;  %v593_v59 = vsel %vm2557_vm4, %v588_v11, %v592_v12  ;;  %v626_v61 = vshll.u32 %v522_v37, 16  ;;  %v2141_v37 = vld [vmem:[%s2528_s6 + $0x40] sm:$0xf] }
  0x52   : > { %2319 = vmatpush3.bf16.msra.mxu0 %v2540_v14  ;;  %2314 = vmatprep.mubr.msk.bf16.mxu0 %vm326_vm3, %v2429_v38  ;;  %v615_v60 = vor.u32 %v614_v53, %v611_v51  ;;  %v632_v62 = vshll.u32 %v523_v44, 16  ;;  %v602_v4 = vrot.slane %v601_v56, 4  ;;  %v1453_v6 = vshrl.u32 %v2133_v49, 16  ;;  %v2138_v14 = vld [vmem:[%s2528_s6 + $0x2c] sm:$0x1] }
  0x53   : > { %2271 = vmatmul.mubr.msk.bf16.vlgmr.msra.gmra.mrb[0].mxu1 %vm326_vm3, %v2042_v55  ;;  %v1456_v5 = vshll.u32 %v2133_v49, 16  ;;  %v1462_v16 = vshll.u32 %v2134_v54, 16  ;;  %2413 = vmatprep.subr.msk.bf16.mxu0 %vm339_vm0, %v2669_v52  ;;  %v628_v18 = vrot.slane %v626_v61, 5  ;;  %v1467_v20 = vshrl.u32 %v2135_v58, 16  ;;  %v2144_v11 = vld [vmem:[%s2528_s6 + $0x50] sm:$0x1] }
  0x54   : > { %2279 = vmatpush3.bf16.msra.mxu1 %v2544_v15  ;;  %v616_v17 = vrot.slane %v615_v60, 4  ;;  %v634_v19 = vrot.slane %v632_v62, 5  ;;  %v607_v22 = vsel %vm2557_vm4, %v602_v4, %v606_v7  ;;  %v1455_v23 = vrot.slane %v1453_v6, 4  ;;  %v2145_v54 = vld [vmem:[%s2528_s6 + $0x58] sm:$0xf] }
  0x55   : > { %v1458_v24 = vrot.slane %v1456_v5, 5  ;;  %v1464_v25 = vrot.slane %v1462_v16, 5  ;;  %2409 = vmatprep.subr.msk.bf16.mxu1 %vm339_vm0, %v2477_v1  ;;  %v2043_v52 = vcombine.low %v593_v59, %v607_v22  ;;  %v629_v27 = vor.u32 %v628_v18, %v625_v10  ;;  %v2432_v4 = vld [vmem:[%s2528_s6 + $0x84] ss:$12 sps:$4 sm:$0xff]  }
  0x56   : > { %v621_v15 = vsel %vm2557_vm4, %v616_v17, %v620_v57  ;;  %v1469_v28 = vrot.slane %v1467_v20, 4  ;;  %v1470_v30 = vshll.u32 %v2135_v58, 16  ;;  %v1476_v31 = vshll.u32 %v2136_v63, 16  ;;  %v2146_v58 = vld [vmem:[%s2528_s6 + $0x5c] sm:$0x1] }
  0x57   : > { %v1459_v29 = vor.u32 %v1458_v24, %v1455_v23  ;;  %v1481_v33 = vshrl.u32 %v2137_v0, 16  ;;  %2274 = vmatprep.mubr.msk.bf16.mxu1 %vm326_vm3, %v2043_v52  ;;  %v630_v34 = vrot.slane %v629_v27, 4  ;;  %v1484_v35 = vshll.u32 %v2137_v0, 16  ;;  %v2147_v63 = vld [vmem:[%s2528_s6 + $0x64] sm:$0xf] }
  0x58   : > { %v1490_v13 = vshll.u32 %v2138_v14, 16  ;;  %v1495_v1 = vshrl.u32 %v2139_v26, 16  ;;  %v1472_v12 = vrot.slane %v1470_v30, 5  ;;  %v1478_v39 = vrot.slane %v1476_v31, 5  ;;  %v2433_v27 = vld [vmem:[%s2528_s6 + $0x9c] ss:$12 sps:$4 sm:$0xff]  }
  0x59   : > { %2315 = vmatmul.mubr.msk.bf16.gmra.mrb[4].mxu0 %vm326_vm3, %v2430_v2  ;;  %v1460_v38 = vrot.slane %v1459_v29, 4  ;;  %v1483_v40 = vrot.slane %v1481_v33, 4  ;;  %v635_v41 = vsel %vm2557_vm4, %v630_v34, %v634_v19  ;;  %v1486_v42 = vrot.slane %v1484_v35, 5  ;;  %v2148_v19 = vld [vmem:[%s2528_s6 + $0x68] sm:$0x1] }
  0x5a   : > { %v1492_v44 = vrot.slane %v1490_v13, 5  ;;  %v1497_v45 = vrot.slane %v1495_v1, 4  ;;  %v2044_v47 = vcombine.low %v621_v15, %v635_v41  ;;  %v1473_v8 = vor.u32 %v1472_v12, %v1469_v28  ;;  %v2159_v1 = vld [vmem:[%s2528_s6 + $0x10] sm:$0x1] }
  0x5b   : > { %v1465_v7 = vsel %vm2557_vm4, %v1460_v38, %v1464_v25  ;;  %v1498_v48 = vshll.u32 %v2139_v26, 16  ;;  %v1487_v49 = vor.u32 %v1486_v42, %v1483_v40  ;;  %v1504_v50 = vshll.u32 %v2140_v32, 16  ;;  %v2158_v32 = vld [vmem:[%s2528_s6 + $0xc] sm:$0xf]  ;;  %v2161_v40 = vld [vmem:[%s2528_s6 + $0x1c] sm:$0x1] }
  0x5c   : > { %v1509_v51 = vshrl.u32 %v2141_v37, 16  ;;  %v1512_v53 = vshll.u32 %v2141_v37, 16  ;;  %2275 = vmatmul.mubr.msk.bf16.gmra.mrb[4].mxu1 %vm326_vm3, %v2044_v47  ;;  %v1474_v55 = vrot.slane %v1473_v8, 4  ;;  %v1518_v57 = vshll.u32 %v2142_v9, 16 }
  0x5d   : > { %v1500_v56 = vrot.slane %v1498_v48, 5  ;;  %v1523_v10 = vshrl.u32 %v2143_v46, 16  ;;  %v1488_v59 = vrot.slane %v1487_v49, 4  ;;  %v1506_v60 = vrot.slane %v1504_v50, 5  ;;  %2280 = vmatprep.mubr.msk.bf16.mxu1 %vm326_vm3, %v2431_v36  ;;  %v2160_v36 = vld [vmem:[%s2528_s6 + $0x18] sm:$0xf] }
  0x5e   : > { %v1511_v61 = vrot.slane %v1509_v51, 4  ;;  %v1514_v62 = vrot.slane %v1512_v53, 5  ;;  %v1479_v0 = vsel %vm2557_vm4, %v1474_v55, %v1478_v39  ;;  %v1520_v6 = vrot.slane %v1518_v57, 5  ;;  %v2163_v48 = vld [vmem:[%s2528_s6 + $0x28] sm:$0x1] }
  0x5f   : > { %v1501_v2 = vor.u32 %v1500_v56, %v1497_v45  ;;  %v1525_v5 = vrot.slane %v1523_v10, 4  ;;  %v2150_v16 = vcombine.low %v1465_v7, %v1479_v0  ;;  %v1493_v14 = vsel %vm2557_vm4, %v1488_v59, %v1492_v44  ;;  %v2162_v45 = vld [vmem:[%s2528_s6 + $0x24] sm:$0xf]  ;;  %v2164_v51 = vld [vmem:[%s2528_s6 + $0x30] sm:$0xf] }
  0x60   : > { %v1515_v17 = vor.u32 %v1514_v62, %v1511_v61  ;;  %v1526_v18 = vshll.u32 %v2143_v46, 16  ;;  %v1532_v22 = vshll.u32 %v2144_v11, 16  ;;  %v1537_v23 = vshrl.u32 %v2145_v54, 16  ;;  %v2434_v55 = vld [vmem:[%s2528_s6 + $0xb4] ss:$12 sps:$4 sm:$0xff]  }
  0x61   : > { %v1502_v20 = vrot.slane %v1501_v2, 4  ;;  %v1540_v24 = vshll.u32 %v2145_v54, 16  ;;  %2320 = vmatprep.mubr.msk.bf16.mxu0 %vm326_vm3, %v2150_v16  ;;  %v1546_v52 = vshll.u32 %v2146_v58, 16  ;;  %v1551_v15 = vshrl.u32 %v2147_v63, 16  ;;  %v2165_v59 = vld [vmem:[%s2528_s6 + $0x34] sm:$0x1] }
  0x62   : > { %v1516_v25 = vrot.slane %v1515_v17, 4  ;;  %v1528_v26 = vrot.slane %v1526_v18, 5  ;;  %v1534_v29 = vrot.slane %v1532_v22, 5  ;;  %v1539_v30 = vrot.slane %v1537_v23, 4  ;;  %v2074_v2 = vld [vmem:[%s2528_s6 + $0xa0] sm:$0xf] }
  0x63   : > { %v1507_v28 = vsel %vm2557_vm4, %v1502_v20, %v1506_v60  ;;  %v1542_v31 = vrot.slane %v1540_v24, 5  ;;  %v1548_v13 = vrot.slane %v1546_v52, 5  ;;  %v1553_v38 = vrot.slane %v1551_v15, 4  ;;  %v2076_v22 = vld [vmem:[%s2528_s6 + $0xac] sm:$0xf] }
  0x64   : > { %v2151_v33 = vcombine.low %v1493_v14, %v1507_v28  ;;  %v1521_v34 = vsel %vm2557_vm4, %v1516_v25, %v1520_v6  ;;  %v1529_v35 = vor.u32 %v1528_v26, %v1525_v5  ;;  %2281 = vmatmul.mubr.msk.bf16.vlgmr.msra.gmra.mrb[0].mxu1 %vm326_vm3, %v2432_v4  ;;  %v1554_v12 = vshll.u32 %v2147_v63, 16  ;;  %v2075_v14 = vld [vmem:[%s2528_s6 + $0xa4] sm:$0x1] }
  0x65   : > { %v1543_v37 = vor.u32 %v1542_v31, %v1539_v30  ;;  %v1560_v39 = vshll.u32 %v2148_v19, 16  ;;  %2339 = vmatpush3.bf16.msra.mxu1 %v2485_v3  ;;  %v1683_v41 = vshrl.u32 %v2158_v32, 16  ;;  %v1686_v42 = vshll.u32 %v2158_v32, 16  ;;  %2284 = vmatprep.mubr.msk.bf16.mxu1 %vm326_vm3, %v2433_v27  ;;  %v2077_v31 = vld [vmem:[%s2528_s6 + $0xb0] sm:$0x1] }
  0x66   : > { %2321 = vmatmul.mubr.msk.bf16.vlgmr.msra.gmra.mrb[0].mxu0 %vm326_vm3, %v2151_v33  ;;  %v1530_v9 = vrot.slane %v1529_v35, 4  ;;  %v1692_v44 = vshll.u32 %v2159_v1, 16  ;;  %v1556_v47 = vrot.slane %v1554_v12, 5  ;;  %v1697_v8 = vshrl.u32 %v2160_v36, 16 }
  0x67   : > { %2329 = vmatpush3.bf16.msra.mxu0 %v2683_v21  ;;  %v1544_v46 = vrot.slane %v1543_v37, 4  ;;  %v1562_v7 = vrot.slane %v1560_v39, 5  ;;  %v1685_v49 = vrot.slane %v1683_v41, 4  ;;  %v1688_v50 = vrot.slane %v1686_v42, 5 }
  0x68   : > { %v1535_v3 = vsel %vm2557_vm4, %v1530_v9, %v1534_v29  ;;  %v1694_v11 = vrot.slane %v1692_v44, 5  ;;  %v1557_v54 = vor.u32 %v1556_v47, %v1553_v38  ;;  %v1699_v56 = vrot.slane %v1697_v8, 4 }
  0x69   : > { %v2152_v53 = vcombine.low %v1521_v34, %v1535_v3  ;;  %v1549_v21 = vsel %vm2557_vm4, %v1544_v46, %v1548_v13  ;;  %v1689_v57 = vor.u32 %v1688_v50, %v1685_v49  ;;  %v1700_v10 = vshll.u32 %v2160_v36, 16  ;;  %v2166_v36 = vld [vmem:[%s2528_s6 + $0x3c] sm:$0xf] }
  0x6a   : > { %v1706_v58 = vshll.u32 %v2161_v40, 16  ;;  %v1711_v60 = vshrl.u32 %v2162_v45, 16  ;;  %v1558_v61 = vrot.slane %v1557_v54, 4  ;;  %v1714_v62 = vshll.u32 %v2162_v45, 16  ;;  %v2168_v40 = vld [vmem:[%s2528_s6 + $0x48] sm:$0xf] }
  0x6b   : > { %2324 = vmatprep.mubr.msk.bf16.mxu0 %vm326_vm3, %v2152_v53  ;;  %v1720_v63 = vshll.u32 %v2163_v48, 16  ;;  %v1725_v0 = vshrl.u32 %v2164_v51, 16  ;;  %v1690_v4 = vrot.slane %v1689_v57, 4  ;;  %v1702_v6 = vrot.slane %v1700_v10, 5  ;;  %v2167_v45 = vld [vmem:[%s2528_s6 + $0x40] sm:$0x1] }
  0x6c   : > { %v1708_v5 = vrot.slane %v1706_v58, 5  ;;  %v1713_v16 = vrot.slane %v1711_v60, 4  ;;  %v1563_v17 = vsel %vm2557_vm4, %v1558_v61, %v1562_v7  ;;  %2285 = vmatmul.mubr.msk.bf16.gmra.mrb[4].mxu1 %vm326_vm3, %v2434_v55  ;;  %v1716_v18 = vrot.slane %v1714_v62, 5  ;;  %v2169_v7 = vld [vmem:[%s2528_s6 + $0x4c] sm:$0x1] }
  0x6d   : > { %v1722_v19 = vrot.slane %v1720_v63, 5  ;;  %v1727_v20 = vrot.slane %v1725_v0, 4  ;;  %v2153_v23 = vcombine.low %v1549_v21, %v1563_v17  ;;  %v1695_v24 = vsel %vm2557_vm4, %v1690_v4, %v1694_v11  ;;  %v2078_v11 = vld [vmem:[%s2528_s6 + $0xb8] sm:$0xf]  ;;  %v2079_v55 = vld [vmem:[%s2528_s6 + $0xbc] sm:$0x1] }
  0x6e   : > { %v1703_v25 = vor.u32 %v1702_v6, %v1699_v56  ;;  %v1728_v26 = vshll.u32 %v2164_v51, 16  ;;  %v1717_v52 = vor.u32 %v1716_v18, %v1713_v16  ;;  %v1734_v15 = vshll.u32 %v2165_v59, 16  ;;  %v2080_v59 = vld [vmem:[%s2528_s6 + $0xc4] sm:$0xf] }
  0x6f   : > { %v930_v27 = vshrl.u32 %v2074_v2, 16  ;;  %v933_v28 = vshll.u32 %v2074_v2, 16  ;;  %2325 = vmatmul.mubr.msk.bf16.gmra.mrb[4].mxu0 %vm326_vm3, %v2153_v23  ;;  %v939_v32 = vshll.u32 %v2075_v14, 16  ;;  %v944_v33 = vshrl.u32 %v2076_v22, 16  ;;  %v2081_v2 = vld [vmem:[%s2528_s6 + $0xc8] sm:$0x1] }
  0x70   : > { %v1704_v29 = vrot.slane %v1703_v25, 4  ;;  %v1730_v30 = vrot.slane %v1728_v26, 5  ;;  %v1718_v34 = vrot.slane %v1717_v52, 4  ;;  %v1736_v35 = vrot.slane %v1734_v15, 5  ;;  %v2172_v25 = vld [vmem:[%s2528_s6 + $0x60] sm:$0xf] }
  0x71   : > { %v932_v13 = vrot.slane %v930_v27, 4  ;;  %v935_v1 = vrot.slane %v933_v28, 5  ;;  %v941_v12 = vrot.slane %v939_v32, 5  ;;  %v946_v39 = vrot.slane %v944_v33, 4  ;;  %v2171_v28 = vld [vmem:[%s2528_s6 + $0x58] sm:$0x1] }
  0x72   : > { %v1709_v37 = vsel %vm2557_vm4, %v1704_v29, %v1708_v5  ;;  %v1731_v38 = vor.u32 %v1730_v30, %v1727_v20  ;;  %v1723_v41 = vsel %vm2557_vm4, %v1718_v34, %v1722_v19  ;;  %v947_v44 = vshll.u32 %v2076_v22, 16  ;;  %v2170_v19 = vld [vmem:[%s2528_s6 + $0x54] sm:$0xf] }
  0x73   : > { %v2175_v9 = vcombine.low %v1695_v24, %v1709_v37  ;;  %v936_v42 = vor.u32 %v935_v1, %v932_v13  ;;  %v953_v47 = vshll.u32 %v2077_v31, 16  ;;  %v1739_v8 = vshrl.u32 %v2166_v36, 16  ;;  %v2173_v37 = vld [vmem:[%s2528_s6 + $0x64] sm:$0x1] }
  0x74   : > { %v1732_v46 = vrot.slane %v1731_v38, 4  ;;  %v1742_v48 = vshll.u32 %v2166_v36, 16  ;;  %v949_v49 = vrot.slane %v947_v44, 5  ;;  %v1753_v50 = vshrl.u32 %v2168_v40, 16 }
  0x75   : > { %2330 = vmatprep.mubr.msk.bf16.mxu0 %vm326_vm3, %v2175_v9  ;;  %v937_v3 = vrot.slane %v936_v42, 4  ;;  %v1741_v53 = vrot.slane %v1739_v8, 4  ;;  %v1748_v54 = vshll.u32 %v2167_v45, 16  ;;  %v955_v58 = vrot.slane %v953_v47, 5 }
  0x76   : > { %v1737_v51 = vsel %vm2557_vm4, %v1732_v46, %v1736_v35  ;;  %v1744_v21 = vrot.slane %v1742_v48, 5  ;;  %v950_v10 = vor.u32 %v949_v49, %v946_v39  ;;  %v1755_v61 = vrot.slane %v1753_v50, 4 }
  0x77   : > { %v2176_v56 = vcombine.low %v1723_v41, %v1737_v51  ;;  %v942_v57 = vsel %vm2557_vm4, %v937_v3, %v941_v12  ;;  %v1756_v62 = vshll.u32 %v2168_v40, 16  ;;  %v1762_v63 = vshll.u32 %v2169_v7, 16 }
  0x78   : > { %v1745_v60 = vor.u32 %v1744_v21, %v1741_v53  ;;  %v951_v0 = vrot.slane %v950_v10, 4  ;;  %v958_v4 = vshrl.u32 %v2078_v11, 16  ;;  %v961_v6 = vshll.u32 %v2078_v11, 16 }
  0x79   : > { %2331 = vmatmul.mubr.msk.bf16.vlgmr.msra.gmra.mrb[0].mxu0 %vm326_vm3, %v2176_v56  ;;  %v967_v5 = vshll.u32 %v2079_v55, 16  ;;  %v1750_v14 = vrot.slane %v1748_v54, 5  ;;  %v1758_v17 = vrot.slane %v1756_v62, 5  ;;  %v972_v18 = vshrl.u32 %v2080_v59, 16 }
  0x7a   : > { %v1746_v16 = vrot.slane %v1745_v60, 4  ;;  %v956_v20 = vsel %vm2557_vm4, %v951_v0, %v955_v58  ;;  %v1764_v22 = vrot.slane %v1762_v63, 5  ;;  %v960_v23 = vrot.slane %v958_v4, 4 }
  0x7b   : > { %v963_v24 = vrot.slane %v961_v6, 5  ;;  %v2085_v26 = vcombine.low %v942_v57, %v956_v20  ;;  %v1759_v52 = vor.u32 %v1758_v17, %v1755_v61  ;;  %v969_v15 = vrot.slane %v967_v5, 5  ;;  %v2183_v61 = vld [vmem:[%s2851_s2] ss:$0 sm:$0xff] }
  0x7c   : > { %v974_v27 = vrot.slane %v972_v18, 4  ;;  %v975_v30 = vshll.u32 %v2080_v59, 16  ;;  %v981_v31 = vshll.u32 %v2081_v2, 16  ;;  %v1767_v32 = vshrl.u32 %v2170_v19, 16 }
  0x7d   : > { %v964_v29 = vor.u32 %v963_v24, %v960_v23  ;;  %2294 = vmatprep.mubr.msk.bf16.mxu1 %vm326_vm3, %v2085_v26  ;;  %v1751_v33 = vsel %vm2557_vm4, %v1746_v16, %v1750_v14  ;;  %v1760_v34 = vrot.slane %v1759_v52, 4  ;;  %v1770_v35 = vshll.u32 %v2170_v19, 16 }
  0x7e   : > { %v1781_v13 = vshrl.u32 %v2172_v25, 16  ;;  %v977_v36 = vrot.slane %v975_v30, 5  ;;  %v1769_v38 = vrot.slane %v1767_v32, 4  ;;  %v1776_v12 = vshll.u32 %v2171_v28, 16 }
  0x7f   : > { %v965_v1 = vrot.slane %v964_v29, 4  ;;  %v1765_v39 = vsel %vm2557_vm4, %v1760_v34, %v1764_v22  ;;  %v983_v40 = vrot.slane %v981_v31, 5  ;;  %v1772_v9 = vrot.slane %v1770_v35, 5 }
  0x80   : > { %v2177_v41 = vcombine.low %v1751_v33, %v1765_v39  ;;  %v978_v42 = vor.u32 %v977_v36, %v974_v27  ;;  %v1783_v44 = vrot.slane %v1781_v13, 4  ;;  %v1784_v45 = vshll.u32 %v2172_v25, 16 }
  0x81   : > { %v1773_v46 = vor.u32 %v1772_v9, %v1769_v38  ;;  %v1790_v47 = vshll.u32 %v2173_v37, 16  ;;  %v970_v7 = vsel %vm2557_vm4, %v965_v1, %v969_v15  ;;  %v1778_v48 = vrot.slane %v1776_v12, 5 }
  0x82   : > { %2334 = vmatprep.mubr.msk.bf16.mxu0 %vm326_vm3, %v2177_v41  ;;  %v979_v8 = vrot.slane %v978_v42, 4  ;;  %v1786_v3 = vrot.slane %v1784_v45, 5 }
  0x83   : > { %v1774_v49 = vrot.slane %v1773_v46, 4  ;;  %v1792_v51 = vrot.slane %v1790_v47, 5 }
  0x84   : > { %v984_v50 = vsel %vm2557_vm4, %v979_v8, %v983_v40  ;;  %v1787_v11 = vor.u32 %v1786_v3, %v1783_v44 }
  0x85   : > { %v2086_v53 = vcombine.low %v970_v7, %v984_v50  ;;  %v1779_v21 = vsel %vm2557_vm4, %v1774_v49, %v1778_v48 }
  0x86   : > { %v1788_v54 = vrot.slane %v1787_v11, 4 }
  0x87   : > { %2295 = vmatmul.mubr.msk.bf16.vlgmr.msra.gmra.mrb[4].mxu1 %vm326_vm3, %v2086_v53 }
  0x88   : > { %v1793_v55 = vsel %vm2557_vm4, %v1788_v54, %v1792_v51 }
  0x89   : > { %v2178_v56 = vcombine.low %v1779_v21, %v1793_v55 }
  0x8b   : > { %2335 = vmatmul.mubr.msk.bf16.gmra.mrb[4].mxu0 %vm326_vm3, %v2178_v56 }
 0x137   : > { %v2282_v57 = vpop.f32.mrb[0].mxu1 }
 0x138   : > { %v818_v10 = vpop.f32.mrb[1].mxu1 }
 0x139   : > { %v2283_v58 = vpop.f32.mrb[2].mxu1 }
 0x13a   : > { %v821_v59 = vpop.f32.mrb[3].mxu1 }
 0x14c   : > { %v2332_v60 = vpop.f32.mrb[0].mxu0 }
 0x14d   : > { %v2340_v62 = vadd.f32 %v2332_v60, %v2282_v57  ;;  %v1857_v63 = vpop.f32.mrb[1].mxu0 }
 0x14e   : > { %v2341_v0 = vadd.f32 %v1857_v63, %v818_v10  ;;  %v2333_v2 = vpop.f32.mrb[2].mxu0 }
 0x14f   : > { %v1905_v4 = vadd.f32 %v2340_v62, %v2183_v61  ;;  %v2342_v43 = vadd.f32 %v2333_v2, %v2283_v58  ;;  %v1860_v6 = vpop.f32.mrb[3].mxu0 }
 0x150   : > { %v1903_v5 = vadd.f32 %v2341_v0, %v2183_v61  ;;  %v2343_v16 = vadd.f32 %v1860_v6, %v821_v59 }
 0x151   : > { %v1913_v14 = vmax.f32 %v1905_v4, 0.0  ;;  %v1906_v17 = vadd.f32 %v2342_v43, %v2183_v61 }
 0x152   : > { %v1911_v18 = vmax.f32 %v1903_v5, 0.0  ;;  %v1904_v19 = vadd.f32 %v2343_v16, %v2183_v61 }
 0x153   : > { %v2197_v20 = vpack.c.bf16 %v1913_v14, %v1913_v14  ;;  %v1914_v22 = vmax.f32 %v1906_v17, 0.0 }
 0x154   : > { %v2195_v23 = vpack.c.bf16 %v1911_v18, %v1911_v18  ;;  %v1912_v24 = vmax.f32 %v1904_v19, 0.0 }
 0x155   : > { %1954 = vst.msk [vmem:[%s2828_s16 + $0x8] sm:$0xf] %vm1951_vm5, %v2197_v20  ;;  %v2198_v25 = vpack.c.bf16 %v1914_v22, %v1914_v22 }
 0x156   : > { %1952 = vst.msk [vmem:[%s2828_s16] sm:$0xf] %vm1951_vm5, %v2195_v23  ;;  %v2196_v26 = vpack.c.bf16 %v1912_v24, %v1912_v24 }
 0x157   : > { %1955 = vst.msk [vmem:[%s2828_s16 + $0xc] sm:$0xf] %vm1951_vm5, %v2198_v25 }
 0x158   : > { %1953 = vst.msk [vmem:[%s2828_s16 + $0x4] sm:$0xf] %vm1951_vm5, %v2196_v26 }
 0x15a   : > { %v2296_v52 = vpop.f32.mrb[4].mxu1 }
 0x15b   : > { %v1064_v15 = vpop.f32.mrb[5].mxu1 }
 0x15c   : > { %v2297_v27 = vpop.f32.mrb[6].mxu1 }
 0x15d   : > { %v1067_v28 = vpop.f32.mrb[7].mxu1 }
 0x15e   : > { %v2336_v29 = vpop.f32.mrb[4].mxu0 }
 0x15f   : > { %v2344_v30 = vadd.f32 %v2336_v29, %v2296_v52  ;;  %v1873_v31 = vpop.f32.mrb[5].mxu0 }
 0x160   : > { %v2345_v32 = vadd.f32 %v1873_v31, %v1064_v15  ;;  %v2337_v33 = vpop.f32.mrb[6].mxu0 }
 0x161   : > { %v1909_v34 = vadd.f32 %v2344_v30, %v2183_v61  ;;  %v2346_v35 = vadd.f32 %v2337_v33, %v2297_v27  ;;  %v1876_v13 = vpop.f32.mrb[7].mxu0 }
 0x162   : > { %v1907_v1 = vadd.f32 %v2345_v32, %v2183_v61  ;;  %v2347_v36 = vadd.f32 %v1876_v13, %v1067_v28 }
 0x163   : > { %v1917_v37 = vmax.f32 %v1909_v34, 0.0  ;;  %v1910_v38 = vadd.f32 %v2346_v35, %v2183_v61 }
 0x164   : > { %v1915_v12 = vmax.f32 %v1907_v1, 0.0  ;;  %v1908_v39 = vadd.f32 %v2347_v36, %v2183_v61 }
 0x165   : > { %v2201_v40 = vpack.c.bf16 %v1917_v37, %v1917_v37  ;;  %v1918_v9 = vmax.f32 %v1910_v38, 0.0 }
 0x166   : > { %v2199_v41 = vpack.c.bf16 %v1915_v12, %v1915_v12  ;;  %v1916_v42 = vmax.f32 %v1908_v39, 0.0 }
 0x167   : > { %1958 = vst.msk [vmem:[%s2828_s16 + $0x18] sm:$0xf] %vm1951_vm5, %v2201_v40  ;;  %v2202_v44 = vpack.c.bf16 %v1918_v9, %v1918_v9 }
 0x168   : > { %1956 = vst.msk [vmem:[%s2828_s16 + $0x10] sm:$0xf] %vm1951_vm5, %v2199_v41  ;;  %v2200_v45 = vpack.c.bf16 %v1916_v42, %v1916_v42 }
 0x169   : > { %1959 = vst.msk [vmem:[%s2828_s16 + $0x1c] sm:$0xf] %vm1951_vm5, %v2202_v44 }
 0x16a   : > { %1957 = vst.msk [vmem:[%s2828_s16 + $0x14] sm:$0xf] %vm1951_vm5, %v2200_v45 }
 0x16b PF: > { %s13_s12 = sadd.s32 1, %s2441_s12  }
 0x16c   : > { %p10_p4 = scmp.ge.s32.totalorder %s13_s12, 4  }
 0x16e   :  { %12 = sbr.rel (!%p10_p4) target bundleno = 1 (0x1), region = 72 }

// kernel: _lambda_.9
= control target key start
LH: loop header
LB: loop body
LE: loop exit
PB: predicated region body
PF: predicated region fallthrough
CT: control target
= control target key end

     0   :  { %s2998_s12 = smov 0   ;;  %s3350_s0 = inlined_call_operand.vmem [shape: bf16[2,18,10,16], index: 0, kind: input, shape index: {}]   ;;  %s3351_s1 = inlined_call_operand.vmem [shape: bf16[9,16,32], index: 1, kind: input, shape index: {}]   ;;  %s3352_s2 = inlined_call_operand.vmem [shape: f32[1,32], index: 2, kind: input, shape index: {}]   ;;  %s3353_s3 = inlined_call_operand.vmem [shape: bf16[2,8,4,32], index: 3, kind: output, shape index: {}]  }
   0x1 LB: > { %s2632_s13 = sadd.s32 4294967295, %s2975_s12   ;;  %p2636_p0 = scmp.ge.s32.totalorder %s2975_s12, 1  ;;  %s2975_s12 = sphi %s2998_s12, %s13_s12  }
   0x2   : > { %p137_p1 = scmp.lt.s32.totalorder %s2975_s12, 3 }
   0x4   : > { %p138_p2 = pnand %p2636_p0, %p137_p1 }
   0x5   : > { %v2948_v0 = vld [vmem:[%s3351_s1 + $0x20] sm:$0xff] (!%p138_p2)   ;;  %p161_p3 = scmp.lt.s32.totalorder (!%p138_p2), %s2632_s13, 1  ;;  %v2949_v1 = vld [vmem:[%s3351_s1 + $0x8] sm:$0xff] (!%p138_p2)   ;;  %vm334_vm0 = vsmask.f32 (!%p138_p2), 1280  ;;  %v461_v2 = vlaneseq (!%p138_p2)  ;;  %vm496_vm7 = vcmask (!%p138_p2), 130048  }
   0x6   : > { %141 = sbr.rel (%p138_p2) target bundleno = 372 (0x174), region = 32  ;;  %2876 = vmatprep.subr.bf16.mxu0 (!%p138_p2), %v2948_v0  ;;  %2852 = vmatprep.subr.bf16.mxu1 (!%p138_p2), %v2949_v1  ;;  %vm335_vm1 = vsmask.f32 (!%p138_p2), 3336  ;;  %vm337_vm2 = vsmask.f32 (!%p138_p2), 5392  ;;  %v3018_v3 = vld [vmem:[%s3351_s1 + $0x28] sm:$0xff] (!%p138_p2)  }
   0x7   : > { %2877 = vmatpush3.bf16.msra.mxu0 (!%p138_p2), %v2948_v0  ;;  %2853 = vmatpush3.bf16.msra.mxu1 (!%p138_p2), %v2949_v1  ;;  %vm339_vm3 = vsmask.f32 (!%p138_p2), 7448  ;;  %v3028_v4 = vld [vmem:[%s3351_s1] sm:$0xff] (!%p138_p2)   ;;  %v2977_v10 = vmov (!%p138_p2), 1983009808   ;;  %v462_v12 = vshrl.u32 (!%p138_p2), %v461_v2, 7  ;;  %vm336_vm4 = vmor (!%p138_p2), %vm334_vm0, %vm335_vm1 }
   0x8   : > { %2882 = vmatprep.subr.bf16.mxu0 (!%p138_p2), %v3018_v3  ;;  %2858 = vmatprep.subr.bf16.mxu1 (!%p138_p2), %v3028_v4  ;;  %v459_v11 = vunpack.c.l.s4 (!%p138_p2), %v2977_v10  ;;  %vm338_vm5 = vmor (!%p138_p2), %vm336_vm4, %vm337_vm2  ;;  %vm2568_vm8 = vcmask (!%p138_p2), 254976  }
   0x9   : > { %vm3044_vm6 = vmor (!%p138_p2), %vm338_vm5, %vm339_vm3 }
   0xa   : > { %v460_v27 = vunpack.c.0.s8 (!%p138_p2), %v459_v11 }
   0xc   : > { %v3055_v57 = vsub.s32 (!%p138_p2), %v460_v27, %v462_v12 }
   0xd   : > { %s3357_s13 = smov (!%p161_p3, %s2632_s13), 1 }
   0xe   : > { %s2938_s18 = smul.u32 144, %s3357_s13  ;;  %s2824_s11 = sshll.u32 %s3357_s13, 4 }
   0xf   : > { %s170_s16 = scalar_lea.vmem %s3353_s3, %s2824_s11 }
  0x10   : > { %s3023_s23 = scalar_lea.vmem %s3350_s0, %s2938_s18 }
  0x11   : > { %v2640_v5 = vld.sshfl [vmem:[%s3023_s23] sm:$0x30 pattern:$0x76325410] }
  0x12   : > { %v2641_v6 = vld.sshfl [vmem:[%s3023_s23 + $0x4] sm:$0x1 pattern:$0x76325410]  ;;  %v221_v7 = vcombine.high %v2640_v5, %v2640_v5 }
  0x13   : > { %v2642_v8 = vld.sshfl [vmem:[%s3023_s23 + $0x8] sm:$0x30 pattern:$0x76325410]  ;;  %v351_v9 = vshll.u32 %v2641_v6, 16 }
  0x14   : > { %v2643_v13 = vld.sshfl [vmem:[%s3023_s23 + $0xc] sm:$0x1 pattern:$0x76325410]  ;;  %v236_v14 = vcombine.high %v2642_v8, %v2642_v8  ;;  %v342_v15 = vshrl.u32 %v221_v7, 16  ;;  %v345_v16 = vshll.u32 %v221_v7, 16 }
  0x15   : > { %v2644_v17 = vld.sshfl [vmem:[%s3023_s23 + $0x10] sm:$0x30 pattern:$0x76325410]  ;;  %v353_v18 = vrot.slane %v351_v9, 7  ;;  %v365_v19 = vshll.u32 %v2643_v13, 16 }
  0x16   : > { %v2645_v20 = vld.sshfl [vmem:[%s3023_s23 + $0x14] sm:$0x1 pattern:$0x76325410]  ;;  %v251_v21 = vcombine.high %v2644_v17, %v2644_v17  ;;  %v344_v22 = vrot.slane %v342_v15, 6  ;;  %v347_v23 = vrot.slane %v345_v16, 7 }
  0x17   : > { %v2646_v24 = vld.sshfl [vmem:[%s3023_s23 + $0x18] sm:$0x30 pattern:$0x76325410]  ;;  %v356_v25 = vshrl.u32 %v236_v14, 16  ;;  %v359_v26 = vshll.u32 %v236_v14, 16 }
  0x18   : > { %v2647_v28 = vld.sshfl [vmem:[%s3023_s23 + $0x1c] sm:$0x1 pattern:$0x76325410]  ;;  %v266_v29 = vcombine.high %v2646_v24, %v2646_v24  ;;  %v348_v30 = vor.u32 %v347_v23, %v344_v22  ;;  %v367_v31 = vrot.slane %v365_v19, 7  ;;  %v370_v32 = vshrl.u32 %v251_v21, 16 }
  0x19   : > { %v358_v33 = vrot.slane %v356_v25, 6  ;;  %v361_v34 = vrot.slane %v359_v26, 7  ;;  %v373_v35 = vshll.u32 %v251_v21, 16  ;;  %v379_v36 = vshll.u32 %v2645_v20, 16 }
  0x1a   : > { %v349_v38 = vrot.slane %v348_v30, 2  ;;  %v372_v39 = vrot.slane %v370_v32, 6  ;;  %v384_v40 = vshrl.u32 %v266_v29, 16  ;;  %v387_v41 = vshll.u32 %v266_v29, 16 }
  0x1b   : > { %v362_v42 = vor.u32 %v361_v34, %v358_v33  ;;  %v375_v43 = vrot.slane %v373_v35, 7  ;;  %v381_v44 = vrot.slane %v379_v36, 7  ;;  %v393_v45 = vshll.u32 %v2647_v28, 16  ;;  %v3049_v46 = vld [vmem:[%s3023_s23] ss:$8 sps:$4 sm:$0x33]  }
  0x1c   : > { %v386_v47 = vrot.slane %v384_v40, 6  ;;  %v389_v48 = vrot.slane %v387_v41, 7  ;;  %v2706_v49 = vld.sshfl [vmem:[%s3023_s23 + $0x48] sm:$0x30 pattern:$0x76325410]  ;;  %v354_v50 = vsel %vm3044_vm6, %v349_v38, %v353_v18  ;;  %v568_v7 = vrot.slane %v3049_v46, %v3055_v57 }
  0x1d   : > { %v363_v51 = vrot.slane %v362_v42, 2  ;;  %v376_v52 = vor.u32 %v375_v43, %v372_v39  ;;  %v2707_v53 = vld.sshfl [vmem:[%s3023_s23 + $0x4c] sm:$0x1 pattern:$0x76325410]  ;;  %v1107_v54 = vcombine.high %v2706_v49, %v2706_v49  ;;  %v395_v56 = vrot.slane %v393_v45, 7 }
  0x1e   : > { %v390_v55 = vor.u32 %v389_v48, %v386_v47  ;;  %v2708_v58 = vld.sshfl [vmem:[%s3023_s23 + $0x50] sm:$0x30 pattern:$0x76325410]  ;;  %v1230_v59 = vshll.u32 %v2707_v53, 16 }
  0x1f   : > { %v3060_v60 = vsel %vm3044_vm6, %v363_v51, %v367_v31  ;;  %v377_v61 = vrot.slane %v376_v52, 2  ;;  %v2709_v62 = vld.sshfl [vmem:[%s3023_s23 + $0x54] sm:$0x1 pattern:$0x76325410]  ;;  %v1122_v63 = vcombine.high %v2708_v58, %v2708_v58  ;;  %v1221_v0 = vshrl.u32 %v1107_v54, 16 }
  0x20   : > { %v391_v1 = vrot.slane %v390_v55, 2  ;;  %v456_v2 = vcombine.low %v354_v50, %v3060_v60  ;;  %v2710_v5 = vld.sshfl [vmem:[%s3023_s23 + $0x58] sm:$0x30 pattern:$0x76325410]  ;;  %v1224_v6 = vshll.u32 %v1107_v54, 16 }
  0x21   : > { %v3069_v8 = vsel %vm3044_vm6, %v377_v61, %v381_v44  ;;  %v2711_v9 = vld.sshfl [vmem:[%s3023_s23 + $0x5c] sm:$0x1 pattern:$0x76325410]  ;;  %v1137_v10 = vcombine.high %v2710_v5, %v2710_v5  ;;  %v1223_v11 = vrot.slane %v1221_v0, 6  ;;  %v1232_v12 = vrot.slane %v1230_v59, 7 }
  0x22   : > { %v3074_v13 = vsel %vm3044_vm6, %v391_v1, %v395_v56  ;;  %v464_v14 = vrot.slane %v456_v2, %v3055_v57  ;;  %v2712_v15 = vld.sshfl [vmem:[%s3023_s23 + $0x60] sm:$0x30 pattern:$0x76325410]  ;;  %v1226_v16 = vrot.slane %v1224_v6, 7  ;;  %v1235_v17 = vshrl.u32 %v1122_v63, 16 }
  0x23   : > { %v457_v18 = vcombine.low %v3069_v8, %v3074_v13  ;;  %v2713_v19 = vld.sshfl [vmem:[%s3023_s23 + $0x64] sm:$0x1 pattern:$0x76325410]  ;;  %v1152_v20 = vcombine.high %v2712_v15, %v2712_v15  ;;  %v1238_v21 = vshll.u32 %v1122_v63, 16  ;;  %v1244_v22 = vshll.u32 %v2709_v62, 16 }
  0x24   : > { %v1227_v23 = vor.u32 %v1226_v16, %v1223_v11  ;;  %v1237_v24 = vrot.slane %v1235_v17, 6  ;;  %v1249_v25 = vshrl.u32 %v1137_v10, 16  ;;  %v1252_v26 = vshll.u32 %v1137_v10, 16  ;;  %v2953_v27 = vld [vmem:[%s3023_s23 + $0x10] ss:$8 sps:$4 sm:$0x33]  }
  0x25   : > { %v471_v28 = vrot.slane %v457_v18, %v3055_v57  ;;  %v1240_v29 = vrot.slane %v1238_v21, 7  ;;  %v1246_v30 = vrot.slane %v1244_v22, 7  ;;  %v1258_v31 = vshll.u32 %v2711_v9, 16 }
  0x26   : > { %v1228_v32 = vrot.slane %v1227_v23, 2  ;;  %v1251_v33 = vrot.slane %v1249_v25, 6  ;;  %v1254_v34 = vrot.slane %v1252_v26, 7  ;;  %v1263_v35 = vshrl.u32 %v1152_v20, 16 }
  0x27   : > { %v472_v36 = vcombine.low %v464_v14, %v471_v28  ;;  %v1241_v38 = vor.u32 %v1240_v29, %v1237_v24  ;;  %v1260_v39 = vrot.slane %v1258_v31, 7  ;;  %v1266_v40 = vshll.u32 %v1152_v20, 16  ;;  %v2648_v41 = vld.sshfl [vmem:[%s3023_s23 + $0x20] sm:$0x30 pattern:$0x76325410] }
  0x28   : > { %v1233_v42 = vsel %vm3044_vm6, %v1228_v32, %v1232_v12  ;;  %v1255_v43 = vor.u32 %v1254_v34, %v1251_v33  ;;  %v1265_v44 = vrot.slane %v1263_v35, 6  ;;  %v1272_v45 = vshll.u32 %v2713_v19, 16  ;;  %v2649_v46 = vld.sshfl [vmem:[%s3023_s23 + $0x24] sm:$0x1 pattern:$0x76325410] }
  0x29   : > { %2854 = vmatprep.mubr.msk.bf16.mxu1 %vm496_vm7, %v472_v36  ;;  %v1242_v47 = vrot.slane %v1241_v38, 2  ;;  %v1268_v48 = vrot.slane %v1266_v40, 7  ;;  %v2650_v49 = vld.sshfl [vmem:[%s3023_s23 + $0x28] sm:$0x30 pattern:$0x76325410]  ;;  %v281_v50 = vcombine.high %v2648_v41, %v2648_v41  ;;  %v575_v51 = vrot.slane %v2953_v27, %v3055_v57 }
  0x2a   : > { %v1256_v52 = vrot.slane %v1255_v43, 2  ;;  %v1274_v53 = vrot.slane %v1272_v45, 7  ;;  %v296_v54 = vcombine.high %v2650_v49, %v2650_v49  ;;  %v2114_v55 = vcombine.low %v3060_v60, %v3069_v8  ;;  %v2652_v59 = vld.sshfl [vmem:[%s3023_s23 + $0x30] sm:$0x30 pattern:$0x76325410] }
  0x2b   : > { %v1247_v56 = vsel %vm3044_vm6, %v1242_v47, %v1246_v30  ;;  %v1269_v58 = vor.u32 %v1268_v48, %v1265_v44  ;;  %v398_v61 = vshrl.u32 %v281_v50, 16  ;;  %v401_v62 = vshll.u32 %v281_v50, 16  ;;  %v2651_v0 = vld.sshfl [vmem:[%s3023_s23 + $0x2c] sm:$0x1 pattern:$0x76325410] }
  0x2c   : > { %v1335_v63 = vcombine.low %v1233_v42, %v1247_v56  ;;  %v311_v1 = vcombine.high %v2652_v59, %v2652_v59  ;;  %v407_v2 = vshll.u32 %v2649_v46, 16  ;;  %v1261_v5 = vsel %vm3044_vm6, %v1256_v52, %v1260_v39  ;;  %v2654_v9 = vld.sshfl [vmem:[%s3023_s23 + $0x38] sm:$0x30 pattern:$0x76325410] }
  0x2d   : > { %v1270_v6 = vrot.slane %v1269_v58, 2  ;;  %v400_v10 = vrot.slane %v398_v61, 6  ;;  %v3099_v60 = vcombine.low %v568_v7, %v575_v51  ;;  %v2653_v11 = vld.sshfl [vmem:[%s3023_s23 + $0x34] sm:$0x1 pattern:$0x76325410]  ;;  %v326_v12 = vcombine.high %v2654_v9, %v2654_v9 }
  0x2e   : > { %v1343_v8 = vrot.slane %v1335_v63, %v3055_v57  ;;  %v403_v14 = vrot.slane %v401_v62, 7  ;;  %v409_v15 = vrot.slane %v407_v2, 7  ;;  %v2655_v17 = vld.sshfl [vmem:[%s3023_s23 + $0x3c] sm:$0x1 pattern:$0x76325410] }
  0x2f   : > { %v1275_v16 = vsel %vm3044_vm6, %v1270_v6, %v1274_v53  ;;  %v412_v18 = vshrl.u32 %v296_v54, 16  ;;  %v415_v19 = vshll.u32 %v296_v54, 16  ;;  %v421_v20 = vshll.u32 %v2651_v0, 16  ;;  %v3109_v38 = vld [vmem:[%s3023_s23 + $0x20] ss:$8 sps:$4 sm:$0x33]  }
  0x30   : > { %v1336_v21 = vcombine.low %v1261_v5, %v1275_v16  ;;  %v404_v22 = vor.u32 %v403_v14, %v400_v10  ;;  %v426_v23 = vshrl.u32 %v311_v1, 16  ;;  %v429_v24 = vshll.u32 %v311_v1, 16  ;;  %v2714_v7 = vld.sshfl [vmem:[%s3023_s23 + $0x68] sm:$0x30 pattern:$0x76325410] }
  0x31   : > { %v414_v25 = vrot.slane %v412_v18, 6  ;;  %v417_v26 = vrot.slane %v415_v19, 7  ;;  %v423_v27 = vrot.slane %v421_v20, 7  ;;  %v435_v28 = vshll.u32 %v2653_v11, 16 }
  0x32   : > { %v1350_v29 = vrot.slane %v1336_v21, %v3055_v57  ;;  %v405_v30 = vrot.slane %v404_v22, 2  ;;  %v428_v31 = vrot.slane %v426_v23, 6  ;;  %v431_v32 = vrot.slane %v429_v24, 7  ;;  %v3117_v48 = vld [vmem:[%s3023_s23 + $0x30] ss:$8 sps:$4 sm:$0x33]  }
  0x33   : > { %v418_v33 = vor.u32 %v417_v26, %v414_v25  ;;  %v437_v34 = vrot.slane %v435_v28, 7  ;;  %v440_v35 = vshrl.u32 %v326_v12, 16  ;;  %v443_v36 = vshll.u32 %v326_v12, 16 }
  0x34   : > { %v1351_v39 = vcombine.low %v1343_v8, %v1350_v29  ;;  %v3113_v40 = vsel %vm3044_vm6, %v405_v30, %v409_v15  ;;  %v432_v41 = vor.u32 %v431_v32, %v428_v31  ;;  %v449_v42 = vshll.u32 %v2655_v17, 16  ;;  %v2715_v43 = vld.sshfl [vmem:[%s3023_s23 + $0x6c] sm:$0x1 pattern:$0x76325410] }
  0x35   : > { %v419_v44 = vrot.slane %v418_v33, 2  ;;  %v442_v45 = vrot.slane %v440_v35, 6  ;;  %v445_v46 = vrot.slane %v443_v36, 7  ;;  %v1167_v47 = vcombine.high %v2714_v7, %v2714_v7 }
  0x36   : > { %2878 = vmatprep.mubr.msk.bf16.mxu0 %vm496_vm7, %v1351_v39  ;;  %v433_v49 = vrot.slane %v432_v41, 2  ;;  %v451_v50 = vrot.slane %v449_v42, 7  ;;  %v2716_v51 = vld.sshfl [vmem:[%s3023_s23 + $0x70] sm:$0x30 pattern:$0x76325410]  ;;  %v585_v52 = vrot.slane %v3109_v38, %v3055_v57  ;;  %v3124_v53 = vrot.slane %v2114_v55, %v3055_v57 }
  0x37   : > { %v3128_v54 = vsel %vm3044_vm6, %v419_v44, %v423_v27  ;;  %v446_v56 = vor.u32 %v445_v46, %v442_v45  ;;  %v2717_v58 = vld.sshfl [vmem:[%s3023_s23 + $0x74] sm:$0x1 pattern:$0x76325410]  ;;  %v1182_v59 = vcombine.high %v2716_v51, %v2716_v51  ;;  %v1277_v61 = vshrl.u32 %v1167_v47, 16 }
  0x38   : > { %v473_v62 = vcombine.low %v3113_v40, %v3128_v54  ;;  %v2718_v63 = vld.sshfl [vmem:[%s3023_s23 + $0x78] sm:$0x30 pattern:$0x76325410]  ;;  %v1280_v0 = vshll.u32 %v1167_v47, 16  ;;  %v1286_v1 = vshll.u32 %v2715_v43, 16  ;;  %v2115_v2 = vcombine.low %v3074_v13, %v3113_v40 }
  0x39   : > { %v3138_v55 = vsel %vm3044_vm6, %v433_v49, %v437_v34  ;;  %v447_v5 = vrot.slane %v446_v56, 2  ;;  %v2719_v6 = vld.sshfl [vmem:[%s3023_s23 + $0x7c] sm:$0x1 pattern:$0x76325410]  ;;  %v1197_v9 = vcombine.high %v2718_v63, %v2718_v63  ;;  %v1279_v10 = vrot.slane %v1277_v61, 6 }
  0x3a   : > { %v481_v8 = vrot.slane %v473_v62, %v3055_v57  ;;  %v2720_v11 = vld.sshfl [vmem:[%s3023_s23 + $0x80] sm:$0x30 pattern:$0x76325410]  ;;  %v1282_v12 = vrot.slane %v1280_v0, 7  ;;  %v1288_v14 = vrot.slane %v1286_v1, 7  ;;  %v592_v15 = vrot.slane %v3117_v48, %v3055_v57 }
  0x3b   : > { %v3147_v16 = vsel %vm3044_vm6, %v447_v5, %v451_v50  ;;  %v1212_v17 = vcombine.high %v2720_v11, %v2720_v11  ;;  %v1291_v18 = vshrl.u32 %v1182_v59, 16  ;;  %v1294_v19 = vshll.u32 %v1182_v59, 16  ;;  %v2721_v21 = vld.sshfl [vmem:[%s3023_s23 + $0x84] sm:$0x1 pattern:$0x76325410] }
  0x3c   : > { %v474_v20 = vcombine.low %v3138_v55, %v3147_v16  ;;  %v1283_v22 = vor.u32 %v1282_v12, %v1279_v10  ;;  %v1300_v23 = vshll.u32 %v2717_v58, 16  ;;  %v1305_v24 = vshrl.u32 %v1197_v9, 16  ;;  %v2735_v32 = vld.sshfl [vmem:[%s3023_s23 + $0x48] sm:$0x13 pattern:$0x76325410] }
  0x3d   : > { %v1293_v7 = vrot.slane %v1291_v18, 6  ;;  %v1296_v25 = vrot.slane %v1294_v19, 7  ;;  %v1308_v26 = vshll.u32 %v1197_v9, 16  ;;  %v1314_v27 = vshll.u32 %v2719_v6, 16  ;;  %v3157_v39 = vld [vmem:[%s3351_s1 + $0x10] sm:$0xff]  }
  0x3e   : > { %v488_v28 = vrot.slane %v474_v20, %v3055_v57  ;;  %v1284_v29 = vrot.slane %v1283_v22, 2  ;;  %v1302_v30 = vrot.slane %v1300_v23, 7  ;;  %v1307_v31 = vrot.slane %v1305_v24, 6 }
  0x3f   : > { %v1297_v33 = vor.u32 %v1296_v25, %v1293_v7  ;;  %v1310_v34 = vrot.slane %v1308_v26, 7  ;;  %v1316_v35 = vrot.slane %v1314_v27, 7  ;;  %v1319_v36 = vshrl.u32 %v1212_v17, 16 }
  0x40   : > { %v489_v41 = vcombine.low %v481_v8, %v488_v28  ;;  %v1289_v42 = vsel %vm3044_vm6, %v1284_v29, %v1288_v14  ;;  %v1322_v43 = vshll.u32 %v1212_v17, 16  ;;  %v1328_v44 = vshll.u32 %v2721_v21, 16  ;;  %v2736_v45 = vld.sshfl [vmem:[%s3023_s23 + $0x50] sm:$0x13 pattern:$0x76325410] }
  0x41   : > { %v1298_v46 = vrot.slane %v1297_v33, 2  ;;  %v1311_v47 = vor.u32 %v1310_v34, %v1307_v31  ;;  %v1321_v49 = vrot.slane %v1319_v36, 6  ;;  %v2737_v50 = vld.sshfl [vmem:[%s3023_s23 + $0x58] sm:$0x13 pattern:$0x76325410]  ;;  %v1457_v51 = vcombine.high %v2735_v32, %v2735_v32 }
  0x42   : > { %2855 = vmatmul.mubr.msk.bf16.vlgmr.msra.gmra.mrb[0].mxu1 %vm496_vm7, %v489_v41  ;;  %v1324_v56 = vrot.slane %v1322_v43, 7  ;;  %v1330_v58 = vrot.slane %v1328_v44, 7  ;;  %v2738_v59 = vld.sshfl [vmem:[%s3023_s23 + $0x60] sm:$0x13 pattern:$0x76325410]  ;;  %v1465_v61 = vcombine.high %v2736_v45, %v2736_v45  ;;  %v1473_v62 = vcombine.high %v2737_v50, %v2737_v50 }
  0x43   : > { %v1303_v63 = vsel %vm3044_vm6, %v1298_v46, %v1302_v30  ;;  %v1312_v0 = vrot.slane %v1311_v47, 2  ;;  %2859 = vmatpush3.bf16.msra.mxu1 %v3028_v4  ;;  %2860 = vmatprep.mubr.msk.bf16.mxu1 %vm496_vm7, %v3099_v60  ;;  %v1481_v1 = vcombine.high %v2738_v59, %v2738_v59  ;;  %v1515_v5 = vshrl.u32 %v2735_v32, 16  ;;  %v3181_v44 = vld [vmem:[%s3351_s1 + $0x30] sm:$0xff]  }
  0x44   : > { %v1325_v6 = vor.u32 %v1324_v56, %v1321_v49  ;;  %v1352_v9 = vcombine.low %v1289_v42, %v1303_v63  ;;  %v1518_v10 = vshll.u32 %v2735_v32, 16  ;;  %v1524_v8 = vshll.u32 %v1457_v51, 16  ;;  %2864 = vmatprep.subr.bf16.mxu1 %v3157_v39  ;;  %v3195_v51 = vld [vmem:[%s3351_s1 + $0x18] sm:$0xff]  }
  0x45   : > { %v1317_v11 = vsel %vm3044_vm6, %v1312_v0, %v1316_v35  ;;  %v1517_v12 = vrot.slane %v1515_v5, 6  ;;  %v1529_v14 = vshrl.u32 %v2736_v45, 16  ;;  %v1532_v17 = vshll.u32 %v2736_v45, 16 }
  0x46   : > { %v1326_v18 = vrot.slane %v1325_v6, 2  ;;  %v1360_v4 = vrot.slane %v1352_v9, %v3055_v57  ;;  %v1520_v19 = vrot.slane %v1518_v10, 7  ;;  %v1526_v20 = vrot.slane %v1524_v8, 7 }
  0x47   : > { %v1531_v60 = vrot.slane %v1529_v14, 6  ;;  %v1534_v21 = vrot.slane %v1532_v17, 7  ;;  %v1538_v22 = vshll.u32 %v1465_v61, 16  ;;  %v1543_v23 = vshrl.u32 %v2737_v50, 16 }
  0x48   : > { %v1331_v24 = vsel %vm3044_vm6, %v1326_v18, %v1330_v58  ;;  %v1521_v7 = vor.u32 %v1520_v19, %v1517_v12  ;;  %v1546_v25 = vshll.u32 %v2737_v50, 16  ;;  %v1552_v26 = vshll.u32 %v1473_v62, 16  ;;  %v2739_v35 = vld.sshfl [vmem:[%s3023_s23 + $0x68] sm:$0x13 pattern:$0x76325410] }
  0x49   : > { %v1353_v27 = vcombine.low %v1317_v11, %v1331_v24  ;;  %v1535_v28 = vor.u32 %v1534_v21, %v1531_v60  ;;  %v1540_v29 = vrot.slane %v1538_v22, 7  ;;  %v1545_v30 = vrot.slane %v1543_v23, 6  ;;  %v2740_v50 = vld.sshfl [vmem:[%s3023_s23 + $0x70] sm:$0x13 pattern:$0x76325410] }
  0x4a   : > { %v1522_v31 = vrot.slane %v1521_v7, 2  ;;  %v1548_v32 = vrot.slane %v1546_v25, 7  ;;  %v1554_v33 = vrot.slane %v1552_v26, 7  ;;  %v1557_v34 = vshrl.u32 %v2738_v59, 16 }
  0x4b   : > { %v1367_v36 = vrot.slane %v1353_v27, %v3055_v57  ;;  %v1536_v41 = vrot.slane %v1535_v28, 2  ;;  %v1560_v42 = vshll.u32 %v2738_v59, 16  ;;  %v1566_v43 = vshll.u32 %v1481_v1, 16 }
  0x4c   : > { %v1527_v45 = vsel %vm3044_vm6, %v1522_v31, %v1526_v20  ;;  %v1549_v46 = vor.u32 %v1548_v32, %v1545_v30  ;;  %v1559_v47 = vrot.slane %v1557_v34, 6  ;;  %v593_v49 = vcombine.low %v585_v52, %v592_v15  ;;  %v2741_v62 = vld.sshfl [vmem:[%s3023_s23 + $0x78] sm:$0x13 pattern:$0x76325410] }
  0x4d   : > { %v1368_v56 = vcombine.low %v1360_v4, %v1367_v36  ;;  %v1541_v58 = vsel %vm3044_vm6, %v1536_v41, %v1540_v29  ;;  %v1562_v59 = vrot.slane %v1560_v42, 7  ;;  %v1568_v61 = vrot.slane %v1566_v43, 7  ;;  %v2742_v48 = vld.sshfl [vmem:[%s3023_s23 + $0x80] sm:$0x13 pattern:$0x76325410] }
  0x4e   : > { %v1550_v63 = vrot.slane %v1549_v46, 2  ;;  %v1629_v0 = vcombine.low %v1527_v45, %v1541_v58  ;;  %2861 = vmatmul.mubr.msk.bf16.vlgmr.msra.gmra.mrb[0].mxu1 %vm496_vm7, %v593_v49  ;;  %v1489_v38 = vcombine.high %v2739_v35, %v2739_v35  ;;  %v1497_v52 = vcombine.high %v2740_v50, %v2740_v50  ;;  %v2664_v34 = vld.sshfl [vmem:[%s3023_s23] sm:$0x13 pattern:$0x76325410] }
  0x4f   : > { %2879 = vmatmul.mubr.msk.bf16.vlgmr.msra.gmra.mrb[0].mxu0 %vm496_vm7, %v1368_v56  ;;  %v1563_v15 = vor.u32 %v1562_v59, %v1559_v47  ;;  %v1505_v1 = vcombine.high %v2741_v62, %v2741_v62  ;;  %v1513_v5 = vcombine.high %v2742_v48, %v2742_v48  ;;  %v1571_v6 = vshrl.u32 %v2739_v35, 16  ;;  %2865 = vmatpush3.bf16.msra.mxu1 %v3157_v39  ;;  %v2667_v59 = vld.sshfl [vmem:[%s3023_s23 + $0x18] sm:$0x13 pattern:$0x76325410] }
  0x50   : > { %2883 = vmatpush3.bf16.msra.mxu0 %v3018_v3  ;;  %v1555_v9 = vsel %vm3044_vm6, %v1550_v63, %v1554_v33  ;;  %v1637_v10 = vrot.slane %v1629_v0, %v3055_v57  ;;  %v1574_v8 = vshll.u32 %v2739_v35, 16  ;;  %v1580_v11 = vshll.u32 %v1489_v38, 16  ;;  %2870 = vmatprep.subr.bf16.mxu1 %v3195_v51  ;;  %v2665_v35 = vld.sshfl [vmem:[%s3023_s23 + $0x8] sm:$0x13 pattern:$0x76325410] }
  0x51   : > { %v1564_v12 = vrot.slane %v1563_v15, 2  ;;  %2888 = vmatprep.subr.bf16.mxu0 %v3181_v44  ;;  %v1573_v14 = vrot.slane %v1571_v6, 6  ;;  %v1585_v17 = vshrl.u32 %v2740_v50, 16  ;;  %v1588_v18 = vshll.u32 %v2740_v50, 16 }
  0x52   : > { %v1576_v4 = vrot.slane %v1574_v8, 7  ;;  %v1582_v19 = vrot.slane %v1580_v11, 7  ;;  %v1594_v39 = vshll.u32 %v1497_v52, 16  ;;  %v1599_v20 = vshrl.u32 %v2741_v62, 16 }
  0x53   : > { %v1569_v3 = vsel %vm3044_vm6, %v1564_v12, %v1568_v61  ;;  %v1587_v60 = vrot.slane %v1585_v17, 6  ;;  %v1590_v21 = vrot.slane %v1588_v18, 7  ;;  %v1602_v22 = vshll.u32 %v2741_v62, 16 }
  0x54   : > { %v1630_v23 = vcombine.low %v1555_v9, %v1569_v3  ;;  %v1577_v24 = vor.u32 %v1576_v4, %v1573_v14  ;;  %v1596_v7 = vrot.slane %v1594_v39, 7  ;;  %v1601_v25 = vrot.slane %v1599_v20, 6  ;;  %v2666_v50 = vld.sshfl [vmem:[%s3023_s23 + $0x10] sm:$0x13 pattern:$0x76325410] }
  0x55   : > { %v1591_v26 = vor.u32 %v1590_v21, %v1587_v60  ;;  %v1604_v27 = vrot.slane %v1602_v22, 7  ;;  %v1608_v28 = vshll.u32 %v1505_v1, 16  ;;  %v1613_v29 = vshrl.u32 %v2742_v48, 16  ;;  %v2958_v20 = vld [vmem:[%s3023_s23 + $0x8] ss:$8 sps:$4 sm:$0x33]  }
  0x56   : > { %v1644_v30 = vrot.slane %v1630_v23, %v3055_v57  ;;  %v1578_v31 = vrot.slane %v1577_v24, 2  ;;  %v1616_v32 = vshll.u32 %v2742_v48, 16  ;;  %v1622_v33 = vshll.u32 %v1513_v5, 16 }
  0x57   : > { %v1592_v36 = vrot.slane %v1591_v26, 2  ;;  %v1605_v41 = vor.u32 %v1604_v27, %v1601_v25  ;;  %v1610_v42 = vrot.slane %v1608_v28, 7  ;;  %v1615_v43 = vrot.slane %v1613_v29, 6  ;;  %v2959_v26 = vld [vmem:[%s3023_s23 + $0x18] ss:$8 sps:$4 sm:$0x33]  }
  0x58   : > { %v1645_v45 = vcombine.low %v1637_v10, %v1644_v30  ;;  %v1583_v46 = vsel %vm3044_vm6, %v1578_v31, %v1582_v19  ;;  %v1618_v47 = vrot.slane %v1616_v32, 7  ;;  %v1624_v49 = vrot.slane %v1622_v33, 7 }
  0x59   : > { %v1597_v56 = vsel %vm3044_vm6, %v1592_v36, %v1596_v7  ;;  %v1606_v58 = vrot.slane %v1605_v41, 2  ;;  %v678_v61 = vcombine.high %v2664_v34, %v2664_v34  ;;  %v686_v62 = vcombine.high %v2665_v35, %v2665_v35 }
  0x5a   : > { %2884 = vmatprep.mubr.msk.bf16.mxu0 %vm496_vm7, %v1645_v45  ;;  %v1619_v63 = vor.u32 %v1618_v47, %v1615_v43  ;;  %v1646_v0 = vcombine.low %v1583_v46, %v1597_v56  ;;  %v694_v48 = vcombine.high %v2666_v50, %v2666_v50  ;;  %v702_v38 = vcombine.high %v2667_v59, %v2667_v59  ;;  %v3236_v45 = vld [vmem:[%s3351_s1 + $0x38] sm:$0xff]   ;;  %v2669_v46 = vld.sshfl [vmem:[%s3023_s23 + $0x28] sm:$0x13 pattern:$0x76325410] }
  0x5b   : > { %v1611_v52 = vsel %vm3044_vm6, %v1606_v58, %v1610_v42  ;;  %v736_v15 = vshrl.u32 %v2664_v34, 16  ;;  %v739_v1 = vshll.u32 %v2664_v34, 16  ;;  %v745_v5 = vshll.u32 %v678_v61, 16 }
  0x5c   : > { %v1620_v6 = vrot.slane %v1619_v63, 2  ;;  %v1654_v9 = vrot.slane %v1646_v0, %v3055_v57  ;;  %v750_v10 = vshrl.u32 %v2665_v35, 16  ;;  %v753_v8 = vshll.u32 %v2665_v35, 16 }
  0x5d   : > { %v738_v11 = vrot.slane %v736_v15, 6  ;;  %v741_v12 = vrot.slane %v739_v1, 7  ;;  %v747_v14 = vrot.slane %v745_v5, 7  ;;  %v759_v17 = vshll.u32 %v686_v62, 16 }
  0x5e   : > { %v1625_v18 = vsel %vm3044_vm6, %v1620_v6, %v1624_v49  ;;  %v752_v4 = vrot.slane %v750_v10, 6  ;;  %v755_v19 = vrot.slane %v753_v8, 7  ;;  %v764_v39 = vshrl.u32 %v2666_v50, 16 }
  0x5f   : > { %v1647_v3 = vcombine.low %v1611_v52, %v1625_v18  ;;  %v742_v60 = vor.u32 %v741_v12, %v738_v11  ;;  %v761_v21 = vrot.slane %v759_v17, 7  ;;  %v767_v22 = vshll.u32 %v2666_v50, 16  ;;  %v2668_v35 = vld.sshfl [vmem:[%s3023_s23 + $0x20] sm:$0x13 pattern:$0x76325410] }
  0x60   : > { %v756_v23 = vor.u32 %v755_v19, %v752_v4  ;;  %v766_v24 = vrot.slane %v764_v39, 6  ;;  %v773_v7 = vshll.u32 %v694_v48, 16  ;;  %v778_v25 = vshrl.u32 %v2667_v59, 16 }
  0x61   : > { %v1661_v27 = vrot.slane %v1647_v3, %v3055_v57  ;;  %v743_v28 = vrot.slane %v742_v60, 2  ;;  %v769_v29 = vrot.slane %v767_v22, 7  ;;  %v781_v30 = vshll.u32 %v2667_v59, 16  ;;  %v2961_v3 = vld [vmem:[%s3023_s23 + $0x28] ss:$8 sps:$4 sm:$0x33]  }
  0x62   : > { %v757_v31 = vrot.slane %v756_v23, 2  ;;  %v775_v32 = vrot.slane %v773_v7, 7  ;;  %v780_v33 = vrot.slane %v778_v25, 6  ;;  %v787_v34 = vshll.u32 %v702_v38, 16 }
  0x63   : > { %v1662_v36 = vcombine.low %v1654_v9, %v1661_v27  ;;  %v748_v41 = vsel %vm3044_vm6, %v743_v28, %v747_v14  ;;  %v770_v42 = vor.u32 %v769_v29, %v766_v24  ;;  %v783_v43 = vrot.slane %v781_v30, 7  ;;  %v2670_v47 = vld.sshfl [vmem:[%s3023_s23 + $0x30] sm:$0x13 pattern:$0x76325410] }
  0x64   : > { %v2671_v49 = vld.sshfl [vmem:[%s3023_s23 + $0x38] sm:$0x13 pattern:$0x76325410]  ;;  %v3243_v50 = vsel %vm3044_vm6, %v757_v31, %v761_v21  ;;  %v789_v56 = vrot.slane %v787_v34, 7  ;;  %v1756_v58 = vrot.slane %v2958_v20, %v3055_v57  ;;  %v1763_v59 = vrot.slane %v2959_v26, %v3055_v57 }
  0x65   : > { %2885 = vmatmul.mubr.msk.bf16.vlgmr.msra.gmra.mrb[0].mxu0 %vm496_vm7, %v1662_v36  ;;  %v771_v61 = vrot.slane %v770_v42, 2  ;;  %v784_v62 = vor.u32 %v783_v43, %v780_v33  ;;  %v850_v63 = vcombine.low %v748_v41, %v3243_v50  ;;  %v710_v0 = vcombine.high %v2668_v35, %v2668_v35  ;;  %v2962_v27 = vld [vmem:[%s3023_s23 + $0x38] ss:$8 sps:$4 sm:$0x33]  }
  0x66   : > { %2889 = vmatpush3.bf16.msra.mxu0 %v3181_v44  ;;  %v1764_v48 = vcombine.low %v1756_v58, %v1763_v59  ;;  %v718_v38 = vcombine.high %v2669_v46, %v2669_v46  ;;  %v726_v52 = vcombine.high %v2670_v47, %v2670_v47  ;;  %v734_v15 = vcombine.high %v2671_v49, %v2671_v49  ;;  %v2791_v59 = vld.sshfl [vmem:[%s3023_s23 + $0x40] sm:$0x30 pattern:$0x76325410] }
  0x67   : > { %v3252_v1 = vsel %vm3044_vm6, %v771_v61, %v775_v32  ;;  %v785_v5 = vrot.slane %v784_v62, 2  ;;  %v858_v6 = vrot.slane %v850_v63, %v3055_v57  ;;  %2894 = vmatprep.subr.bf16.mxu0 %v3236_v45  ;;  %v792_v9 = vshrl.u32 %v2668_v35, 16  ;;  %v2792_v62 = vld.sshfl [vmem:[%s3023_s23 + $0x44] sm:$0x1 pattern:$0x76325410] }
  0x68   : > { %2890 = vmatprep.mubr.msk.bf16.mxu0 %vm496_vm7, %v1764_v48  ;;  %v795_v10 = vshll.u32 %v2668_v35, 16  ;;  %v801_v8 = vshll.u32 %v710_v0, 16  ;;  %v806_v44 = vshrl.u32 %v2669_v46, 16  ;;  %v809_v11 = vshll.u32 %v2669_v46, 16 }
  0x69   : > { %v3259_v12 = vsel %vm3044_vm6, %v785_v5, %v789_v56  ;;  %v794_v14 = vrot.slane %v792_v9, 6  ;;  %v815_v17 = vshll.u32 %v718_v38, 16  ;;  %v820_v18 = vshrl.u32 %v2670_v47, 16  ;;  %v2964_v35 = vld [vmem:[%s3023_s23 + $0x48] ss:$8 sps:$4 sm:$0x33]  }
  0x6a   : > { %v851_v4 = vcombine.low %v3252_v1, %v3259_v12  ;;  %v797_v19 = vrot.slane %v795_v10, 7  ;;  %v803_v39 = vrot.slane %v801_v8, 7  ;;  %v808_v20 = vrot.slane %v806_v44, 6  ;;  %v2966_v38 = vld [vmem:[%s3351_s1 + $0x40] sm:$0xff]  }
  0x6b   : > { %v811_v60 = vrot.slane %v809_v11, 7  ;;  %v817_v21 = vrot.slane %v815_v17, 7  ;;  %v822_v22 = vrot.slane %v820_v18, 6  ;;  %v823_v23 = vshll.u32 %v2670_v47, 16 }
  0x6c   : > { %v865_v24 = vrot.slane %v851_v4, %v3055_v57  ;;  %v798_v7 = vor.u32 %v797_v19, %v794_v14  ;;  %v829_v25 = vshll.u32 %v726_v52, 16  ;;  %v834_v26 = vshrl.u32 %v2671_v49, 16  ;;  %v2965_v47 = vld [vmem:[%s3023_s23 + $0x58] ss:$8 sps:$4 sm:$0x33]  }
  0x6d   : > { %v812_v28 = vor.u32 %v811_v60, %v808_v20  ;;  %v825_v29 = vrot.slane %v823_v23, 7  ;;  %v837_v30 = vshll.u32 %v2671_v49, 16  ;;  %v843_v31 = vshll.u32 %v734_v15, 16 }
  0x6e   : > { %v866_v32 = vcombine.low %v858_v6, %v865_v24  ;;  %v799_v33 = vrot.slane %v798_v7, 2  ;;  %v836_v34 = vrot.slane %v834_v26, 6  ;;  %v2129_v36 = vrot.slane %v2115_v2, %v3055_v57  ;;  %v2813_v52 = vld.sshfl [vmem:[%s3023_s23 + $0x40] sm:$0x13 pattern:$0x76325410] }
  0x6f   : > { %v813_v41 = vrot.slane %v812_v28, 2  ;;  %v826_v42 = vor.u32 %v825_v29, %v822_v22  ;;  %v831_v43 = vrot.slane %v829_v25, 7  ;;  %v839_v46 = vrot.slane %v837_v30, 7  ;;  %v2967_v25 = vld [vmem:[%s3023_s23 + $0x68] ss:$8 sps:$4 sm:$0x33]  }
  0x70   : > { %2866 = vmatprep.mubr.msk.bf16.mxu1 %vm496_vm7, %v866_v32  ;;  %v804_v49 = vsel %vm3044_vm6, %v799_v33, %v803_v39  ;;  %v1773_v56 = vrot.slane %v2961_v3, %v3055_v57  ;;  %v1780_v58 = vrot.slane %v2962_v27, %v3055_v57  ;;  %v845_v61 = vrot.slane %v843_v31, 7  ;;  %v2968_v27 = vld [vmem:[%s3023_s23 + $0x78] ss:$8 sps:$4 sm:$0x33]  }
  0x71   : > { %v3280_v13 = vsel %vm3044_vm6, %v813_v41, %v817_v21  ;;  %v827_v40 = vrot.slane %v826_v42, 2  ;;  %v840_v2 = vor.u32 %v839_v46, %v836_v34  ;;  %v2130_v48 = vcombine.low %v3124_v53, %v2129_v36 }
  0x72   : > { %v867_v63 = vcombine.low %v804_v49, %v3280_v13  ;;  %v1781_v0 = vcombine.low %v1773_v56, %v1780_v58  ;;  %v977_v6 = vrot.slane %v2964_v35, %v3055_v57  ;;  %v984_v9 = vrot.slane %v2965_v47, %v3055_v57 }
  0x73   : > { %v832_v15 = vsel %vm3044_vm6, %v827_v40, %v831_v43  ;;  %v841_v5 = vrot.slane %v840_v2, 2  ;;  %v1991_v10 = vcombine.high %v2791_v59, %v2791_v59  ;;  %v2131_v8 = vcombine.low %v3128_v54, %v3138_v55 }
  0x74   : > { %2891 = vmatmul.mubr.msk.bf16.vlgmr.msra.gmra.mrb[0].mxu0 %vm496_vm7, %v1781_v0  ;;  %v2107_v44 = vshll.u32 %v2792_v62, 16  ;;  %v2392_v11 = vshrl.u32 %v2813_v52, 16  ;;  %v875_v17 = vrot.slane %v867_v63, %v3055_v57  ;;  %v2292_v19 = vcombine.high %v2813_v52, %v2813_v52 }
  0x75   : > { %v846_v53 = vsel %vm3044_vm6, %v841_v5, %v845_v61  ;;  %2895 = vmatpush3.bf16.msra.mxu0 %v3236_v45  ;;  %2896 = vmatprep.mubr.msk.bf16.mxu0 %vm496_vm7, %v2130_v48  ;;  %v2098_v18 = vshrl.u32 %v1991_v10, 16  ;;  %v2101_v4 = vshll.u32 %v1991_v10, 16  ;;  %v985_v55 = vcombine.low %v977_v6, %v984_v9 }
  0x76   : > { %v868_v14 = vcombine.low %v832_v15, %v846_v53  ;;  %2900 = vmatprep.subr.bf16.mxu0 %v2966_v38  ;;  %v2109_v3 = vrot.slane %v2107_v44, 7  ;;  %v2408_v45 = vcombine.low %v3243_v50, %v3252_v1  ;;  %v2394_v60 = vrot.slane %v2392_v11, 6 }
  0x77   : > { %v2100_v39 = vrot.slane %v2098_v18, 6  ;;  %v2103_v20 = vrot.slane %v2101_v4, 7  ;;  %v2395_v21 = vshll.u32 %v2813_v52, 16  ;;  %v2409_v24 = vcombine.low %v3259_v12, %v804_v49 }
  0x78   : > { %v882_v54 = vrot.slane %v868_v14, %v3055_v57  ;;  %v2401_v7 = vshll.u32 %v2292_v19, 16  ;;  %v2416_v1 = vrot.slane %v2408_v45, %v3055_v57  ;;  %v2139_v32 = vrot.slane %v2131_v8, %v3055_v57 }
  0x79   : > { %v2104_v23 = vor.u32 %v2103_v20, %v2100_v39  ;;  %v2397_v26 = vrot.slane %v2395_v21, 7  ;;  %v2423_v30 = vrot.slane %v2409_v24, %v3055_v57  ;;  %v994_v34 = vrot.slane %v2967_v25, %v3055_v57 }
  0x7a   : > { %v883_v22 = vcombine.low %v875_v17, %v882_v54  ;;  %v2403_v12 = vrot.slane %v2401_v7, 7  ;;  %v2425_v46 = vcombine.low %v3280_v13, %v832_v15  ;;  %v2819_v13 = vld [vmem:[%s3352_s2] ss:$0 sm:$0xff] }
  0x7b   : > { %v2105_v28 = vrot.slane %v2104_v23, 2  ;;  %v2398_v29 = vor.u32 %v2397_v26, %v2394_v60  ;;  %v2424_v36 = vcombine.low %v2416_v1, %v2423_v30 }
  0x7c   : > { %2867 = vmatmul.mubr.msk.bf16.vlgmr.msra.gmra.mrb[0].mxu1 %vm496_vm7, %v883_v22  ;;  %v2433_v47 = vrot.slane %v2425_v46, %v3055_v57 }
  0x7d   : > { %2871 = vmatpush3.bf16.msra.mxu1 %v3195_v51  ;;  %2872 = vmatprep.mubr.msk.bf16.mxu1 %vm496_vm7, %v985_v55  ;;  %v2110_v50 = vsel %vm3044_vm6, %v2105_v28, %v2109_v3  ;;  %v2399_v33 = vrot.slane %v2398_v29, 2  ;;  %v1001_v51 = vrot.slane %v2968_v27, %v3055_v57 }
  0x7e   : > { %v2132_v31 = vcombine.low %v3147_v16, %v2110_v50 }
  0x7f   : > { %v2404_v41 = vsel %vm3044_vm6, %v2399_v33, %v2403_v12  ;;  %v1002_v43 = vcombine.low %v994_v34, %v1001_v51 }
  0x80   : > { %v2146_v35 = vrot.slane %v2132_v31, %v3055_v57  ;;  %v2426_v16 = vcombine.low %v846_v53, %v2404_v41 }
  0x82   : > { %v2147_v42 = vcombine.low %v2139_v32, %v2146_v35  ;;  %v2440_v49 = vrot.slane %v2426_v16, %v3055_v57 }
  0x84   : > { %2897 = vmatmul.mubr.msk.bf16.vlgmr.msra.gmra.mrb[0].mxu0 %vm496_vm7, %v2147_v42  ;;  %v2441_v56 = vcombine.low %v2433_v47, %v2440_v49 }
  0x85   : > { %2901 = vmatpush3.bf16.msra.mxu0 %v2966_v38  ;;  %2902 = vmatprep.mubr.msk.bf16.mxu0 %vm496_vm7, %v2424_v36 }
  0x88   : > { %2873 = vmatmul.mubr.msk.bf16.vlgmr.msra.gmra.mrb[0].mxu1 %vm496_vm7, %v1002_v43 }
  0x90   : > { %2903 = vmatmul.mubr.msk.bf16.vlgmr.msra.gmra.mrb[0].mxu0 %vm496_vm7, %v2441_v56 }
 0x15b   : > { %v2874_v37 = vpop.f32.mrb[0].mxu1 }
 0x15c   : > { %v1049_v58 = vpop.f32.mrb[1].mxu1 }
 0x15d   : > { %v2875_v59 = vpop.f32.mrb[2].mxu1 }
 0x15e   : > { %v1052_v40 = vpop.f32.mrb[3].mxu1 }
 0x163   : > { %v2904_v2 = vpop.f32.mrb[0].mxu0 }
 0x164   : > { %v2906_v61 = vadd.f32 %v2904_v2, %v2874_v37  ;;  %v2488_v62 = vpop.f32.mrb[1].mxu0 }
 0x165   : > { %v2907_v63 = vadd.f32 %v2488_v62, %v1049_v58  ;;  %v2905_v0 = vpop.f32.mrb[2].mxu0 }
 0x166   : > { %v2516_v48 = vadd.f32 %v2906_v61, %v2819_v13  ;;  %v2908_v38 = vadd.f32 %v2905_v0, %v2875_v59  ;;  %v2491_v52 = vpop.f32.mrb[3].mxu0 }
 0x167   : > { %v2514_v15 = vadd.f32 %v2907_v63, %v2819_v13  ;;  %v2909_v5 = vadd.f32 %v2491_v52, %v1052_v40 }
 0x168   : > { %v2517_v6 = vadd.f32 %v2908_v38, %v2819_v13  ;;  %v2520_v10 = vmax.f32 %v2516_v48, 0.0 }
 0x169   : > { %v2515_v9 = vadd.f32 %v2909_v5, %v2819_v13  ;;  %v2518_v53 = vmax.f32 %v2514_v15, 0.0 }
 0x16a   : > { %v2521_v8 = vmax.f32 %v2517_v6, 0.0 }
 0x16b   : > { %v2519_v44 = vmax.f32 %v2515_v9, 0.0 }
 0x16c   : > { %v2523_v11 = vpack.c.bf16 %v2521_v8, %v2520_v10  ;;  %v2821_v14 = vpack.c.bf16 %v2521_v8, %v2521_v8 }
 0x16d   : > { %v2522_v17 = vpack.c.bf16 %v2519_v44, %v2518_v53  ;;  %v2820_v18 = vpack.c.bf16 %v2519_v44, %v2519_v44 }
 0x16e   : > { %v2550_v4 = vrot.slane %v2523_v11, %v3055_v57  ;;  %v2557_v19 = vrot.slane %v2821_v14, %v3055_v57 }
 0x16f   : > { %v2533_v54 = vrot.slane %v2522_v17, %v3055_v57  ;;  %v2540_v55 = vrot.slane %v2820_v18, %v3055_v57 }
 0x170   : > { %v2558_v39 = vcombine.high %v2550_v4, %v2550_v4  ;;  %v2559_v20 = vcombine.high %v2557_v19, %v2557_v19  ;;  %2573 = vst.msk [vmem:[%s170_s16 + $0x8] sm:$0x3] %vm2568_vm8, %v2550_v4  ;;  %2575 = vst.msk [vmem:[%s170_s16 + $0xc] sm:$0x3] %vm2568_vm8, %v2557_v19 }
 0x171   : > { %v2541_v3 = vcombine.high %v2533_v54, %v2533_v54  ;;  %v2542_v45 = vcombine.high %v2540_v55, %v2540_v55  ;;  %2569 = vst.msk [vmem:[%s170_s16] sm:$0x3] %vm2568_vm8, %v2533_v54  ;;  %2571 = vst.msk [vmem:[%s170_s16 + $0x4] sm:$0x3] %vm2568_vm8, %v2540_v55 }
 0x172   : > { %2574 = vst.msk [vmem:[%s170_s16 + $0xa] sm:$0x3] %vm2568_vm8, %v2558_v39  ;;  %2576 = vst.msk [vmem:[%s170_s16 + $0xe] sm:$0x3] %vm2568_vm8, %v2559_v20 }
 0x173   : > { %2570 = vst.msk [vmem:[%s170_s16 + $0x2] sm:$0x3] %vm2568_vm8, %v2541_v3  ;;  %2572 = vst.msk [vmem:[%s170_s16 + $0x6] sm:$0x3] %vm2568_vm8, %v2542_v45 }
 0x174 PF: > { %s13_s12 = sadd.s32 1, %s2975_s12  }
 0x175   : > { %p10_p4 = scmp.ge.s32.totalorder %s13_s12, 4  }
 0x177   :  { %12 = sbr.rel (!%p10_p4) target bundleno = 1 (0x1), region = 72 }

// kernel: _lambda_.10
= control target key start
LH: loop header
LB: loop body
LE: loop exit
PB: predicated region body
PF: predicated region fallthrough
CT: control target
= control target key end

     0   :  { %s3377_s12 = smov 0   ;;  %s3816_s0 = inlined_call_operand.vmem [shape: bf16[2,18,6,32], index: 0, kind: input, shape index: {}]   ;;  %s3817_s1 = inlined_call_operand.vmem [shape: bf16[9,32,64], index: 1, kind: input, shape index: {}]   ;;  %s3818_s2 = inlined_call_operand.vmem [shape: f32[1,64], index: 2, kind: input, shape index: {}]   ;;  %s3819_s3 = inlined_call_operand.vmem [shape: bf16[2,8,2,64], index: 3, kind: output, shape index: {}]  }
   0x1 LB: > { %s2979_s13 = sadd.s32 4294967295, %s3352_s12   ;;  %p2983_p0 = scmp.ge.s32.totalorder %s3352_s12, 1  ;;  %s3352_s12 = sphi %s3377_s12, %s13_s12  }
   0x2   : > { %p137_p1 = scmp.lt.s32.totalorder %s3352_s12, 3 }
   0x4   : > { %p138_p2 = pnand %p2983_p0, %p137_p1 }
   0x5   : > { %v3304_v0 = vld [vmem:[%s3817_s1 + $0x10] sm:$0xff] (!%p138_p2)   ;;  %v209_v1 = vlaneseq (!%p138_p2)  ;;  %v3354_v2 = vmov (!%p138_p2), 0.0   ;;  %v3305_v3 = vld [vmem:[%s3817_s1] sm:$0xff] (!%p138_p2)   ;;  %v3306_v4 = vld [vmem:[%s3817_s1 + $0x18] sm:$0xff] (!%p138_p2)   ;;  %vm3355_vm0 = vmmov (!%p138_p2), 0   ;;  %p160_p3 = scmp.lt.s32.totalorder (!%p138_p2), %s2979_s13, 1 }
   0x6   : > { %141 = sbr.rel (%p138_p2) target bundleno = 338 (0x152), region = 32  ;;  %3220 = vmatprep.subr.bf16.mxu0 (!%p138_p2), %v3354_v2  ;;  %3228 = vmatprep.subr.bf16.mxu1 (!%p138_p2), %v3354_v2  ;;  %v3307_v5 = vld [vmem:[%s3817_s1 + $0x8] sm:$0xff] (!%p138_p2)   ;;  %vm382_vm1 = vsmask.f32 (!%p138_p2), 256  ;;  %v3356_v7 = vmov (!%p138_p2), 1966171168  }
   0x7   : > { %3221 = vmatpush3.bf16.msra.mxu0 (!%p138_p2), %v3304_v0  ;;  %3224 = vmatprep.mubr.msk.bf16.mxu0 (!%p138_p2), %vm3355_vm0, %v3354_v2  ;;  %v210_v6 = vshrl.u32 (!%p138_p2), %v209_v1, 7  ;;  %v207_v8 = vunpack.c.l.s4 (!%p138_p2), %v3356_v7  ;;  %vm383_vm2 = vsmask.f32 (!%p138_p2), 1284  ;;  %vm385_vm3 = vsmask.f32 (!%p138_p2), 2312 }
   0x8   : > { %3229 = vmatpush3.bf16.msra.mxu1 (!%p138_p2), %v3305_v3  ;;  %3222 = vmatprep.subr.bf16.mxu0 (!%p138_p2), %v3354_v2  ;;  %vm387_vm4 = vsmask.f32 (!%p138_p2), 3340  ;;  %vm384_vm5 = vmor (!%p138_p2), %vm382_vm1, %vm383_vm2  ;;  %vm389_vm6 = vsmask.f32 (!%p138_p2), 4368  ;;  %vm391_vm8 = vsmask.f32 (!%p138_p2), 5396 }
   0x9   : > { %3230 = vmatprep.subr.bf16.mxu1 (!%p138_p2), %v3354_v2  ;;  %3232 = vmatprep.mubr.msk.bf16.mxu1 (!%p138_p2), %vm3355_vm0, %v3354_v2  ;;  %v208_v9 = vunpack.c.0.s8 (!%p138_p2), %v207_v8  ;;  %vm386_vm7 = vmor (!%p138_p2), %vm384_vm5, %vm385_vm3  ;;  %vm393_vm9 = vsmask.f32 (!%p138_p2), 6424  ;;  %vm395_vm11 = vsmask.f32 (!%p138_p2), 7452  ;;  %vm535_vm1 = vcmask (!%p138_p2), 261120  }
   0xa   : > { %vm388_vm10 = vmor (!%p138_p2), %vm386_vm7, %vm387_vm4 }
   0xb   : > { %3223 = vmatpush3.bf16.msra.mxu0 (!%p138_p2), %v3306_v4  ;;  %v3416_v11 = vsub.s32 (!%p138_p2), %v208_v9, %v210_v6  ;;  %vm390_vm12 = vmor (!%p138_p2), %vm388_vm10, %vm389_vm6 }
   0xc   : > { %3231 = vmatpush3.bf16.msra.mxu1 (!%p138_p2), %v3307_v5  ;;  %3236 = vmatprep.subr.bf16.mxu0 (!%p138_p2), %v3354_v2  ;;  %vm3426_vm13 = vmor (!%p138_p2), %vm390_vm12, %vm391_vm8 }
   0xd   : > { %s3825_s13 = smov (!%p160_p3, %s2979_s13), 1  ;;  %3244 = vmatprep.subr.bf16.mxu1 %v3354_v2  ;;  %vm394_vm14 = vmor %vm3426_vm13, %vm393_vm9 }
   0xe   : > { %s3292_s22 = smul.u32 72, %s3825_s13  ;;  %vm3449_vm15 = vmor %vm394_vm14, %vm395_vm11  ;;  %s2985_s4 = sshll.u32 %s3825_s13, 3 }
   0xf   : > { %s168_s7 = scalar_lea.vmem %s3819_s3, %s2985_s4 }
  0x10   : > { %s3412_s25 = scalar_lea.vmem %s3816_s0, %s3292_s22 }
  0x11   : > { %v2986_v10 = vld.sshfl [vmem:[%s3412_s25] sm:$0x12 pattern:$0x75316420] }
  0x12   : > { %v2987_v12 = vld.sshfl [vmem:[%s3412_s25 + $0x4] sm:$0x12 pattern:$0x75316420]  ;;  %v205_v13 = vcombine.high %v2986_v10, %v2986_v10  ;;  %v212_v15 = vrot.slane %v2986_v10, %v3416_v11 }
  0x13   : > { %v2988_v14 = vld.sshfl [vmem:[%s3412_s25 + $0x8] sm:$0x12 pattern:$0x75316420]  ;;  %v228_v16 = vcombine.high %v2987_v12, %v2987_v12  ;;  %v235_v17 = vrot.slane %v2987_v12, %v3416_v11 }
  0x14   : > { %v2989_v18 = vld.sshfl [vmem:[%s3412_s25 + $0xc] sm:$0x12 pattern:$0x75316420]  ;;  %v219_v19 = vrot.slane %v205_v13, %v3416_v11  ;;  %v251_v20 = vcombine.high %v2988_v14, %v2988_v14  ;;  %v258_v21 = vrot.slane %v2988_v14, %v3416_v11  ;;  %v220_v24 = vcombine.high %v212_v15, %v212_v15 }
  0x15   : > { %v2990_v23 = vld.sshfl [vmem:[%s3412_s25 + $0x10] sm:$0x12 pattern:$0x75316420]  ;;  %v242_v25 = vrot.slane %v228_v16, %v3416_v11  ;;  %v243_v26 = vcombine.high %v235_v17, %v235_v17  ;;  %v274_v27 = vcombine.high %v2989_v18, %v2989_v18  ;;  %v281_v31 = vrot.slane %v2989_v18, %v3416_v11 }
  0x16   : > { %v2991_v28 = vld.sshfl [vmem:[%s3412_s25 + $0x14] sm:$0x12 pattern:$0x75316420]  ;;  %v265_v29 = vrot.slane %v251_v20, %v3416_v11  ;;  %v266_v30 = vcombine.high %v258_v21, %v258_v21  ;;  %v297_v32 = vcombine.high %v2990_v23, %v2990_v23  ;;  %v304_v35 = vrot.slane %v2990_v23, %v3416_v11 }
  0x17   : > { %v2992_v33 = vld.sshfl [vmem:[%s3412_s25 + $0x18] sm:$0x12 pattern:$0x75316420]  ;;  %v288_v34 = vrot.slane %v274_v27, %v3416_v11  ;;  %v320_v36 = vcombine.high %v2991_v28, %v2991_v28  ;;  %v327_v37 = vrot.slane %v2991_v28, %v3416_v11  ;;  %v289_v39 = vcombine.high %v281_v31, %v281_v31 }
  0x18   : > { %v2993_v38 = vld.sshfl [vmem:[%s3412_s25 + $0x1c] sm:$0x12 pattern:$0x75316420]  ;;  %v311_v40 = vrot.slane %v297_v32, %v3416_v11  ;;  %v343_v41 = vcombine.high %v2992_v33, %v2992_v33  ;;  %v350_v42 = vrot.slane %v2992_v33, %v3416_v11  ;;  %v312_v43 = vcombine.high %v304_v35, %v304_v35 }
  0x19   : > { %v334_v44 = vrot.slane %v320_v36, %v3416_v11  ;;  %v335_v45 = vcombine.high %v327_v37, %v327_v37  ;;  %v366_v46 = vcombine.high %v2993_v38, %v2993_v38  ;;  %v373_v49 = vrot.slane %v2993_v38, %v3416_v11  ;;  %v3334_v56 = vld.sshfl [vmem:[%s3412_s25] sm:$0x5 pattern:$0x75316420] }
  0x1a   : > { %v357_v47 = vrot.slane %v343_v41, %v3416_v11  ;;  %v358_v48 = vcombine.high %v350_v42, %v350_v42  ;;  %v398_v51 = vshrl.u32 %v219_v19, 16  ;;  %v403_v53 = vshll.u32 %v220_v24, 16  ;;  %v3335_v61 = vld.sshfl [vmem:[%s3412_s25 + $0x8] sm:$0x5 pattern:$0x75316420] }
  0x1b   : > { %v380_v52 = vrot.slane %v366_v46, %v3416_v11  ;;  %v407_v54 = vshrl.u32 %v242_v25, 16  ;;  %v412_v55 = vshll.u32 %v243_v26, 16  ;;  %v381_v57 = vcombine.high %v373_v49, %v373_v49  ;;  %v3336_v62 = vld.sshfl [vmem:[%s3412_s25 + $0x10] sm:$0x5 pattern:$0x75316420] }
  0x1c   : > { %v416_v58 = vshrl.u32 %v265_v29, 16  ;;  %v421_v59 = vshll.u32 %v266_v30, 16  ;;  %v425_v60 = vshrl.u32 %v288_v34, 16  ;;  %v405_v63 = vsel %vm3449_vm15, %v398_v51, %v403_v53 }
  0x1d   : > { %v3461_v0 = vsel %vm3449_vm15, %v407_v54, %v412_v55  ;;  %v430_v1 = vshll.u32 %v289_v39, 16  ;;  %v434_v3 = vshrl.u32 %v311_v40, 16  ;;  %v3337_v4 = vld.sshfl [vmem:[%s3412_s25 + $0x18] sm:$0x5 pattern:$0x75316420]  ;;  %v620_v29 = vcombine.low %v3334_v56, %v3335_v61 }
  0x1e   : > { %v3466_v5 = vsel %vm3449_vm15, %v416_v58, %v421_v59  ;;  %v439_v6 = vshll.u32 %v312_v43, 16  ;;  %v443_v7 = vshrl.u32 %v334_v44, 16  ;;  %v448_v8 = vshll.u32 %v335_v45, 16  ;;  %v3313_v40 = vld [vmem:[%s3817_s1 + $0x30] sm:$0xff]   ;;  %v3312_v58 = vld [vmem:[%s3817_s1 + $0x20] sm:$0xff]  }
  0x1f   : > { %v3470_v9 = vsel %vm3449_vm15, %v425_v60, %v430_v1  ;;  %v452_v10 = vshrl.u32 %v357_v47, 16  ;;  %v457_v12 = vshll.u32 %v358_v48, 16  ;;  %v461_v13 = vshrl.u32 %v380_v52, 16 }
  0x20   : > { %v3474_v14 = vsel %vm3449_vm15, %v434_v3, %v439_v6  ;;  %v3478_v15 = vsel %vm3449_vm15, %v443_v7, %v448_v8  ;;  %v466_v16 = vshll.u32 %v381_v57, 16  ;;  %v474_v17 = vcombine.low %v405_v63, %v3461_v0  ;;  %v3012_v18 = vld.sshfl [vmem:[%s3412_s25] sm:$0x11 pattern:$0x75316420]  ;;  %v3315_v8 = vld [vmem:[%s3817_s1 + $0x38] sm:$0xff]  }
  0x21   : > { %v3484_v19 = vsel %vm3449_vm15, %v452_v10, %v457_v12  ;;  %v475_v20 = vcombine.low %v3466_v5, %v3470_v9  ;;  %v476_v21 = vcombine.low %v3474_v14, %v3478_v15  ;;  %v3013_v22 = vld.sshfl [vmem:[%s3412_s25 + $0x4] sm:$0x11 pattern:$0x75316420]  ;;  %v716_v31 = vcombine.high %v3012_v18, %v3012_v18 }
  0x22   : > { %v3493_v23 = vsel %vm3449_vm15, %v461_v13, %v466_v16  ;;  %v484_v24 = vrot.slane %v474_v17, %v3416_v11  ;;  %v3014_v28 = vld.sshfl [vmem:[%s3412_s25 + $0x8] sm:$0x11 pattern:$0x75316420]  ;;  %v723_v32 = vrot.slane %v3012_v18, %v3416_v11  ;;  %v738_v33 = vcombine.high %v3013_v22, %v3013_v22 }
  0x23   : > { %v477_v25 = vcombine.low %v3484_v19, %v3493_v23  ;;  %v491_v26 = vrot.slane %v475_v20, %v3416_v11  ;;  %v498_v27 = vrot.slane %v476_v21, %v3416_v11  ;;  %v3015_v30 = vld.sshfl [vmem:[%s3412_s25 + $0xc] sm:$0x11 pattern:$0x75316420]  ;;  %v621_v36 = vcombine.low %v3336_v62, %v3337_v4 }
  0x24   : > { %v3016_v37 = vld.sshfl [vmem:[%s3412_s25 + $0x10] sm:$0x11 pattern:$0x75316420]  ;;  %v745_v38 = vrot.slane %v3013_v22, %v3416_v11  ;;  %v628_v39 = vrot.slane %v620_v29, %v3416_v11  ;;  %v730_v42 = vrot.slane %v716_v31, %v3416_v11  ;;  %v752_v43 = vrot.slane %v738_v33, %v3416_v11 }
  0x25   : > { %v505_v34 = vrot.slane %v477_v25, %v3416_v11  ;;  %v506_v35 = vcombine.low %v484_v24, %v491_v26  ;;  %v3017_v41 = vld.sshfl [vmem:[%s3412_s25 + $0x14] sm:$0x11 pattern:$0x75316420]  ;;  %v760_v44 = vcombine.high %v3014_v28, %v3014_v28  ;;  %v635_v47 = vrot.slane %v621_v36, %v3416_v11  ;;  %v3314_v25 = vld [vmem:[%s3817_s1 + $0x28] sm:$0xff]  }
  0x26   : > { %v3018_v48 = vld.sshfl [vmem:[%s3412_s25 + $0x18] sm:$0x11 pattern:$0x75316420]  ;;  %v767_v49 = vrot.slane %v3014_v28, %v3416_v11  ;;  %v782_v53 = vcombine.high %v3015_v30, %v3015_v30  ;;  %v789_v54 = vrot.slane %v3015_v30, %v3416_v11  ;;  %v804_v55 = vcombine.high %v3016_v37, %v3016_v37 }
  0x27   : > { %v507_v45 = vcombine.low %v498_v27, %v505_v34  ;;  %v514_v46 = vrot.slane %v506_v35, %v3416_v11  ;;  %v3019_v51 = vld.sshfl [vmem:[%s3412_s25 + $0x1c] sm:$0x11 pattern:$0x75316420]  ;;  %v774_v52 = vrot.slane %v760_v44, %v3416_v11  ;;  %v636_v57 = vcombine.low %v628_v39, %v635_v47 }
  0x28   : > { %v811_v59 = vrot.slane %v3016_v37, %v3416_v11  ;;  %v826_v60 = vcombine.high %v3017_v41, %v3017_v41  ;;  %v796_v61 = vrot.slane %v782_v53, %v3416_v11  ;;  %v818_v62 = vrot.slane %v804_v55, %v3416_v11  ;;  %v3338_v17 = vld.sshfl [vmem:[%s3412_s25 + $0x24] sm:$0x5 pattern:$0x75316420] }
  0x29   : > { %v521_v56 = vrot.slane %v507_v45, %v3416_v11  ;;  %v833_v63 = vrot.slane %v3017_v41, %v3416_v11  ;;  %v848_v1 = vcombine.high %v3018_v48, %v3018_v48  ;;  %3233 = vmatmul.mubr.msk.bf16.vlgmr.msra.gmra.mrb[0].mxu1 %vm535_vm1, %v636_v57  ;;  %v855_v6 = vrot.slane %v3018_v48, %v3416_v11  ;;  %v3339_v24 = vld.sshfl [vmem:[%s3412_s25 + $0x2c] sm:$0x5 pattern:$0x75316420] }
  0x2a   : > { %v840_v4 = vrot.slane %v826_v60, %v3416_v11  ;;  %v870_v7 = vcombine.high %v3019_v51, %v3019_v51  ;;  %3245 = vmatpush3.bf16.msra.mxu1 %v3313_v40  ;;  %v877_v12 = vrot.slane %v3019_v51, %v3416_v11  ;;  %v886_v13 = vshrl.u32 %v723_v32, 16  ;;  %3248 = vmatprep.mubr.msk.bf16.mxu1 %vm3355_vm0, %v3354_v2  ;;  %v3341_v39 = vld.sshfl [vmem:[%s3412_s25 + $0x3c] sm:$0x5 pattern:$0x75316420] }
  0x2b   : > { %v522_v3 = vcombine.low %v514_v46, %v521_v56  ;;  %v862_v10 = vrot.slane %v848_v1, %v3416_v11  ;;  %v891_v16 = vshll.u32 %v730_v42, 16  ;;  %3246 = vmatprep.subr.bf16.mxu1 %v3354_v2  ;;  %v895_v20 = vshrl.u32 %v745_v38, 16  ;;  %v3340_v38 = vld.sshfl [vmem:[%s3412_s25 + $0x34] sm:$0x5 pattern:$0x75316420] }
  0x2c   : > { %v884_v18 = vrot.slane %v870_v7, %v3416_v11  ;;  %v900_v21 = vshll.u32 %v752_v43, 16  ;;  %v904_v22 = vshrl.u32 %v767_v49, 16  ;;  %v909_v27 = vshll.u32 %v774_v52, 16 }
  0x2d   : > { %3225 = vmatmul.mubr.msk.bf16.vlgmr.msra.gmra.mrb[0].mxu0 %vm535_vm1, %v522_v3  ;;  %v893_v26 = vsel %vm3449_vm15, %v886_v13, %v891_v16  ;;  %v913_v28 = vshrl.u32 %v789_v54, 16  ;;  %v918_v29 = vshll.u32 %v796_v61, 16  ;;  %v922_v31 = vshrl.u32 %v811_v59, 16  ;;  %v3321_v13 = vld [vmem:[%s3817_s1 + $0x50] sm:$0xff]  }
  0x2e   : > { %3237 = vmatpush3.bf16.msra.mxu0 %v3312_v58  ;;  %3240 = vmatprep.mubr.msk.bf16.mxu0 %vm3355_vm0, %v3354_v2  ;;  %v3553_v30 = vsel %vm3449_vm15, %v895_v20, %v900_v21  ;;  %v927_v32 = vshll.u32 %v818_v62, 16  ;;  %v931_v33 = vshrl.u32 %v833_v63, 16  ;;  %v3557_v34 = vsel %vm3449_vm15, %v904_v22, %v909_v27  ;;  %v3058_v47 = vld.sshfl [vmem:[%s3412_s25 + $0x24] sm:$0x12 pattern:$0x75316420] }
  0x2f   : > { %3238 = vmatprep.subr.bf16.mxu0 %v3354_v2  ;;  %3247 = vmatpush3.bf16.msra.mxu1 %v3315_v8  ;;  %v3561_v35 = vsel %vm3449_vm15, %v913_v28, %v918_v29  ;;  %v936_v36 = vshll.u32 %v840_v4, 16  ;;  %v940_v37 = vshrl.u32 %v855_v6, 16  ;;  %v945_v41 = vshll.u32 %v862_v10, 16 }
  0x30   : > { %v3567_v40 = vsel %vm3449_vm15, %v922_v31, %v927_v32  ;;  %v949_v42 = vshrl.u32 %v877_v12, 16  ;;  %v954_v43 = vshll.u32 %v884_v18, 16  ;;  %3260 = vmatprep.subr.bf16.mxu1 %v3354_v2  ;;  %v962_v45 = vcombine.low %v893_v26, %v3553_v30  ;;  %v3059_v52 = vld.sshfl [vmem:[%s3412_s25 + $0x28] sm:$0x12 pattern:$0x75316420] }
  0x31   : > { %v3572_v44 = vsel %vm3449_vm15, %v931_v33, %v936_v36  ;;  %v963_v46 = vcombine.low %v3557_v34, %v3561_v35  ;;  %v3581_v48 = vsel %vm3449_vm15, %v940_v37, %v945_v41  ;;  %v1123_v57 = vcombine.low %v3338_v17, %v3339_v24  ;;  %v3060_v58 = vld.sshfl [vmem:[%s3412_s25 + $0x2c] sm:$0x12 pattern:$0x75316420]  ;;  %v3316_v18 = vld [vmem:[%s3817_s1 + $0x40] sm:$0xff]  }
  0x32   : > { %3239 = vmatpush3.bf16.msra.mxu0 %v3314_v25  ;;  %v3585_v49 = vsel %vm3449_vm15, %v949_v42, %v954_v43  ;;  %v964_v51 = vcombine.low %v3567_v40, %v3572_v44  ;;  %v972_v54 = vrot.slane %v962_v45, %v3416_v11  ;;  %v1221_v59 = vcombine.high %v3058_v47, %v3058_v47  ;;  %v3061_v62 = vld.sshfl [vmem:[%s3412_s25 + $0x30] sm:$0x12 pattern:$0x75316420] }
  0x33   : > { %3252 = vmatprep.subr.bf16.mxu0 %v3354_v2  ;;  %v965_v53 = vcombine.low %v3581_v48, %v3585_v49  ;;  %v979_v55 = vrot.slane %v963_v46, %v3416_v11  ;;  %v1228_v63 = vrot.slane %v3058_v47, %v3416_v11  ;;  %v1244_v1 = vcombine.high %v3059_v52, %v3059_v52  ;;  %v3062_v6 = vld.sshfl [vmem:[%s3412_s25 + $0x34] sm:$0x12 pattern:$0x75316420] }
  0x34   : > { %v986_v56 = vrot.slane %v964_v51, %v3416_v11  ;;  %v1124_v3 = vcombine.low %v3340_v38, %v3341_v39  ;;  %v1131_v4 = vrot.slane %v1123_v57, %v3416_v11  ;;  %v1235_v7 = vrot.slane %v1221_v59, %v3416_v11  ;;  %v3063_v21 = vld.sshfl [vmem:[%s3412_s25 + $0x38] sm:$0x12 pattern:$0x75316420]  ;;  %v3322_v57 = vld [vmem:[%s3817_s1 + $0x48] sm:$0xff]  }
  0x35   : > { %v993_v60 = vrot.slane %v965_v53, %v3416_v11  ;;  %v994_v61 = vcombine.low %v972_v54, %v979_v55  ;;  %v1251_v8 = vrot.slane %v3059_v52, %v3416_v11  ;;  %v1236_v16 = vcombine.high %v1228_v63, %v1228_v63  ;;  %v3064_v27 = vld.sshfl [vmem:[%s3412_s25 + $0x3c] sm:$0x12 pattern:$0x75316420] }
  0x36   : > { %v1258_v17 = vrot.slane %v1244_v1, %v3416_v11  ;;  %v1138_v20 = vrot.slane %v1124_v3, %v3416_v11  ;;  %v1267_v24 = vcombine.high %v3060_v58, %v3060_v58  ;;  %v1274_v25 = vrot.slane %v3060_v58, %v3416_v11  ;;  %v3065_v33 = vld.sshfl [vmem:[%s3412_s25 + $0x40] sm:$0x12 pattern:$0x75316420]  ;;  %v3323_v52 = vld [vmem:[%s3817_s1 + $0x58] sm:$0xff]  }
  0x37   : > { %v995_v10 = vcombine.low %v986_v56, %v993_v60  ;;  %v1002_v12 = vrot.slane %v994_v61, %v3416_v11  ;;  %v1259_v22 = vcombine.high %v1251_v8, %v1251_v8  ;;  %v1290_v28 = vcombine.high %v3061_v62, %v3061_v62 }
  0x38   : > { %v1297_v29 = vrot.slane %v3061_v62, %v3416_v11  ;;  %v1313_v31 = vcombine.high %v3062_v6, %v3062_v6  ;;  %v1139_v32 = vcombine.low %v1131_v4, %v1138_v20  ;;  %v1281_v36 = vrot.slane %v1267_v24, %v3416_v11  ;;  %v3090_v20 = vld.sshfl [vmem:[%s3412_s25 + $0x28] sm:$0x11 pattern:$0x75316420] }
  0x39   : > { %v1009_v26 = vrot.slane %v995_v10, %v3416_v11  ;;  %v1282_v37 = vcombine.high %v1274_v25, %v1274_v25  ;;  %v1320_v38 = vrot.slane %v3062_v6, %v3416_v11  ;;  %v1304_v41 = vrot.slane %v1290_v28, %v3416_v11  ;;  %v3645_v10 = vld.sshfl [vmem:[%s3412_s25 + $0x24] sm:$0x11 pattern:$0x75316420] }
  0x3a   : > { %v1305_v42 = vcombine.high %v1297_v29, %v1297_v29  ;;  %v1327_v43 = vrot.slane %v1313_v31, %v3416_v11  ;;  %3249 = vmatmul.mubr.msk.bf16.vlgmr.msra.gmra.mrb[4].mxu1 %vm535_vm1, %v1139_v32  ;;  %v1336_v46 = vcombine.high %v3063_v21, %v3063_v21  ;;  %v1343_v47 = vrot.slane %v3063_v21, %v3416_v11  ;;  %v3091_v29 = vld.sshfl [vmem:[%s3412_s25 + $0x2c] sm:$0x11 pattern:$0x75316420] }
  0x3b   : > { %v1010_v39 = vcombine.low %v1002_v12, %v1009_v26  ;;  %v1328_v45 = vcombine.high %v1320_v38, %v1320_v38  ;;  %v1359_v51 = vcombine.high %v3064_v27, %v3064_v27  ;;  %3261 = vmatpush3.bf16.msra.mxu1 %v3321_v13  ;;  %v1366_v53 = vrot.slane %v3064_v27, %v3416_v11 }
  0x3c   : > { %v1382_v54 = vcombine.high %v3065_v33, %v3065_v33  ;;  %v1389_v55 = vrot.slane %v3065_v33, %v3416_v11  ;;  %v1399_v56 = vshrl.u32 %v1235_v7, 16  ;;  %3262 = vmatprep.subr.bf16.mxu1 %v3354_v2  ;;  %v1350_v58 = vrot.slane %v1336_v46, %v3416_v11  ;;  %3264 = vmatprep.mubr.msk.bf16.mxu1 %vm3355_vm0, %v3354_v2  ;;  %v3093_v46 = vld.sshfl [vmem:[%s3412_s25 + $0x34] sm:$0x11 pattern:$0x75316420] }
  0x3d   : > { %3241 = vmatmul.mubr.msk.bf16.vlgmr.msra.gmra.mrb[4].mxu0 %vm535_vm1, %v1010_v39  ;;  %v1351_v59 = vcombine.high %v1343_v47, %v1343_v47  ;;  %v1373_v60 = vrot.slane %v1359_v51, %v3416_v11  ;;  %v1404_v61 = vshll.u32 %v1236_v16, 16  ;;  %v1374_v62 = vcombine.high %v1366_v53, %v1366_v53 }
  0x3e   : > { %3253 = vmatpush3.bf16.msra.mxu0 %v3316_v18  ;;  %3256 = vmatprep.mubr.msk.bf16.mxu0 %vm3355_vm0, %v3354_v2  ;;  %v1396_v63 = vrot.slane %v1382_v54, %v3416_v11  ;;  %v1397_v1 = vcombine.high %v1389_v55, %v1389_v55  ;;  %v1408_v3 = vshrl.u32 %v1258_v17, 16  ;;  %v1413_v6 = vshll.u32 %v1259_v22, 16  ;;  %v3094_v55 = vld.sshfl [vmem:[%s3412_s25 + $0x38] sm:$0x11 pattern:$0x75316420] }
  0x3f   : > { %3254 = vmatprep.subr.bf16.mxu0 %v3354_v2  ;;  %v1406_v4 = vsel %vm3449_vm15, %v1399_v56, %v1404_v61  ;;  %v1417_v7 = vshrl.u32 %v1281_v36, 16  ;;  %v1422_v8 = vshll.u32 %v1282_v37, 16  ;;  %3263 = vmatpush3.bf16.msra.mxu1 %v3323_v52  ;;  %v1426_v12 = vshrl.u32 %v1304_v41, 16 }
  0x40   : > { %v1431_v13 = vshll.u32 %v1305_v42, 16  ;;  %v1435_v16 = vshrl.u32 %v1327_v43, 16  ;;  %v1440_v18 = vshll.u32 %v1328_v45, 16  ;;  %v1415_v17 = vsel %vm3449_vm15, %v1408_v3, %v1413_v6  ;;  %3276 = vmatprep.subr.bf16.mxu1 %v3354_v2 }
  0x41   : > { %v1424_v21 = vsel %vm3449_vm15, %v1417_v7, %v1422_v8  ;;  %v1444_v22 = vshrl.u32 %v1350_v58, 16  ;;  %v1449_v24 = vshll.u32 %v1351_v59, 16  ;;  %v1453_v27 = vshrl.u32 %v1373_v60, 16 }
  0x42   : > { %3255 = vmatpush3.bf16.msra.mxu0 %v3322_v57  ;;  %v1433_v25 = vsel %vm3449_vm15, %v1426_v12, %v1431_v13  ;;  %v1442_v26 = vsel %vm3449_vm15, %v1435_v16, %v1440_v18  ;;  %v1458_v28 = vshll.u32 %v1374_v62, 16  ;;  %v1462_v32 = vshrl.u32 %v1396_v63, 16  ;;  %v3092_v41 = vld.sshfl [vmem:[%s3412_s25 + $0x30] sm:$0x11 pattern:$0x75316420] }
  0x43   : > { %3268 = vmatprep.subr.bf16.mxu0 %v3354_v2  ;;  %v1451_v31 = vsel %vm3449_vm15, %v1444_v22, %v1449_v24  ;;  %v1467_v33 = vshll.u32 %v1397_v1, 16  ;;  %v1475_v36 = vcombine.low %v1406_v4, %v1415_v17  ;;  %v1476_v38 = vcombine.low %v1424_v21, %v1433_v25  ;;  %v3095_v63 = vld.sshfl [vmem:[%s3412_s25 + $0x3c] sm:$0x11 pattern:$0x75316420] }
  0x44   : > { %v1460_v37 = vsel %vm3449_vm15, %v1453_v27, %v1458_v28  ;;  %v1477_v39 = vcombine.low %v1442_v26, %v1451_v31  ;;  %v1605_v42 = vcombine.high %v3645_v10, %v3645_v10  ;;  %v1612_v47 = vrot.slane %v3645_v10, %v3416_v11  ;;  %v3096_v4 = vld.sshfl [vmem:[%s3412_s25 + $0x40] sm:$0x11 pattern:$0x75316420] }
  0x45   : > { %v1469_v43 = vsel %vm3449_vm15, %v1462_v32, %v1467_v33  ;;  %v1485_v45 = vrot.slane %v1475_v36, %v3416_v11  ;;  %v1627_v51 = vcombine.high %v3090_v20, %v3090_v20  ;;  %v1492_v53 = vrot.slane %v1476_v38, %v3416_v11  ;;  %v3324_v28 = vld [vmem:[%s3817_s1 + $0x60] sm:$0xff]  }
  0x46   : > { %v1478_v52 = vcombine.low %v1460_v37, %v1469_v43  ;;  %v1499_v54 = vrot.slane %v1477_v39, %v3416_v11  ;;  %v1619_v56 = vrot.slane %v1605_v42, %v3416_v11  ;;  %v1634_v57 = vrot.slane %v3090_v20, %v3416_v11 }
  0x47   : > { %v1641_v58 = vrot.slane %v1627_v51, %v3416_v11  ;;  %v1649_v59 = vcombine.high %v3091_v29, %v3091_v29  ;;  %v1656_v60 = vrot.slane %v3091_v29, %v3416_v11  ;;  %v1507_v62 = vcombine.low %v1485_v45, %v1492_v53 }
  0x48   : > { %v1506_v61 = vrot.slane %v1478_v52, %v3416_v11  ;;  %v1671_v1 = vcombine.high %v3092_v41, %v3092_v41  ;;  %v1678_v3 = vrot.slane %v3092_v41, %v3416_v11  ;;  %v1693_v7 = vcombine.high %v3093_v46, %v3093_v46 }
  0x49   : > { %v1663_v6 = vrot.slane %v1649_v59, %v3416_v11  ;;  %v1700_v8 = vrot.slane %v3093_v46, %v3416_v11  ;;  %v1715_v10 = vcombine.high %v3094_v55, %v3094_v55  ;;  %v1515_v13 = vrot.slane %v1507_v62, %v3416_v11  ;;  %v3342_v46 = vld.sshfl [vmem:[%s3412_s25 + $0x4] sm:$0x5 pattern:$0x75316420] }
  0x4a   : > { %v1508_v12 = vcombine.low %v1499_v54, %v1506_v61  ;;  %v1685_v16 = vrot.slane %v1671_v1, %v3416_v11  ;;  %v1722_v18 = vrot.slane %v3094_v55, %v3416_v11  ;;  %v1707_v20 = vrot.slane %v1693_v7, %v3416_v11  ;;  %v3344_v55 = vld.sshfl [vmem:[%s3412_s25 + $0x14] sm:$0x5 pattern:$0x75316420] }
  0x4b   : > { %v1729_v17 = vrot.slane %v1715_v10, %v3416_v11  ;;  %v1737_v21 = vcombine.high %v3095_v63, %v3095_v63  ;;  %v1744_v22 = vrot.slane %v3095_v63, %v3416_v11  ;;  %v1759_v25 = vcombine.high %v3096_v4, %v3096_v4  ;;  %v3345_v61 = vld.sshfl [vmem:[%s3412_s25 + $0x1c] sm:$0x5 pattern:$0x75316420] }
  0x4c   : > { %v1522_v24 = vrot.slane %v1508_v12, %v3416_v11  ;;  %v1766_v26 = vrot.slane %v3096_v4, %v3416_v11  ;;  %v1775_v27 = vshrl.u32 %v1612_v47, 16  ;;  %v1780_v31 = vshll.u32 %v1619_v56, 16  ;;  %v3343_v47 = vld.sshfl [vmem:[%s3412_s25 + $0xc] sm:$0x5 pattern:$0x75316420] }
  0x4d   : > { %v1751_v29 = vrot.slane %v1737_v21, %v3416_v11  ;;  %v1784_v32 = vshrl.u32 %v1634_v57, 16  ;;  %v1789_v33 = vshll.u32 %v1641_v58, 16  ;;  %v1773_v37 = vrot.slane %v1759_v25, %v3416_v11 }
  0x4e   : > { %v1523_v36 = vcombine.low %v1515_v13, %v1522_v24  ;;  %v1793_v38 = vshrl.u32 %v1656_v60, 16  ;;  %v1798_v39 = vshll.u32 %v1663_v6, 16  ;;  %v1782_v41 = vsel %vm3449_vm15, %v1775_v27, %v1780_v31  ;;  %v3326_v60 = vld [vmem:[%s3817_s1 + $0x68] sm:$0xff]  }
  0x4f   : > { %v1791_v42 = vsel %vm3449_vm15, %v1784_v32, %v1789_v33  ;;  %v1802_v43 = vshrl.u32 %v1678_v3, 16  ;;  %v1807_v45 = vshll.u32 %v1685_v16, 16  ;;  %v1811_v52 = vshrl.u32 %v1700_v8, 16 }
  0x50   : > { %3257 = vmatmul.mubr.msk.bf16.vlgmr.msra.gmra.mrb[8].mxu0 %vm535_vm1, %v1523_v36  ;;  %v1800_v51 = vsel %vm3449_vm15, %v1793_v38, %v1798_v39  ;;  %v1816_v53 = vshll.u32 %v1707_v20, 16  ;;  %v1820_v54 = vshrl.u32 %v1722_v18, 16  ;;  %v1825_v57 = vshll.u32 %v1729_v17, 16 }
  0x51   : > { %3269 = vmatpush3.bf16.msra.mxu0 %v3324_v28  ;;  %v1809_v56 = vsel %vm3449_vm15, %v1802_v43, %v1807_v45  ;;  %v1829_v58 = vshrl.u32 %v1744_v22, 16  ;;  %v1834_v59 = vshll.u32 %v1751_v29, 16  ;;  %3272 = vmatprep.mubr.msk.bf16.mxu0 %vm3355_vm0, %v3354_v2  ;;  %v1838_v63 = vshrl.u32 %v1766_v26, 16 }
  0x52   : > { %v1818_v62 = vsel %vm3449_vm15, %v1811_v52, %v1816_v53  ;;  %v1843_v1 = vshll.u32 %v1773_v37, 16  ;;  %v1851_v3 = vcombine.low %v1782_v41, %v1791_v42  ;;  %3270 = vmatprep.subr.bf16.mxu0 %v3354_v2  ;;  %v1827_v4 = vsel %vm3449_vm15, %v1820_v54, %v1825_v57  ;;  %v3142_v8 = vld.sshfl [vmem:[%s3412_s25 + $0x20] sm:$0x12 pattern:$0x75316420]  ;;  %v3333_v57 = vld [vmem:[%s3817_s1 + $0x88] sm:$0xff]  }
  0x53   : > { %v1836_v6 = vsel %vm3449_vm15, %v1829_v58, %v1834_v59  ;;  %v1852_v7 = vcombine.low %v1800_v51, %v1809_v56  ;;  %v1853_v12 = vcombine.low %v1818_v62, %v1827_v4  ;;  %v2012_v17 = vcombine.low %v3342_v46, %v3343_v47  ;;  %v3173_v33 = vld.sshfl [vmem:[%s3412_s25 + $0x20] sm:$0x11 pattern:$0x75316420]  ;;  %v3327_v59 = vld [vmem:[%s3817_s1 + $0x78] sm:$0xff]  }
  0x54   : > { %v1845_v10 = vsel %vm3449_vm15, %v1838_v63, %v1843_v1  ;;  %v1861_v13 = vrot.slane %v1851_v3, %v3416_v11  ;;  %v2271_v21 = vcombine.high %v3142_v8, %v3142_v8  ;;  %v2278_v22 = vrot.slane %v3142_v8, %v3416_v11 }
  0x55   : > { %v1854_v16 = vcombine.low %v1836_v6, %v1845_v10  ;;  %v1868_v18 = vrot.slane %v1852_v7, %v3416_v11  ;;  %3271 = vmatpush3.bf16.msra.mxu0 %v3326_v60  ;;  %v1875_v20 = vrot.slane %v1853_v12, %v3416_v11  ;;  %v2013_v26 = vcombine.low %v3344_v55, %v3345_v61 }
  0x56   : > { %3284 = vmatprep.subr.bf16.mxu0 %v3354_v2  ;;  %v2364_v27 = vcombine.low %v3461_v0, %v3466_v5  ;;  %v2020_v28 = vrot.slane %v2012_v17, %v3416_v11  ;;  %v2285_v29 = vrot.slane %v2271_v21, %v3416_v11  ;;  %v2286_v31 = vcombine.high %v2278_v22, %v2278_v22  ;;  %v3332_v0 = vld [vmem:[%s3817_s1 + $0x80] sm:$0xff]  }
  0x57   : > { %v1882_v24 = vrot.slane %v1854_v16, %v3416_v11  ;;  %v1883_v25 = vcombine.low %v1861_v13, %v1868_v18  ;;  %v2365_v32 = vcombine.low %v3470_v9, %v3474_v14  ;;  %v2027_v38 = vrot.slane %v2013_v26, %v3416_v11 }
  0x58   : > { %v2366_v39 = vcombine.low %v3478_v15, %v3484_v19  ;;  %v2351_v5 = vshrl.u32 %v2285_v29, 16  ;;  %v2356_v41 = vshll.u32 %v2286_v31, 16  ;;  %v2374_v42 = vrot.slane %v2364_v27, %v3416_v11  ;;  %v3325_v15 = vld [vmem:[%s3817_s1 + $0x70] sm:$0xff]  }
  0x59   : > { %v1884_v36 = vcombine.low %v1875_v20, %v1882_v24  ;;  %v1891_v37 = vrot.slane %v1883_v25, %v3416_v11  ;;  %v2381_v43 = vrot.slane %v2365_v32, %v3416_v11  ;;  %v2028_v14 = vcombine.low %v2020_v28, %v2027_v38 }
  0x5a   : > { %v2388_v45 = vrot.slane %v2366_v39, %v3416_v11  ;;  %v2648_v46 = vcombine.high %v3173_v33, %v3173_v33  ;;  %v2358_v19 = vsel %vm3449_vm15, %v2351_v5, %v2356_v41  ;;  %v2655_v51 = vrot.slane %v3173_v33, %v3416_v11 }
  0x5b   : > { %v1898_v9 = vrot.slane %v1884_v36, %v3416_v11  ;;  %v2396_v47 = vcombine.low %v2374_v42, %v2381_v43  ;;  %v2740_v52 = vcombine.low %v3553_v30, %v3557_v34  ;;  %3273 = vmatmul.mubr.msk.bf16.vlgmr.msra.gmra.mrb[12].mxu0 %vm535_vm1, %v2028_v14  ;;  %v2367_v54 = vcombine.low %v3493_v23, %v2358_v19 }
  0x5c   : > { %v2662_v55 = vrot.slane %v2648_v46, %v3416_v11  ;;  %v2741_v56 = vcombine.low %v3561_v35, %v3567_v40  ;;  %3285 = vmatpush3.bf16.msra.mxu0 %v3332_v0  ;;  %3288 = vmatprep.mubr.msk.bf16.mxu0 %vm3355_vm0, %v3354_v2  ;;  %v2727_v58 = vshrl.u32 %v2655_v51, 16  ;;  %v2742_v30 = vcombine.low %v3572_v44, %v3581_v48 }
  0x5d   : > { %v1899_v53 = vcombine.low %v1891_v37, %v1898_v9  ;;  %v2750_v34 = vrot.slane %v2740_v52, %v3416_v11  ;;  %v2395_v23 = vrot.slane %v2367_v54, %v3416_v11  ;;  %3286 = vmatprep.subr.bf16.mxu0 %v3354_v2  ;;  %v2404_v48 = vrot.slane %v2396_v47, %v3416_v11 }
  0x5e   : > { %v2732_v35 = vshll.u32 %v2662_v55, 16  ;;  %v2757_v40 = vrot.slane %v2741_v56, %v3416_v11  ;;  %v2764_v62 = vrot.slane %v2742_v30, %v3416_v11 }
  0x5f   : > { %3265 = vmatmul.mubr.msk.bf16.vlgmr.msra.gmra.mrb[8].mxu1 %vm535_vm1, %v1899_v53  ;;  %v2397_v44 = vcombine.low %v2388_v45, %v2395_v23 }
  0x60   : > { %3277 = vmatpush3.bf16.msra.mxu1 %v3325_v15  ;;  %3280 = vmatprep.mubr.msk.bf16.mxu1 %vm3355_vm0, %v3354_v2  ;;  %v2734_v60 = vsel %vm3449_vm15, %v2727_v58, %v2732_v35  ;;  %v2772_v63 = vcombine.low %v2750_v34, %v2757_v40  ;;  %v3189_v35 = vld [vmem:[%s3818_s2] ss:$0 sm:$0xff]  ;;  %vm2917_vm0 = vcmask 516096  }
  0x61   : > { %3278 = vmatprep.subr.bf16.mxu1 %v3354_v2  ;;  %3287 = vmatpush3.bf16.msra.mxu0 %v3333_v57  ;;  %v2743_v61 = vcombine.low %v3585_v49, %v2734_v60  ;;  %v2411_v1 = vrot.slane %v2397_v44, %v3416_v11 }
  0x62   : > { %v2780_v2 = vrot.slane %v2772_v63, %v3416_v11 }
  0x63   : > { %v2771_v3 = vrot.slane %v2743_v61, %v3416_v11  ;;  %v2412_v4 = vcombine.low %v2404_v48, %v2411_v1 }
  0x64   : > { %3279 = vmatpush3.bf16.msra.mxu1 %v3327_v59 }
  0x65   : > { %v2773_v6 = vcombine.low %v2764_v62, %v2771_v3 }
  0x67   : > { %3281 = vmatmul.mubr.msk.bf16.vlgmr.msra.gmra.mrb[12].mxu1 %vm535_vm1, %v2412_v4  ;;  %v2787_v50 = vrot.slane %v2773_v6, %v3416_v11 }
  0x69   : > { %v2788_v7 = vcombine.low %v2780_v2, %v2787_v50 }
  0x6b   : > { %3289 = vmatmul.mubr.msk.bf16.vlgmr.msra.gmra.mrb[16].mxu0 %vm535_vm1, %v2788_v7 }
  0xfc   : > { %v686_v49 = vpop.f32.mrb[0].mxu1 }
  0xfd   : > { %v3234_v8 = vpop.f32.mrb[1].mxu1 }
  0xfe   : > { %v689_v12 = vpop.f32.mrb[2].mxu1 }
  0xff   : > { %v3235_v18 = vpop.f32.mrb[3].mxu1 }
 0x100   : > { %v573_v10 = vpop.f32.mrb[0].mxu0 }
 0x101   : > { %v687_v13 = vadd.f32 %v686_v49, %v573_v10  ;;  %v3226_v16 = vpop.f32.mrb[1].mxu0 }
 0x102   : > { %v576_v20 = vpop.f32.mrb[2].mxu0 }
 0x103   : > { %v690_v17 = vadd.f32 %v689_v12, %v576_v20  ;;  %v3227_v21 = vpop.f32.mrb[3].mxu0 }
 0x10d   : > { %v1189_v22 = vpop.f32.mrb[4].mxu1 }
 0x10e   : > { %v3250_v25 = vpop.f32.mrb[5].mxu1 }
 0x10f   : > { %v1192_v28 = vpop.f32.mrb[6].mxu1 }
 0x110   : > { %v1060_v24 = vpop.f32.mrb[4].mxu0  ;;  %v3251_v31 = vpop.f32.mrb[7].mxu1 }
 0x111   : > { %v1067_v26 = vadd.f32 %v1060_v24, %v687_v13  ;;  %v3242_v27 = vpop.f32.mrb[5].mxu0 }
 0x112   : > { %v1063_v29 = vpop.f32.mrb[6].mxu0 }
 0x113   : > { %v1068_v32 = vadd.f32 %v1063_v29, %v690_v17  ;;  %v1196_v33 = vadd.f32 %v1189_v22, %v1067_v26  ;;  %v3243_v36 = vpop.f32.mrb[7].mxu0 }
 0x115   : > { %v1197_v37 = vadd.f32 %v1192_v28, %v1068_v32 }
 0x123   : > { %v1573_v38 = vpop.f32.mrb[8].mxu0 }
 0x124   : > { %v1580_v39 = vadd.f32 %v1573_v38, %v1196_v33  ;;  %v3258_v0 = vpop.f32.mrb[9].mxu0 }
 0x125   : > { %v1576_v5 = vpop.f32.mrb[10].mxu0 }
 0x126   : > { %v1581_v41 = vadd.f32 %v1576_v5, %v1197_v37  ;;  %v3259_v42 = vpop.f32.mrb[11].mxu0 }
 0x12e   : > { %v2078_v43 = vpop.f32.mrb[12].mxu0 }
 0x12f   : > { %v3274_v9 = vpop.f32.mrb[13].mxu0 }
 0x130   : > { %v2081_v45 = vpop.f32.mrb[14].mxu0 }
 0x131   : > { %v3275_v19 = vpop.f32.mrb[15].mxu0 }
 0x132   : > { %v1949_v14 = vpop.f32.mrb[8].mxu1 }
 0x133   : > { %v1956_v46 = vadd.f32 %v1949_v14, %v1580_v39  ;;  %v3266_v15 = vpop.f32.mrb[9].mxu1 }
 0x134   : > { %v1952_v47 = vpop.f32.mrb[10].mxu1 }
 0x135   : > { %v1957_v51 = vadd.f32 %v1952_v47, %v1581_v41  ;;  %v3267_v52 = vpop.f32.mrb[11].mxu1  ;;  %v2085_v53 = vadd.f32 %v2078_v43, %v1956_v46 }
 0x137   : > { %v2086_v54 = vadd.f32 %v2081_v45, %v1957_v51 }
 0x13a   : > { %v2462_v55 = vpop.f32.mrb[12].mxu1 }
 0x13b   : > { %v2469_v56 = vadd.f32 %v2462_v55, %v2085_v53  ;;  %v3282_v57 = vpop.f32.mrb[13].mxu1 }
 0x13c   : > { %v2465_v58 = vpop.f32.mrb[14].mxu1 }
 0x13d   : > { %v2470_v30 = vadd.f32 %v2465_v58, %v2086_v54  ;;  %v3283_v34 = vpop.f32.mrb[15].mxu1 }
 0x13e   : > { %v2838_v23 = vpop.f32.mrb[16].mxu0 }
 0x13f   : > { %v2845_v40 = vadd.f32 %v2838_v23, %v2469_v56  ;;  %v3290_v59 = vpop.f32.mrb[17].mxu0 }
 0x140   : > { %v2841_v44 = vpop.f32.mrb[18].mxu0 }
 0x141   : > { %v2854_v48 = vadd.f32 %v3189_v35, %v2845_v40  ;;  %v2846_v60 = vadd.f32 %v2841_v44, %v2470_v30  ;;  %v3291_v61 = vpop.f32.mrb[19].mxu0 }
 0x143   : > { %v2855_v62 = vadd.f32 %v3189_v35, %v2846_v60  ;;  %v2856_v63 = vmax.f32 %v2854_v48, 0.0 }
 0x145   : > { %v2857_v1 = vmax.f32 %v2855_v62, 0.0 }
 0x147   : > { %v2858_v3 = vpack.c.bf16 %v2857_v1, %v2856_v63  ;;  %v3190_v4 = vpack.c.bf16 %v2857_v1, %v2857_v1 }
 0x149   : > { %v2867_v6 = vrot.slane %v2858_v3, %v3416_v11  ;;  %v2874_v2 = vrot.slane %v3190_v4, %v3416_v11 }
 0x14b   : > { %v2875_v50 = vcombine.high %v2867_v6, %v2867_v6  ;;  %v2876_v7 = vcombine.high %v2874_v2, %v2874_v2  ;;  %v2883_v49 = vrot.slane %v2867_v6, %v3416_v11  ;;  %v2890_v8 = vrot.slane %v2874_v2, %v3416_v11 }
 0x14d   : > { %v2897_v10 = vrot.slane %v2875_v50, %v3416_v11  ;;  %v2904_v12 = vrot.slane %v2876_v7, %v3416_v11  ;;  %v2905_v13 = vcombine.high %v2883_v49, %v2883_v49  ;;  %v2906_v16 = vcombine.high %v2890_v8, %v2890_v8  ;;  %2918 = vst.msk [vmem:[%s168_s7] sm:$0x1] %vm2917_vm0, %v2883_v49 }
 0x14e   : > { %2922 = vst.msk [vmem:[%s168_s7 + $0x4] sm:$0x1] %vm2917_vm0, %v2890_v8 }
 0x14f   : > { %v2907_v18 = vcombine.high %v2897_v10, %v2897_v10  ;;  %v2908_v20 = vcombine.high %v2904_v12, %v2904_v12  ;;  %2919 = vst.msk [vmem:[%s168_s7 + $0x1] sm:$0x1] %vm2917_vm0, %v2897_v10  ;;  %2920 = vst.msk [vmem:[%s168_s7 + $0x2] sm:$0x1] %vm2917_vm0, %v2905_v13 }
 0x150   : > { %2923 = vst.msk [vmem:[%s168_s7 + $0x5] sm:$0x1] %vm2917_vm0, %v2904_v12  ;;  %2924 = vst.msk [vmem:[%s168_s7 + $0x6] sm:$0x1] %vm2917_vm0, %v2906_v16 }
 0x151   : > { %2921 = vst.msk [vmem:[%s168_s7 + $0x3] sm:$0x1] %vm2917_vm0, %v2907_v18  ;;  %2925 = vst.msk [vmem:[%s168_s7 + $0x7] sm:$0x1] %vm2917_vm0, %v2908_v20 }
 0x152 PF: > { %s13_s12 = sadd.s32 1, %s3352_s12  }
 0x153   : > { %p10_p4 = scmp.ge.s32.totalorder %s13_s12, 4  }
 0x155   :  { %12 = sbr.rel (!%p10_p4) target bundleno = 1 (0x1), region = 72 }

// kernel: _lambda_.11
= control target key start
LH: loop header
LB: loop body
LE: loop exit
PB: predicated region body
PF: predicated region fallthrough
CT: control target
= control target key end

     0   :  { %s2339_s12 = smov 0   ;;  %s2790_s0 = inlined_call_operand.vmem [shape: bf16[2,18,4,64], index: 0, kind: input, shape index: {}]   ;;  %s2791_s1 = inlined_call_operand.vmem [shape: bf16[9,64,128], index: 1, kind: input, shape index: {}]   ;;  %s2792_s2 = inlined_call_operand.vmem [shape: f32[1,128], index: 2, kind: input, shape index: {}]   ;;  %s2793_s3 = inlined_call_operand.vmem [shape: bf16[2,8,1,128], index: 3, kind: output, shape index: {}]  }
   0x1 LB: > { %s1864_s13 = sadd.s32 4294967295, %s2314_s12   ;;  %p1868_p0 = scmp.ge.s32.totalorder %s2314_s12, 1  ;;  %s2314_s12 = sphi %s2339_s12, %s13_s12  }
   0x2   : > { %p137_p1 = scmp.lt.s32.totalorder %s2314_s12, 3 }
   0x4   : > { %p138_p2 = pnand %p1868_p0, %p137_p1 }
   0x5   : > { %v2272_v0 = vld [vmem:[%s2791_s1 + $0x20] sm:$0xff] (!%p138_p2)   ;;  %v2316_v1 = vmov (!%p138_p2), 0.0   ;;  %v2274_v3 = vld [vmem:[%s2791_s1 + $0x28] sm:$0xff] (!%p138_p2)   ;;  %vm2317_vm0 = vmmov (!%p138_p2), 0   ;;  %p160_p3 = scmp.lt.s32.totalorder (!%p138_p2), %s1864_s13, 1  ;;  %v2276_v5 = vld [vmem:[%s2791_s1 + $0x30] sm:$0xff] (!%p138_p2)  }
   0x6   : > { %141 = sbr.rel (%p138_p2) target bundleno = 331 (0x14b), region = 32  ;;  %2152 = vmatprep.subr.bf16.mxu0 (!%p138_p2), %v2316_v1  ;;  %2164 = vmatprep.subr.bf16.mxu1 (!%p138_p2), %v2316_v1  ;;  %v2273_v2 = vld [vmem:[%s2791_s1] sm:$0xff] (!%p138_p2)   ;;  %v2275_v4 = vld [vmem:[%s2791_s1 + $0x8] sm:$0xff] (!%p138_p2)   ;;  %v2277_v6 = vld [vmem:[%s2791_s1 + $0x10] sm:$0xff] (!%p138_p2)   ;;  %vm277_vm1 = vcmask (!%p138_p2), 1041409   ;;  %vm279_vm2 = vcmask (!%p138_p2), 1042434  }
   0x7   : > { %2153 = vmatpush3.bf16.msra.mxu0 (!%p138_p2), %v2272_v0  ;;  %2160 = vmatprep.mubr.msk.bf16.mxu0 (!%p138_p2), %vm2317_vm0, %v2316_v1  ;;  %v2278_v7 = vld [vmem:[%s2791_s1 + $0x38] sm:$0xff] (!%p138_p2)   ;;  %vm282_vm3 = vcmask (!%p138_p2), 1043459   ;;  %vm285_vm4 = vcmask (!%p138_p2), 1044484   ;;  %vm288_vm5 = vcmask (!%p138_p2), 1045509   ;;  %vm291_vm6 = vcmask (!%p138_p2), 1046534   ;;  %v2280_v42 = vld [vmem:[%s2791_s1 + $0x40] sm:$0xff] (!%p138_p2)  }
   0x8   : > { %2165 = vmatpush3.bf16.msra.mxu1 (!%p138_p2), %v2273_v2  ;;  %2154 = vmatprep.subr.bf16.mxu0 (!%p138_p2), %v2316_v1  ;;  %v2279_v8 = vld [vmem:[%s2791_s1 + $0x18] sm:$0xff] (!%p138_p2)   ;;  %vm294_vm7 = vcmask (!%p138_p2), 1047559   ;;  %vm321_vm8 = vcmask (!%p138_p2), 523264   ;;  %v2282_v2 = vld [vmem:[%s2791_s1 + $0x48] sm:$0xff] (!%p138_p2)   ;;  %vm1784_vm9 = vcmask (!%p138_p2), 1040384  }
   0x9   : > { %2166 = vmatprep.subr.bf16.mxu1 (!%p138_p2), %v2316_v1  ;;  %2172 = vmatprep.mubr.msk.bf16.mxu1 (!%p138_p2), %vm2317_vm0, %v2316_v1  ;;  %vm1785_vm10 = vsmask.f32 (!%p138_p2), 256 }
   0xa   : > { %vm2751_vm11 = vmand (!%p138_p2), %vm1784_vm9, %vm1785_vm10 }
   0xb   : > { %2155 = vmatpush3.bf16.msra.mxu0 (!%p138_p2), %v2274_v3 }
   0xc   : > { %2167 = vmatpush3.bf16.msra.mxu1 (!%p138_p2), %v2275_v4  ;;  %2156 = vmatprep.subr.bf16.mxu0 (!%p138_p2), %v2316_v1 }
   0xd   : > { %s2797_s13 = smov (!%p160_p3, %s1864_s13), 1  ;;  %2168 = vmatprep.subr.bf16.mxu1 %v2316_v1 }
   0xe   : > { %s2260_s24 = smul.u32 36, %s2797_s13  ;;  %s1870_s18 = sshll.u32 %s2797_s13, 3 }
   0xf   : > { %2157 = vmatpush3.bf16.msra.mxu0 %v2276_v5  ;;  %s2749_s21 = scalar_lea.vmem %s2793_s3, %s1870_s18 }
  0x10   : > { %s2381_s29 = scalar_lea.vmem %s2790_s0, %s2260_s24  ;;  %2169 = vmatpush3.bf16.msra.mxu1 %v2277_v6  ;;  %2158 = vmatprep.subr.bf16.mxu0 %v2316_v1 }
  0x11   : > { %v1879_v9 = vld.sshfl [vmem:[%s2381_s29] sm:$0x2 pattern:$0x76325410]  ;;  %2170 = vmatprep.subr.bf16.mxu1 %v2316_v1 }
  0x12   : > { %v2391_v10 = vld.sshfl [vmem:[%s2381_s29 + $0x2] sm:$0x2 pattern:$0x76325410]  ;;  %v267_v11 = vunpack.c.l.b16 %v1879_v9 }
  0x13   : > { %v2395_v12 = vld.sshfl [vmem:[%s2381_s29 + $0x4] sm:$0x2 pattern:$0x76325410]  ;;  %v268_v13 = vunpack.c.l.b16 %v2391_v10  ;;  %2159 = vmatpush3.bf16.msra.mxu0 %v2278_v7 }
  0x14   : > { %v2400_v14 = vld.sshfl [vmem:[%s2381_s29 + $0x6] sm:$0x2 pattern:$0x76325410]  ;;  %v269_v15 = vunpack.c.l.b16 %v2395_v12  ;;  %v275_v16 = vrot.slane %v267_v11, 2  ;;  %2171 = vmatpush3.bf16.msra.mxu1 %v2279_v8  ;;  %2176 = vmatprep.subr.bf16.mxu0 %v2316_v1 }
  0x15   : > { %v2404_v17 = vld.sshfl [vmem:[%s2381_s29 + $0x8] sm:$0x2 pattern:$0x76325410]  ;;  %v270_v18 = vunpack.c.l.b16 %v2400_v14  ;;  %v276_v19 = vrot.slane %v268_v13, 1  ;;  %2188 = vmatprep.subr.bf16.mxu1 %v2316_v1  ;;  %v2297_v10 = vld [vmem:[%s2791_s1 + $0xe0] sm:$0xff]  }
  0x16   : > { %v2410_v20 = vld.sshfl [vmem:[%s2381_s29 + $0xa] sm:$0x2 pattern:$0x76325410]  ;;  %v271_v21 = vunpack.c.l.b16 %v2404_v17 }
  0x17   : > { %v2415_v22 = vld.sshfl [vmem:[%s2381_s29 + $0xc] sm:$0x2 pattern:$0x76325410]  ;;  %v272_v23 = vunpack.c.l.b16 %v2410_v20  ;;  %v278_v24 = vsel %vm277_vm1, %v276_v19, %v275_v16  ;;  %v281_v25 = vrot.slane %v270_v18, 7 }
  0x18   : > { %v2422_v26 = vld.sshfl [vmem:[%s2381_s29 + $0xe] sm:$0x2 pattern:$0x76325410]  ;;  %v273_v27 = vunpack.c.l.b16 %v2415_v22  ;;  %v280_v28 = vsel %vm279_vm2, %v269_v15, %v278_v24  ;;  %v284_v29 = vrot.slane %v271_v21, 6  ;;  %v2281_v24 = vld [vmem:[%s2791_s1 + $0x60] sm:$0xff]  }
  0x19   : > { %v274_v30 = vunpack.c.l.b16 %v2422_v26  ;;  %v283_v31 = vsel %vm282_vm3, %v281_v25, %v280_v28  ;;  %v287_v32 = vrot.slane %v272_v23, 5  ;;  %v1892_v33 = vld.sshfl [vmem:[%s2381_s29] sm:$0x1 pattern:$0x76325410]  ;;  %v2284_v25 = vld [vmem:[%s2791_s1 + $0x50] sm:$0xff]  }
  0x1a   : > { %v286_v34 = vsel %vm285_vm4, %v284_v29, %v283_v31  ;;  %v290_v35 = vrot.slane %v273_v27, 4  ;;  %v1893_v36 = vld.sshfl [vmem:[%s2381_s29 + $0x2] sm:$0x1 pattern:$0x76325410]  ;;  %v429_v40 = vunpack.c.l.b16 %v1892_v33  ;;  %v2299_v22 = vld [vmem:[%s2791_s1 + $0xe8] sm:$0xff]  }
  0x1b   : > { %v289_v37 = vsel %vm288_vm5, %v287_v32, %v286_v34  ;;  %v293_v38 = vrot.slane %v274_v30, 3  ;;  %v1894_v39 = vld.sshfl [vmem:[%s2381_s29 + $0x4] sm:$0x1 pattern:$0x76325410]  ;;  %v2444_v41 = vunpack.c.l.b16 %v1893_v36 }
  0x1c   : > { %v292_v43 = vsel %vm291_vm6, %v290_v35, %v289_v37  ;;  %v1895_v44 = vld.sshfl [vmem:[%s2381_s29 + $0x6] sm:$0x1 pattern:$0x76325410]  ;;  %v2451_v45 = vunpack.c.l.b16 %v1894_v39  ;;  %v608_v50 = vrot.slane %v429_v40, 1  ;;  %v2286_v39 = vld [vmem:[%s2791_s1 + $0x58] sm:$0xff]  }
  0x1d   : > { %v295_v46 = vsel %vm294_vm7, %v293_v38, %v292_v43  ;;  %v1896_v47 = vld.sshfl [vmem:[%s2381_s29 + $0x8] sm:$0x1 pattern:$0x76325410]  ;;  %v2455_v48 = vunpack.c.l.b16 %v1895_v44  ;;  %v437_v49 = vrot.slane %v2444_v41, 7  ;;  %v1642_v14 = vrot.slane %v2444_v41, 1 }
  0x1e   : > { %v296_v51 = vpack.c.b16 %v295_v46, %v295_v46  ;;  %v1897_v52 = vld.sshfl [vmem:[%s2381_s29 + $0xa] sm:$0x1 pattern:$0x76325410]  ;;  %v2459_v53 = vunpack.c.l.b16 %v1896_v47  ;;  %v439_v54 = vrot.slane %v2451_v45, 6  ;;  %v610_v55 = vrot.slane %v2451_v45, 7 }
  0x1f   : > { %v1898_v56 = vld.sshfl [vmem:[%s2381_s29 + $0xc] sm:$0x1 pattern:$0x76325410]  ;;  %v2464_v57 = vunpack.c.l.b16 %v1897_v52  ;;  %v438_v58 = vsel %vm277_vm1, %v437_v49, %v429_v40  ;;  %v441_v59 = vrot.slane %v2455_v48, 5  ;;  %v609_v60 = vsel %vm277_vm1, %v2444_v41, %v608_v50 }
  0x20   : > { %2161 = vmatmul.mubr.msk.bf16.vlgmr.msra.gmra.mrb[0].mxu0 %vm321_vm8, %v296_v51  ;;  %v1899_v61 = vld.sshfl [vmem:[%s2381_s29 + $0xe] sm:$0x1 pattern:$0x76325410]  ;;  %v2472_v62 = vunpack.c.l.b16 %v1898_v56  ;;  %v440_v63 = vsel %vm279_vm2, %v439_v54, %v438_v58  ;;  %v443_v0 = vrot.slane %v2459_v53, 4  ;;  %v611_v3 = vsel %vm279_vm2, %v610_v55, %v609_v60  ;;  %v2285_v58 = vld [vmem:[%s2791_s1 + $0x70] sm:$0xff]  }
  0x21   : > { %v2482_v4 = vunpack.c.l.b16 %v1899_v61  ;;  %v442_v5 = vsel %vm282_vm3, %v441_v59, %v440_v63  ;;  %v445_v6 = vrot.slane %v2464_v57, 3  ;;  %2177 = vmatpush3.bf16.msra.mxu0 %v2280_v42  ;;  %2184 = vmatprep.mubr.msk.bf16.mxu0 %vm2317_vm0, %v2316_v1  ;;  %v612_v7 = vrot.slane %v2455_v48, 6  ;;  %v2283_v38 = vld [vmem:[%s2791_s1 + $0x68] sm:$0xff]  }
  0x22   : > { %v444_v8 = vsel %vm285_vm4, %v443_v0, %v442_v5  ;;  %v447_v9 = vrot.slane %v2472_v62, 2  ;;  %2178 = vmatprep.subr.bf16.mxu0 %v2316_v1  ;;  %v614_v11 = vrot.slane %v2459_v53, 5  ;;  %v616_v29 = vrot.slane %v2464_v57, 4  ;;  %v2288_v0 = vld [vmem:[%s2791_s1 + $0x80] sm:$0xff]  }
  0x23   : > { %v446_v16 = vsel %vm288_vm5, %v445_v6, %v444_v8  ;;  %v449_v19 = vrot.slane %v2482_v4, 1  ;;  %v613_v28 = vsel %vm282_vm3, %v612_v7, %v611_v3  ;;  %v618_v35 = vrot.slane %v2472_v62, 3  ;;  %v1942_v42 = vld.sshfl [vmem:[%s2381_s29 + $0x12] sm:$0x1 pattern:$0x76325410] }
  0x24   : > { %v448_v31 = vsel %vm291_vm6, %v447_v9, %v446_v16  ;;  %v615_v32 = vsel %vm285_vm4, %v614_v11, %v613_v28  ;;  %v620_v36 = vrot.slane %v2482_v4, 2  ;;  %v1943_v43 = vld.sshfl [vmem:[%s2381_s29 + $0x14] sm:$0x1 pattern:$0x76325410]  ;;  %v773_v47 = vunpack.c.l.b16 %v1942_v42 }
  0x25   : > { %v450_v33 = vsel %vm294_vm7, %v449_v19, %v448_v31  ;;  %2179 = vmatpush3.bf16.msra.mxu0 %v2282_v2  ;;  %v617_v34 = vsel %vm288_vm5, %v616_v29, %v615_v32  ;;  %v1944_v46 = vld.sshfl [vmem:[%s2381_s29 + $0x16] sm:$0x1 pattern:$0x76325410]  ;;  %v774_v49 = vunpack.c.l.b16 %v1943_v43  ;;  %v2290_v32 = vld [vmem:[%s2791_s1 + $0x88] sm:$0xff]  }
  0x26   : > { %v451_v37 = vpack.c.b16 %v450_v33, %v450_v33  ;;  %2180 = vmatprep.subr.bf16.mxu0 %v2316_v1  ;;  %v619_v40 = vsel %vm291_vm6, %v618_v35, %v617_v34  ;;  %v1945_v50 = vld.sshfl [vmem:[%s2381_s29 + $0x18] sm:$0x1 pattern:$0x76325410]  ;;  %v775_v51 = vunpack.c.l.b16 %v1944_v46  ;;  %v2289_v46 = vld [vmem:[%s2791_s1 + $0xa0] sm:$0xff]  }
  0x27   : > { %v621_v44 = vsel %vm294_vm7, %v620_v36, %v619_v40  ;;  %v1946_v52 = vld.sshfl [vmem:[%s2381_s29 + $0x1a] sm:$0x1 pattern:$0x76325410]  ;;  %v776_v54 = vunpack.c.l.b16 %v1945_v50  ;;  %v781_v56 = vrot.slane %v774_v49, 7 }
  0x28   : > { %2173 = vmatmul.mubr.msk.bf16.vlgmr.msra.gmra.mrb[0].mxu1 %vm321_vm8, %v451_v37  ;;  %v622_v59 = vpack.c.b16 %v621_v44, %v621_v44  ;;  %v2542_v60 = vld.sshfl [vmem:[%s2381_s29 + $0x1c] sm:$0x1 pattern:$0x76325410]  ;;  %v777_v61 = vunpack.c.l.b16 %v1946_v52  ;;  %v783_v63 = vrot.slane %v775_v51, 6  ;;  %v1125_v37 = vrot.slane %v773_v47, 1 }
  0x29   : > { %2189 = vmatpush3.bf16.msra.mxu1 %v2281_v24  ;;  %2181 = vmatpush3.bf16.msra.mxu0 %v2284_v25  ;;  %v1948_v2 = vld.sshfl [vmem:[%s2381_s29 + $0x1e] sm:$0x1 pattern:$0x76325410]  ;;  %v778_v3 = vunpack.c.l.b16 %v2542_v60  ;;  %v782_v5 = vsel %vm277_vm1, %v781_v56, %v773_v47  ;;  %v785_v6 = vrot.slane %v776_v54, 5  ;;  %v1127_v40 = vrot.slane %v775_v51, 7 }
  0x2a   : > { %2190 = vmatprep.subr.bf16.mxu1 %v2316_v1  ;;  %2182 = vmatprep.subr.bf16.mxu0 %v2316_v1  ;;  %v2553_v8 = vld.sshfl [vmem:[%s2381_s29 + $0x20] sm:$0x1 pattern:$0x76325410]  ;;  %v779_v9 = vunpack.c.l.b16 %v1948_v2  ;;  %v784_v16 = vsel %vm279_vm2, %v783_v63, %v782_v5  ;;  %v787_v19 = vrot.slane %v777_v61, 4  ;;  %v2287_v24 = vld [vmem:[%s2791_s1 + $0x78] sm:$0xff]   ;;  %v1126_v43 = vsel %vm277_vm1, %v774_v49, %v1125_v37 }
  0x2b   : > { %2196 = vmatprep.mubr.msk.bf16.mxu1 %vm2317_vm0, %v2316_v1  ;;  %v780_v25 = vunpack.c.l.b16 %v2553_v8  ;;  %v786_v28 = vsel %vm282_vm3, %v785_v6, %v784_v16  ;;  %v789_v31 = vrot.slane %v778_v3, 3  ;;  %v2292_v47 = vld [vmem:[%s2791_s1 + $0x90] sm:$0xff]   ;;  %v1974_v60 = vld.sshfl [vmem:[%s2381_s29 + $0x18] sm:$0x2 pattern:$0x76325410] }
  0x2c   : > { %v788_v33 = vsel %vm285_vm4, %v787_v19, %v786_v28  ;;  %v791_v34 = vrot.slane %v779_v9, 2  ;;  %v1971_v50 = vld.sshfl [vmem:[%s2381_s29 + $0x12] sm:$0x2 pattern:$0x76325410]  ;;  %v1129_v2 = vrot.slane %v776_v54, 6  ;;  %v948_v16 = vunpack.c.l.b16 %v1974_v60 }
  0x2d   : > { %2191 = vmatpush3.bf16.msra.mxu1 %v2283_v38  ;;  %2183 = vmatpush3.bf16.msra.mxu0 %v2286_v39  ;;  %v790_v38 = vsel %vm288_vm5, %v789_v31, %v788_v33  ;;  %v793_v39 = vrot.slane %v780_v25, 1  ;;  %v1972_v52 = vld.sshfl [vmem:[%s2381_s29 + $0x14] sm:$0x2 pattern:$0x76325410]  ;;  %v945_v56 = vunpack.c.l.b16 %v1971_v50  ;;  %v2291_v5 = vld [vmem:[%s2791_s1 + $0xa8] sm:$0xff]  }
  0x2e   : > { %2192 = vmatprep.subr.bf16.mxu1 %v2316_v1  ;;  %2200 = vmatprep.subr.bf16.mxu0 %v2316_v1  ;;  %v792_v42 = vsel %vm291_vm6, %v791_v34, %v790_v38  ;;  %v1973_v49 = vld.sshfl [vmem:[%s2381_s29 + $0x16] sm:$0x2 pattern:$0x76325410]  ;;  %v1133_v33 = vrot.slane %v778_v3, 4  ;;  %v1135_v34 = vrot.slane %v779_v9, 3 }
  0x2f   : > { %v794_v44 = vsel %vm294_vm7, %v793_v39, %v792_v42  ;;  %v947_v63 = vunpack.c.l.b16 %v1973_v49  ;;  %v1975_v6 = vld.sshfl [vmem:[%s2381_s29 + $0x1a] sm:$0x2 pattern:$0x76325410]  ;;  %v2293_v49 = vld [vmem:[%s2791_s1 + $0xb0] sm:$0xff]  }
  0x30   : > { %2185 = vmatmul.mubr.msk.bf16.vlgmr.msra.gmra.mrb[4].mxu0 %vm321_vm8, %v622_v59  ;;  %v795_v51 = vpack.c.b16 %v794_v44, %v794_v44  ;;  %v1128_v59 = vsel %vm279_vm2, %v1127_v40, %v1126_v43  ;;  %v1976_v28 = vld.sshfl [vmem:[%s2381_s29 + $0x1c] sm:$0x2 pattern:$0x76325410]  ;;  %v949_v31 = vunpack.c.l.b16 %v1975_v6  ;;  %v1299_v6 = vsel %vm277_vm1, %v610_v55, %v2444_v41 }
  0x31   : > { %2193 = vmatpush3.bf16.msra.mxu1 %v2285_v58  ;;  %2201 = vmatpush3.bf16.msra.mxu0 %v2288_v0  ;;  %v946_v58 = vunpack.c.l.b16 %v1972_v52  ;;  %v953_v0 = vrot.slane %v945_v56, 2  ;;  %v2294_v54 = vld [vmem:[%s2791_s1 + $0x98] sm:$0xff]   ;;  %v950_v38 = vunpack.c.l.b16 %v1976_v28  ;;  %v1978_v42 = vld.sshfl [vmem:[%s2381_s29 + $0x20] sm:$0x2 pattern:$0x76325410] }
  0x32   : > { %2194 = vmatprep.subr.bf16.mxu1 %v2316_v1  ;;  %2202 = vmatprep.subr.bf16.mxu0 %v2316_v1  ;;  %v1977_v37 = vld.sshfl [vmem:[%s2381_s29 + $0x1e] sm:$0x2 pattern:$0x76325410]  ;;  %v959_v43 = vrot.slane %v949_v31, 6  ;;  %v1137_v56 = vrot.slane %v780_v25, 2 }
  0x33   : > { %2208 = vmatprep.mubr.msk.bf16.mxu0 %vm2317_vm0, %v2316_v1  ;;  %v954_v19 = vrot.slane %v946_v58, 1  ;;  %v951_v3 = vunpack.c.l.b16 %v1977_v37  ;;  %v961_v50 = vrot.slane %v950_v38, 5  ;;  %v2296_v25 = vld [vmem:[%s2791_s1 + $0xc0] sm:$0xff]   ;;  %v1470_v31 = vrot.slane %v268_v13, 2 }
  0x34   : > { %v1646_v37 = vrot.slane %v2459_v53, 6  ;;  %v1648_v38 = vrot.slane %v2464_v57, 5  ;;  %v1480_v41 = vrot.slane %v274_v30, 4 }
  0x35   : > { %2195 = vmatpush3.bf16.msra.mxu1 %v2287_v24  ;;  %2203 = vmatpush3.bf16.msra.mxu0 %v2290_v32  ;;  %v1131_v24 = vrot.slane %v777_v61, 5  ;;  %v1130_v32 = vsel %vm282_vm3, %v1129_v2, %v1128_v59  ;;  %v955_v39 = vsel %vm277_vm1, %v954_v19, %v953_v0  ;;  %v957_v61 = vrot.slane %v948_v16, 7  ;;  %v2298_v16 = vld [vmem:[%s2791_s1 + $0xc8] sm:$0xff]  }
  0x36   : > { %2212 = vmatprep.subr.bf16.mxu1 %v2316_v1  ;;  %2204 = vmatprep.subr.bf16.mxu0 %v2316_v1  ;;  %v956_v9 = vsel %vm279_vm2, %v947_v63, %v955_v39  ;;  %v963_v52 = vrot.slane %v951_v3, 4  ;;  %v2036_v19 = vld.sshfl [vmem:[%s2381_s29 + $0x10] sm:$0x1 pattern:$0x76325410]  ;;  %v2302_v39 = vld [vmem:[%s2791_s1 + $0xd8] sm:$0xff]  }
  0x37   : > { %v1132_v40 = vsel %vm285_vm4, %v1131_v24, %v1130_v32  ;;  %v1301_v24 = vsel %vm279_vm2, %v612_v7, %v1299_v6  ;;  %v1297_v28 = vunpack.c.l.b16 %v2036_v19  ;;  %v1471_v32 = vrot.slane %v269_v15, 1  ;;  %v2300_v15 = vld [vmem:[%s2791_s1 + $0xd0] sm:$0xff]  }
  0x38   : > { %2197 = vmatmul.mubr.msk.bf16.vlgmr.msra.gmra.mrb[4].mxu1 %vm321_vm8, %v795_v51  ;;  %v1134_v44 = vsel %vm288_vm5, %v1133_v33, %v1132_v40  ;;  %v1303_v55 = vsel %vm282_vm3, %v614_v11, %v1301_v24  ;;  %v1476_v11 = vrot.slane %v272_v23, 6  ;;  %v1478_v23 = vrot.slane %v273_v27, 5 }
  0x39   : > { %2213 = vmatpush3.bf16.msra.mxu1 %v2289_v46  ;;  %2205 = vmatpush3.bf16.msra.mxu0 %v2292_v47  ;;  %v952_v46 = vunpack.c.l.b16 %v1978_v42  ;;  %v958_v47 = vsel %vm282_vm3, %v957_v61, %v956_v9  ;;  %v1136_v60 = vsel %vm291_vm6, %v1135_v34, %v1134_v44  ;;  %v1305_v7 = vsel %vm285_vm4, %v616_v29, %v1303_v55  ;;  %v2065_v34 = vld.sshfl [vmem:[%s2381_s29 + $0x10] sm:$0x2 pattern:$0x76325410] }
  0x3a   : > { %2214 = vmatprep.subr.bf16.mxu1 %v2316_v1  ;;  %2206 = vmatprep.subr.bf16.mxu0 %v2316_v1  ;;  %v960_v51 = vsel %vm285_vm4, %v959_v43, %v958_v47  ;;  %v1138_v2 = vsel %vm294_vm7, %v1137_v56, %v1136_v60  ;;  %v1307_v12 = vsel %vm288_vm5, %v618_v35, %v1305_v7  ;;  %v1310_v20 = vrot.slane %v1297_v28, 1  ;;  %v2304_v43 = vld [vmem:[%s2791_s1 + $0x100] sm:$0xff]   ;;  %v2303_v47 = vld [vmem:[%s2791_s1 + $0xf8] sm:$0xff]   ;;  %v2306_v56 = vld [vmem:[%s2791_s1 + $0x110] sm:$0xff]  }
  0x3b   : > { %2220 = vmatprep.mubr.msk.bf16.mxu1 %vm2317_vm0, %v2316_v1  ;;  %v962_v58 = vsel %vm288_vm5, %v961_v50, %v960_v51  ;;  %v965_v59 = vrot.slane %v952_v46, 3  ;;  %v1139_v33 = vpack.c.b16 %v1138_v2, %v1138_v2  ;;  %v1472_v13 = vsel %vm277_vm1, %v1471_v32, %v1470_v31  ;;  %v2305_v51 = vld [vmem:[%s2791_s1 + $0x108] sm:$0xff]  }
  0x3c   : > { %v964_v63 = vsel %vm291_vm6, %v963_v52, %v962_v58  ;;  %v1473_v17 = vsel %vm279_vm2, %v270_v18, %v1472_v13  ;;  %v1309_v29 = vsel %vm291_vm6, %v620_v36, %v1307_v12  ;;  %v1644_v18 = vrot.slane %v2455_v48, 7 }
  0x3d   : > { %2215 = vmatpush3.bf16.msra.mxu1 %v2291_v5  ;;  %2207 = vmatpush3.bf16.msra.mxu0 %v2294_v54  ;;  %v966_v8 = vsel %vm294_vm7, %v965_v59, %v964_v63  ;;  %v2295_v5 = vld [vmem:[%s2791_s1 + $0xb8] sm:$0xff]   ;;  %v1474_v54 = vrot.slane %v271_v21, 7  ;;  %v1469_v27 = vunpack.c.l.b16 %v2065_v34  ;;  %v1643_v48 = vsel %vm277_vm1, %v2451_v45, %v1642_v14  ;;  %v2301_v45 = vld [vmem:[%s2791_s1 + $0xf0] sm:$0xff]  }
  0x3e   : > { %2216 = vmatprep.subr.bf16.mxu1 %v2316_v1  ;;  %2224 = vmatprep.subr.bf16.mxu0 %v2316_v1  ;;  %v967_v0 = vpack.c.b16 %v966_v8, %v966_v8  ;;  %v1650_v36 = vrot.slane %v2472_v62, 4  ;;  %v1311_v61 = vsel %vm294_vm7, %v1310_v20, %v1309_v29  ;;  %v1645_v57 = vsel %vm279_vm2, %v1644_v18, %v1643_v48 }
  0x3f   : > { %v1475_v21 = vsel %vm282_vm3, %v1474_v54, %v1473_v17  ;;  %v1652_v40 = vrot.slane %v2482_v4, 3  ;;  %v1647_v26 = vsel %vm282_vm3, %v1646_v37, %v1645_v57  ;;  %v1654_v30 = vrot.slane %v1297_v28, 2 }
  0x40   : > { %2209 = vmatmul.mubr.msk.bf16.vlgmr.msra.gmra.mrb[8].mxu0 %vm321_vm8, %v967_v0  ;;  %v1477_v35 = vsel %vm285_vm4, %v1476_v11, %v1475_v21  ;;  %v1482_v62 = vrot.slane %v1469_v27, 3  ;;  %v1649_v42 = vsel %vm285_vm4, %v1648_v38, %v1647_v26  ;;  %v1312_v3 = vpack.c.b16 %v1311_v61, %v1311_v61 }
  0x41   : > { %2217 = vmatpush3.bf16.msra.mxu1 %v2293_v49  ;;  %2225 = vmatpush3.bf16.msra.mxu0 %v2296_v25  ;;  %v1479_v53 = vsel %vm288_vm5, %v1478_v23, %v1477_v35  ;;  %v1651_v4 = vsel %vm288_vm5, %v1650_v36, %v1649_v42  ;;  %v2307_v49 = vld [vmem:[%s2791_s1 + $0x118] sm:$0xff]   ;;  %v2318_v48 = vmov 1966171168  }
  0x42   : > { %2218 = vmatprep.subr.bf16.mxu1 %v2316_v1  ;;  %2232 = vmatprep.mubr.msk.bf16.mxu0 %vm2317_vm0, %v2316_v1  ;;  %v1481_v9 = vsel %vm291_vm6, %v1480_v41, %v1479_v53  ;;  %v1653_v44 = vsel %vm291_vm6, %v1652_v40, %v1651_v4  ;;  %v1737_v36 = vunpack.c.l.s4 %v2318_v48  ;;  %v2100_v53 = vld [vmem:[%s2792_s2] ss:$0 sm:$0xff] }
  0x43   : > { %2226 = vmatprep.subr.bf16.mxu0 %v2316_v1  ;;  %v1655_v46 = vsel %vm294_vm7, %v1654_v30, %v1653_v44  ;;  %v1483_v50 = vsel %vm294_vm7, %v1482_v62, %v1481_v9 }
  0x44   : > { %v1484_v52 = vpack.c.b16 %v1483_v50, %v1483_v50  ;;  %v1656_v58 = vpack.c.b16 %v1655_v46, %v1655_v46  ;;  %v1738_v40 = vunpack.c.0.s8 %v1737_v36 }
  0x45   : > { %2219 = vmatpush3.bf16.msra.mxu1 %v2295_v5  ;;  %2227 = vmatpush3.bf16.msra.mxu0 %v2298_v16 }
  0x46   : > { %2236 = vmatprep.subr.bf16.mxu1 %v2316_v1  ;;  %2228 = vmatprep.subr.bf16.mxu0 %v2316_v1 }
  0x48   : > { %2221 = vmatmul.mubr.msk.bf16.vlgmr.msra.gmra.mrb[8].mxu1 %vm321_vm8, %v1139_v33 }
  0x49   : > { %2237 = vmatpush3.bf16.msra.mxu1 %v2297_v10  ;;  %2244 = vmatprep.mubr.msk.bf16.mxu1 %vm2317_vm0, %v2316_v1 }
  0x4a   : > { %2238 = vmatprep.subr.bf16.mxu1 %v2316_v1  ;;  %2229 = vmatpush3.bf16.msra.mxu0 %v2300_v15 }
  0x4b   : > { %2230 = vmatprep.subr.bf16.mxu0 %v2316_v1 }
  0x4d   : > { %2239 = vmatpush3.bf16.msra.mxu1 %v2299_v22 }
  0x4e   : > { %2240 = vmatprep.subr.bf16.mxu1 %v2316_v1  ;;  %2231 = vmatpush3.bf16.msra.mxu0 %v2302_v39  ;;  %v1739_v39 = vlaneseq }
  0x4f   : > { %2248 = vmatprep.subr.bf16.mxu0 %v2316_v1 }
  0x50   : > { %v1740_v26 = vshrl.u32 %v1739_v39, 7 }
  0x51   : > { %2241 = vmatpush3.bf16.msra.mxu1 %v2301_v45  ;;  %2233 = vmatmul.mubr.msk.bf16.vlgmr.msra.gmra.mrb[12].mxu0 %vm321_vm8, %v1312_v3 }
  0x52   : > { %2242 = vmatprep.subr.bf16.mxu1 %v2316_v1  ;;  %2249 = vmatpush3.bf16.msra.mxu0 %v2304_v43  ;;  %v1741_v9 = vsub.s32 %v1738_v40, %v1740_v26 }
  0x53   : > { %2256 = vmatprep.mubr.msk.bf16.mxu0 %vm2317_vm0, %v2316_v1  ;;  %2250 = vmatprep.subr.bf16.mxu0 %v2316_v1 }
  0x55   : > { %2243 = vmatpush3.bf16.msra.mxu1 %v2303_v47 }
  0x56   : > { %2251 = vmatpush3.bf16.msra.mxu0 %v2305_v51 }
  0x57   : > { %2252 = vmatprep.subr.bf16.mxu0 %v2316_v1 }
  0x58   : > { %2245 = vmatmul.mubr.msk.bf16.vlgmr.msra.gmra.mrb[12].mxu1 %vm321_vm8, %v1484_v52 }
  0x5a   : > { %2253 = vmatpush3.bf16.msra.mxu0 %v2306_v56 }
  0x5b   : > { %2254 = vmatprep.subr.bf16.mxu0 %v2316_v1 }
  0x5e   : > { %2255 = vmatpush3.bf16.msra.mxu0 %v2307_v49  ;;  %v1787_v49 = vld [vmem:[%s2749_s21] sm:$0x1] }
  0x61   : > { %2257 = vmatmul.mubr.msk.bf16.vlgmr.msra.gmra.mrb[16].mxu0 %vm321_vm8, %v1656_v58 }
  0xf3   : > { %v359_v59 = vpop.f32.mrb[0].mxu0 }
  0xf4   : > { %v2162_v60 = vpop.f32.mrb[1].mxu0 }
  0xf5   : > { %v362_v63 = vpop.f32.mrb[2].mxu0 }
  0xf6   : > { %v2163_v8 = vpop.f32.mrb[3].mxu0 }
  0xf7   : > { %v1790_v8 = vld [vmem:[%s2749_s21 + $0x1] sm:$0x1] }
  0xfb   : > { %v513_v25 = vpop.f32.mrb[0].mxu1 }
  0xfc   : > { %v514_v0 = vadd.f32 %v513_v25, %v359_v59  ;;  %v2174_v2 = vpop.f32.mrb[1].mxu1  ;;  %v1793_v25 = vld [vmem:[%s2749_s21 + $0x2] sm:$0x1] }
  0xfd   : > { %v516_v5 = vpop.f32.mrb[2].mxu1 }
  0xfe   : > { %v2175_v6 = vpop.f32.mrb[3].mxu1 }
 0x103   : > { %v684_v16 = vpop.f32.mrb[4].mxu0 }
 0x104   : > { %v690_v19 = vadd.f32 %v684_v16, %v514_v0  ;;  %v2186_v24 = vpop.f32.mrb[5].mxu0  ;;  %v1799_v0 = vld [vmem:[%s2749_s21 + $0x4] sm:$0x1]  ;;  %v1796_v16 = vld [vmem:[%s2749_s21 + $0x3] sm:$0x1] }
 0x105   : > { %v687_v28 = vpop.f32.mrb[6].mxu0  ;;  %v1805_v24 = vld [vmem:[%s2749_s21 + $0x6] sm:$0x1] }
 0x106   : > { %v2187_v55 = vpop.f32.mrb[7].mxu0 }
 0x10b   : > { %v857_v31 = vpop.f32.mrb[4].mxu1 }
 0x10c   : > { %v863_v1 = vadd.f32 %v857_v31, %v690_v19  ;;  %v2198_v32 = vpop.f32.mrb[5].mxu1  ;;  %v1802_v19 = vld [vmem:[%s2749_s21 + $0x5] sm:$0x1] }
 0x10d   : > { %v860_v33 = vpop.f32.mrb[6].mxu1 }
 0x10e   : > { %v2199_v7 = vpop.f32.mrb[7].mxu1 }
 0x113   : > { %v1029_v34 = vpop.f32.mrb[8].mxu0 }
 0x114   : > { %v1035_v54 = vadd.f32 %v1029_v34, %v863_v1  ;;  %v2210_v11 = vpop.f32.mrb[9].mxu0  ;;  %v1808_v34 = vld [vmem:[%s2749_s21 + $0x7] sm:$0x1] }
 0x115   : > { %v1032_v10 = vpop.f32.mrb[10].mxu0 }
 0x116   : > { %v2211_v12 = vpop.f32.mrb[11].mxu0 }
 0x11b   : > { %v1201_v13 = vpop.f32.mrb[8].mxu1 }
 0x11c   : > { %v1207_v15 = vadd.f32 %v1201_v13, %v1035_v54  ;;  %v2222_v17 = vpop.f32.mrb[9].mxu1 }
 0x11d   : > { %v1204_v20 = vpop.f32.mrb[10].mxu1 }
 0x11e   : > { %v2223_v21 = vpop.f32.mrb[11].mxu1 }
 0x124   : > { %v1374_v23 = vpop.f32.mrb[12].mxu0 }
 0x125   : > { %v1380_v29 = vadd.f32 %v1374_v23, %v1207_v15  ;;  %v2234_v35 = vpop.f32.mrb[13].mxu0 }
 0x126   : > { %v1377_v14 = vpop.f32.mrb[14].mxu0 }
 0x127   : > { %v2235_v18 = vpop.f32.mrb[15].mxu0 }
 0x12b   : > { %v1546_v22 = vpop.f32.mrb[12].mxu1 }
 0x12c   : > { %v1552_v27 = vadd.f32 %v1546_v22, %v1380_v29  ;;  %v2246_v37 = vpop.f32.mrb[13].mxu1 }
 0x12d   : > { %v1549_v38 = vpop.f32.mrb[14].mxu1 }
 0x12e   : > { %v2247_v41 = vpop.f32.mrb[15].mxu1 }
 0x134   : > { %v1718_v61 = vpop.f32.mrb[16].mxu0 }
 0x135   : > { %v1724_v57 = vadd.f32 %v1718_v61, %v1552_v27  ;;  %v2258_v30 = vpop.f32.mrb[17].mxu0 }
 0x136   : > { %v1721_v45 = vpop.f32.mrb[18].mxu0 }
 0x137   : > { %v1732_v62 = vadd.f32 %v2100_v53, %v1724_v57  ;;  %v2259_v42 = vpop.f32.mrb[19].mxu0 }
 0x139   : > { %v1733_v3 = vmax.f32 %v1732_v62, 0.0 }
 0x13b   : > { %v1734_v4 = vpack.c.bf16 %v1733_v3, %v1733_v3 }
 0x13d   : > { %v1742_v43 = vrot.slane %v1734_v4, %v1741_v9 }
 0x13f   : > { %v1743_v44 = vcombine.high %v1742_v43, %v1742_v43  ;;  %v1750_v46 = vrot.slane %v1742_v43, %v1741_v9 }
 0x141   : > { %v1757_v47 = vrot.slane %v1743_v44, %v1741_v9  ;;  %v1758_v50 = vcombine.high %v1750_v46, %v1750_v46  ;;  %v1761_v51 = vunpack.i.h.s16 %v1750_v46  ;;  %v2101_v52 = vpack.i.b16 %v1750_v46, %v1750_v46 }
 0x143   : > { %v1759_v58 = vcombine.high %v1757_v47, %v1757_v47  ;;  %v1763_v59 = vunpack.i.h.s16 %v1757_v47  ;;  %v1765_v60 = vunpack.i.h.s16 %v1758_v50  ;;  %v1769_v63 = vpack.i.b16 %v1761_v51, %v1761_v51 }
 0x144   : > { %v2102_v2 = vpack.i.b16 %v1757_v47, %v1757_v47  ;;  %v2103_v5 = vpack.i.b16 %v1758_v50, %v1758_v50  ;;  %v1788_v6 = vsel %vm2751_vm11, %v2101_v52, %v1787_v49 }
 0x145   : > { %v1767_v28 = vunpack.i.h.s16 %v1759_v58  ;;  %v1771_v55 = vpack.i.b16 %v1763_v59, %v1763_v59  ;;  %v1773_v31 = vpack.i.b16 %v1765_v60, %v1765_v60  ;;  %v2104_v1 = vpack.i.b16 %v1759_v58, %v1759_v58  ;;  %1789 = vst [vmem:[%s2749_s21] sm:$0x1] %v1788_v6 }
 0x146   : > { %v1791_v32 = vsel %vm2751_vm11, %v1769_v63, %v1790_v8  ;;  %v1794_v33 = vsel %vm2751_vm11, %v2102_v2, %v1793_v25  ;;  %v1800_v7 = vsel %vm2751_vm11, %v2103_v5, %v1799_v0 }
 0x147   : > { %v1775_v54 = vpack.i.b16 %v1767_v28, %v1767_v28  ;;  %1792 = vst [vmem:[%s2749_s21 + $0x1] sm:$0x1] %v1791_v32  ;;  %1795 = vst [vmem:[%s2749_s21 + $0x2] sm:$0x1] %v1794_v33  ;;  %v1797_v11 = vsel %vm2751_vm11, %v1771_v55, %v1796_v16  ;;  %v1803_v10 = vsel %vm2751_vm11, %v1773_v31, %v1802_v19 }
 0x148   : > { %1801 = vst [vmem:[%s2749_s21 + $0x4] sm:$0x1] %v1800_v7  ;;  %v1806_v12 = vsel %vm2751_vm11, %v2104_v1, %v1805_v24  ;;  %1798 = vst [vmem:[%s2749_s21 + $0x3] sm:$0x1] %v1797_v11 }
 0x149   : > { %1804 = vst [vmem:[%s2749_s21 + $0x5] sm:$0x1] %v1803_v10  ;;  %1807 = vst [vmem:[%s2749_s21 + $0x6] sm:$0x1] %v1806_v12  ;;  %v1809_v13 = vsel %vm2751_vm11, %v1775_v54, %v1808_v34 }
 0x14a   : > { %1810 = vst [vmem:[%s2749_s21 + $0x7] sm:$0x1] %v1809_v13 }
 0x14b PF: > { %s13_s12 = sadd.s32 1, %s2314_s12  }
 0x14c   : > { %p10_p4 = scmp.ge.s32.totalorder %s13_s12, 4  }
 0x14e   :  { %12 = sbr.rel (!%p10_p4) target bundleno = 1 (0x1), region = 72 }

</bundles_post_ra>
